<compile_context>
chip_gen: v7x
topology: tpu7x:2x2x1
jax: 0.10.0
libtpu: 0.0.40
codegen_flags: <defaults>
</compile_context>

<pallas_src>
import functools

import jax
import jax.numpy as jnp
from jax.experimental import pallas as pl
from jax.experimental.pallas import tpu as pltpu


# ----------------------------------------------------------------------------
# helpers
# ----------------------------------------------------------------------------
def _round_up(x, m):
    return (x + m - 1) // m * m


def _pick_tile(dim, prefs):
    """Largest preferred tile that evenly divides `dim`, else full extent."""
    for p in prefs:
        if dim >= p and dim % p == 0:
            return p
    return dim


# ----------------------------------------------------------------------------
# Pallas kernels
# ----------------------------------------------------------------------------
def _mm_kernel(a_ref, b_ref, bias_ref, *rest, act, has_residual):
    """Tiled matmul with K-accumulation and fused BN-bias / residual / act epilogue."""
    if has_residual:
        res_ref, o_ref, acc_ref = rest
    else:
        o_ref, acc_ref = rest
        res_ref = None

    @pl.when(pl.program_id(2) == 0)
    def _init():
        acc_ref[...] = jnp.zeros_like(acc_ref)

    acc_ref[...] += jnp.dot(a_ref[...], b_ref[...],
                            preferred_element_type=jnp.float32)

    @pl.when(pl.program_id(2) == pl.num_programs(2) - 1)
    def _epilogue():
        out = acc_ref[...] + bias_ref[...]
        if has_residual:
            out = out + res_ref[...].astype(jnp.float32)
        if act == "relu":
            out = jnp.maximum(out, 0.0)
        o_ref[...] = out.astype(o_ref.dtype)


def _head_kernel(x_ref, w1_ref, b1_ref, w2t_ref, b2_ref, o_ref, *, inv_hw):
    """Global avg-pool + fc1 + ReLU + Dropout(id) + fc2 + sigmoid, all fused."""
    x = jnp.sum(x_ref[...].astype(jnp.float32), axis=1) * inv_hw      # (B, 512)
    h = jnp.dot(x, w1_ref[...], preferred_element_type=jnp.float32) + b1_ref[...]
    h = jnp.maximum(h, 0.0)                                            # ReLU (Dropout = identity, eval)
    y = jnp.sum(h * w2t_ref[...], axis=1, keepdims=True) + b2_ref[...]  # (B, 1)
    o_ref[...] = 0.5 * (jnp.tanh(0.5 * y) + 1.0)                        # stable sigmoid


# ----------------------------------------------------------------------------
# fused matmul wrapper (tiled, bf16 operands, f32 accumulation)
# ----------------------------------------------------------------------------
def fused_matmul(a, b, bias, residual=None, act=None, out_dtype=jnp.bfloat16):
    """act(a @ b + bias [+ residual]); bias broadcast over rows."""
    M, K = a.shape
    K2, N = b.shape
    assert K == K2

    a = a.astype(jnp.bfloat16)
    b = b.astype(jnp.bfloat16)
    if residual is not None:
        residual = residual.astype(jnp.bfloat16)
    bias2 = bias.reshape(1, N).astype(jnp.float32)

    # Tile selection: full-extent blocks are legal, so small / non-multiple
    # dims need no padding at all.
    tn = _pick_tile(N, (256, 128))
    tk = _pick_tile(K, (512, 256, 128))
    if M > 256:
        tm = 256
        Mp = _round_up(M, tm)
    else:
        Mp = _round_up(M, 16)          # bf16 sublane packing
        tm = Mp
    if Mp != M:
        a = jnp.zeros((Mp, K), a.dtype).at[:M].set(a)
        if residual is not None:
            residual = jnp.zeros((Mp, N), residual.dtype).at[:M].set(residual)

    has_residual = residual is not None
    grid = (Mp // tm, N // tn, K // tk)

    in_specs = [
        pl.BlockSpec((tm, tk), lambda i, j, k: (i, k)),
        pl.BlockSpec((tk, tn), lambda i, j, k: (k, j)),
        pl.BlockSpec((1, tn), lambda i, j, k: (0, j)),
    ]
    args = [a, b, bias2]
    if has_residual:
        in_specs.append(pl.BlockSpec((tm, tn), lambda i, j, k: (i, j)))
        args.append(residual)

    out = pl.pallas_call(
        functools.partial(_mm_kernel, act=act, has_residual=has_residual),
        out_shape=jax.ShapeDtypeStruct((Mp, N), out_dtype),
        grid=grid,
        in_specs=in_specs,
        out_specs=pl.BlockSpec((tm, tn), lambda i, j, k: (i, j)),
        scratch_shapes=[pltpu.VMEM((tm, tn), jnp.float32)],
        compiler_params=pltpu.CompilerParams(
            dimension_semantics=("parallel", "parallel", "arbitrary"),
            vmem_limit_bytes=32 * 1024 * 1024,
        ),
    )(*args)
    return out[:M] if Mp != M else out


# ----------------------------------------------------------------------------
# JAX glue (patch extraction, pooling, layer wiring)
# ----------------------------------------------------------------------------
def im2col(x, kh, kw, stride, pad):
    """x: (N, H, W, C) -> patches (N, OH, OW, kh*kw, C)."""
    N, H, W, C = x.shape
    xp = jnp.pad(x, ((0, 0), (pad, pad), (pad, pad), (0, 0)))
    OH = (H + 2 * pad - kh) // stride + 1
    OW = (W + 2 * pad - kw) // stride + 1
    cols = []
    for i in range(kh):
        for j in range(kw):
            cols.append(
                xp[:, i : i + stride * (OH - 1) + 1 : stride,
                      j : j + stride * (OW - 1) + 1 : stride, :]
            )
    patches = jnp.stack(cols, axis=3)
    return patches, OH, OW


def conv_bn(x, w, bn, stride, pad, act=None, residual=None):
    """Conv2d(bias=False) + folded inference BatchNorm + optional residual + act."""
    kh, kw, cin, cout = w.shape
    patches, OH, OW = im2col(x, kh, kw, stride, pad)
    N = x.shape[0]
    a = patches.reshape(N * OH * OW, kh * kw * cin)

    gamma, beta, mean, var, eps = bn
    scale = gamma / jnp.sqrt(var + eps)
    bias = beta - mean * scale
    # fold BN scale into the weights (trace-time, tiny) -> epilogue is bias-only
    w2d = (w.reshape(kh * kw * cin, cout) * scale[None, :]).astype(jnp.bfloat16)

    res = None if residual is None else residual.reshape(N * OH * OW, cout)
    out = fused_matmul(a, w2d, bias, residual=res, act=act)
    return out.reshape(N, OH, OW, cout)


def maxpool_3x3_s2(x):
    """3x3/2 max-pool, pad 1, via 9 shifted views (no 9x patch materialization)."""
    N, H, W, C = x.shape
    pad, k, s = 1, 3, 2
    OH = (H + 2 * pad - k) // s + 1
    OW = (W + 2 * pad - k) // s + 1
    xp = jnp.pad(x, ((0, 0), (pad, pad), (pad, pad), (0, 0)),
                 constant_values=-jnp.inf)
    out = None
    for i in range(k):
        for j in range(k):
            v = xp[:, i : i + s * (OH - 1) + 1 : s,
                      j : j + s * (OW - 1) + 1 : s, :]
            out = v if out is None else jnp.maximum(out, v)
    return out


def basic_block(x, p, stride):
    identity = x
    out = conv_bn(x, p["conv1"], p["bn1"], stride, 1, act="relu")
    if "down_w" in p:
        identity = conv_bn(x, p["down_w"], p["down_bn"], stride, 0, act=None)
    # second conv: bn2 + residual add + final relu, fused in the kernel epilogue
    out = conv_bn(out, p["conv2"], p["bn2"], 1, 1, act="relu", residual=identity)
    return out


def head_forward(x4, w1, b1, w2, b2):
    """adaptive avgpool(1,1) + fc(512->512) + ReLU + Dropout(id) + fc(512->1) + sigmoid."""
    B, H, W, C = x4.shape
    hw = H * W
    xr = x4.reshape(B, hw, C)
    return pl.pallas_call(
        functools.partial(_head_kernel, inv_hw=1.0 / hw),
        out_shape=jax.ShapeDtypeStruct((B, 1), jnp.float32),
        grid=(1,),
        in_specs=[
            pl.BlockSpec((B, hw, C), lambda i: (0, 0, 0)),
            pl.BlockSpec((C, 512), lambda i: (0, 0)),
            pl.BlockSpec((1, 512), lambda i: (0, 0)),
            pl.BlockSpec((1, C), lambda i: (0, 0)),
            pl.BlockSpec((1, 1), lambda i: (0, 0)),
        ],
        out_specs=pl.BlockSpec((B, 1), lambda i: (0, 0)),
        compiler_params=pltpu.CompilerParams(
            dimension_semantics=("arbitrary",),
            vmem_limit_bytes=32 * 1024 * 1024,
        ),
    )(xr,
      w1.astype(jnp.float32),
      b1.reshape(1, -1).astype(jnp.float32),
      w2.T.astype(jnp.float32),
      b2.reshape(1, 1).astype(jnp.float32))


# ----------------------------------------------------------------------------
# Deterministic parameter init (ResNet-18 shapes, conv1 = 1->64)
# ----------------------------------------------------------------------------
_LAYER_CFG = [
    ("layer1", [(64, 64, 1), (64, 64, 1)]),
    ("layer2", [(64, 128, 2), (128, 128, 1)]),
    ("layer3", [(128, 256, 2), (256, 256, 1)]),
    ("layer4", [(256, 512, 2), (512, 512, 1)]),
]


def init_params(key):
    keys = iter(jax.random.split(key, 256))

    def conv_w(kh, kw, cin, cout):
        std = (2.0 / (kh * kw * cin)) ** 0.5
        return std * jax.random.normal(next(keys), (kh, kw, cin, cout), jnp.float32)

    def bn_p(c):
        gamma = 1.0 + 0.1 * jax.random.normal(next(keys), (c,), jnp.float32)
        beta = 0.1 * jax.random.normal(next(keys), (c,), jnp.float32)
        mean = 0.1 * jax.random.normal(next(keys), (c,), jnp.float32)
        var = 1.0 + 0.1 * jax.random.uniform(next(keys), (c,), jnp.float32)
        return (gamma, beta, mean, var, 1e-5)

    params = {"conv1": conv_w(7, 7, 1, 64), "bn1": bn_p(64)}
    for lname, blocks in _LAYER_CFG:
        blist = []
        for cin, cout, stride in blocks:
            bp = {
                "conv1": conv_w(3, 3, cin, cout),
                "bn1": bn_p(cout),
                "conv2": conv_w(3, 3, cout, cout),
                "bn2": bn_p(cout),
            }
            if stride != 1 or cin != cout:
                bp["down_w"] = conv_w(1, 1, cin, cout)
                bp["down_bn"] = bn_p(cout)
            blist.append(bp)
        params[lname] = blist

    params["fc1_w"] = (1.0 / 512.0**0.5) * jax.random.normal(next(keys), (512, 512), jnp.float32)
    params["fc1_b"] = 0.1 * jax.random.normal(next(keys), (512,), jnp.float32)
    params["fc2_w"] = (1.0 / 512.0**0.5) * jax.random.normal(next(keys), (512, 1), jnp.float32)
    params["fc2_b"] = 0.1 * jax.random.normal(next(keys), (1,), jnp.float32)
    return params


# ----------------------------------------------------------------------------
# Full forward (matches TBModel.forward, eval semantics)
# ----------------------------------------------------------------------------
def tbmodel_forward(params, x_nchw):
    # NCHW -> NHWC, bf16 activations (matmuls accumulate in f32)
    x = jnp.transpose(x_nchw, (0, 2, 3, 1)).astype(jnp.bfloat16)

    x = conv_bn(x, params["conv1"], params["bn1"], stride=2, pad=3, act="relu")
    x = maxpool_3x3_s2(x)

    for lname, blocks in _LAYER_CFG:
        for bp, (_, _, stride) in zip(params[lname], blocks):
            x = basic_block(x, bp, stride)

    # fused: global avg pool + fc1 + ReLU + Dropout(id) + fc2 + sigmoid
    return head_forward(x, params["fc1_w"], params["fc1_b"],
                        params["fc2_w"], params["fc2_b"])   # (N, 1)


if __name__ == "__main__":
    key = jax.random.PRNGKey(0)
    pkey, xkey = jax.random.split(key)
    params = init_params(pkey)
    # small input consistent with conv1(1, 64, 7x7, stride 2): (N=2, C=1, H=32, W=32)
    x = jax.random.normal(xkey, (2, 1, 32, 32), jnp.float32)

    fwd = jax.jit(tbmodel_forward)
    out = fwd(params, x)
    out = jax.block_until_ready(out)
    assert out.shape == (2, 1)
    assert bool(jnp.all((out >= 0.0) & (out <= 1.0)))
    print("KERNEL_OK")
</pallas_src>

<mosaic_0001>
module attributes {stable_mosaic.version = 11 : i64} {
  func.func @_mm_kernel(%arg0: i32, %arg1: i32, %arg2: i32, %arg3: memref<256x49xbf16, #tpu.memory_space<vmem>>, %arg4: memref<49x64xbf16, #tpu.memory_space<vmem>>, %arg5: memref<1x64xf32, #tpu.memory_space<vmem>>, %arg6: memref<256x64xbf16, #tpu.memory_space<vmem>>, %arg7: memref<256x64xf32, #tpu.memory_space<vmem>>) attributes {dimension_semantics = [#tpu.dimension_semantics<parallel>, #tpu.dimension_semantics<parallel>, #tpu.dimension_semantics<arbitrary>], iteration_bounds = array<i64: 2, 1, 1>, scalar_prefetch = 0 : i64, scratch_operands = 1 : i64, tpu.core_type = #tpu.core_type<tc>, window_params = [{transform_indices = @transform_0, window_bounds = array<i64: 256, 49>}, {transform_indices = @transform_1, window_bounds = array<i64: 49, 64>}, {transform_indices = @transform_2, window_bounds = array<i64: 1, 64>}, {transform_indices = @transform_3, window_bounds = array<i64: 256, 64>}]} {
    %c0_i32 = arith.constant 0 : i32
    %0 = arith.cmpi eq, %arg2, %c0_i32 : i32
    %1 = arith.extui %0 : i1 to i32
    %c0_i32_0 = arith.constant 0 : i32
    %2 = arith.cmpi ne, %1, %c0_i32_0 : i32
    scf.if %2 {
      %cst_10 = arith.constant 0.000000e+00 : f32
      %12 = vector.broadcast %cst_10 : f32 to vector<256x64xf32>
      %c0_11 = arith.constant 0 : index
      %c0_12 = arith.constant 0 : index
      %13 = vector.load %arg7[%c0_11, %c0_12] : memref<256x64xf32, #tpu.memory_space<vmem>>, vector<256x64xf32>
      tpu.vector_store %arg7[%c0_11, %c0_12], %12 {strides = array<i32>} : memref<256x64xf32, #tpu.memory_space<vmem>>, vector<256x64xf32>,
    } else {
    }
    %c0 = arith.constant 0 : index
    %c0_1 = arith.constant 0 : index
    %3 = vector.load %arg7[%c0, %c0_1] : memref<256x64xf32, #tpu.memory_space<vmem>>, vector<256x64xf32>
    %c0_2 = arith.constant 0 : index
    %c0_3 = arith.constant 0 : index
    %4 = vector.load %arg3[%c0_2, %c0_3] : memref<256x49xbf16, #tpu.memory_space<vmem>>, vector<256x49xbf16>
    %c0_4 = arith.constant 0 : index
    %c0_5 = arith.constant 0 : index
    %5 = vector.load %arg4[%c0_4, %c0_5] : memref<49x64xbf16, #tpu.memory_space<vmem>>, vector<49x64xbf16>
    %cst = arith.constant dense<0.000000e+00> : vector<256x64xf32>
    %6 = tpu.matmul %4, %5, %cst {dimension_numbers = #tpu.dot_dimension_numbers<[1], [0], [0], [1], [0, 0, 1, 1], [], []>} : vector<256x49xbf16>, vector<49x64xbf16>, vector<256x64xf32> -> vector<256x64xf32>
    %7 = arith.addf %3, %6 : vector<256x64xf32>
    %c0_6 = arith.constant 0 : index
    %c0_7 = arith.constant 0 : index
    %8 = vector.load %arg7[%c0_6, %c0_7] : memref<256x64xf32, #tpu.memory_space<vmem>>, vector<256x64xf32>
    tpu.vector_store %arg7[%c0_6, %c0_7], %7 {strides = array<i32>} : memref<256x64xf32, #tpu.memory_space<vmem>>, vector<256x64xf32>,
    %c0_i32_8 = arith.constant 0 : i32
    %9 = arith.cmpi eq, %arg2, %c0_i32_8 : i32
    %10 = arith.extui %9 : i1 to i32
    %c0_i32_9 = arith.constant 0 : i32
    %11 = arith.cmpi ne, %10, %c0_i32_9 : i32
    scf.if %11 {
      %c0_10 = arith.constant 0 : index
      %c0_11 = arith.constant 0 : index
      %12 = vector.load %arg7[%c0_10, %c0_11] : memref<256x64xf32, #tpu.memory_space<vmem>>, vector<256x64xf32>
      %c0_12 = arith.constant 0 : index
      %c0_13 = arith.constant 0 : index
      %13 = vector.load %arg5[%c0_12, %c0_13] : memref<1x64xf32, #tpu.memory_space<vmem>>, vector<1x64xf32>
      %14 = vector.broadcast %13 : vector<1x64xf32> to vector<256x64xf32>
      %15 = arith.addf %12, %14 : vector<256x64xf32>
      %cst_14 = arith.constant 0.000000e+00 : f32
      %16 = vector.broadcast %cst_14 : f32 to vector<256x64xf32>
      %17 = arith.maximumf %15, %16 : vector<256x64xf32>
      %18 = arith.truncf %17 : vector<256x64xf32> to vector<256x64xbf16>
      %c0_15 = arith.constant 0 : index
      %c0_16 = arith.constant 0 : index
      %19 = vector.load %arg6[%c0_15, %c0_16] : memref<256x64xbf16, #tpu.memory_space<vmem>>, vector<256x64xbf16>
      tpu.vector_store %arg6[%c0_15, %c0_16], %18 {strides = array<i32>} : memref<256x64xbf16, #tpu.memory_space<vmem>>, vector<256x64xbf16>,
    } else {
    }
    return
  }
  func.func @transform_0(%arg0: i32, %arg1: i32, %arg2: i32) -> (i32, i32) {
    %c0_i32 = arith.constant 0 : i32
    return %arg0, %arg2 : i32, i32
  }
  func.func @transform_1(%arg0: i32, %arg1: i32, %arg2: i32) -> (i32, i32) {
    %c0_i32 = arith.constant 0 : i32
    return %arg2, %arg1 : i32, i32
  }
  func.func @transform_2(%arg0: i32, %arg1: i32, %arg2: i32) -> (i32, i32) {
    %c0_i32 = arith.constant 0 : i32
    %c0_i32_0 = arith.constant 0 : i32
    return %c0_i32, %arg1 : i32, i32
  }
  func.func @transform_3(%arg0: i32, %arg1: i32, %arg2: i32) -> (i32, i32) {
    %c0_i32 = arith.constant 0 : i32
    return %arg0, %arg1 : i32, i32
  }
}

module attributes {stable_mosaic.version = 11 : i64} {
  func.func @_mm_kernel(%arg0: i32, %arg1: i32, %arg2: i32, %arg3: memref<128x576xbf16, #tpu.memory_space<vmem>>, %arg4: memref<576x64xbf16, #tpu.memory_space<vmem>>, %arg5: memref<1x64xf32, #tpu.memory_space<vmem>>, %arg6: memref<128x64xbf16, #tpu.memory_space<vmem>>, %arg7: memref<128x64xf32, #tpu.memory_space<vmem>>) attributes {dimension_semantics = [#tpu.dimension_semantics<parallel>, #tpu.dimension_semantics<parallel>, #tpu.dimension_semantics<arbitrary>], iteration_bounds = array<i64: 1, 1, 1>, scalar_prefetch = 0 : i64, scratch_operands = 1 : i64, tpu.core_type = #tpu.core_type<tc>, window_params = [{transform_indices = @transform_0, window_bounds = array<i64: 128, 576>}, {transform_indices = @transform_1, window_bounds = array<i64: 576, 64>}, {transform_indices = @transform_2, window_bounds = array<i64: 1, 64>}, {transform_indices = @transform_3, window_bounds = array<i64: 128, 64>}]} {
    %c0_i32 = arith.constant 0 : i32
    %0 = arith.cmpi eq, %arg2, %c0_i32 : i32
    %1 = arith.extui %0 : i1 to i32
    %c0_i32_0 = arith.constant 0 : i32
    %2 = arith.cmpi ne, %1, %c0_i32_0 : i32
    scf.if %2 {
      %cst_10 = arith.constant 0.000000e+00 : f32
      %12 = vector.broadcast %cst_10 : f32 to vector<128x64xf32>
      %c0_11 = arith.constant 0 : index
      %c0_12 = arith.constant 0 : index
      %13 = vector.load %arg7[%c0_11, %c0_12] : memref<128x64xf32, #tpu.memory_space<vmem>>, vector<128x64xf32>
      tpu.vector_store %arg7[%c0_11, %c0_12], %12 {strides = array<i32>} : memref<128x64xf32, #tpu.memory_space<vmem>>, vector<128x64xf32>,
    } else {
    }
    %c0 = arith.constant 0 : index
    %c0_1 = arith.constant 0 : index
    %3 = vector.load %arg7[%c0, %c0_1] : memref<128x64xf32, #tpu.memory_space<vmem>>, vector<128x64xf32>
    %c0_2 = arith.constant 0 : index
    %c0_3 = arith.constant 0 : index
    %4 = vector.load %arg3[%c0_2, %c0_3] : memref<128x576xbf16, #tpu.memory_space<vmem>>, vector<128x576xbf16>
    %c0_4 = arith.constant 0 : index
    %c0_5 = arith.constant 0 : index
    %5 = vector.load %arg4[%c0_4, %c0_5] : memref<576x64xbf16, #tpu.memory_space<vmem>>, vector<576x64xbf16>
    %cst = arith.constant dense<0.000000e+00> : vector<128x64xf32>
    %6 = tpu.matmul %4, %5, %cst {dimension_numbers = #tpu.dot_dimension_numbers<[1], [0], [0], [1], [0, 0, 1, 1], [], []>} : vector<128x576xbf16>, vector<576x64xbf16>, vector<128x64xf32> -> vector<128x64xf32>
    %7 = arith.addf %3, %6 : vector<128x64xf32>
    %c0_6 = arith.constant 0 : index
    %c0_7 = arith.constant 0 : index
    %8 = vector.load %arg7[%c0_6, %c0_7] : memref<128x64xf32, #tpu.memory_space<vmem>>, vector<128x64xf32>
    tpu.vector_store %arg7[%c0_6, %c0_7], %7 {strides = array<i32>} : memref<128x64xf32, #tpu.memory_space<vmem>>, vector<128x64xf32>,
    %c0_i32_8 = arith.constant 0 : i32
    %9 = arith.cmpi eq, %arg2, %c0_i32_8 : i32
    %10 = arith.extui %9 : i1 to i32
    %c0_i32_9 = arith.constant 0 : i32
    %11 = arith.cmpi ne, %10, %c0_i32_9 : i32
    scf.if %11 {
      %c0_10 = arith.constant 0 : index
      %c0_11 = arith.constant 0 : index
      %12 = vector.load %arg7[%c0_10, %c0_11] : memref<128x64xf32, #tpu.memory_space<vmem>>, vector<128x64xf32>
      %c0_12 = arith.constant 0 : index
      %c0_13 = arith.constant 0 : index
      %13 = vector.load %arg5[%c0_12, %c0_13] : memref<1x64xf32, #tpu.memory_space<vmem>>, vector<1x64xf32>
      %14 = vector.broadcast %13 : vector<1x64xf32> to vector<128x64xf32>
      %15 = arith.addf %12, %14 : vector<128x64xf32>
      %cst_14 = arith.constant 0.000000e+00 : f32
      %16 = vector.broadcast %cst_14 : f32 to vector<128x64xf32>
      %17 = arith.maximumf %15, %16 : vector<128x64xf32>
      %18 = arith.truncf %17 : vector<128x64xf32> to vector<128x64xbf16>
      %c0_15 = arith.constant 0 : index
      %c0_16 = arith.constant 0 : index
      %19 = vector.load %arg6[%c0_15, %c0_16] : memref<128x64xbf16, #tpu.memory_space<vmem>>, vector<128x64xbf16>
      tpu.vector_store %arg6[%c0_15, %c0_16], %18 {strides = array<i32>} : memref<128x64xbf16, #tpu.memory_space<vmem>>, vector<128x64xbf16>,
    } else {
    }
    return
  }
  func.func @transform_0(%arg0: i32, %arg1: i32, %arg2: i32) -> (i32, i32) {
    %c0_i32 = arith.constant 0 : i32
    return %arg0, %arg2 : i32, i32
  }
  func.func @transform_1(%arg0: i32, %arg1: i32, %arg2: i32) -> (i32, i32) {
    %c0_i32 = arith.constant 0 : i32
    return %arg2, %arg1 : i32, i32
  }
  func.func @transform_2(%arg0: i32, %arg1: i32, %arg2: i32) -> (i32, i32) {
    %c0_i32 = arith.constant 0 : i32
    %c0_i32_0 = arith.constant 0 : i32
    return %c0_i32, %arg1 : i32, i32
  }
  func.func @transform_3(%arg0: i32, %arg1: i32, %arg2: i32) -> (i32, i32) {
    %c0_i32 = arith.constant 0 : i32
    return %arg0, %arg1 : i32, i32
  }
}

module attributes {stable_mosaic.version = 11 : i64} {
  func.func @_mm_kernel(%arg0: i32, %arg1: i32, %arg2: i32, %arg3: memref<128x576xbf16, #tpu.memory_space<vmem>>, %arg4: memref<576x64xbf16, #tpu.memory_space<vmem>>, %arg5: memref<1x64xf32, #tpu.memory_space<vmem>>, %arg6: memref<128x64xbf16, #tpu.memory_space<vmem>>, %arg7: memref<128x64xbf16, #tpu.memory_space<vmem>>, %arg8: memref<128x64xf32, #tpu.memory_space<vmem>>) attributes {dimension_semantics = [#tpu.dimension_semantics<parallel>, #tpu.dimension_semantics<parallel>, #tpu.dimension_semantics<arbitrary>], iteration_bounds = array<i64: 1, 1, 1>, scalar_prefetch = 0 : i64, scratch_operands = 1 : i64, tpu.core_type = #tpu.core_type<tc>, window_params = [{transform_indices = @transform_0, window_bounds = array<i64: 128, 576>}, {transform_indices = @transform_1, window_bounds = array<i64: 576, 64>}, {transform_indices = @transform_2, window_bounds = array<i64: 1, 64>}, {transform_indices = @transform_3, window_bounds = array<i64: 128, 64>}, {transform_indices = @transform_4, window_bounds = array<i64: 128, 64>}]} {
    %c0_i32 = arith.constant 0 : i32
    %0 = arith.cmpi eq, %arg2, %c0_i32 : i32
    %1 = arith.extui %0 : i1 to i32
    %c0_i32_0 = arith.constant 0 : i32
    %2 = arith.cmpi ne, %1, %c0_i32_0 : i32
    scf.if %2 {
      %cst_10 = arith.constant 0.000000e+00 : f32
      %12 = vector.broadcast %cst_10 : f32 to vector<128x64xf32>
      %c0_11 = arith.constant 0 : index
      %c0_12 = arith.constant 0 : index
      %13 = vector.load %arg8[%c0_11, %c0_12] : memref<128x64xf32, #tpu.memory_space<vmem>>, vector<128x64xf32>
      tpu.vector_store %arg8[%c0_11, %c0_12], %12 {strides = array<i32>} : memref<128x64xf32, #tpu.memory_space<vmem>>, vector<128x64xf32>,
    } else {
    }
    %c0 = arith.constant 0 : index
    %c0_1 = arith.constant 0 : index
    %3 = vector.load %arg8[%c0, %c0_1] : memref<128x64xf32, #tpu.memory_space<vmem>>, vector<128x64xf32>
    %c0_2 = arith.constant 0 : index
    %c0_3 = arith.constant 0 : index
    %4 = vector.load %arg3[%c0_2, %c0_3] : memref<128x576xbf16, #tpu.memory_space<vmem>>, vector<128x576xbf16>
    %c0_4 = arith.constant 0 : index
    %c0_5 = arith.constant 0 : index
    %5 = vector.load %arg4[%c0_4, %c0_5] : memref<576x64xbf16, #tpu.memory_space<vmem>>, vector<576x64xbf16>
    %cst = arith.constant dense<0.000000e+00> : vector<128x64xf32>
    %6 = tpu.matmul %4, %5, %cst {dimension_numbers = #tpu.dot_dimension_numbers<[1], [0], [0], [1], [0, 0, 1, 1], [], []>} : vector<128x576xbf16>, vector<576x64xbf16>, vector<128x64xf32> -> vector<128x64xf32>
    %7 = arith.addf %3, %6 : vector<128x64xf32>
    %c0_6 = arith.constant 0 : index
    %c0_7 = arith.constant 0 : index
    %8 = vector.load %arg8[%c0_6, %c0_7] : memref<128x64xf32, #tpu.memory_space<vmem>>, vector<128x64xf32>
    tpu.vector_store %arg8[%c0_6, %c0_7], %7 {strides = array<i32>} : memref<128x64xf32, #tpu.memory_space<vmem>>, vector<128x64xf32>,
    %c0_i32_8 = arith.constant 0 : i32
    %9 = arith.cmpi eq, %arg2, %c0_i32_8 : i32
    %10 = arith.extui %9 : i1 to i32
    %c0_i32_9 = arith.constant 0 : i32
    %11 = arith.cmpi ne, %10, %c0_i32_9 : i32
    scf.if %11 {
      %c0_10 = arith.constant 0 : index
      %c0_11 = arith.constant 0 : index
      %12 = vector.load %arg8[%c0_10, %c0_11] : memref<128x64xf32, #tpu.memory_space<vmem>>, vector<128x64xf32>
      %c0_12 = arith.constant 0 : index
      %c0_13 = arith.constant 0 : index
      %13 = vector.load %arg5[%c0_12, %c0_13] : memref<1x64xf32, #tpu.memory_space<vmem>>, vector<1x64xf32>
      %14 = vector.broadcast %13 : vector<1x64xf32> to vector<128x64xf32>
      %15 = arith.addf %12, %14 : vector<128x64xf32>
      %c0_14 = arith.constant 0 : index
      %c0_15 = arith.constant 0 : index
      %16 = vector.load %arg6[%c0_14, %c0_15] : memref<128x64xbf16, #tpu.memory_space<vmem>>, vector<128x64xbf16>
      %17 = arith.extf %16 : vector<128x64xbf16> to vector<128x64xf32>
      %18 = arith.addf %15, %17 : vector<128x64xf32>
      %cst_16 = arith.constant 0.000000e+00 : f32
      %19 = vector.broadcast %cst_16 : f32 to vector<128x64xf32>
      %20 = arith.maximumf %18, %19 : vector<128x64xf32>
      %21 = arith.truncf %20 : vector<128x64xf32> to vector<128x64xbf16>
      %c0_17 = arith.constant 0 : index
      %c0_18 = arith.constant 0 : index
      %22 = vector.load %arg7[%c0_17, %c0_18] : memref<128x64xbf16, #tpu.memory_space<vmem>>, vector<128x64xbf16>
      tpu.vector_store %arg7[%c0_17, %c0_18], %21 {strides = array<i32>} : memref<128x64xbf16, #tpu.memory_space<vmem>>, vector<128x64xbf16>,
    } else {
    }
    return
  }
  func.func @transform_0(%arg0: i32, %arg1: i32, %arg2: i32) -> (i32, i32) {
    %c0_i32 = arith.constant 0 : i32
    return %arg0, %arg2 : i32, i32
  }
  func.func @transform_1(%arg0: i32, %arg1: i32, %arg2: i32) -> (i32, i32) {
    %c0_i32 = arith.constant 0 : i32
    return %arg2, %arg1 : i32, i32
  }
  func.func @transform_2(%arg0: i32, %arg1: i32, %arg2: i32) -> (i32, i32) {
    %c0_i32 = arith.constant 0 : i32
    %c0_i32_0 = arith.constant 0 : i32
    return %c0_i32, %arg1 : i32, i32
  }
  func.func @transform_3(%arg0: i32, %arg1: i32, %arg2: i32) -> (i32, i32) {
    %c0_i32 = arith.constant 0 : i32
    return %arg0, %arg1 : i32, i32
  }
  func.func @transform_4(%arg0: i32, %arg1: i32, %arg2: i32) -> (i32, i32) {
    %c0_i32 = arith.constant 0 : i32
    return %arg0, %arg1 : i32, i32
  }
}

module attributes {stable_mosaic.version = 11 : i64} {
  func.func @_mm_kernel(%arg0: i32, %arg1: i32, %arg2: i32, %arg3: memref<32x576xbf16, #tpu.memory_space<vmem>>, %arg4: memref<576x128xbf16, #tpu.memory_space<vmem>>, %arg5: memref<1x128xf32, #tpu.memory_space<vmem>>, %arg6: memref<32x128xbf16, #tpu.memory_space<vmem>>, %arg7: memref<32x128xf32, #tpu.memory_space<vmem>>) attributes {dimension_semantics = [#tpu.dimension_semantics<parallel>, #tpu.dimension_semantics<parallel>, #tpu.dimension_semantics<arbitrary>], iteration_bounds = array<i64: 1, 1, 1>, scalar_prefetch = 0 : i64, scratch_operands = 1 : i64, tpu.core_type = #tpu.core_type<tc>, window_params = [{transform_indices = @transform_0, window_bounds = array<i64: 32, 576>}, {transform_indices = @transform_1, window_bounds = array<i64: 576, 128>}, {transform_indices = @transform_2, window_bounds = array<i64: 1, 128>}, {transform_indices = @transform_3, window_bounds = array<i64: 32, 128>}]} {
    %c0_i32 = arith.constant 0 : i32
    %0 = arith.cmpi eq, %arg2, %c0_i32 : i32
    %1 = arith.extui %0 : i1 to i32
    %c0_i32_0 = arith.constant 0 : i32
    %2 = arith.cmpi ne, %1, %c0_i32_0 : i32
    scf.if %2 {
      %cst_10 = arith.constant 0.000000e+00 : f32
      %12 = vector.broadcast %cst_10 : f32 to vector<32x128xf32>
      %c0_11 = arith.constant 0 : index
      %c0_12 = arith.constant 0 : index
      %13 = vector.load %arg7[%c0_11, %c0_12] : memref<32x128xf32, #tpu.memory_space<vmem>>, vector<32x128xf32>
      tpu.vector_store %arg7[%c0_11, %c0_12], %12 {strides = array<i32>} : memref<32x128xf32, #tpu.memory_space<vmem>>, vector<32x128xf32>,
    } else {
    }
    %c0 = arith.constant 0 : index
    %c0_1 = arith.constant 0 : index
    %3 = vector.load %arg7[%c0, %c0_1] : memref<32x128xf32, #tpu.memory_space<vmem>>, vector<32x128xf32>
    %c0_2 = arith.constant 0 : index
    %c0_3 = arith.constant 0 : index
    %4 = vector.load %arg3[%c0_2, %c0_3] : memref<32x576xbf16, #tpu.memory_space<vmem>>, vector<32x576xbf16>
    %c0_4 = arith.constant 0 : index
    %c0_5 = arith.constant 0 : index
    %5 = vector.load %arg4[%c0_4, %c0_5] : memref<576x128xbf16, #tpu.memory_space<vmem>>, vector<576x128xbf16>
    %cst = arith.constant dense<0.000000e+00> : vector<32x128xf32>
    %6 = tpu.matmul %4, %5, %cst {dimension_numbers = #tpu.dot_dimension_numbers<[1], [0], [0], [1], [0, 0, 1, 1], [], []>} : vector<32x576xbf16>, vector<576x128xbf16>, vector<32x128xf32> -> vector<32x128xf32>
    %7 = arith.addf %3, %6 : vector<32x128xf32>
    %c0_6 = arith.constant 0 : index
    %c0_7 = arith.constant 0 : index
    %8 = vector.load %arg7[%c0_6, %c0_7] : memref<32x128xf32, #tpu.memory_space<vmem>>, vector<32x128xf32>
    tpu.vector_store %arg7[%c0_6, %c0_7], %7 {strides = array<i32>} : memref<32x128xf32, #tpu.memory_space<vmem>>, vector<32x128xf32>,
    %c0_i32_8 = arith.constant 0 : i32
    %9 = arith.cmpi eq, %arg2, %c0_i32_8 : i32
    %10 = arith.extui %9 : i1 to i32
    %c0_i32_9 = arith.constant 0 : i32
    %11 = arith.cmpi ne, %10, %c0_i32_9 : i32
    scf.if %11 {
      %c0_10 = arith.constant 0 : index
      %c0_11 = arith.constant 0 : index
      %12 = vector.load %arg7[%c0_10, %c0_11] : memref<32x128xf32, #tpu.memory_space<vmem>>, vector<32x128xf32>
      %c0_12 = arith.constant 0 : index
      %c0_13 = arith.constant 0 : index
      %13 = vector.load %arg5[%c0_12, %c0_13] : memref<1x128xf32, #tpu.memory_space<vmem>>, vector<1x128xf32>
      %14 = vector.broadcast %13 : vector<1x128xf32> to vector<32x128xf32>
      %15 = arith.addf %12, %14 : vector<32x128xf32>
      %cst_14 = arith.constant 0.000000e+00 : f32
      %16 = vector.broadcast %cst_14 : f32 to vector<32x128xf32>
      %17 = arith.maximumf %15, %16 : vector<32x128xf32>
      %18 = arith.truncf %17 : vector<32x128xf32> to vector<32x128xbf16>
      %c0_15 = arith.constant 0 : index
      %c0_16 = arith.constant 0 : index
      %19 = vector.load %arg6[%c0_15, %c0_16] : memref<32x128xbf16, #tpu.memory_space<vmem>>, vector<32x128xbf16>
      tpu.vector_store %arg6[%c0_15, %c0_16], %18 {strides = array<i32>} : memref<32x128xbf16, #tpu.memory_space<vmem>>, vector<32x128xbf16>,
    } else {
    }
    return
  }
  func.func @transform_0(%arg0: i32, %arg1: i32, %arg2: i32) -> (i32, i32) {
    %c0_i32 = arith.constant 0 : i32
    return %arg0, %arg2 : i32, i32
  }
  func.func @transform_1(%arg0: i32, %arg1: i32, %arg2: i32) -> (i32, i32) {
    %c0_i32 = arith.constant 0 : i32
    return %arg2, %arg1 : i32, i32
  }
  func.func @transform_2(%arg0: i32, %arg1: i32, %arg2: i32) -> (i32, i32) {
    %c0_i32 = arith.constant 0 : i32
    %c0_i32_0 = arith.constant 0 : i32
    return %c0_i32, %arg1 : i32, i32
  }
  func.func @transform_3(%arg0: i32, %arg1: i32, %arg2: i32) -> (i32, i32) {
    %c0_i32 = arith.constant 0 : i32
    return %arg0, %arg1 : i32, i32
  }
}

module attributes {stable_mosaic.version = 11 : i64} {
  func.func @_mm_kernel(%arg0: i32, %arg1: i32, %arg2: i32, %arg3: memref<32x128xbf16, #tpu.memory_space<vmem>>, %arg4: memref<128x128xbf16, #tpu.memory_space<vmem>>, %arg5: memref<1x128xf32, #tpu.memory_space<vmem>>, %arg6: memref<32x128xbf16, #tpu.memory_space<vmem>>, %arg7: memref<32x128xbf16, #tpu.memory_space<vmem>>, %arg8: memref<32x128xf32, #tpu.memory_space<vmem>>) attributes {dimension_semantics = [#tpu.dimension_semantics<parallel>, #tpu.dimension_semantics<parallel>, #tpu.dimension_semantics<arbitrary>], iteration_bounds = array<i64: 1, 1, 9>, scalar_prefetch = 0 : i64, scratch_operands = 1 : i64, tpu.core_type = #tpu.core_type<tc>, window_params = [{transform_indices = @transform_0, window_bounds = array<i64: 32, 128>}, {transform_indices = @transform_1, window_bounds = array<i64: 128, 128>}, {transform_indices = @transform_2, window_bounds = array<i64: 1, 128>}, {transform_indices = @transform_3, window_bounds = array<i64: 32, 128>}, {transform_indices = @transform_4, window_bounds = array<i64: 32, 128>}]} {
    %c0_i32 = arith.constant 0 : i32
    %0 = arith.cmpi eq, %arg2, %c0_i32 : i32
    %1 = arith.extui %0 : i1 to i32
    %c0_i32_0 = arith.constant 0 : i32
    %2 = arith.cmpi ne, %1, %c0_i32_0 : i32
    scf.if %2 {
      %cst_9 = arith.constant 0.000000e+00 : f32
      %12 = vector.broadcast %cst_9 : f32 to vector<32x128xf32>
      %c0_10 = arith.constant 0 : index
      %c0_11 = arith.constant 0 : index
      %13 = vector.load %arg8[%c0_10, %c0_11] : memref<32x128xf32, #tpu.memory_space<vmem>>, vector<32x128xf32>
      tpu.vector_store %arg8[%c0_10, %c0_11], %12 {strides = array<i32>} : memref<32x128xf32, #tpu.memory_space<vmem>>, vector<32x128xf32>,
    } else {
    }
    %c0 = arith.constant 0 : index
    %c0_1 = arith.constant 0 : index
    %3 = vector.load %arg8[%c0, %c0_1] : memref<32x128xf32, #tpu.memory_space<vmem>>, vector<32x128xf32>
    %c0_2 = arith.constant 0 : index
    %c0_3 = arith.constant 0 : index
    %4 = vector.load %arg3[%c0_2, %c0_3] : memref<32x128xbf16, #tpu.memory_space<vmem>>, vector<32x128xbf16>
    %c0_4 = arith.constant 0 : index
    %c0_5 = arith.constant 0 : index
    %5 = vector.load %arg4[%c0_4, %c0_5] : memref<128x128xbf16, #tpu.memory_space<vmem>>, vector<128x128xbf16>
    %cst = arith.constant dense<0.000000e+00> : vector<32x128xf32>
    %6 = tpu.matmul %4, %5, %cst {dimension_numbers = #tpu.dot_dimension_numbers<[1], [0], [0], [1], [0, 0, 1, 1], [], []>} : vector<32x128xbf16>, vector<128x128xbf16>, vector<32x128xf32> -> vector<32x128xf32>
    %7 = arith.addf %3, %6 : vector<32x128xf32>
    %c0_6 = arith.constant 0 : index
    %c0_7 = arith.constant 0 : index
    %8 = vector.load %arg8[%c0_6, %c0_7] : memref<32x128xf32, #tpu.memory_space<vmem>>, vector<32x128xf32>
    tpu.vector_store %arg8[%c0_6, %c0_7], %7 {strides = array<i32>} : memref<32x128xf32, #tpu.memory_space<vmem>>, vector<32x128xf32>,
    %c8_i32 = arith.constant 8 : i32
    %9 = arith.cmpi eq, %arg2, %c8_i32 : i32
    %10 = arith.extui %9 : i1 to i32
    %c0_i32_8 = arith.constant 0 : i32
    %11 = arith.cmpi ne, %10, %c0_i32_8 : i32
    scf.if %11 {
      %c0_9 = arith.constant 0 : index
      %c0_10 = arith.constant 0 : index
      %12 = vector.load %arg8[%c0_9, %c0_10] : memref<32x128xf32, #tpu.memory_space<vmem>>, vector<32x128xf32>
      %c0_11 = arith.constant 0 : index
      %c0_12 = arith.constant 0 : index
      %13 = vector.load %arg5[%c0_11, %c0_12] : memref<1x128xf32, #tpu.memory_space<vmem>>, vector<1x128xf32>
      %14 = vector.broadcast %13 : vector<1x128xf32> to vector<32x128xf32>
      %15 = arith.addf %12, %14 : vector<32x128xf32>
      %c0_13 = arith.constant 0 : index
      %c0_14 = arith.constant 0 : index
      %16 = vector.load %arg6[%c0_13, %c0_14] : memref<32x128xbf16, #tpu.memory_space<vmem>>, vector<32x128xbf16>
      %17 = arith.extf %16 : vector<32x128xbf16> to vector<32x128xf32>
      %18 = arith.addf %15, %17 : vector<32x128xf32>
      %cst_15 = arith.constant 0.000000e+00 : f32
      %19 = vector.broadcast %cst_15 : f32 to vector<32x128xf32>
      %20 = arith.maximumf %18, %19 : vector<32x128xf32>
      %21 = arith.truncf %20 : vector<32x128xf32> to vector<32x128xbf16>
      %c0_16 = arith.constant 0 : index
      %c0_17 = arith.constant 0 : index
      %22 = vector.load %arg7[%c0_16, %c0_17] : memref<32x128xbf16, #tpu.memory_space<vmem>>, vector<32x128xbf16>
      tpu.vector_store %arg7[%c0_16, %c0_17], %21 {strides = array<i32>} : memref<32x128xbf16, #tpu.memory_space<vmem>>, vector<32x128xbf16>,
    } else {
    }
    return
  }
  func.func @transform_0(%arg0: i32, %arg1: i32, %arg2: i32) -> (i32, i32) {
    %c0_i32 = arith.constant 0 : i32
    return %arg0, %arg2 : i32, i32
  }
  func.func @transform_1(%arg0: i32, %arg1: i32, %arg2: i32) -> (i32, i32) {
    %c0_i32 = arith.constant 0 : i32
    return %arg2, %arg1 : i32, i32
  }
  func.func @transform_2(%arg0: i32, %arg1: i32, %arg2: i32) -> (i32, i32) {
    %c0_i32 = arith.constant 0 : i32
    %c0_i32_0 = arith.constant 0 : i32
    return %c0_i32, %arg1 : i32, i32
  }
  func.func @transform_3(%arg0: i32, %arg1: i32, %arg2: i32) -> (i32, i32) {
    %c0_i32 = arith.constant 0 : i32
    return %arg0, %arg1 : i32, i32
  }
  func.func @transform_4(%arg0: i32, %arg1: i32, %arg2: i32) -> (i32, i32) {
    %c0_i32 = arith.constant 0 : i32
    return %arg0, %arg1 : i32, i32
  }
}

module attributes {stable_mosaic.version = 11 : i64} {
  func.func @_mm_kernel(%arg0: i32, %arg1: i32, %arg2: i32, %arg3: memref<32x64xbf16, #tpu.memory_space<vmem>>, %arg4: memref<64x128xbf16, #tpu.memory_space<vmem>>, %arg5: memref<1x128xf32, #tpu.memory_space<vmem>>, %arg6: memref<32x128xbf16, #tpu.memory_space<vmem>>, %arg7: memref<32x128xf32, #tpu.memory_space<vmem>>) attributes {dimension_semantics = [#tpu.dimension_semantics<parallel>, #tpu.dimension_semantics<parallel>, #tpu.dimension_semantics<arbitrary>], iteration_bounds = array<i64: 1, 1, 1>, scalar_prefetch = 0 : i64, scratch_operands = 1 : i64, tpu.core_type = #tpu.core_type<tc>, window_params = [{transform_indices = @transform_0, window_bounds = array<i64: 32, 64>}, {transform_indices = @transform_1, window_bounds = array<i64: 64, 128>}, {transform_indices = @transform_2, window_bounds = array<i64: 1, 128>}, {transform_indices = @transform_3, window_bounds = array<i64: 32, 128>}]} {
    %c0_i32 = arith.constant 0 : i32
    %0 = arith.cmpi eq, %arg2, %c0_i32 : i32
    %1 = arith.extui %0 : i1 to i32
    %c0_i32_0 = arith.constant 0 : i32
    %2 = arith.cmpi ne, %1, %c0_i32_0 : i32
    scf.if %2 {
      %cst_10 = arith.constant 0.000000e+00 : f32
      %12 = vector.broadcast %cst_10 : f32 to vector<32x128xf32>
      %c0_11 = arith.constant 0 : index
      %c0_12 = arith.constant 0 : index
      %13 = vector.load %arg7[%c0_11, %c0_12] : memref<32x128xf32, #tpu.memory_space<vmem>>, vector<32x128xf32>
      tpu.vector_store %arg7[%c0_11, %c0_12], %12 {strides = array<i32>} : memref<32x128xf32, #tpu.memory_space<vmem>>, vector<32x128xf32>,
    } else {
    }
    %c0 = arith.constant 0 : index
    %c0_1 = arith.constant 0 : index
    %3 = vector.load %arg7[%c0, %c0_1] : memref<32x128xf32, #tpu.memory_space<vmem>>, vector<32x128xf32>
    %c0_2 = arith.constant 0 : index
    %c0_3 = arith.constant 0 : index
    %4 = vector.load %arg3[%c0_2, %c0_3] : memref<32x64xbf16, #tpu.memory_space<vmem>>, vector<32x64xbf16>
    %c0_4 = arith.constant 0 : index
    %c0_5 = arith.constant 0 : index
    %5 = vector.load %arg4[%c0_4, %c0_5] : memref<64x128xbf16, #tpu.memory_space<vmem>>, vector<64x128xbf16>
    %cst = arith.constant dense<0.000000e+00> : vector<32x128xf32>
    %6 = tpu.matmul %4, %5, %cst {dimension_numbers = #tpu.dot_dimension_numbers<[1], [0], [0], [1], [0, 0, 1, 1], [], []>} : vector<32x64xbf16>, vector<64x128xbf16>, vector<32x128xf32> -> vector<32x128xf32>
    %7 = arith.addf %3, %6 : vector<32x128xf32>
    %c0_6 = arith.constant 0 : index
    %c0_7 = arith.constant 0 : index
    %8 = vector.load %arg7[%c0_6, %c0_7] : memref<32x128xf32, #tpu.memory_space<vmem>>, vector<32x128xf32>
    tpu.vector_store %arg7[%c0_6, %c0_7], %7 {strides = array<i32>} : memref<32x128xf32, #tpu.memory_space<vmem>>, vector<32x128xf32>,
    %c0_i32_8 = arith.constant 0 : i32
    %9 = arith.cmpi eq, %arg2, %c0_i32_8 : i32
    %10 = arith.extui %9 : i1 to i32
    %c0_i32_9 = arith.constant 0 : i32
    %11 = arith.cmpi ne, %10, %c0_i32_9 : i32
    scf.if %11 {
      %c0_10 = arith.constant 0 : index
      %c0_11 = arith.constant 0 : index
      %12 = vector.load %arg7[%c0_10, %c0_11] : memref<32x128xf32, #tpu.memory_space<vmem>>, vector<32x128xf32>
      %c0_12 = arith.constant 0 : index
      %c0_13 = arith.constant 0 : index
      %13 = vector.load %arg5[%c0_12, %c0_13] : memref<1x128xf32, #tpu.memory_space<vmem>>, vector<1x128xf32>
      %14 = vector.broadcast %13 : vector<1x128xf32> to vector<32x128xf32>
      %15 = arith.addf %12, %14 : vector<32x128xf32>
      %16 = arith.truncf %15 : vector<32x128xf32> to vector<32x128xbf16>
      %c0_14 = arith.constant 0 : index
      %c0_15 = arith.constant 0 : index
      %17 = vector.load %arg6[%c0_14, %c0_15] : memref<32x128xbf16, #tpu.memory_space<vmem>>, vector<32x128xbf16>
      tpu.vector_store %arg6[%c0_14, %c0_15], %16 {strides = array<i32>} : memref<32x128xbf16, #tpu.memory_space<vmem>>, vector<32x128xbf16>,
    } else {
    }
    return
  }
  func.func @transform_0(%arg0: i32, %arg1: i32, %arg2: i32) -> (i32, i32) {
    %c0_i32 = arith.constant 0 : i32
    return %arg0, %arg2 : i32, i32
  }
  func.func @transform_1(%arg0: i32, %arg1: i32, %arg2: i32) -> (i32, i32) {
    %c0_i32 = arith.constant 0 : i32
    return %arg2, %arg1 : i32, i32
  }
  func.func @transform_2(%arg0: i32, %arg1: i32, %arg2: i32) -> (i32, i32) {
    %c0_i32 = arith.constant 0 : i32
    %c0_i32_0 = arith.constant 0 : i32
    return %c0_i32, %arg1 : i32, i32
  }
  func.func @transform_3(%arg0: i32, %arg1: i32, %arg2: i32) -> (i32, i32) {
    %c0_i32 = arith.constant 0 : i32
    return %arg0, %arg1 : i32, i32
  }
}

module attributes {stable_mosaic.version = 11 : i64} {
  func.func @_mm_kernel(%arg0: i32, %arg1: i32, %arg2: i32, %arg3: memref<32x128xbf16, #tpu.memory_space<vmem>>, %arg4: memref<128x128xbf16, #tpu.memory_space<vmem>>, %arg5: memref<1x128xf32, #tpu.memory_space<vmem>>, %arg6: memref<32x128xbf16, #tpu.memory_space<vmem>>, %arg7: memref<32x128xf32, #tpu.memory_space<vmem>>) attributes {dimension_semantics = [#tpu.dimension_semantics<parallel>, #tpu.dimension_semantics<parallel>, #tpu.dimension_semantics<arbitrary>], iteration_bounds = array<i64: 1, 1, 9>, scalar_prefetch = 0 : i64, scratch_operands = 1 : i64, tpu.core_type = #tpu.core_type<tc>, window_params = [{transform_indices = @transform_0, window_bounds = array<i64: 32, 128>}, {transform_indices = @transform_1, window_bounds = array<i64: 128, 128>}, {transform_indices = @transform_2, window_bounds = array<i64: 1, 128>}, {transform_indices = @transform_3, window_bounds = array<i64: 32, 128>}]} {
    %c0_i32 = arith.constant 0 : i32
    %0 = arith.cmpi eq, %arg2, %c0_i32 : i32
    %1 = arith.extui %0 : i1 to i32
    %c0_i32_0 = arith.constant 0 : i32
    %2 = arith.cmpi ne, %1, %c0_i32_0 : i32
    scf.if %2 {
      %cst_9 = arith.constant 0.000000e+00 : f32
      %12 = vector.broadcast %cst_9 : f32 to vector<32x128xf32>
      %c0_10 = arith.constant 0 : index
      %c0_11 = arith.constant 0 : index
      %13 = vector.load %arg7[%c0_10, %c0_11] : memref<32x128xf32, #tpu.memory_space<vmem>>, vector<32x128xf32>
      tpu.vector_store %arg7[%c0_10, %c0_11], %12 {strides = array<i32>} : memref<32x128xf32, #tpu.memory_space<vmem>>, vector<32x128xf32>,
    } else {
    }
    %c0 = arith.constant 0 : index
    %c0_1 = arith.constant 0 : index
    %3 = vector.load %arg7[%c0, %c0_1] : memref<32x128xf32, #tpu.memory_space<vmem>>, vector<32x128xf32>
    %c0_2 = arith.constant 0 : index
    %c0_3 = arith.constant 0 : index
    %4 = vector.load %arg3[%c0_2, %c0_3] : memref<32x128xbf16, #tpu.memory_space<vmem>>, vector<32x128xbf16>
    %c0_4 = arith.constant 0 : index
    %c0_5 = arith.constant 0 : index
    %5 = vector.load %arg4[%c0_4, %c0_5] : memref<128x128xbf16, #tpu.memory_space<vmem>>, vector<128x128xbf16>
    %cst = arith.constant dense<0.000000e+00> : vector<32x128xf32>
    %6 = tpu.matmul %4, %5, %cst {dimension_numbers = #tpu.dot_dimension_numbers<[1], [0], [0], [1], [0, 0, 1, 1], [], []>} : vector<32x128xbf16>, vector<128x128xbf16>, vector<32x128xf32> -> vector<32x128xf32>
    %7 = arith.addf %3, %6 : vector<32x128xf32>
    %c0_6 = arith.constant 0 : index
    %c0_7 = arith.constant 0 : index
    %8 = vector.load %arg7[%c0_6, %c0_7] : memref<32x128xf32, #tpu.memory_space<vmem>>, vector<32x128xf32>
    tpu.vector_store %arg7[%c0_6, %c0_7], %7 {strides = array<i32>} : memref<32x128xf32, #tpu.memory_space<vmem>>, vector<32x128xf32>,
    %c8_i32 = arith.constant 8 : i32
    %9 = arith.cmpi eq, %arg2, %c8_i32 : i32
    %10 = arith.extui %9 : i1 to i32
    %c0_i32_8 = arith.constant 0 : i32
    %11 = arith.cmpi ne, %10, %c0_i32_8 : i32
    scf.if %11 {
      %c0_9 = arith.constant 0 : index
      %c0_10 = arith.constant 0 : index
      %12 = vector.load %arg7[%c0_9, %c0_10] : memref<32x128xf32, #tpu.memory_space<vmem>>, vector<32x128xf32>
      %c0_11 = arith.constant 0 : index
      %c0_12 = arith.constant 0 : index
      %13 = vector.load %arg5[%c0_11, %c0_12] : memref<1x128xf32, #tpu.memory_space<vmem>>, vector<1x128xf32>
      %14 = vector.broadcast %13 : vector<1x128xf32> to vector<32x128xf32>
      %15 = arith.addf %12, %14 : vector<32x128xf32>
      %cst_13 = arith.constant 0.000000e+00 : f32
      %16 = vector.broadcast %cst_13 : f32 to vector<32x128xf32>
      %17 = arith.maximumf %15, %16 : vector<32x128xf32>
      %18 = arith.truncf %17 : vector<32x128xf32> to vector<32x128xbf16>
      %c0_14 = arith.constant 0 : index
      %c0_15 = arith.constant 0 : index
      %19 = vector.load %arg6[%c0_14, %c0_15] : memref<32x128xbf16, #tpu.memory_space<vmem>>, vector<32x128xbf16>
      tpu.vector_store %arg6[%c0_14, %c0_15], %18 {strides = array<i32>} : memref<32x128xbf16, #tpu.memory_space<vmem>>, vector<32x128xbf16>,
    } else {
    }
    return
  }
  func.func @transform_0(%arg0: i32, %arg1: i32, %arg2: i32) -> (i32, i32) {
    %c0_i32 = arith.constant 0 : i32
    return %arg0, %arg2 : i32, i32
  }
  func.func @transform_1(%arg0: i32, %arg1: i32, %arg2: i32) -> (i32, i32) {
    %c0_i32 = arith.constant 0 : i32
    return %arg2, %arg1 : i32, i32
  }
  func.func @transform_2(%arg0: i32, %arg1: i32, %arg2: i32) -> (i32, i32) {
    %c0_i32 = arith.constant 0 : i32
    %c0_i32_0 = arith.constant 0 : i32
    return %c0_i32, %arg1 : i32, i32
  }
  func.func @transform_3(%arg0: i32, %arg1: i32, %arg2: i32) -> (i32, i32) {
    %c0_i32 = arith.constant 0 : i32
    return %arg0, %arg1 : i32, i32
  }
}

module attributes {stable_mosaic.version = 11 : i64} {
  func.func @_mm_kernel(%arg0: i32, %arg1: i32, %arg2: i32, %arg3: memref<16x128xbf16, #tpu.memory_space<vmem>>, %arg4: memref<128x256xbf16, #tpu.memory_space<vmem>>, %arg5: memref<1x256xf32, #tpu.memory_space<vmem>>, %arg6: memref<16x256xbf16, #tpu.memory_space<vmem>>, %arg7: memref<16x256xf32, #tpu.memory_space<vmem>>) attributes {dimension_semantics = [#tpu.dimension_semantics<parallel>, #tpu.dimension_semantics<parallel>, #tpu.dimension_semantics<arbitrary>], iteration_bounds = array<i64: 1, 1, 9>, scalar_prefetch = 0 : i64, scratch_operands = 1 : i64, tpu.core_type = #tpu.core_type<tc>, window_params = [{transform_indices = @transform_0, window_bounds = array<i64: 16, 128>}, {transform_indices = @transform_1, window_bounds = array<i64: 128, 256>}, {transform_indices = @transform_2, window_bounds = array<i64: 1, 256>}, {transform_indices = @transform_3, window_bounds = array<i64: 16, 256>}]} {
    %c0_i32 = arith.constant 0 : i32
    %0 = arith.cmpi eq, %arg2, %c0_i32 : i32
    %1 = arith.extui %0 : i1 to i32
    %c0_i32_0 = arith.constant 0 : i32
    %2 = arith.cmpi ne, %1, %c0_i32_0 : i32
    scf.if %2 {
      %cst_9 = arith.constant 0.000000e+00 : f32
      %12 = vector.broadcast %cst_9 : f32 to vector<16x256xf32>
      %c0_10 = arith.constant 0 : index
      %c0_11 = arith.constant 0 : index
      %13 = vector.load %arg7[%c0_10, %c0_11] : memref<16x256xf32, #tpu.memory_space<vmem>>, vector<16x256xf32>
      tpu.vector_store %arg7[%c0_10, %c0_11], %12 {strides = array<i32>} : memref<16x256xf32, #tpu.memory_space<vmem>>, vector<16x256xf32>,
    } else {
    }
    %c0 = arith.constant 0 : index
    %c0_1 = arith.constant 0 : index
    %3 = vector.load %arg7[%c0, %c0_1] : memref<16x256xf32, #tpu.memory_space<vmem>>, vector<16x256xf32>
    %c0_2 = arith.constant 0 : index
    %c0_3 = arith.constant 0 : index
    %4 = vector.load %arg3[%c0_2, %c0_3] : memref<16x128xbf16, #tpu.memory_space<vmem>>, vector<16x128xbf16>
    %c0_4 = arith.constant 0 : index
    %c0_5 = arith.constant 0 : index
    %5 = vector.load %arg4[%c0_4, %c0_5] : memref<128x256xbf16, #tpu.memory_space<vmem>>, vector<128x256xbf16>
    %cst = arith.constant dense<0.000000e+00> : vector<16x256xf32>
    %6 = tpu.matmul %4, %5, %cst {dimension_numbers = #tpu.dot_dimension_numbers<[1], [0], [0], [1], [0, 0, 1, 1], [], []>} : vector<16x128xbf16>, vector<128x256xbf16>, vector<16x256xf32> -> vector<16x256xf32>
    %7 = arith.addf %3, %6 : vector<16x256xf32>
    %c0_6 = arith.constant 0 : index
    %c0_7 = arith.constant 0 : index
    %8 = vector.load %arg7[%c0_6, %c0_7] : memref<16x256xf32, #tpu.memory_space<vmem>>, vector<16x256xf32>
    tpu.vector_store %arg7[%c0_6, %c0_7], %7 {strides = array<i32>} : memref<16x256xf32, #tpu.memory_space<vmem>>, vector<16x256xf32>,
    %c8_i32 = arith.constant 8 : i32
    %9 = arith.cmpi eq, %arg2, %c8_i32 : i32
    %10 = arith.extui %9 : i1 to i32
    %c0_i32_8 = arith.constant 0 : i32
    %11 = arith.cmpi ne, %10, %c0_i32_8 : i32
    scf.if %11 {
      %c0_9 = arith.constant 0 : index
      %c0_10 = arith.constant 0 : index
      %12 = vector.load %arg7[%c0_9, %c0_10] : memref<16x256xf32, #tpu.memory_space<vmem>>, vector<16x256xf32>
      %c0_11 = arith.constant 0 : index
      %c0_12 = arith.constant 0 : index
      %13 = vector.load %arg5[%c0_11, %c0_12] : memref<1x256xf32, #tpu.memory_space<vmem>>, vector<1x256xf32>
      %14 = vector.broadcast %13 : vector<1x256xf32> to vector<16x256xf32>
      %15 = arith.addf %12, %14 : vector<16x256xf32>
      %cst_13 = arith.constant 0.000000e+00 : f32
      %16 = vector.broadcast %cst_13 : f32 to vector<16x256xf32>
      %17 = arith.maximumf %15, %16 : vector<16x256xf32>
      %18 = arith.truncf %17 : vector<16x256xf32> to vector<16x256xbf16>
      %c0_14 = arith.constant 0 : index
      %c0_15 = arith.constant 0 : index
      %19 = vector.load %arg6[%c0_14, %c0_15] : memref<16x256xbf16, #tpu.memory_space<vmem>>, vector<16x256xbf16>
      tpu.vector_store %arg6[%c0_14, %c0_15], %18 {strides = array<i32>} : memref<16x256xbf16, #tpu.memory_space<vmem>>, vector<16x256xbf16>,
    } else {
    }
    return
  }
  func.func @transform_0(%arg0: i32, %arg1: i32, %arg2: i32) -> (i32, i32) {
    %c0_i32 = arith.constant 0 : i32
    return %arg0, %arg2 : i32, i32
  }
  func.func @transform_1(%arg0: i32, %arg1: i32, %arg2: i32) -> (i32, i32) {
    %c0_i32 = arith.constant 0 : i32
    return %arg2, %arg1 : i32, i32
  }
  func.func @transform_2(%arg0: i32, %arg1: i32, %arg2: i32) -> (i32, i32) {
    %c0_i32 = arith.constant 0 : i32
    %c0_i32_0 = arith.constant 0 : i32
    return %c0_i32, %arg1 : i32, i32
  }
  func.func @transform_3(%arg0: i32, %arg1: i32, %arg2: i32) -> (i32, i32) {
    %c0_i32 = arith.constant 0 : i32
    return %arg0, %arg1 : i32, i32
  }
}

module attributes {stable_mosaic.version = 11 : i64} {
  func.func @_mm_kernel(%arg0: i32, %arg1: i32, %arg2: i32, %arg3: memref<16x128xbf16, #tpu.memory_space<vmem>>, %arg4: memref<128x256xbf16, #tpu.memory_space<vmem>>, %arg5: memref<1x256xf32, #tpu.memory_space<vmem>>, %arg6: memref<16x256xbf16, #tpu.memory_space<vmem>>, %arg7: memref<16x256xf32, #tpu.memory_space<vmem>>) attributes {dimension_semantics = [#tpu.dimension_semantics<parallel>, #tpu.dimension_semantics<parallel>, #tpu.dimension_semantics<arbitrary>], iteration_bounds = array<i64: 1, 1, 1>, scalar_prefetch = 0 : i64, scratch_operands = 1 : i64, tpu.core_type = #tpu.core_type<tc>, window_params = [{transform_indices = @transform_0, window_bounds = array<i64: 16, 128>}, {transform_indices = @transform_1, window_bounds = array<i64: 128, 256>}, {transform_indices = @transform_2, window_bounds = array<i64: 1, 256>}, {transform_indices = @transform_3, window_bounds = array<i64: 16, 256>}]} {
    %c0_i32 = arith.constant 0 : i32
    %0 = arith.cmpi eq, %arg2, %c0_i32 : i32
    %1 = arith.extui %0 : i1 to i32
    %c0_i32_0 = arith.constant 0 : i32
    %2 = arith.cmpi ne, %1, %c0_i32_0 : i32
    scf.if %2 {
      %cst_10 = arith.constant 0.000000e+00 : f32
      %12 = vector.broadcast %cst_10 : f32 to vector<16x256xf32>
      %c0_11 = arith.constant 0 : index
      %c0_12 = arith.constant 0 : index
      %13 = vector.load %arg7[%c0_11, %c0_12] : memref<16x256xf32, #tpu.memory_space<vmem>>, vector<16x256xf32>
      tpu.vector_store %arg7[%c0_11, %c0_12], %12 {strides = array<i32>} : memref<16x256xf32, #tpu.memory_space<vmem>>, vector<16x256xf32>,
    } else {
    }
    %c0 = arith.constant 0 : index
    %c0_1 = arith.constant 0 : index
    %3 = vector.load %arg7[%c0, %c0_1] : memref<16x256xf32, #tpu.memory_space<vmem>>, vector<16x256xf32>
    %c0_2 = arith.constant 0 : index
    %c0_3 = arith.constant 0 : index
    %4 = vector.load %arg3[%c0_2, %c0_3] : memref<16x128xbf16, #tpu.memory_space<vmem>>, vector<16x128xbf16>
    %c0_4 = arith.constant 0 : index
    %c0_5 = arith.constant 0 : index
    %5 = vector.load %arg4[%c0_4, %c0_5] : memref<128x256xbf16, #tpu.memory_space<vmem>>, vector<128x256xbf16>
    %cst = arith.constant dense<0.000000e+00> : vector<16x256xf32>
    %6 = tpu.matmul %4, %5, %cst {dimension_numbers = #tpu.dot_dimension_numbers<[1], [0], [0], [1], [0, 0, 1, 1], [], []>} : vector<16x128xbf16>, vector<128x256xbf16>, vector<16x256xf32> -> vector<16x256xf32>
    %7 = arith.addf %3, %6 : vector<16x256xf32>
    %c0_6 = arith.constant 0 : index
    %c0_7 = arith.constant 0 : index
    %8 = vector.load %arg7[%c0_6, %c0_7] : memref<16x256xf32, #tpu.memory_space<vmem>>, vector<16x256xf32>
    tpu.vector_store %arg7[%c0_6, %c0_7], %7 {strides = array<i32>} : memref<16x256xf32, #tpu.memory_space<vmem>>, vector<16x256xf32>,
    %c0_i32_8 = arith.constant 0 : i32
    %9 = arith.cmpi eq, %arg2, %c0_i32_8 : i32
    %10 = arith.extui %9 : i1 to i32
    %c0_i32_9 = arith.constant 0 : i32
    %11 = arith.cmpi ne, %10, %c0_i32_9 : i32
    scf.if %11 {
      %c0_10 = arith.constant 0 : index
      %c0_11 = arith.constant 0 : index
      %12 = vector.load %arg7[%c0_10, %c0_11] : memref<16x256xf32, #tpu.memory_space<vmem>>, vector<16x256xf32>
      %c0_12 = arith.constant 0 : index
      %c0_13 = arith.constant 0 : index
      %13 = vector.load %arg5[%c0_12, %c0_13] : memref<1x256xf32, #tpu.memory_space<vmem>>, vector<1x256xf32>
      %14 = vector.broadcast %13 : vector<1x256xf32> to vector<16x256xf32>
      %15 = arith.addf %12, %14 : vector<16x256xf32>
      %16 = arith.truncf %15 : vector<16x256xf32> to vector<16x256xbf16>
      %c0_14 = arith.constant 0 : index
      %c0_15 = arith.constant 0 : index
      %17 = vector.load %arg6[%c0_14, %c0_15] : memref<16x256xbf16, #tpu.memory_space<vmem>>, vector<16x256xbf16>
      tpu.vector_store %arg6[%c0_14, %c0_15], %16 {strides = array<i32>} : memref<16x256xbf16, #tpu.memory_space<vmem>>, vector<16x256xbf16>,
    } else {
    }
    return
  }
  func.func @transform_0(%arg0: i32, %arg1: i32, %arg2: i32) -> (i32, i32) {
    %c0_i32 = arith.constant 0 : i32
    return %arg0, %arg2 : i32, i32
  }
  func.func @transform_1(%arg0: i32, %arg1: i32, %arg2: i32) -> (i32, i32) {
    %c0_i32 = arith.constant 0 : i32
    return %arg2, %arg1 : i32, i32
  }
  func.func @transform_2(%arg0: i32, %arg1: i32, %arg2: i32) -> (i32, i32) {
    %c0_i32 = arith.constant 0 : i32
    %c0_i32_0 = arith.constant 0 : i32
    return %c0_i32, %arg1 : i32, i32
  }
  func.func @transform_3(%arg0: i32, %arg1: i32, %arg2: i32) -> (i32, i32) {
    %c0_i32 = arith.constant 0 : i32
    return %arg0, %arg1 : i32, i32
  }
}

module attributes {stable_mosaic.version = 11 : i64} {
  func.func @_mm_kernel(%arg0: i32, %arg1: i32, %arg2: i32, %arg3: memref<16x256xbf16, #tpu.memory_space<vmem>>, %arg4: memref<256x256xbf16, #tpu.memory_space<vmem>>, %arg5: memref<1x256xf32, #tpu.memory_space<vmem>>, %arg6: memref<16x256xbf16, #tpu.memory_space<vmem>>, %arg7: memref<16x256xbf16, #tpu.memory_space<vmem>>, %arg8: memref<16x256xf32, #tpu.memory_space<vmem>>) attributes {dimension_semantics = [#tpu.dimension_semantics<parallel>, #tpu.dimension_semantics<parallel>, #tpu.dimension_semantics<arbitrary>], iteration_bounds = array<i64: 1, 1, 9>, scalar_prefetch = 0 : i64, scratch_operands = 1 : i64, tpu.core_type = #tpu.core_type<tc>, window_params = [{transform_indices = @transform_0, window_bounds = array<i64: 16, 256>}, {transform_indices = @transform_1, window_bounds = array<i64: 256, 256>}, {transform_indices = @transform_2, window_bounds = array<i64: 1, 256>}, {transform_indices = @transform_3, window_bounds = array<i64: 16, 256>}, {transform_indices = @transform_4, window_bounds = array<i64: 16, 256>}]} {
    %c0_i32 = arith.constant 0 : i32
    %0 = arith.cmpi eq, %arg2, %c0_i32 : i32
    %1 = arith.extui %0 : i1 to i32
    %c0_i32_0 = arith.constant 0 : i32
    %2 = arith.cmpi ne, %1, %c0_i32_0 : i32
    scf.if %2 {
      %cst_9 = arith.constant 0.000000e+00 : f32
      %12 = vector.broadcast %cst_9 : f32 to vector<16x256xf32>
      %c0_10 = arith.constant 0 : index
      %c0_11 = arith.constant 0 : index
      %13 = vector.load %arg8[%c0_10, %c0_11] : memref<16x256xf32, #tpu.memory_space<vmem>>, vector<16x256xf32>
      tpu.vector_store %arg8[%c0_10, %c0_11], %12 {strides = array<i32>} : memref<16x256xf32, #tpu.memory_space<vmem>>, vector<16x256xf32>,
    } else {
    }
    %c0 = arith.constant 0 : index
    %c0_1 = arith.constant 0 : index
    %3 = vector.load %arg8[%c0, %c0_1] : memref<16x256xf32, #tpu.memory_space<vmem>>, vector<16x256xf32>
    %c0_2 = arith.constant 0 : index
    %c0_3 = arith.constant 0 : index
    %4 = vector.load %arg3[%c0_2, %c0_3] : memref<16x256xbf16, #tpu.memory_space<vmem>>, vector<16x256xbf16>
    %c0_4 = arith.constant 0 : index
    %c0_5 = arith.constant 0 : index
    %5 = vector.load %arg4[%c0_4, %c0_5] : memref<256x256xbf16, #tpu.memory_space<vmem>>, vector<256x256xbf16>
    %cst = arith.constant dense<0.000000e+00> : vector<16x256xf32>
    %6 = tpu.matmul %4, %5, %cst {dimension_numbers = #tpu.dot_dimension_numbers<[1], [0], [0], [1], [0, 0, 1, 1], [], []>} : vector<16x256xbf16>, vector<256x256xbf16>, vector<16x256xf32> -> vector<16x256xf32>
    %7 = arith.addf %3, %6 : vector<16x256xf32>
    %c0_6 = arith.constant 0 : index
    %c0_7 = arith.constant 0 : index
    %8 = vector.load %arg8[%c0_6, %c0_7] : memref<16x256xf32, #tpu.memory_space<vmem>>, vector<16x256xf32>
    tpu.vector_store %arg8[%c0_6, %c0_7], %7 {strides = array<i32>} : memref<16x256xf32, #tpu.memory_space<vmem>>, vector<16x256xf32>,
    %c8_i32 = arith.constant 8 : i32
    %9 = arith.cmpi eq, %arg2, %c8_i32 : i32
    %10 = arith.extui %9 : i1 to i32
    %c0_i32_8 = arith.constant 0 : i32
    %11 = arith.cmpi ne, %10, %c0_i32_8 : i32
    scf.if %11 {
      %c0_9 = arith.constant 0 : index
      %c0_10 = arith.constant 0 : index
      %12 = vector.load %arg8[%c0_9, %c0_10] : memref<16x256xf32, #tpu.memory_space<vmem>>, vector<16x256xf32>
      %c0_11 = arith.constant 0 : index
      %c0_12 = arith.constant 0 : index
      %13 = vector.load %arg5[%c0_11, %c0_12] : memref<1x256xf32, #tpu.memory_space<vmem>>, vector<1x256xf32>
      %14 = vector.broadcast %13 : vector<1x256xf32> to vector<16x256xf32>
      %15 = arith.addf %12, %14 : vector<16x256xf32>
      %c0_13 = arith.constant 0 : index
      %c0_14 = arith.constant 0 : index
      %16 = vector.load %arg6[%c0_13, %c0_14] : memref<16x256xbf16, #tpu.memory_space<vmem>>, vector<16x256xbf16>
      %17 = arith.extf %16 : vector<16x256xbf16> to vector<16x256xf32>
      %18 = arith.addf %15, %17 : vector<16x256xf32>
      %cst_15 = arith.constant 0.000000e+00 : f32
      %19 = vector.broadcast %cst_15 : f32 to vector<16x256xf32>
      %20 = arith.maximumf %18, %19 : vector<16x256xf32>
      %21 = arith.truncf %20 : vector<16x256xf32> to vector<16x256xbf16>
      %c0_16 = arith.constant 0 : index
      %c0_17 = arith.constant 0 : index
      %22 = vector.load %arg7[%c0_16, %c0_17] : memref<16x256xbf16, #tpu.memory_space<vmem>>, vector<16x256xbf16>
      tpu.vector_store %arg7[%c0_16, %c0_17], %21 {strides = array<i32>} : memref<16x256xbf16, #tpu.memory_space<vmem>>, vector<16x256xbf16>,
    } else {
    }
    return
  }
  func.func @transform_0(%arg0: i32, %arg1: i32, %arg2: i32) -> (i32, i32) {
    %c0_i32 = arith.constant 0 : i32
    return %arg0, %arg2 : i32, i32
  }
  func.func @transform_1(%arg0: i32, %arg1: i32, %arg2: i32) -> (i32, i32) {
    %c0_i32 = arith.constant 0 : i32
    return %arg2, %arg1 : i32, i32
  }
  func.func @transform_2(%arg0: i32, %arg1: i32, %arg2: i32) -> (i32, i32) {
    %c0_i32 = arith.constant 0 : i32
    %c0_i32_0 = arith.constant 0 : i32
    return %c0_i32, %arg1 : i32, i32
  }
  func.func @transform_3(%arg0: i32, %arg1: i32, %arg2: i32) -> (i32, i32) {
    %c0_i32 = arith.constant 0 : i32
    return %arg0, %arg1 : i32, i32
  }
  func.func @transform_4(%arg0: i32, %arg1: i32, %arg2: i32) -> (i32, i32) {
    %c0_i32 = arith.constant 0 : i32
    return %arg0, %arg1 : i32, i32
  }
}

module attributes {stable_mosaic.version = 11 : i64} {
  func.func @_mm_kernel(%arg0: i32, %arg1: i32, %arg2: i32, %arg3: memref<16x256xbf16, #tpu.memory_space<vmem>>, %arg4: memref<256x256xbf16, #tpu.memory_space<vmem>>, %arg5: memref<1x256xf32, #tpu.memory_space<vmem>>, %arg6: memref<16x256xbf16, #tpu.memory_space<vmem>>, %arg7: memref<16x256xf32, #tpu.memory_space<vmem>>) attributes {dimension_semantics = [#tpu.dimension_semantics<parallel>, #tpu.dimension_semantics<parallel>, #tpu.dimension_semantics<arbitrary>], iteration_bounds = array<i64: 1, 1, 9>, scalar_prefetch = 0 : i64, scratch_operands = 1 : i64, tpu.core_type = #tpu.core_type<tc>, window_params = [{transform_indices = @transform_0, window_bounds = array<i64: 16, 256>}, {transform_indices = @transform_1, window_bounds = array<i64: 256, 256>}, {transform_indices = @transform_2, window_bounds = array<i64: 1, 256>}, {transform_indices = @transform_3, window_bounds = array<i64: 16, 256>}]} {
    %c0_i32 = arith.constant 0 : i32
    %0 = arith.cmpi eq, %arg2, %c0_i32 : i32
    %1 = arith.extui %0 : i1 to i32
    %c0_i32_0 = arith.constant 0 : i32
    %2 = arith.cmpi ne, %1, %c0_i32_0 : i32
    scf.if %2 {
      %cst_9 = arith.constant 0.000000e+00 : f32
      %12 = vector.broadcast %cst_9 : f32 to vector<16x256xf32>
      %c0_10 = arith.constant 0 : index
      %c0_11 = arith.constant 0 : index
      %13 = vector.load %arg7[%c0_10, %c0_11] : memref<16x256xf32, #tpu.memory_space<vmem>>, vector<16x256xf32>
      tpu.vector_store %arg7[%c0_10, %c0_11], %12 {strides = array<i32>} : memref<16x256xf32, #tpu.memory_space<vmem>>, vector<16x256xf32>,
    } else {
    }
    %c0 = arith.constant 0 : index
    %c0_1 = arith.constant 0 : index
    %3 = vector.load %arg7[%c0, %c0_1] : memref<16x256xf32, #tpu.memory_space<vmem>>, vector<16x256xf32>
    %c0_2 = arith.constant 0 : index
    %c0_3 = arith.constant 0 : index
    %4 = vector.load %arg3[%c0_2, %c0_3] : memref<16x256xbf16, #tpu.memory_space<vmem>>, vector<16x256xbf16>
    %c0_4 = arith.constant 0 : index
    %c0_5 = arith.constant 0 : index
    %5 = vector.load %arg4[%c0_4, %c0_5] : memref<256x256xbf16, #tpu.memory_space<vmem>>, vector<256x256xbf16>
    %cst = arith.constant dense<0.000000e+00> : vector<16x256xf32>
    %6 = tpu.matmul %4, %5, %cst {dimension_numbers = #tpu.dot_dimension_numbers<[1], [0], [0], [1], [0, 0, 1, 1], [], []>} : vector<16x256xbf16>, vector<256x256xbf16>, vector<16x256xf32> -> vector<16x256xf32>
    %7 = arith.addf %3, %6 : vector<16x256xf32>
    %c0_6 = arith.constant 0 : index
    %c0_7 = arith.constant 0 : index
    %8 = vector.load %arg7[%c0_6, %c0_7] : memref<16x256xf32, #tpu.memory_space<vmem>>, vector<16x256xf32>
    tpu.vector_store %arg7[%c0_6, %c0_7], %7 {strides = array<i32>} : memref<16x256xf32, #tpu.memory_space<vmem>>, vector<16x256xf32>,
    %c8_i32 = arith.constant 8 : i32
    %9 = arith.cmpi eq, %arg2, %c8_i32 : i32
    %10 = arith.extui %9 : i1 to i32
    %c0_i32_8 = arith.constant 0 : i32
    %11 = arith.cmpi ne, %10, %c0_i32_8 : i32
    scf.if %11 {
      %c0_9 = arith.constant 0 : index
      %c0_10 = arith.constant 0 : index
      %12 = vector.load %arg7[%c0_9, %c0_10] : memref<16x256xf32, #tpu.memory_space<vmem>>, vector<16x256xf32>
      %c0_11 = arith.constant 0 : index
      %c0_12 = arith.constant 0 : index
      %13 = vector.load %arg5[%c0_11, %c0_12] : memref<1x256xf32, #tpu.memory_space<vmem>>, vector<1x256xf32>
      %14 = vector.broadcast %13 : vector<1x256xf32> to vector<16x256xf32>
      %15 = arith.addf %12, %14 : vector<16x256xf32>
      %cst_13 = arith.constant 0.000000e+00 : f32
      %16 = vector.broadcast %cst_13 : f32 to vector<16x256xf32>
      %17 = arith.maximumf %15, %16 : vector<16x256xf32>
      %18 = arith.truncf %17 : vector<16x256xf32> to vector<16x256xbf16>
      %c0_14 = arith.constant 0 : index
      %c0_15 = arith.constant 0 : index
      %19 = vector.load %arg6[%c0_14, %c0_15] : memref<16x256xbf16, #tpu.memory_space<vmem>>, vector<16x256xbf16>
      tpu.vector_store %arg6[%c0_14, %c0_15], %18 {strides = array<i32>} : memref<16x256xbf16, #tpu.memory_space<vmem>>, vector<16x256xbf16>,
    } else {
    }
    return
  }
  func.func @transform_0(%arg0: i32, %arg1: i32, %arg2: i32) -> (i32, i32) {
    %c0_i32 = arith.constant 0 : i32
    return %arg0, %arg2 : i32, i32
  }
  func.func @transform_1(%arg0: i32, %arg1: i32, %arg2: i32) -> (i32, i32) {
    %c0_i32 = arith.constant 0 : i32
    return %arg2, %arg1 : i32, i32
  }
  func.func @transform_2(%arg0: i32, %arg1: i32, %arg2: i32) -> (i32, i32) {
    %c0_i32 = arith.constant 0 : i32
    %c0_i32_0 = arith.constant 0 : i32
    return %c0_i32, %arg1 : i32, i32
  }
  func.func @transform_3(%arg0: i32, %arg1: i32, %arg2: i32) -> (i32, i32) {
    %c0_i32 = arith.constant 0 : i32
    return %arg0, %arg1 : i32, i32
  }
}

module attributes {stable_mosaic.version = 11 : i64} {
  func.func @_mm_kernel(%arg0: i32, %arg1: i32, %arg2: i32, %arg3: memref<16x256xbf16, #tpu.memory_space<vmem>>, %arg4: memref<256x256xbf16, #tpu.memory_space<vmem>>, %arg5: memref<1x256xf32, #tpu.memory_space<vmem>>, %arg6: memref<16x256xbf16, #tpu.memory_space<vmem>>, %arg7: memref<16x256xf32, #tpu.memory_space<vmem>>) attributes {dimension_semantics = [#tpu.dimension_semantics<parallel>, #tpu.dimension_semantics<parallel>, #tpu.dimension_semantics<arbitrary>], iteration_bounds = array<i64: 1, 2, 9>, scalar_prefetch = 0 : i64, scratch_operands = 1 : i64, tpu.core_type = #tpu.core_type<tc>, window_params = [{transform_indices = @transform_0, window_bounds = array<i64: 16, 256>}, {transform_indices = @transform_1, window_bounds = array<i64: 256, 256>}, {transform_indices = @transform_2, window_bounds = array<i64: 1, 256>}, {transform_indices = @transform_3, window_bounds = array<i64: 16, 256>}]} {
    %c0_i32 = arith.constant 0 : i32
    %0 = arith.cmpi eq, %arg2, %c0_i32 : i32
    %1 = arith.extui %0 : i1 to i32
    %c0_i32_0 = arith.constant 0 : i32
    %2 = arith.cmpi ne, %1, %c0_i32_0 : i32
    scf.if %2 {
      %cst_9 = arith.constant 0.000000e+00 : f32
      %12 = vector.broadcast %cst_9 : f32 to vector<16x256xf32>
      %c0_10 = arith.constant 0 : index
      %c0_11 = arith.constant 0 : index
      %13 = vector.load %arg7[%c0_10, %c0_11] : memref<16x256xf32, #tpu.memory_space<vmem>>, vector<16x256xf32>
      tpu.vector_store %arg7[%c0_10, %c0_11], %12 {strides = array<i32>} : memref<16x256xf32, #tpu.memory_space<vmem>>, vector<16x256xf32>,
    } else {
    }
    %c0 = arith.constant 0 : index
    %c0_1 = arith.constant 0 : index
    %3 = vector.load %arg7[%c0, %c0_1] : memref<16x256xf32, #tpu.memory_space<vmem>>, vector<16x256xf32>
    %c0_2 = arith.constant 0 : index
    %c0_3 = arith.constant 0 : index
    %4 = vector.load %arg3[%c0_2, %c0_3] : memref<16x256xbf16, #tpu.memory_space<vmem>>, vector<16x256xbf16>
    %c0_4 = arith.constant 0 : index
    %c0_5 = arith.constant 0 : index
    %5 = vector.load %arg4[%c0_4, %c0_5] : memref<256x256xbf16, #tpu.memory_space<vmem>>, vector<256x256xbf16>
    %cst = arith.constant dense<0.000000e+00> : vector<16x256xf32>
    %6 = tpu.matmul %4, %5, %cst {dimension_numbers = #tpu.dot_dimension_numbers<[1], [0], [0], [1], [0, 0, 1, 1], [], []>} : vector<16x256xbf16>, vector<256x256xbf16>, vector<16x256xf32> -> vector<16x256xf32>
    %7 = arith.addf %3, %6 : vector<16x256xf32>
    %c0_6 = arith.constant 0 : index
    %c0_7 = arith.constant 0 : index
    %8 = vector.load %arg7[%c0_6, %c0_7] : memref<16x256xf32, #tpu.memory_space<vmem>>, vector<16x256xf32>
    tpu.vector_store %arg7[%c0_6, %c0_7], %7 {strides = array<i32>} : memref<16x256xf32, #tpu.memory_space<vmem>>, vector<16x256xf32>,
    %c8_i32 = arith.constant 8 : i32
    %9 = arith.cmpi eq, %arg2, %c8_i32 : i32
    %10 = arith.extui %9 : i1 to i32
    %c0_i32_8 = arith.constant 0 : i32
    %11 = arith.cmpi ne, %10, %c0_i32_8 : i32
    scf.if %11 {
      %c0_9 = arith.constant 0 : index
      %c0_10 = arith.constant 0 : index
      %12 = vector.load %arg7[%c0_9, %c0_10] : memref<16x256xf32, #tpu.memory_space<vmem>>, vector<16x256xf32>
      %c0_11 = arith.constant 0 : index
      %c0_12 = arith.constant 0 : index
      %13 = vector.load %arg5[%c0_11, %c0_12] : memref<1x256xf32, #tpu.memory_space<vmem>>, vector<1x256xf32>
      %14 = vector.broadcast %13 : vector<1x256xf32> to vector<16x256xf32>
      %15 = arith.addf %12, %14 : vector<16x256xf32>
      %cst_13 = arith.constant 0.000000e+00 : f32
      %16 = vector.broadcast %cst_13 : f32 to vector<16x256xf32>
      %17 = arith.maximumf %15, %16 : vector<16x256xf32>
      %18 = arith.truncf %17 : vector<16x256xf32> to vector<16x256xbf16>
      %c0_14 = arith.constant 0 : index
      %c0_15 = arith.constant 0 : index
      %19 = vector.load %arg6[%c0_14, %c0_15] : memref<16x256xbf16, #tpu.memory_space<vmem>>, vector<16x256xbf16>
      tpu.vector_store %arg6[%c0_14, %c0_15], %18 {strides = array<i32>} : memref<16x256xbf16, #tpu.memory_space<vmem>>, vector<16x256xbf16>,
    } else {
    }
    return
  }
  func.func @transform_0(%arg0: i32, %arg1: i32, %arg2: i32) -> (i32, i32) {
    %c0_i32 = arith.constant 0 : i32
    return %arg0, %arg2 : i32, i32
  }
  func.func @transform_1(%arg0: i32, %arg1: i32, %arg2: i32) -> (i32, i32) {
    %c0_i32 = arith.constant 0 : i32
    return %arg2, %arg1 : i32, i32
  }
  func.func @transform_2(%arg0: i32, %arg1: i32, %arg2: i32) -> (i32, i32) {
    %c0_i32 = arith.constant 0 : i32
    %c0_i32_0 = arith.constant 0 : i32
    return %c0_i32, %arg1 : i32, i32
  }
  func.func @transform_3(%arg0: i32, %arg1: i32, %arg2: i32) -> (i32, i32) {
    %c0_i32 = arith.constant 0 : i32
    return %arg0, %arg1 : i32, i32
  }
}

module attributes {stable_mosaic.version = 11 : i64} {
  func.func @_mm_kernel(%arg0: i32, %arg1: i32, %arg2: i32, %arg3: memref<16x256xbf16, #tpu.memory_space<vmem>>, %arg4: memref<256x256xbf16, #tpu.memory_space<vmem>>, %arg5: memref<1x256xf32, #tpu.memory_space<vmem>>, %arg6: memref<16x256xbf16, #tpu.memory_space<vmem>>, %arg7: memref<16x256xf32, #tpu.memory_space<vmem>>) attributes {dimension_semantics = [#tpu.dimension_semantics<parallel>, #tpu.dimension_semantics<parallel>, #tpu.dimension_semantics<arbitrary>], iteration_bounds = array<i64: 1, 2, 1>, scalar_prefetch = 0 : i64, scratch_operands = 1 : i64, tpu.core_type = #tpu.core_type<tc>, window_params = [{transform_indices = @transform_0, window_bounds = array<i64: 16, 256>}, {transform_indices = @transform_1, window_bounds = array<i64: 256, 256>}, {transform_indices = @transform_2, window_bounds = array<i64: 1, 256>}, {transform_indices = @transform_3, window_bounds = array<i64: 16, 256>}]} {
    %c0_i32 = arith.constant 0 : i32
    %0 = arith.cmpi eq, %arg2, %c0_i32 : i32
    %1 = arith.extui %0 : i1 to i32
    %c0_i32_0 = arith.constant 0 : i32
    %2 = arith.cmpi ne, %1, %c0_i32_0 : i32
    scf.if %2 {
      %cst_10 = arith.constant 0.000000e+00 : f32
      %12 = vector.broadcast %cst_10 : f32 to vector<16x256xf32>
      %c0_11 = arith.constant 0 : index
      %c0_12 = arith.constant 0 : index
      %13 = vector.load %arg7[%c0_11, %c0_12] : memref<16x256xf32, #tpu.memory_space<vmem>>, vector<16x256xf32>
      tpu.vector_store %arg7[%c0_11, %c0_12], %12 {strides = array<i32>} : memref<16x256xf32, #tpu.memory_space<vmem>>, vector<16x256xf32>,
    } else {
    }
    %c0 = arith.constant 0 : index
    %c0_1 = arith.constant 0 : index
    %3 = vector.load %arg7[%c0, %c0_1] : memref<16x256xf32, #tpu.memory_space<vmem>>, vector<16x256xf32>
    %c0_2 = arith.constant 0 : index
    %c0_3 = arith.constant 0 : index
    %4 = vector.load %arg3[%c0_2, %c0_3] : memref<16x256xbf16, #tpu.memory_space<vmem>>, vector<16x256xbf16>
    %c0_4 = arith.constant 0 : index
    %c0_5 = arith.constant 0 : index
    %5 = vector.load %arg4[%c0_4, %c0_5] : memref<256x256xbf16, #tpu.memory_space<vmem>>, vector<256x256xbf16>
    %cst = arith.constant dense<0.000000e+00> : vector<16x256xf32>
    %6 = tpu.matmul %4, %5, %cst {dimension_numbers = #tpu.dot_dimension_numbers<[1], [0], [0], [1], [0, 0, 1, 1], [], []>} : vector<16x256xbf16>, vector<256x256xbf16>, vector<16x256xf32> -> vector<16x256xf32>
    %7 = arith.addf %3, %6 : vector<16x256xf32>
    %c0_6 = arith.constant 0 : index
    %c0_7 = arith.constant 0 : index
    %8 = vector.load %arg7[%c0_6, %c0_7] : memref<16x256xf32, #tpu.memory_space<vmem>>, vector<16x256xf32>
    tpu.vector_store %arg7[%c0_6, %c0_7], %7 {strides = array<i32>} : memref<16x256xf32, #tpu.memory_space<vmem>>, vector<16x256xf32>,
    %c0_i32_8 = arith.constant 0 : i32
    %9 = arith.cmpi eq, %arg2, %c0_i32_8 : i32
    %10 = arith.extui %9 : i1 to i32
    %c0_i32_9 = arith.constant 0 : i32
    %11 = arith.cmpi ne, %10, %c0_i32_9 : i32
    scf.if %11 {
      %c0_10 = arith.constant 0 : index
      %c0_11 = arith.constant 0 : index
      %12 = vector.load %arg7[%c0_10, %c0_11] : memref<16x256xf32, #tpu.memory_space<vmem>>, vector<16x256xf32>
      %c0_12 = arith.constant 0 : index
      %c0_13 = arith.constant 0 : index
      %13 = vector.load %arg5[%c0_12, %c0_13] : memref<1x256xf32, #tpu.memory_space<vmem>>, vector<1x256xf32>
      %14 = vector.broadcast %13 : vector<1x256xf32> to vector<16x256xf32>
      %15 = arith.addf %12, %14 : vector<16x256xf32>
      %16 = arith.truncf %15 : vector<16x256xf32> to vector<16x256xbf16>
      %c0_14 = arith.constant 0 : index
      %c0_15 = arith.constant 0 : index
      %17 = vector.load %arg6[%c0_14, %c0_15] : memref<16x256xbf16, #tpu.memory_space<vmem>>, vector<16x256xbf16>
      tpu.vector_store %arg6[%c0_14, %c0_15], %16 {strides = array<i32>} : memref<16x256xbf16, #tpu.memory_space<vmem>>, vector<16x256xbf16>,
    } else {
    }
    return
  }
  func.func @transform_0(%arg0: i32, %arg1: i32, %arg2: i32) -> (i32, i32) {
    %c0_i32 = arith.constant 0 : i32
    return %arg0, %arg2 : i32, i32
  }
  func.func @transform_1(%arg0: i32, %arg1: i32, %arg2: i32) -> (i32, i32) {
    %c0_i32 = arith.constant 0 : i32
    return %arg2, %arg1 : i32, i32
  }
  func.func @transform_2(%arg0: i32, %arg1: i32, %arg2: i32) -> (i32, i32) {
    %c0_i32 = arith.constant 0 : i32
    %c0_i32_0 = arith.constant 0 : i32
    return %c0_i32, %arg1 : i32, i32
  }
  func.func @transform_3(%arg0: i32, %arg1: i32, %arg2: i32) -> (i32, i32) {
    %c0_i32 = arith.constant 0 : i32
    return %arg0, %arg1 : i32, i32
  }
}

module attributes {stable_mosaic.version = 11 : i64} {
  func.func @_mm_kernel(%arg0: i32, %arg1: i32, %arg2: i32, %arg3: memref<16x512xbf16, #tpu.memory_space<vmem>>, %arg4: memref<512x256xbf16, #tpu.memory_space<vmem>>, %arg5: memref<1x256xf32, #tpu.memory_space<vmem>>, %arg6: memref<16x256xbf16, #tpu.memory_space<vmem>>, %arg7: memref<16x256xbf16, #tpu.memory_space<vmem>>, %arg8: memref<16x256xf32, #tpu.memory_space<vmem>>) attributes {dimension_semantics = [#tpu.dimension_semantics<parallel>, #tpu.dimension_semantics<parallel>, #tpu.dimension_semantics<arbitrary>], iteration_bounds = array<i64: 1, 2, 9>, scalar_prefetch = 0 : i64, scratch_operands = 1 : i64, tpu.core_type = #tpu.core_type<tc>, window_params = [{transform_indices = @transform_0, window_bounds = array<i64: 16, 512>}, {transform_indices = @transform_1, window_bounds = array<i64: 512, 256>}, {transform_indices = @transform_2, window_bounds = array<i64: 1, 256>}, {transform_indices = @transform_3, window_bounds = array<i64: 16, 256>}, {transform_indices = @transform_4, window_bounds = array<i64: 16, 256>}]} {
    %c0_i32 = arith.constant 0 : i32
    %0 = arith.cmpi eq, %arg2, %c0_i32 : i32
    %1 = arith.extui %0 : i1 to i32
    %c0_i32_0 = arith.constant 0 : i32
    %2 = arith.cmpi ne, %1, %c0_i32_0 : i32
    scf.if %2 {
      %cst_9 = arith.constant 0.000000e+00 : f32
      %12 = vector.broadcast %cst_9 : f32 to vector<16x256xf32>
      %c0_10 = arith.constant 0 : index
      %c0_11 = arith.constant 0 : index
      %13 = vector.load %arg8[%c0_10, %c0_11] : memref<16x256xf32, #tpu.memory_space<vmem>>, vector<16x256xf32>
      tpu.vector_store %arg8[%c0_10, %c0_11], %12 {strides = array<i32>} : memref<16x256xf32, #tpu.memory_space<vmem>>, vector<16x256xf32>,
    } else {
    }
    %c0 = arith.constant 0 : index
    %c0_1 = arith.constant 0 : index
    %3 = vector.load %arg8[%c0, %c0_1] : memref<16x256xf32, #tpu.memory_space<vmem>>, vector<16x256xf32>
    %c0_2 = arith.constant 0 : index
    %c0_3 = arith.constant 0 : index
    %4 = vector.load %arg3[%c0_2, %c0_3] : memref<16x512xbf16, #tpu.memory_space<vmem>>, vector<16x512xbf16>
    %c0_4 = arith.constant 0 : index
    %c0_5 = arith.constant 0 : index
    %5 = vector.load %arg4[%c0_4, %c0_5] : memref<512x256xbf16, #tpu.memory_space<vmem>>, vector<512x256xbf16>
    %cst = arith.constant dense<0.000000e+00> : vector<16x256xf32>
    %6 = tpu.matmul %4, %5, %cst {dimension_numbers = #tpu.dot_dimension_numbers<[1], [0], [0], [1], [0, 0, 1, 1], [], []>} : vector<16x512xbf16>, vector<512x256xbf16>, vector<16x256xf32> -> vector<16x256xf32>
    %7 = arith.addf %3, %6 : vector<16x256xf32>
    %c0_6 = arith.constant 0 : index
    %c0_7 = arith.constant 0 : index
    %8 = vector.load %arg8[%c0_6, %c0_7] : memref<16x256xf32, #tpu.memory_space<vmem>>, vector<16x256xf32>
    tpu.vector_store %arg8[%c0_6, %c0_7], %7 {strides = array<i32>} : memref<16x256xf32, #tpu.memory_space<vmem>>, vector<16x256xf32>,
    %c8_i32 = arith.constant 8 : i32
    %9 = arith.cmpi eq, %arg2, %c8_i32 : i32
    %10 = arith.extui %9 : i1 to i32
    %c0_i32_8 = arith.constant 0 : i32
    %11 = arith.cmpi ne, %10, %c0_i32_8 : i32
    scf.if %11 {
      %c0_9 = arith.constant 0 : index
      %c0_10 = arith.constant 0 : index
      %12 = vector.load %arg8[%c0_9, %c0_10] : memref<16x256xf32, #tpu.memory_space<vmem>>, vector<16x256xf32>
      %c0_11 = arith.constant 0 : index
      %c0_12 = arith.constant 0 : index
      %13 = vector.load %arg5[%c0_11, %c0_12] : memref<1x256xf32, #tpu.memory_space<vmem>>, vector<1x256xf32>
      %14 = vector.broadcast %13 : vector<1x256xf32> to vector<16x256xf32>
      %15 = arith.addf %12, %14 : vector<16x256xf32>
      %c0_13 = arith.constant 0 : index
      %c0_14 = arith.constant 0 : index
      %16 = vector.load %arg6[%c0_13, %c0_14] : memref<16x256xbf16, #tpu.memory_space<vmem>>, vector<16x256xbf16>
      %17 = arith.extf %16 : vector<16x256xbf16> to vector<16x256xf32>
      %18 = arith.addf %15, %17 : vector<16x256xf32>
      %cst_15 = arith.constant 0.000000e+00 : f32
      %19 = vector.broadcast %cst_15 : f32 to vector<16x256xf32>
      %20 = arith.maximumf %18, %19 : vector<16x256xf32>
      %21 = arith.truncf %20 : vector<16x256xf32> to vector<16x256xbf16>
      %c0_16 = arith.constant 0 : index
      %c0_17 = arith.constant 0 : index
      %22 = vector.load %arg7[%c0_16, %c0_17] : memref<16x256xbf16, #tpu.memory_space<vmem>>, vector<16x256xbf16>
      tpu.vector_store %arg7[%c0_16, %c0_17], %21 {strides = array<i32>} : memref<16x256xbf16, #tpu.memory_space<vmem>>, vector<16x256xbf16>,
    } else {
    }
    return
  }
  func.func @transform_0(%arg0: i32, %arg1: i32, %arg2: i32) -> (i32, i32) {
    %c0_i32 = arith.constant 0 : i32
    return %arg0, %arg2 : i32, i32
  }
  func.func @transform_1(%arg0: i32, %arg1: i32, %arg2: i32) -> (i32, i32) {
    %c0_i32 = arith.constant 0 : i32
    return %arg2, %arg1 : i32, i32
  }
  func.func @transform_2(%arg0: i32, %arg1: i32, %arg2: i32) -> (i32, i32) {
    %c0_i32 = arith.constant 0 : i32
    %c0_i32_0 = arith.constant 0 : i32
    return %c0_i32, %arg1 : i32, i32
  }
  func.func @transform_3(%arg0: i32, %arg1: i32, %arg2: i32) -> (i32, i32) {
    %c0_i32 = arith.constant 0 : i32
    return %arg0, %arg1 : i32, i32
  }
  func.func @transform_4(%arg0: i32, %arg1: i32, %arg2: i32) -> (i32, i32) {
    %c0_i32 = arith.constant 0 : i32
    return %arg0, %arg1 : i32, i32
  }
}

module attributes {stable_mosaic.version = 11 : i64} {
  func.func @_mm_kernel(%arg0: i32, %arg1: i32, %arg2: i32, %arg3: memref<16x512xbf16, #tpu.memory_space<vmem>>, %arg4: memref<512x256xbf16, #tpu.memory_space<vmem>>, %arg5: memref<1x256xf32, #tpu.memory_space<vmem>>, %arg6: memref<16x256xbf16, #tpu.memory_space<vmem>>, %arg7: memref<16x256xf32, #tpu.memory_space<vmem>>) attributes {dimension_semantics = [#tpu.dimension_semantics<parallel>, #tpu.dimension_semantics<parallel>, #tpu.dimension_semantics<arbitrary>], iteration_bounds = array<i64: 1, 2, 9>, scalar_prefetch = 0 : i64, scratch_operands = 1 : i64, tpu.core_type = #tpu.core_type<tc>, window_params = [{transform_indices = @transform_0, window_bounds = array<i64: 16, 512>}, {transform_indices = @transform_1, window_bounds = array<i64: 512, 256>}, {transform_indices = @transform_2, window_bounds = array<i64: 1, 256>}, {transform_indices = @transform_3, window_bounds = array<i64: 16, 256>}]} {
    %c0_i32 = arith.constant 0 : i32
    %0 = arith.cmpi eq, %arg2, %c0_i32 : i32
    %1 = arith.extui %0 : i1 to i32
    %c0_i32_0 = arith.constant 0 : i32
    %2 = arith.cmpi ne, %1, %c0_i32_0 : i32
    scf.if %2 {
      %cst_9 = arith.constant 0.000000e+00 : f32
      %12 = vector.broadcast %cst_9 : f32 to vector<16x256xf32>
      %c0_10 = arith.constant 0 : index
      %c0_11 = arith.constant 0 : index
      %13 = vector.load %arg7[%c0_10, %c0_11] : memref<16x256xf32, #tpu.memory_space<vmem>>, vector<16x256xf32>
      tpu.vector_store %arg7[%c0_10, %c0_11], %12 {strides = array<i32>} : memref<16x256xf32, #tpu.memory_space<vmem>>, vector<16x256xf32>,
    } else {
    }
    %c0 = arith.constant 0 : index
    %c0_1 = arith.constant 0 : index
    %3 = vector.load %arg7[%c0, %c0_1] : memref<16x256xf32, #tpu.memory_space<vmem>>, vector<16x256xf32>
    %c0_2 = arith.constant 0 : index
    %c0_3 = arith.constant 0 : index
    %4 = vector.load %arg3[%c0_2, %c0_3] : memref<16x512xbf16, #tpu.memory_space<vmem>>, vector<16x512xbf16>
    %c0_4 = arith.constant 0 : index
    %c0_5 = arith.constant 0 : index
    %5 = vector.load %arg4[%c0_4, %c0_5] : memref<512x256xbf16, #tpu.memory_space<vmem>>, vector<512x256xbf16>
    %cst = arith.constant dense<0.000000e+00> : vector<16x256xf32>
    %6 = tpu.matmul %4, %5, %cst {dimension_numbers = #tpu.dot_dimension_numbers<[1], [0], [0], [1], [0, 0, 1, 1], [], []>} : vector<16x512xbf16>, vector<512x256xbf16>, vector<16x256xf32> -> vector<16x256xf32>
    %7 = arith.addf %3, %6 : vector<16x256xf32>
    %c0_6 = arith.constant 0 : index
    %c0_7 = arith.constant 0 : index
    %8 = vector.load %arg7[%c0_6, %c0_7] : memref<16x256xf32, #tpu.memory_space<vmem>>, vector<16x256xf32>
    tpu.vector_store %arg7[%c0_6, %c0_7], %7 {strides = array<i32>} : memref<16x256xf32, #tpu.memory_space<vmem>>, vector<16x256xf32>,
    %c8_i32 = arith.constant 8 : i32
    %9 = arith.cmpi eq, %arg2, %c8_i32 : i32
    %10 = arith.extui %9 : i1 to i32
    %c0_i32_8 = arith.constant 0 : i32
    %11 = arith.cmpi ne, %10, %c0_i32_8 : i32
    scf.if %11 {
      %c0_9 = arith.constant 0 : index
      %c0_10 = arith.constant 0 : index
      %12 = vector.load %arg7[%c0_9, %c0_10] : memref<16x256xf32, #tpu.memory_space<vmem>>, vector<16x256xf32>
      %c0_11 = arith.constant 0 : index
      %c0_12 = arith.constant 0 : index
      %13 = vector.load %arg5[%c0_11, %c0_12] : memref<1x256xf32, #tpu.memory_space<vmem>>, vector<1x256xf32>
      %14 = vector.broadcast %13 : vector<1x256xf32> to vector<16x256xf32>
      %15 = arith.addf %12, %14 : vector<16x256xf32>
      %cst_13 = arith.constant 0.000000e+00 : f32
      %16 = vector.broadcast %cst_13 : f32 to vector<16x256xf32>
      %17 = arith.maximumf %15, %16 : vector<16x256xf32>
      %18 = arith.truncf %17 : vector<16x256xf32> to vector<16x256xbf16>
      %c0_14 = arith.constant 0 : index
      %c0_15 = arith.constant 0 : index
      %19 = vector.load %arg6[%c0_14, %c0_15] : memref<16x256xbf16, #tpu.memory_space<vmem>>, vector<16x256xbf16>
      tpu.vector_store %arg6[%c0_14, %c0_15], %18 {strides = array<i32>} : memref<16x256xbf16, #tpu.memory_space<vmem>>, vector<16x256xbf16>,
    } else {
    }
    return
  }
  func.func @transform_0(%arg0: i32, %arg1: i32, %arg2: i32) -> (i32, i32) {
    %c0_i32 = arith.constant 0 : i32
    return %arg0, %arg2 : i32, i32
  }
  func.func @transform_1(%arg0: i32, %arg1: i32, %arg2: i32) -> (i32, i32) {
    %c0_i32 = arith.constant 0 : i32
    return %arg2, %arg1 : i32, i32
  }
  func.func @transform_2(%arg0: i32, %arg1: i32, %arg2: i32) -> (i32, i32) {
    %c0_i32 = arith.constant 0 : i32
    %c0_i32_0 = arith.constant 0 : i32
    return %c0_i32, %arg1 : i32, i32
  }
  func.func @transform_3(%arg0: i32, %arg1: i32, %arg2: i32) -> (i32, i32) {
    %c0_i32 = arith.constant 0 : i32
    return %arg0, %arg1 : i32, i32
  }
}

module attributes {stable_mosaic.version = 11 : i64} {
  func.func @_head_kernel(%arg0: i32, %arg1: memref<2x1x512xbf16, #tpu.memory_space<vmem>>, %arg2: memref<512x512xf32, #tpu.memory_space<vmem>>, %arg3: memref<1x512xf32, #tpu.memory_space<vmem>>, %arg4: memref<1x512xf32, #tpu.memory_space<vmem>>, %arg5: memref<1x1xf32, #tpu.memory_space<vmem>>, %arg6: memref<2x1xf32, #tpu.memory_space<vmem>>) attributes {dimension_semantics = [#tpu.dimension_semantics<arbitrary>], iteration_bounds = array<i64: 1>, scalar_prefetch = 0 : i64, scratch_operands = 0 : i64, tpu.core_type = #tpu.core_type<tc>, window_params = [{pipeline_mode = #tpu.pipeline_mode<synchronous>, transform_indices = @transform_0, window_bounds = array<i64: 2, 1, 512>}, {pipeline_mode = #tpu.pipeline_mode<synchronous>, transform_indices = @transform_1, window_bounds = array<i64: 512, 512>}, {pipeline_mode = #tpu.pipeline_mode<synchronous>, transform_indices = @transform_2, window_bounds = array<i64: 1, 512>}, {pipeline_mode = #tpu.pipeline_mode<synchronous>, transform_indices = @transform_3, window_bounds = array<i64: 1, 512>}, {pipeline_mode = #tpu.pipeline_mode<synchronous>, transform_indices = @transform_4, window_bounds = array<i64: 1, 1>}, {pipeline_mode = #tpu.pipeline_mode<synchronous>, transform_indices = @transform_5, window_bounds = array<i64: 2, 1>}]} {
    %c0 = arith.constant 0 : index
    %c0_0 = arith.constant 0 : index
    %c0_1 = arith.constant 0 : index
    %0 = vector.load %arg1[%c0, %c0_0, %c0_1] : memref<2x1x512xbf16, #tpu.memory_space<vmem>>, vector<2x1x512xbf16>
    %1 = arith.extf %0 : vector<2x1x512xbf16> to vector<2x1x512xf32>
    %cst = arith.constant dense<0.000000e+00> : vector<2x512xf32>
    %2 = vector.multi_reduction <add>, %1, %cst [1] : vector<2x1x512xf32> to vector<2x512xf32>
    %cst_2 = arith.constant 1.000000e+00 : f32
    %3 = vector.broadcast %cst_2 : f32 to vector<2x512xf32>
    %4 = arith.mulf %2, %3 : vector<2x512xf32>
    %c0_3 = arith.constant 0 : index
    %c0_4 = arith.constant 0 : index
    %5 = vector.load %arg2[%c0_3, %c0_4] : memref<512x512xf32, #tpu.memory_space<vmem>>, vector<512x512xf32>
    %cst_5 = arith.constant dense<0.000000e+00> : vector<2x512xf32>
    %6 = tpu.matmul %4, %5, %cst_5 {dimension_numbers = #tpu.dot_dimension_numbers<[1], [0], [0], [1], [0, 0, 1, 1], [], []>} : vector<2x512xf32>, vector<512x512xf32>, vector<2x512xf32> -> vector<2x512xf32>
    %c0_6 = arith.constant 0 : index
    %c0_7 = arith.constant 0 : index
    %7 = vector.load %arg3[%c0_6, %c0_7] : memref<1x512xf32, #tpu.memory_space<vmem>>, vector<1x512xf32>
    %8 = vector.broadcast %7 : vector<1x512xf32> to vector<2x512xf32>
    %9 = arith.addf %6, %8 : vector<2x512xf32>
    %cst_8 = arith.constant 0.000000e+00 : f32
    %10 = vector.broadcast %cst_8 : f32 to vector<2x512xf32>
    %11 = arith.maximumf %9, %10 : vector<2x512xf32>
    %c0_9 = arith.constant 0 : index
    %c0_10 = arith.constant 0 : index
    %12 = vector.load %arg4[%c0_9, %c0_10] : memref<1x512xf32, #tpu.memory_space<vmem>>, vector<1x512xf32>
    %13 = vector.broadcast %12 : vector<1x512xf32> to vector<2x512xf32>
    %14 = arith.mulf %11, %13 : vector<2x512xf32>
    %cst_11 = arith.constant dense<0.000000e+00> : vector<2xf32>
    %15 = vector.multi_reduction <add>, %14, %cst_11 [1] : vector<2x512xf32> to vector<2xf32>
    %16 = vector.shape_cast %15 : vector<2xf32> to vector<2x1xf32>
    %c0_12 = arith.constant 0 : index
    %c0_13 = arith.constant 0 : index
    %17 = vector.load %arg5[%c0_12, %c0_13] : memref<1x1xf32, #tpu.memory_space<vmem>>, vector<1x1xf32>
    %18 = vector.broadcast %17 : vector<1x1xf32> to vector<2x1xf32>
    %19 = arith.addf %16, %18 : vector<2x1xf32>
    %cst_14 = arith.constant 5.000000e-01 : f32
    %20 = vector.broadcast %cst_14 : f32 to vector<2x1xf32>
    %21 = arith.mulf %20, %19 : vector<2x1xf32>
    %22 = math.tanh %21 : vector<2x1xf32>
    %cst_15 = arith.constant 1.000000e+00 : f32
    %23 = vector.broadcast %cst_15 : f32 to vector<2x1xf32>
    %24 = arith.addf %22, %23 : vector<2x1xf32>
    %cst_16 = arith.constant 5.000000e-01 : f32
    %25 = vector.broadcast %cst_16 : f32 to vector<2x1xf32>
    %26 = arith.mulf %25, %24 : vector<2x1xf32>
    %c0_17 = arith.constant 0 : index
    %c0_18 = arith.constant 0 : index
    %27 = vector.load %arg6[%c0_17, %c0_18] : memref<2x1xf32, #tpu.memory_space<vmem>>, vector<2x1xf32>
    tpu.vector_store %arg6[%c0_17, %c0_18], %26 {strides = array<i32>} : memref<2x1xf32, #tpu.memory_space<vmem>>, vector<2x1xf32>,
    return
  }
  func.func @transform_0(%arg0: i32) -> (i32, i32, i32) {
    %c0_i32 = arith.constant 0 : i32
    %c0_i32_0 = arith.constant 0 : i32
    %c0_i32_1 = arith.constant 0 : i32
    %c0_i32_2 = arith.constant 0 : i32
    return %c0_i32, %c0_i32_0, %c0_i32_1 : i32, i32, i32
  }
  func.func @transform_1(%arg0: i32) -> (i32, i32) {
    %c0_i32 = arith.constant 0 : i32
    %c0_i32_0 = arith.constant 0 : i32
    %c0_i32_1 = arith.constant 0 : i32
    return %c0_i32, %c0_i32_0 : i32, i32
  }
  func.func @transform_2(%arg0: i32) -> (i32, i32) {
    %c0_i32 = arith.constant 0 : i32
    %c0_i32_0 = arith.constant 0 : i32
    %c0_i32_1 = arith.constant 0 : i32
    return %c0_i32, %c0_i32_0 : i32, i32
  }
  func.func @transform_3(%arg0: i32) -> (i32, i32) {
    %c0_i32 = arith.constant 0 : i32
    %c0_i32_0 = arith.constant 0 : i32
    %c0_i32_1 = arith.constant 0 : i32
    return %c0_i32, %c0_i32_0 : i32, i32
  }
  func.func @transform_4(%arg0: i32) -> (i32, i32) {
    %c0_i32 = arith.constant 0 : i32
    %c0_i32_0 = arith.constant 0 : i32
    %c0_i32_1 = arith.constant 0 : i32
    return %c0_i32, %c0_i32_0 : i32, i32
  }
  func.func @transform_5(%arg0: i32) -> (i32, i32) {
    %c0_i32 = arith.constant 0 : i32
    %c0_i32_0 = arith.constant 0 : i32
    %c0_i32_1 = arith.constant 0 : i32
    return %c0_i32, %c0_i32_0 : i32, i32
  }
}

</mosaic_0001>

<bundles_post_ra>
// kernel: tbmodel_forward.21
= control target key start
LH: loop header
LB: loop body
LE: loop exit
PB: predicated region body
PF: predicated region fallthrough
CT: control target
= control target key end

     0   :  { %s1402_s12 = smov 0   ;;  %s1404_s13 = smov 0   ;;  %s1668_s0 = inlined_call_operand.vmem [shape: bf16[512,49], index: 0, kind: input, shape index: {}]   ;;  %s1669_s1 = inlined_call_operand.vmem [shape: bf16[49,64], index: 1, kind: input, shape index: {}]   ;;  %s1670_s2 = inlined_call_operand.vmem [shape: f32[1,64], index: 2, kind: input, shape index: {}]   ;;  %s1671_s3 = inlined_call_operand.vmem [shape: bf16[512,64], index: 3, kind: output, shape index: {}]  }
   0x1   :  { %s1406_s14 = smov 0  }
   0x2 LB: > { %s32_s15 = sadd.s32 1, %s1374_s13  ;;  %p1134_p0 = scmp.ge.s32.totalorder %s1378_s14, 1  ;;  %s1378_s14 = sphi %s1406_s14, %s13_s14   ;;  %s1374_s13 = sphi %s1404_s13, %s1674_s13   ;;  %s1370_s12 = sphi %s1402_s12, %s1673_s12  }
   0x3   : > { %p34_p1 = scmp.ge.s32.totalorder %s32_s15, 2  ;;  %p188_p2 = scmp.lt.s32.totalorder %s1378_s14, 3 }
   0x5   : > { %s1676_s15 = smov (%p34_p1, %s32_s15), 0  ;;  %p189_p3 = pnand %p1134_p0, %p188_p2 }
   0x6   : > { %v1336_v0 = vld [vmem:[%s1669_s1] sm:$0xff] (!%p189_p3)   ;;  %v1337_v1 = vld [vmem:[%s1669_s1 + $0x8] sm:$0xff] (!%p189_p3)   ;;  %vm518_vm0 = vcmask (!%p189_p3), 1040384   ;;  %v1338_v2 = vld [vmem:[%s1669_s1 + $0x10] sm:$0xff] (!%p189_p3)   ;;  %s1135_s22 = sshll.u32 (!%p189_p3), %s1370_s12, 5  ;;  %vm264_vm1 = vcmask (!%p189_p3), 523264  }
   0x7   : > { %192 = sbr.rel (%p189_p3) target bundleno = 284 (0x11c), region = 32  ;;  %1262 = vmatprep.subr.bf16.mxu0 (!%p189_p3), %v1336_v0  ;;  %1302 = vmatprep.subr.bf16.mxu1 (!%p189_p3), %v1336_v0  ;;  %v1339_v3 = vld [vmem:[%s1669_s1 + $0x18] ss:$0 sps:$4 sm:$0x11] (!%p189_p3)   ;;  %p1437_p4 = scmp.lt.s32.totalorder (!%p189_p3), %s1135_s22, 63  ;;  %v1380_v4 = vmov (!%p189_p3), 0  }
   0x8   : > { %1263 = vmatpush3.bf16.msra.mxu0 (!%p189_p3), %v1336_v0  ;;  %1306 = vmatpush3.bf16.msra.mxu1 (!%p189_p3), %v1336_v0  ;;  %v520_v5 = vsel (!%p189_p3), %vm518_vm0, 65535, %v1380_v4  ;;  %v1381_v6 = vmov (!%p189_p3), 0.0   ;;  %vm469_vm2 = vcmask (!%p189_p3), 400384   ;;  %v1530_v52 = vld [vmem:[%s1670_s2] ss:$0 sm:$0xff] (!%p189_p3)  ;;  %vm984_vm3 = vcmask (!%p189_p3), 519168  }
   0x9   : > { %1264 = vmatprep.subr.bf16.mxu0 (!%p189_p3), %v1337_v1  ;;  %1303 = vmatprep.subr.bf16.mxu1 (!%p189_p3), %v1337_v1  ;;  %267 = vst.msk [vmem:[#allocation2 + $0x10] sm:$0xff] (!%p189_p3), %vm264_vm1, %v1381_v6  ;;  %265 = vst.msk [vmem:[#allocation2] sm:$0xff] (!%p189_p3), %vm264_vm1, %v1381_v6  ;;  %v522_v7 = vand.u32 (!%p189_p3), %v1339_v3, %v520_v5 }
   0xa   : > { %266 = vst.msk [vmem:[#allocation2 + $0x8] sm:$0xff] (!%p189_p3), %vm264_vm1, %v1381_v6  ;;  %268 = vst.msk [vmem:[#allocation2 + $0x18] sm:$0xff] (!%p189_p3), %vm264_vm1, %v1381_v6 }
   0xb   : > { %269 = vst.msk [vmem:[#allocation2 + $0x20] sm:$0xff] (!%p189_p3), %vm264_vm1, %v1381_v6  ;;  %270 = vst.msk [vmem:[#allocation2 + $0x28] sm:$0xff] (!%p189_p3), %vm264_vm1, %v1381_v6 }
   0xc   : > { %271 = vst.msk [vmem:[#allocation2 + $0x30] sm:$0xff] (!%p189_p3), %vm264_vm1, %v1381_v6  ;;  %272 = vst.msk [vmem:[#allocation2 + $0x38] sm:$0xff] (!%p189_p3), %vm264_vm1, %v1381_v6  ;;  %1265 = vmatpush3.bf16.msra.mxu0 (!%p189_p3), %v1337_v1  ;;  %1307 = vmatpush3.bf16.msra.mxu1 (!%p189_p3), %v1337_v1 }
   0xd   : > { %273 = vst.msk [vmem:[#allocation2 + $0x40] sm:$0xff] (!%p189_p3), %vm264_vm1, %v1381_v6  ;;  %274 = vst.msk [vmem:[#allocation2 + $0x48] sm:$0xff] (!%p189_p3), %vm264_vm1, %v1381_v6  ;;  %1266 = vmatprep.subr.bf16.mxu0 (!%p189_p3), %v1338_v2  ;;  %1304 = vmatprep.subr.bf16.mxu1 (!%p189_p3), %v1338_v2 }
   0xe   : > { %275 = vst.msk [vmem:[#allocation2 + $0x50] sm:$0xff] %vm264_vm1, %v1381_v6  ;;  %276 = vst.msk [vmem:[#allocation2 + $0x58] sm:$0xff] %vm264_vm1, %v1381_v6  ;;  %s1678_s22 = smov (!%p1437_p4, %s1135_s22), 63 }
   0xf   : > { %277 = vst.msk [vmem:[#allocation2 + $0x60] sm:$0xff] %vm264_vm1, %v1381_v6  ;;  %278 = vst.msk [vmem:[#allocation2 + $0x68] sm:$0xff] %vm264_vm1, %v1381_v6  ;;  %s1136_s26 = sshll.u32 %s1678_s22, 2 }
  0x10   : > { %279 = vst.msk [vmem:[#allocation2 + $0x70] sm:$0xff] %vm264_vm1, %v1381_v6  ;;  %280 = vst.msk [vmem:[#allocation2 + $0x78] sm:$0xff] %vm264_vm1, %v1381_v6  ;;  %s1485_s29 = scalar_lea.vmem %s1668_s0, %s1136_s26  ;;  %1267 = vmatpush3.bf16.msra.mxu0 %v1338_v2  ;;  %1308 = vmatpush3.bf16.msra.mxu1 %v1338_v2  ;;  %v299_v24 = vld [vmem:[#allocation2 + $0x10] sm:$0xff]  ;;  %v297_v26 = vld [vmem:[#allocation2] sm:$0xff]  ;;  %s1549_s7 = scalar_lea.vmem %s1671_s3, %s1136_s26 }
  0x11   : > { %281 = vst.msk [vmem:[#allocation2 + $0x80] sm:$0xff] %vm264_vm1, %v1381_v6  ;;  %282 = vst.msk [vmem:[#allocation2 + $0x88] sm:$0xff] %vm264_vm1, %v1381_v6  ;;  %v1340_v8 = vld [vmem:[%s1485_s29] sm:$0xff]   ;;  %1268 = vmatprep.subr.bf16.mxu0 %v522_v7  ;;  %1305 = vmatprep.subr.bf16.mxu1 %v522_v7  ;;  %v1342_v10 = vld [vmem:[%s1485_s29 + $0x8] sm:$0xff]  }
  0x12   : > { %283 = vst.msk [vmem:[#allocation2 + $0x90] sm:$0xff] %vm264_vm1, %v1381_v6  ;;  %284 = vst.msk [vmem:[#allocation2 + $0x98] sm:$0xff] %vm264_vm1, %v1381_v6  ;;  %v1341_v9 = vld [vmem:[%s1485_s29 + $0x40] sm:$0xff]   ;;  %1270 = vmatprep.mubr.msk.bf16.mxu0 %vm469_vm2, %v1340_v8  ;;  %v1343_v11 = vld [vmem:[%s1485_s29 + $0x48] sm:$0xff]  }
  0x13   : > { %285 = vst.msk [vmem:[#allocation2 + $0xa0] sm:$0xff] %vm264_vm1, %v1381_v6  ;;  %286 = vst.msk [vmem:[#allocation2 + $0xa8] sm:$0xff] %vm264_vm1, %v1381_v6  ;;  %1286 = vmatprep.mubr.msk.bf16.mxu1 %vm469_vm2, %v1341_v9  ;;  %v1344_v12 = vld [vmem:[%s1485_s29 + $0x10] sm:$0xff]   ;;  %v1346_v14 = vld [vmem:[%s1485_s29 + $0x18] sm:$0xff]  }
  0x14   : > { %287 = vst.msk [vmem:[#allocation2 + $0xb0] sm:$0xff] %vm264_vm1, %v1381_v6  ;;  %288 = vst.msk [vmem:[#allocation2 + $0xb8] sm:$0xff] %vm264_vm1, %v1381_v6  ;;  %1269 = vmatpush3.bf16.msra.mxu0 %v522_v7  ;;  %1309 = vmatpush3.bf16.msra.mxu1 %v522_v7  ;;  %v1345_v13 = vld [vmem:[%s1485_s29 + $0x50] sm:$0xff]   ;;  %v1347_v15 = vld [vmem:[%s1485_s29 + $0x58] sm:$0xff]  }
  0x15   : > { %289 = vst.msk [vmem:[#allocation2 + $0xc0] sm:$0xff] %vm264_vm1, %v1381_v6  ;;  %290 = vst.msk [vmem:[#allocation2 + $0xc8] sm:$0xff] %vm264_vm1, %v1381_v6  ;;  %v1348_v16 = vld [vmem:[%s1485_s29 + $0x20] sm:$0xff]   ;;  %v1350_v18 = vld [vmem:[%s1485_s29 + $0x28] sm:$0xff]  }
  0x16   : > { %291 = vst.msk [vmem:[#allocation2 + $0xd0] sm:$0xff] %vm264_vm1, %v1381_v6  ;;  %292 = vst.msk [vmem:[#allocation2 + $0xd8] sm:$0xff] %vm264_vm1, %v1381_v6  ;;  %v1349_v17 = vld [vmem:[%s1485_s29 + $0x60] sm:$0xff]   ;;  %v1351_v19 = vld [vmem:[%s1485_s29 + $0x68] sm:$0xff]  }
  0x17   : > { %293 = vst.msk [vmem:[#allocation2 + $0xe0] sm:$0xff] %vm264_vm1, %v1381_v6  ;;  %294 = vst.msk [vmem:[#allocation2 + $0xe8] sm:$0xff] %vm264_vm1, %v1381_v6  ;;  %1271 = vmatmul.mubr.msk.bf16.vlgmr.msra.gmra.mrb[0].mxu0 %vm469_vm2, %v1342_v10  ;;  %1287 = vmatmul.mubr.msk.bf16.vlgmr.msra.gmra.mrb[0].mxu1 %vm469_vm2, %v1343_v11  ;;  %v1352_v20 = vld [vmem:[%s1485_s29 + $0x30] sm:$0xff]   ;;  %v1354_v22 = vld [vmem:[%s1485_s29 + $0x38] sm:$0xff]  }
  0x18   : > { %295 = vst.msk [vmem:[#allocation2 + $0xf0] sm:$0xff] %vm264_vm1, %v1381_v6  ;;  %296 = vst.msk [vmem:[#allocation2 + $0xf8] sm:$0xff] %vm264_vm1, %v1381_v6  ;;  %1274 = vmatprep.mubr.msk.bf16.mxu0 %vm469_vm2, %v1344_v12  ;;  %1290 = vmatprep.mubr.msk.bf16.mxu1 %vm469_vm2, %v1345_v13  ;;  %v1353_v21 = vld [vmem:[%s1485_s29 + $0x70] sm:$0xff]   ;;  %v1355_v23 = vld [vmem:[%s1485_s29 + $0x78] sm:$0xff]  }
  0x19   : > { %v315_v25 = vld [vmem:[#allocation2 + $0x90] sm:$0xff]  ;;  %v313_v27 = vld [vmem:[#allocation2 + $0x80] sm:$0xff]  ;;  %v300_v30 = vld [vmem:[#allocation2 + $0x18] sm:$0xff] }
  0x1a   : > { %v316_v31 = vld [vmem:[#allocation2 + $0x98] sm:$0xff]  ;;  %v298_v36 = vld [vmem:[#allocation2 + $0x8] sm:$0xff]  ;;  %v303_v48 = vld [vmem:[#allocation2 + $0x30] sm:$0xff] }
  0x1b   : > { %v314_v37 = vld [vmem:[#allocation2 + $0x88] sm:$0xff]  ;;  %v319_v49 = vld [vmem:[#allocation2 + $0xb0] sm:$0xff]  ;;  %v301_v50 = vld [vmem:[#allocation2 + $0x20] sm:$0xff] }
  0x1c   : > { %v317_v51 = vld [vmem:[#allocation2 + $0xa0] sm:$0xff]  ;;  %v304_v55 = vld [vmem:[#allocation2 + $0x38] sm:$0xff]  ;;  %v302_v61 = vld [vmem:[#allocation2 + $0x28] sm:$0xff] }
  0x1d   : > { %v320_v56 = vld [vmem:[#allocation2 + $0xb8] sm:$0xff]  ;;  %v318_v62 = vld [vmem:[#allocation2 + $0xa8] sm:$0xff] }
  0x1f   : > { %1275 = vmatmul.mubr.msk.bf16.gmra.mrb[4].mxu0 %vm469_vm2, %v1346_v14  ;;  %1291 = vmatmul.mubr.msk.bf16.gmra.mrb[4].mxu1 %vm469_vm2, %v1347_v15 }
  0x20   : > { %1278 = vmatprep.mubr.msk.bf16.mxu0 %vm469_vm2, %v1348_v16  ;;  %1294 = vmatprep.mubr.msk.bf16.mxu1 %vm469_vm2, %v1349_v17 }
  0x27   : > { %1279 = vmatmul.mubr.msk.bf16.gmra.mrb[8].mxu0 %vm469_vm2, %v1350_v18  ;;  %1295 = vmatmul.mubr.msk.bf16.gmra.mrb[8].mxu1 %vm469_vm2, %v1351_v19 }
  0x28   : > { %1282 = vmatprep.mubr.msk.bf16.mxu0 %vm469_vm2, %v1352_v20  ;;  %1298 = vmatprep.mubr.msk.bf16.mxu1 %vm469_vm2, %v1353_v21 }
  0x2f   : > { %1283 = vmatmul.mubr.msk.bf16.gmra.mrb[12].mxu0 %vm469_vm2, %v1354_v22  ;;  %1299 = vmatmul.mubr.msk.bf16.gmra.mrb[12].mxu1 %vm469_vm2, %v1355_v23 }
  0xea   : > { %v1272_v28 = vpop.f32.mrb[0].mxu0  ;;  %v1288_v29 = vpop.f32.mrb[0].mxu1 }
  0xeb   : > { %v687_v32 = vadd.f32 %v1272_v28, %v299_v24  ;;  %v703_v33 = vadd.f32 %v1288_v29, %v315_v25  ;;  %v558_v34 = vpop.f32.mrb[1].mxu0  ;;  %v622_v35 = vpop.f32.mrb[1].mxu1  ;;  %v307_v29 = vld [vmem:[#allocation2 + $0x50] sm:$0xff] }
  0xec   : > { %v685_v38 = vadd.f32 %v558_v34, %v297_v26  ;;  %v701_v39 = vadd.f32 %v622_v35, %v313_v27  ;;  %v1273_v40 = vpop.f32.mrb[2].mxu0  ;;  %v1289_v41 = vpop.f32.mrb[2].mxu1  ;;  %v305_v35 = vld [vmem:[#allocation2 + $0x40] sm:$0xff] }
  0xed   : > { %720 = vst.msk [vmem:[#allocation2 + $0x10] sm:$0xff] %vm264_vm1, %v687_v32  ;;  %736 = vst.msk [vmem:[#allocation2 + $0x90] sm:$0xff] %vm264_vm1, %v703_v33  ;;  %v688_v42 = vadd.f32 %v1273_v40, %v300_v30  ;;  %v704_v43 = vadd.f32 %v1289_v41, %v316_v31  ;;  %v561_v44 = vpop.f32.mrb[3].mxu0  ;;  %v625_v45 = vpop.f32.mrb[3].mxu1  ;;  %v323_v30 = vld [vmem:[#allocation2 + $0xd0] sm:$0xff] }
  0xee   : > { %718 = vst.msk [vmem:[#allocation2] sm:$0xff] %vm264_vm1, %v685_v38  ;;  %734 = vst.msk [vmem:[#allocation2 + $0x80] sm:$0xff] %vm264_vm1, %v701_v39  ;;  %v686_v46 = vadd.f32 %v561_v44, %v298_v36  ;;  %v702_v47 = vadd.f32 %v625_v45, %v314_v37  ;;  %v321_v36 = vld [vmem:[#allocation2 + $0xc0] sm:$0xff]  ;;  %v324_v44 = vld [vmem:[#allocation2 + $0xd8] sm:$0xff] }
  0xef   : > { %721 = vst.msk [vmem:[#allocation2 + $0x18] sm:$0xff] %vm264_vm1, %v688_v42  ;;  %737 = vst.msk [vmem:[#allocation2 + $0x98] sm:$0xff] %vm264_vm1, %v704_v43  ;;  %v308_v43 = vld [vmem:[#allocation2 + $0x58] sm:$0xff] }
  0xf0   : > { %719 = vst.msk [vmem:[#allocation2 + $0x8] sm:$0xff] %vm264_vm1, %v686_v46  ;;  %735 = vst.msk [vmem:[#allocation2 + $0x88] sm:$0xff] %vm264_vm1, %v702_v47 }
  0xf2   : > { %v1276_v53 = vpop.f32.mrb[4].mxu0  ;;  %v1292_v54 = vpop.f32.mrb[4].mxu1 }
  0xf3   : > { %v691_v57 = vadd.f32 %v1276_v53, %v303_v48  ;;  %v707_v58 = vadd.f32 %v1292_v54, %v319_v49  ;;  %v574_v59 = vpop.f32.mrb[5].mxu0  ;;  %v638_v60 = vpop.f32.mrb[5].mxu1  ;;  %v322_v53 = vld [vmem:[#allocation2 + $0xc8] sm:$0xff] }
  0xf4   : > { %v755_v63 = vld [vmem:[#allocation2 + $0x10] sm:$0xff]  ;;  %v689_v1 = vadd.f32 %v574_v59, %v301_v50  ;;  %v705_v2 = vadd.f32 %v638_v60, %v317_v51  ;;  %v1277_v3 = vpop.f32.mrb[6].mxu0  ;;  %v1293_v4 = vpop.f32.mrb[6].mxu1  ;;  %v306_v51 = vld [vmem:[#allocation2 + $0x48] sm:$0xff] }
  0xf5   : > { %v771_v0 = vld [vmem:[#allocation2 + $0x90] sm:$0xff]  ;;  %v794_v5 = vadd.f32 %v1530_v52, %v755_v63  ;;  %v753_v7 = vld [vmem:[#allocation2] sm:$0xff]  ;;  %724 = vst.msk [vmem:[#allocation2 + $0x30] sm:$0xff] %vm264_vm1, %v691_v57  ;;  %740 = vst.msk [vmem:[#allocation2 + $0xb0] sm:$0xff] %vm264_vm1, %v707_v58  ;;  %v692_v9 = vadd.f32 %v1277_v3, %v304_v55  ;;  %v708_v10 = vadd.f32 %v1293_v4, %v320_v56  ;;  %v577_v11 = vpop.f32.mrb[7].mxu0  ;;  %v641_v12 = vpop.f32.mrb[7].mxu1 }
  0xf6   : > { %v810_v6 = vadd.f32 %v1530_v52, %v771_v0  ;;  %v769_v8 = vld [vmem:[#allocation2 + $0x80] sm:$0xff]  ;;  %v792_v13 = vadd.f32 %v1530_v52, %v753_v7  ;;  %v756_v15 = vld [vmem:[#allocation2 + $0x18] sm:$0xff]  ;;  %722 = vst.msk [vmem:[#allocation2 + $0x20] sm:$0xff] %vm264_vm1, %v689_v1  ;;  %738 = vst.msk [vmem:[#allocation2 + $0xa0] sm:$0xff] %vm264_vm1, %v705_v2  ;;  %v690_v17 = vadd.f32 %v577_v11, %v302_v61 }
  0xf7   : > { %v808_v14 = vadd.f32 %v1530_v52, %v769_v8  ;;  %v772_v16 = vld [vmem:[#allocation2 + $0x98] sm:$0xff]  ;;  %v706_v18 = vadd.f32 %v641_v12, %v318_v62  ;;  %v826_v19 = vmax.f32 %v794_v5, 0.0  ;;  %v795_v21 = vadd.f32 %v1530_v52, %v756_v15  ;;  %v754_v23 = vld [vmem:[#allocation2 + $0x8] sm:$0xff]  ;;  %725 = vst.msk [vmem:[#allocation2 + $0x38] sm:$0xff] %vm264_vm1, %v692_v9  ;;  %741 = vst.msk [vmem:[#allocation2 + $0xb8] sm:$0xff] %vm264_vm1, %v708_v10 }
  0xf8   : > { %v842_v20 = vmax.f32 %v810_v6, 0.0  ;;  %v811_v22 = vadd.f32 %v1530_v52, %v772_v16  ;;  %v770_v24 = vld [vmem:[#allocation2 + $0x88] sm:$0xff]  ;;  %v824_v25 = vmax.f32 %v792_v13, 0.0  ;;  %v793_v27 = vadd.f32 %v1530_v52, %v754_v23  ;;  %723 = vst.msk [vmem:[#allocation2 + $0x28] sm:$0xff] %vm264_vm1, %v690_v17  ;;  %v327_v23 = vld [vmem:[#allocation2 + $0xf0] sm:$0xff] }
  0xf9   : > { %v840_v26 = vmax.f32 %v808_v14, 0.0  ;;  %v809_v28 = vadd.f32 %v1530_v52, %v770_v24  ;;  %739 = vst.msk [vmem:[#allocation2 + $0xa8] sm:$0xff] %vm264_vm1, %v706_v18  ;;  %v1212_v31 = vpack.c.bf16 %v826_v19, %v826_v19  ;;  %v827_v33 = vmax.f32 %v795_v21, 0.0 }
  0xfa   : > { %v1228_v32 = vpack.c.bf16 %v842_v20, %v842_v20  ;;  %v843_v34 = vmax.f32 %v811_v22, 0.0  ;;  %v1210_v37 = vpack.c.bf16 %v824_v25, %v824_v25  ;;  %v825_v39 = vmax.f32 %v793_v27, 0.0  ;;  %v1280_v41 = vpop.f32.mrb[8].mxu0  ;;  %v1296_v42 = vpop.f32.mrb[8].mxu1  ;;  %v311_v22 = vld [vmem:[#allocation2 + $0x70] sm:$0xff] }
  0xfb   : > { %v1226_v38 = vpack.c.bf16 %v840_v26, %v840_v26  ;;  %v841_v40 = vmax.f32 %v809_v28, 0.0  ;;  %987 = vst.msk [vmem:[%s1549_s7 + $0x8] sm:$0xf] %vm984_vm3, %v1212_v31  ;;  %v1213_v45 = vpack.c.bf16 %v827_v33, %v827_v33  ;;  %v695_v47 = vadd.f32 %v1280_v41, %v307_v29  ;;  %v590_v49 = vpop.f32.mrb[9].mxu0  ;;  %v654_v50 = vpop.f32.mrb[9].mxu1  ;;  %v309_v28 = vld [vmem:[#allocation2 + $0x60] sm:$0xff] }
  0xfc   : > { %1003 = vst.msk [vmem:[%s1549_s7 + $0x48] sm:$0xf] %vm984_vm3, %v1228_v32  ;;  %v1229_v46 = vpack.c.bf16 %v843_v34, %v843_v34  ;;  %v711_v48 = vadd.f32 %v1296_v42, %v323_v30  ;;  %985 = vst.msk [vmem:[%s1549_s7] sm:$0xf] %vm984_vm3, %v1210_v37  ;;  %v1211_v54 = vpack.c.bf16 %v825_v39, %v825_v39  ;;  %v759_v56 = vld [vmem:[#allocation2 + $0x30] sm:$0xff]  ;;  %v1281_v60 = vpop.f32.mrb[10].mxu0 }
  0xfd   : > { %1001 = vst.msk [vmem:[%s1549_s7 + $0x40] sm:$0xf] %vm984_vm3, %v1226_v38  ;;  %v1227_v55 = vpack.c.bf16 %v841_v40, %v841_v40  ;;  %v775_v57 = vld [vmem:[#allocation2 + $0xb0] sm:$0xff]  ;;  %v693_v58 = vadd.f32 %v590_v49, %v305_v35  ;;  %v709_v59 = vadd.f32 %v654_v50, %v321_v36  ;;  %v1297_v61 = vpop.f32.mrb[10].mxu1  ;;  %988 = vst.msk [vmem:[%s1549_s7 + $0xc] sm:$0xf] %vm984_vm3, %v1213_v45 }
  0xfe   : > { %1004 = vst.msk [vmem:[%s1549_s7 + $0x4c] sm:$0xf] %vm984_vm3, %v1229_v46  ;;  %v798_v62 = vadd.f32 %v1530_v52, %v759_v56  ;;  %v814_v63 = vadd.f32 %v1530_v52, %v775_v57  ;;  %v757_v0 = vld [vmem:[#allocation2 + $0x20] sm:$0xff]  ;;  %v696_v2 = vadd.f32 %v1281_v60, %v308_v43  ;;  %v712_v3 = vadd.f32 %v1297_v61, %v324_v44  ;;  %v593_v4 = vpop.f32.mrb[11].mxu0  ;;  %v657_v5 = vpop.f32.mrb[11].mxu1  ;;  %v760_v8 = vld [vmem:[#allocation2 + $0x38] sm:$0xff] }
  0xff   : > { %v773_v1 = vld [vmem:[#allocation2 + $0xa0] sm:$0xff]  ;;  %728 = vst.msk [vmem:[#allocation2 + $0x50] sm:$0xff] %vm264_vm1, %v695_v47  ;;  %744 = vst.msk [vmem:[#allocation2 + $0xd0] sm:$0xff] %vm264_vm1, %v711_v48  ;;  %v796_v6 = vadd.f32 %v1530_v52, %v757_v0  ;;  %v776_v9 = vld [vmem:[#allocation2 + $0xb8] sm:$0xff]  ;;  %v694_v10 = vadd.f32 %v593_v4, %v306_v51  ;;  %v710_v11 = vadd.f32 %v657_v5, %v322_v53 }
 0x100   : > { %986 = vst.msk [vmem:[%s1549_s7 + $0x4] sm:$0xf] %vm984_vm3, %v1211_v54  ;;  %1002 = vst.msk [vmem:[%s1549_s7 + $0x44] sm:$0xf] %vm984_vm3, %v1227_v55  ;;  %v812_v7 = vadd.f32 %v1530_v52, %v773_v1  ;;  %v830_v12 = vmax.f32 %v798_v62, 0.0  ;;  %v846_v13 = vmax.f32 %v814_v63, 0.0  ;;  %v799_v14 = vadd.f32 %v1530_v52, %v760_v8 }
 0x101   : > { %726 = vst.msk [vmem:[#allocation2 + $0x40] sm:$0xff] %vm264_vm1, %v693_v58  ;;  %742 = vst.msk [vmem:[#allocation2 + $0xc0] sm:$0xff] %vm264_vm1, %v709_v59  ;;  %v815_v15 = vadd.f32 %v1530_v52, %v776_v9  ;;  %v758_v16 = vld [vmem:[#allocation2 + $0x28] sm:$0xff]  ;;  %v828_v18 = vmax.f32 %v796_v6, 0.0  ;;  %v325_v29 = vld [vmem:[#allocation2 + $0xe0] sm:$0xff] }
 0x102   : > { %v774_v17 = vld [vmem:[#allocation2 + $0xa8] sm:$0xff]  ;;  %729 = vst.msk [vmem:[#allocation2 + $0x58] sm:$0xff] %vm264_vm1, %v696_v2  ;;  %745 = vst.msk [vmem:[#allocation2 + $0xd8] sm:$0xff] %vm264_vm1, %v712_v3  ;;  %v844_v19 = vmax.f32 %v812_v7, 0.0  ;;  %v797_v20 = vadd.f32 %v1530_v52, %v758_v16  ;;  %v1216_v24 = vpack.c.bf16 %v830_v12, %v830_v12  ;;  %v1232_v25 = vpack.c.bf16 %v846_v13, %v846_v13  ;;  %v1284_v34 = vpop.f32.mrb[12].mxu0  ;;  %v1300_v35 = vpop.f32.mrb[12].mxu1 }
 0x103   : > { %v813_v21 = vadd.f32 %v1530_v52, %v774_v17  ;;  %727 = vst.msk [vmem:[#allocation2 + $0x48] sm:$0xff] %vm264_vm1, %v694_v10  ;;  %743 = vst.msk [vmem:[#allocation2 + $0xc8] sm:$0xff] %vm264_vm1, %v710_v11  ;;  %v831_v26 = vmax.f32 %v799_v14, 0.0  ;;  %v847_v27 = vmax.f32 %v815_v15, 0.0  ;;  %v1214_v30 = vpack.c.bf16 %v828_v18, %v828_v18  ;;  %v312_v36 = vld [vmem:[#allocation2 + $0x78] sm:$0xff]  ;;  %v606_v42 = vpop.f32.mrb[13].mxu0 }
 0x104   : > { %v1230_v31 = vpack.c.bf16 %v844_v19, %v844_v19  ;;  %v829_v32 = vmax.f32 %v797_v20, 0.0  ;;  %v328_v37 = vld [vmem:[#allocation2 + $0xf8] sm:$0xff]  ;;  %991 = vst.msk [vmem:[%s1549_s7 + $0x18] sm:$0xf] %vm984_vm3, %v1216_v24  ;;  %1007 = vst.msk [vmem:[%s1549_s7 + $0x58] sm:$0xf] %vm984_vm3, %v1232_v25  ;;  %v699_v40 = vadd.f32 %v1284_v34, %v311_v22  ;;  %v715_v41 = vadd.f32 %v1300_v35, %v327_v23 }
 0x105   : > { %v845_v33 = vmax.f32 %v813_v21, 0.0  ;;  %v1217_v38 = vpack.c.bf16 %v831_v26, %v831_v26  ;;  %v1233_v39 = vpack.c.bf16 %v847_v27, %v847_v27  ;;  %v670_v43 = vpop.f32.mrb[13].mxu1  ;;  %v310_v44 = vld [vmem:[#allocation2 + $0x68] sm:$0xff]  ;;  %989 = vst.msk [vmem:[%s1549_s7 + $0x10] sm:$0xf] %vm984_vm3, %v1214_v30  ;;  %v697_v50 = vadd.f32 %v606_v42, %v309_v28  ;;  %v1285_v53 = vpop.f32.mrb[14].mxu0 }
 0x106   : > { %v326_v45 = vld [vmem:[#allocation2 + $0xe8] sm:$0xff]  ;;  %1005 = vst.msk [vmem:[%s1549_s7 + $0x50] sm:$0xf] %vm984_vm3, %v1230_v31  ;;  %v1215_v46 = vpack.c.bf16 %v829_v32, %v829_v32  ;;  %v763_v48 = vld [vmem:[#allocation2 + $0x50] sm:$0xff]  ;;  %v713_v51 = vadd.f32 %v670_v43, %v325_v29  ;;  %v1301_v54 = vpop.f32.mrb[14].mxu1  ;;  %v700_v59 = vadd.f32 %v1285_v53, %v312_v36  ;;  %v609_v61 = vpop.f32.mrb[15].mxu0 }
 0x107   : > { %v1231_v47 = vpack.c.bf16 %v845_v33, %v845_v33  ;;  %v779_v49 = vld [vmem:[#allocation2 + $0xd0] sm:$0xff]  ;;  %992 = vst.msk [vmem:[%s1549_s7 + $0x1c] sm:$0xf] %vm984_vm3, %v1217_v38  ;;  %1008 = vst.msk [vmem:[%s1549_s7 + $0x5c] sm:$0xf] %vm984_vm3, %v1233_v39  ;;  %v802_v55 = vadd.f32 %v1530_v52, %v763_v48  ;;  %v716_v60 = vadd.f32 %v1301_v54, %v328_v37  ;;  %v673_v62 = vpop.f32.mrb[15].mxu1 }
 0x108   : > { %v818_v56 = vadd.f32 %v1530_v52, %v779_v49  ;;  %v761_v57 = vld [vmem:[#allocation2 + $0x40] sm:$0xff]  ;;  %732 = vst.msk [vmem:[#allocation2 + $0x70] sm:$0xff] %vm264_vm1, %v699_v40  ;;  %748 = vst.msk [vmem:[#allocation2 + $0xf0] sm:$0xff] %vm264_vm1, %v715_v41  ;;  %v698_v3 = vadd.f32 %v609_v61, %v310_v44  ;;  %v714_v4 = vadd.f32 %v673_v62, %v326_v45 }
 0x109   : > { %v777_v58 = vld [vmem:[#allocation2 + $0xc0] sm:$0xff]  ;;  %990 = vst.msk [vmem:[%s1549_s7 + $0x14] sm:$0xf] %vm984_vm3, %v1215_v46  ;;  %1006 = vst.msk [vmem:[%s1549_s7 + $0x54] sm:$0xf] %vm984_vm3, %v1231_v47  ;;  %v800_v63 = vadd.f32 %v1530_v52, %v761_v57  ;;  %v764_v1 = vld [vmem:[#allocation2 + $0x58] sm:$0xff] }
 0x10a   : > { %v816_v0 = vadd.f32 %v1530_v52, %v777_v58  ;;  %v780_v2 = vld [vmem:[#allocation2 + $0xd8] sm:$0xff]  ;;  %730 = vst.msk [vmem:[#allocation2 + $0x60] sm:$0xff] %vm264_vm1, %v697_v50  ;;  %746 = vst.msk [vmem:[#allocation2 + $0xe0] sm:$0xff] %vm264_vm1, %v713_v51  ;;  %v834_v5 = vmax.f32 %v802_v55, 0.0  ;;  %v850_v6 = vmax.f32 %v818_v56, 0.0  ;;  %v803_v7 = vadd.f32 %v1530_v52, %v764_v1  ;;  %v762_v9 = vld [vmem:[#allocation2 + $0x48] sm:$0xff] }
 0x10b   : > { %v819_v8 = vadd.f32 %v1530_v52, %v780_v2  ;;  %v778_v10 = vld [vmem:[#allocation2 + $0xc8] sm:$0xff]  ;;  %733 = vst.msk [vmem:[#allocation2 + $0x78] sm:$0xff] %vm264_vm1, %v700_v59  ;;  %749 = vst.msk [vmem:[#allocation2 + $0xf8] sm:$0xff] %vm264_vm1, %v716_v60  ;;  %v832_v11 = vmax.f32 %v800_v63, 0.0  ;;  %v801_v13 = vadd.f32 %v1530_v52, %v762_v9 }
 0x10c   : > { %v848_v12 = vmax.f32 %v816_v0, 0.0  ;;  %v817_v14 = vadd.f32 %v1530_v52, %v778_v10  ;;  %731 = vst.msk [vmem:[#allocation2 + $0x68] sm:$0xff] %vm264_vm1, %v698_v3  ;;  %747 = vst.msk [vmem:[#allocation2 + $0xe8] sm:$0xff] %vm264_vm1, %v714_v4  ;;  %v1220_v15 = vpack.c.bf16 %v834_v5, %v834_v5  ;;  %v1236_v16 = vpack.c.bf16 %v850_v6, %v850_v6 }
 0x10d   : > { %v835_v17 = vmax.f32 %v803_v7, 0.0  ;;  %v851_v18 = vmax.f32 %v819_v8, 0.0  ;;  %v1218_v19 = vpack.c.bf16 %v832_v11, %v832_v11  ;;  %v833_v21 = vmax.f32 %v801_v13, 0.0 }
 0x10e   : > { %v1234_v20 = vpack.c.bf16 %v848_v12, %v848_v12  ;;  %v849_v22 = vmax.f32 %v817_v14, 0.0  ;;  %995 = vst.msk [vmem:[%s1549_s7 + $0x28] sm:$0xf] %vm984_vm3, %v1220_v15  ;;  %1011 = vst.msk [vmem:[%s1549_s7 + $0x68] sm:$0xf] %vm984_vm3, %v1236_v16 }
 0x10f   : > { %v1221_v23 = vpack.c.bf16 %v835_v17, %v835_v17  ;;  %v1237_v24 = vpack.c.bf16 %v851_v18, %v851_v18  ;;  %993 = vst.msk [vmem:[%s1549_s7 + $0x20] sm:$0xf] %vm984_vm3, %v1218_v19  ;;  %v1219_v25 = vpack.c.bf16 %v833_v21, %v833_v21  ;;  %v767_v27 = vld [vmem:[#allocation2 + $0x70] sm:$0xff] }
 0x110   : > { %1009 = vst.msk [vmem:[%s1549_s7 + $0x60] sm:$0xf] %vm984_vm3, %v1234_v20  ;;  %v1235_v26 = vpack.c.bf16 %v849_v22, %v849_v22  ;;  %v783_v28 = vld [vmem:[#allocation2 + $0xf0] sm:$0xff]  ;;  %v806_v29 = vadd.f32 %v1530_v52, %v767_v27 }
 0x111   : > { %996 = vst.msk [vmem:[%s1549_s7 + $0x2c] sm:$0xf] %vm984_vm3, %v1221_v23  ;;  %1012 = vst.msk [vmem:[%s1549_s7 + $0x6c] sm:$0xf] %vm984_vm3, %v1237_v24  ;;  %v822_v30 = vadd.f32 %v1530_v52, %v783_v28  ;;  %v765_v31 = vld [vmem:[#allocation2 + $0x60] sm:$0xff] }
 0x112   : > { %v781_v32 = vld [vmem:[#allocation2 + $0xe0] sm:$0xff]  ;;  %994 = vst.msk [vmem:[%s1549_s7 + $0x24] sm:$0xf] %vm984_vm3, %v1219_v25  ;;  %1010 = vst.msk [vmem:[%s1549_s7 + $0x64] sm:$0xf] %vm984_vm3, %v1235_v26  ;;  %v804_v33 = vadd.f32 %v1530_v52, %v765_v31  ;;  %v768_v35 = vld [vmem:[#allocation2 + $0x78] sm:$0xff] }
 0x113   : > { %v820_v34 = vadd.f32 %v1530_v52, %v781_v32  ;;  %v784_v36 = vld [vmem:[#allocation2 + $0xf8] sm:$0xff]  ;;  %v838_v37 = vmax.f32 %v806_v29, 0.0  ;;  %v854_v38 = vmax.f32 %v822_v30, 0.0  ;;  %v807_v39 = vadd.f32 %v1530_v52, %v768_v35  ;;  %v766_v41 = vld [vmem:[#allocation2 + $0x68] sm:$0xff] }
 0x114   : > { %v823_v40 = vadd.f32 %v1530_v52, %v784_v36  ;;  %v782_v42 = vld [vmem:[#allocation2 + $0xe8] sm:$0xff]  ;;  %v836_v43 = vmax.f32 %v804_v33, 0.0  ;;  %v805_v45 = vadd.f32 %v1530_v52, %v766_v41 }
 0x115   : > { %v852_v44 = vmax.f32 %v820_v34, 0.0  ;;  %v821_v46 = vadd.f32 %v1530_v52, %v782_v42  ;;  %v1224_v47 = vpack.c.bf16 %v838_v37, %v838_v37  ;;  %v1240_v48 = vpack.c.bf16 %v854_v38, %v854_v38 }
 0x116   : > { %v839_v49 = vmax.f32 %v807_v39, 0.0  ;;  %v855_v50 = vmax.f32 %v823_v40, 0.0  ;;  %v1222_v51 = vpack.c.bf16 %v836_v43, %v836_v43  ;;  %v837_v54 = vmax.f32 %v805_v45, 0.0 }
 0x117   : > { %v1238_v53 = vpack.c.bf16 %v852_v44, %v852_v44  ;;  %v853_v55 = vmax.f32 %v821_v46, 0.0  ;;  %999 = vst.msk [vmem:[%s1549_s7 + $0x38] sm:$0xf] %vm984_vm3, %v1224_v47  ;;  %1015 = vst.msk [vmem:[%s1549_s7 + $0x78] sm:$0xf] %vm984_vm3, %v1240_v48 }
 0x118   : > { %v1225_v56 = vpack.c.bf16 %v839_v49, %v839_v49  ;;  %v1241_v57 = vpack.c.bf16 %v855_v50, %v855_v50  ;;  %997 = vst.msk [vmem:[%s1549_s7 + $0x30] sm:$0xf] %vm984_vm3, %v1222_v51  ;;  %v1223_v52 = vpack.c.bf16 %v837_v54, %v837_v54 }
 0x119   : > { %1013 = vst.msk [vmem:[%s1549_s7 + $0x70] sm:$0xf] %vm984_vm3, %v1238_v53  ;;  %v1239_v58 = vpack.c.bf16 %v853_v55, %v853_v55 }
 0x11a   : > { %1000 = vst.msk [vmem:[%s1549_s7 + $0x3c] sm:$0xf] %vm984_vm3, %v1225_v56  ;;  %1016 = vst.msk [vmem:[%s1549_s7 + $0x7c] sm:$0xf] %vm984_vm3, %v1241_v57 }
 0x11b   : > { %998 = vst.msk [vmem:[%s1549_s7 + $0x34] sm:$0xf] %vm984_vm3, %v1223_v52  ;;  %1014 = vst.msk [vmem:[%s1549_s7 + $0x74] sm:$0xf] %vm984_vm3, %v1239_v58 }
 0x11c PF: > { %s13_s14 = sadd.s32 1, %s1378_s14   ;;  %s1673_s12 = smov %s1374_s13 }
 0x11d   : > { %p10_p5 = scmp.ge.s32.totalorder %s13_s14, 4   ;;  %s1674_s13 = smov %s1676_s15 }
 0x11f   :  { %12 = sbr.rel (!%p10_p5) target bundleno = 2 (0x2), region = 76 }

// kernel: tbmodel_forward.22
= control target key start
LH: loop header
LB: loop body
LE: loop exit
PB: predicated region body
PF: predicated region fallthrough
CT: control target
= control target key end

     0   :  { %vm19_vm0 = vcmask 523264   ;;  %vm1058_vm1 = vcmask 519168   ;;  %s1871_s1 = inlined_call_operand.vmem [shape: bf16[576,64], index: 1, kind: input, shape index: {}]   ;;  %s1872_s0 = inlined_call_operand.vmem [shape: bf16[128,576], index: 0, kind: input, shape index: {}]   ;;  %s1873_s2 = inlined_call_operand.vmem [shape: f32[1,64], index: 2, kind: input, shape index: {}]   ;;  %s1874_s3 = inlined_call_operand.vmem [shape: bf16[128,64], index: 3, kind: output, shape index: {}]  }
   0x1   :  { %v1369_v0 = vld [vmem:[%s1871_s1 + $0x40] sm:$0xff]   ;;  %v1373_v4 = vld [vmem:[%s1871_s1 + $0x48] sm:$0xff]   ;;  %v1377_v8 = vld [vmem:[%s1871_s1 + $0x50] sm:$0xff]  }
   0x2   :  { %v1370_v1 = vld [vmem:[%s1871_s1 + $0xc0] sm:$0xff]   ;;  %1196 = vmatprep.subr.bf16.mxu0 %v1369_v0  ;;  %v1374_v5 = vld [vmem:[%s1871_s1 + $0xc8] sm:$0xff]   ;;  %v1378_v9 = vld [vmem:[%s1871_s1 + $0xd0] sm:$0xff]  }
   0x3   :  { %v1371_v2 = vld [vmem:[%s1871_s1] sm:$0xff]   ;;  %1260 = vmatprep.subr.bf16.mxu1 %v1370_v1  ;;  %v1375_v6 = vld [vmem:[%s1871_s1 + $0x8] sm:$0xff]   ;;  %v1379_v10 = vld [vmem:[%s1871_s1 + $0x10] sm:$0xff]  }
   0x4   :  { %v1372_v3 = vld [vmem:[%s1871_s1 + $0x80] sm:$0xff]   ;;  %1197 = vmatpush3.bf16.msra.mxu0 %v1371_v2  ;;  %v1376_v7 = vld [vmem:[%s1871_s1 + $0x88] sm:$0xff]   ;;  %v1380_v11 = vld [vmem:[%s1871_s1 + $0x90] sm:$0xff]  }
   0x5   :  { %1261 = vmatpush3.bf16.msra.mxu1 %v1372_v3  ;;  %1198 = vmatprep.subr.bf16.mxu0 %v1373_v4  ;;  %v1381_v12 = vld [vmem:[%s1871_s1 + $0x58] sm:$0xff]   ;;  %v1385_v16 = vld [vmem:[%s1871_s1 + $0x60] sm:$0xff]   ;;  %v1389_v20 = vld [vmem:[%s1871_s1 + $0x68] sm:$0xff]  }
   0x6   :  { %1262 = vmatprep.subr.bf16.mxu1 %v1374_v5  ;;  %v1382_v13 = vld [vmem:[%s1871_s1 + $0xd8] sm:$0xff]   ;;  %v1386_v17 = vld [vmem:[%s1871_s1 + $0xe0] sm:$0xff]   ;;  %v1390_v21 = vld [vmem:[%s1871_s1 + $0xe8] sm:$0xff]  }
   0x7   :  { %v1383_v14 = vld [vmem:[%s1871_s1 + $0x18] sm:$0xff]   ;;  %v1387_v18 = vld [vmem:[%s1871_s1 + $0x20] sm:$0xff]   ;;  %v1391_v22 = vld [vmem:[%s1871_s1 + $0x28] sm:$0xff]  }
   0x8   :  { %1199 = vmatpush3.bf16.msra.mxu0 %v1375_v6  ;;  %v1384_v15 = vld [vmem:[%s1871_s1 + $0x98] sm:$0xff]   ;;  %v1388_v19 = vld [vmem:[%s1871_s1 + $0xa0] sm:$0xff]   ;;  %v1392_v23 = vld [vmem:[%s1871_s1 + $0xa8] sm:$0xff]  }
   0x9   :  { %1263 = vmatpush3.bf16.msra.mxu1 %v1376_v7  ;;  %1200 = vmatprep.subr.bf16.mxu0 %v1377_v8  ;;  %v1393_v24 = vld [vmem:[%s1871_s1 + $0x70] sm:$0xff]   ;;  %v1397_v28 = vld [vmem:[%s1871_s1 + $0x78] sm:$0xff]   ;;  %v1406_v35 = vld [vmem:[%s1872_s0 + $0xc] ss:$20 sps:$4 sm:$0xff]  }
   0xa   :  { %1264 = vmatprep.subr.bf16.mxu1 %v1378_v9  ;;  %v1394_v25 = vld [vmem:[%s1871_s1 + $0xf0] sm:$0xff]   ;;  %v1398_v29 = vld [vmem:[%s1871_s1 + $0xf8] sm:$0xff]   ;;  %v1407_v36 = vld [vmem:[%s1871_s1 + $0x100] sm:$0xff]   ;;  %742 = vmatprep.mubr.bf16.mxu1 %v1406_v35 }
   0xb   :  { %v1395_v26 = vld [vmem:[%s1871_s1 + $0x30] sm:$0xff]   ;;  %v1399_v30 = vld [vmem:[%s1871_s1 + $0x38] sm:$0xff]   ;;  %v1408_v37 = vld [vmem:[%s1872_s0 + $0x2c] ss:$20 sps:$4 sm:$0xff]  }
   0xc   :  { %1201 = vmatpush3.bf16.msra.mxu0 %v1379_v10  ;;  %v1396_v27 = vld [vmem:[%s1871_s1 + $0xb0] sm:$0xff]   ;;  %v1400_v31 = vld [vmem:[%s1871_s1 + $0xb8] sm:$0xff]   ;;  %v1420_v42 = vld [vmem:[%s1871_s1 + $0x108] sm:$0xff]  }
   0xd   :  { %1265 = vmatpush3.bf16.msra.mxu1 %v1380_v11  ;;  %1202 = vmatprep.subr.bf16.mxu0 %v1381_v12  ;;  %v1401_v32 = vld [vmem:[%s1872_s0] ss:$20 sps:$4 sm:$0xff]   ;;  %v1403_v33 = vld [vmem:[%s1872_s0 + $0x4] ss:$20 sps:$4 sm:$0xff]   ;;  %v1404_v34 = vld [vmem:[%s1872_s0 + $0x8] ss:$20 sps:$4 sm:$0xff]  }
   0xe   :  { %1266 = vmatprep.subr.bf16.mxu1 %v1382_v13  ;;  %645 = vmatprep.mubr.bf16.mxu0 %v1403_v33  ;;  %v1410_v38 = vld [vmem:[%s1872_s0 + $0x34] ss:$20 sps:$4 sm:$0xff]   ;;  %v1413_v40 = vld [vmem:[%s1872_s0 + $0x30] ss:$20 sps:$4 sm:$0xff]   ;;  %v1419_v45 = vld [vmem:[%s1872_s0 + $0x58] ss:$20 sps:$4 sm:$0xff]  }
   0xf   :  { %v1412_v39 = vld [vmem:[%s1872_s0 + $0x28] ss:$20 sps:$4 sm:$0xff]   ;;  %v1418_v44 = vld [vmem:[%s1872_s0 + $0x50] ss:$20 sps:$4 sm:$0xff]   ;;  %v1425_v50 = vld [vmem:[%s1872_s0 + $0x78] ss:$20 sps:$4 sm:$0xff]  }
  0x10   :  { %1203 = vmatpush3.bf16.msra.mxu0 %v1383_v14  ;;  %v1414_v41 = vld [vmem:[%s1872_s0 + $0x54] ss:$20 sps:$4 sm:$0xff]   ;;  %v1416_v43 = vld [vmem:[%s1872_s0 + $0x5c] ss:$20 sps:$4 sm:$0xff]   ;;  %v1423_v48 = vld [vmem:[%s1872_s0 + $0x84] ss:$20 sps:$4 sm:$0xff]  }
  0x11   :  { %1267 = vmatpush3.bf16.msra.mxu1 %v1384_v15  ;;  %1204 = vmatprep.subr.bf16.mxu0 %v1385_v16  ;;  %v1433_v46 = vld [vmem:[%s1871_s1 + $0x110] sm:$0xff]   ;;  %v1446_v49 = vld [vmem:[%s1871_s1 + $0x118] sm:$0xff]   ;;  %v1429_v53 = vld [vmem:[%s1872_s0 + $0xac] ss:$20 sps:$4 sm:$0xff]   ;;  %v1461_v12 = vmov 0.0  }
  0x12   :  { %1268 = vmatprep.subr.bf16.mxu1 %v1386_v17  ;;  %v1421_v47 = vld [vmem:[%s1872_s0 + $0x7c] ss:$20 sps:$4 sm:$0xff]   ;;  %v1426_v51 = vld [vmem:[%s1872_s0 + $0x80] ss:$20 sps:$4 sm:$0xff]   ;;  %v1427_v52 = vld [vmem:[%s1872_s0 + $0xa4] ss:$20 sps:$4 sm:$0xff]  }
  0x13   :  { %v1431_v54 = vld [vmem:[%s1872_s0 + $0xa0] ss:$20 sps:$4 sm:$0xff]   ;;  %v1432_v55 = vld [vmem:[%s1872_s0 + $0xa8] ss:$20 sps:$4 sm:$0xff]   ;;  %v1439_v59 = vld [vmem:[%s1872_s0 + $0xd0] ss:$20 sps:$4 sm:$0xff]  }
  0x14   :  { %1205 = vmatpush3.bf16.msra.mxu0 %v1387_v18  ;;  %v1434_v56 = vld [vmem:[%s1872_s0 + $0xcc] ss:$20 sps:$4 sm:$0xff]   ;;  %v1436_v57 = vld [vmem:[%s1872_s0 + $0xd4] ss:$20 sps:$4 sm:$0xff]   ;;  %v1442_v61 = vld [vmem:[%s1872_s0 + $0xfc] ss:$20 sps:$4 sm:$0xff]  }
  0x15   :  { %1269 = vmatpush3.bf16.msra.mxu1 %v1388_v19  ;;  %1206 = vmatprep.subr.bf16.mxu0 %v1389_v20  ;;  %v1438_v58 = vld [vmem:[%s1872_s0 + $0xc8] ss:$20 sps:$4 sm:$0xff]   ;;  %v1444_v62 = vld [vmem:[%s1872_s0 + $0xf0] ss:$20 sps:$4 sm:$0xff]   ;;  %v1445_v63 = vld [vmem:[%s1872_s0 + $0xf8] ss:$20 sps:$4 sm:$0xff]  }
  0x16   :  { %1270 = vmatprep.subr.bf16.mxu1 %v1390_v21  ;;  %v1440_v60 = vld [vmem:[%s1872_s0 + $0xf4] ss:$20 sps:$4 sm:$0xff]   ;;  %v1447_v0 = vld [vmem:[%s1872_s0 + $0x11c] ss:$20 sps:$4 sm:$0xff]   ;;  %v1449_v1 = vld [vmem:[%s1872_s0 + $0x124] ss:$20 sps:$4 sm:$0xff]  }
  0x17   :  { %v1451_v2 = vld [vmem:[%s1872_s0 + $0x118] ss:$20 sps:$4 sm:$0xff]   ;;  %v1452_v3 = vld [vmem:[%s1872_s0 + $0x120] ss:$20 sps:$4 sm:$0xff]   ;;  %v1453_v4 = vld [vmem:[%s1872_s0 + $0x10] ss:$20 sps:$4 sm:$0xff]  }
  0x18   :  { %1207 = vmatpush3.bf16.msra.mxu0 %v1391_v22  ;;  %v1454_v5 = vld [vmem:[%s1872_s0 + $0xb0] ss:$20 sps:$4 sm:$0xff]   ;;  %v1455_v6 = vld [vmem:[%s1872_s0 + $0x38] ss:$20 sps:$4 sm:$0xff]   ;;  %v1457_v8 = vld [vmem:[%s1872_s0 + $0x60] ss:$20 sps:$4 sm:$0xff]  }
  0x19   :  { %1271 = vmatpush3.bf16.msra.mxu1 %v1392_v23  ;;  %1208 = vmatprep.subr.bf16.mxu0 %v1393_v24  ;;  %v1456_v7 = vld [vmem:[%s1872_s0 + $0xd8] ss:$20 sps:$4 sm:$0xff]   ;;  %v1458_v9 = vld [vmem:[%s1872_s0 + $0x100] ss:$20 sps:$4 sm:$0xff]   ;;  %v1459_v10 = vld [vmem:[%s1872_s0 + $0x88] ss:$20 sps:$4 sm:$0xff]  }
  0x1a   :  { %1272 = vmatprep.subr.bf16.mxu1 %v1394_v25  ;;  %v1460_v11 = vld [vmem:[%s1872_s0 + $0x128] ss:$20 sps:$4 sm:$0xff]   ;;  %22 = vst.msk [vmem:[#allocation2 + $0x10] sm:$0xff] %vm19_vm0, %v1461_v12  ;;  %20 = vst.msk [vmem:[#allocation2] sm:$0xff] %vm19_vm0, %v1461_v12 }
  0x1b   :  { %21 = vst.msk [vmem:[#allocation2 + $0x8] sm:$0xff] %vm19_vm0, %v1461_v12  ;;  %23 = vst.msk [vmem:[#allocation2 + $0x18] sm:$0xff] %vm19_vm0, %v1461_v12 }
  0x1c   :  { %1209 = vmatpush3.bf16.msra.mxu0 %v1395_v26  ;;  %24 = vst.msk [vmem:[#allocation2 + $0x20] sm:$0xff] %vm19_vm0, %v1461_v12  ;;  %25 = vst.msk [vmem:[#allocation2 + $0x28] sm:$0xff] %vm19_vm0, %v1461_v12 }
  0x1d   :  { %1273 = vmatpush3.bf16.msra.mxu1 %v1396_v27  ;;  %1210 = vmatprep.subr.bf16.mxu0 %v1397_v28  ;;  %26 = vst.msk [vmem:[#allocation2 + $0x30] sm:$0xff] %vm19_vm0, %v1461_v12  ;;  %27 = vst.msk [vmem:[#allocation2 + $0x38] sm:$0xff] %vm19_vm0, %v1461_v12 }
  0x1e   :  { %1274 = vmatprep.subr.bf16.mxu1 %v1398_v29  ;;  %28 = vst.msk [vmem:[#allocation2 + $0x40] sm:$0xff] %vm19_vm0, %v1461_v12  ;;  %29 = vst.msk [vmem:[#allocation2 + $0x48] sm:$0xff] %vm19_vm0, %v1461_v12 }
  0x1f   :  { %30 = vst.msk [vmem:[#allocation2 + $0x50] sm:$0xff] %vm19_vm0, %v1461_v12  ;;  %31 = vst.msk [vmem:[#allocation2 + $0x58] sm:$0xff] %vm19_vm0, %v1461_v12 }
  0x20   :  { %1211 = vmatpush3.bf16.msra.mxu0 %v1399_v30  ;;  %32 = vst.msk [vmem:[#allocation2 + $0x60] sm:$0xff] %vm19_vm0, %v1461_v12  ;;  %33 = vst.msk [vmem:[#allocation2 + $0x68] sm:$0xff] %vm19_vm0, %v1461_v12 }
  0x21   :  { %1275 = vmatpush3.bf16.msra.mxu1 %v1400_v31  ;;  %1336 = vmatprep.subr.bf16.mxu0 %v1407_v36  ;;  %34 = vst.msk [vmem:[#allocation2 + $0x70] sm:$0xff] %vm19_vm0, %v1461_v12  ;;  %35 = vst.msk [vmem:[#allocation2 + $0x78] sm:$0xff] %vm19_vm0, %v1461_v12 }
  0x22   :  { %1360 = vmatprep.subr.bf16.mxu1 %v1407_v36 }
  0x23   :  { %646 = vmatmul.mubr.bf16.vlgmr.msra.gmra.mrb[0].mxu0 %v1401_v32 }
  0x24   :  { %743 = vmatmul.mubr.bf16.vlgmr.msra.gmra.mrb[0].mxu1 %v1404_v34  ;;  %1337 = vmatpush3.bf16.msra.mxu0 %v1407_v36 }
  0x25   :  { %1364 = vmatpush3.bf16.msra.mxu1 %v1407_v36  ;;  %653 = vmatprep.mubr.bf16.mxu0 %v1408_v37 }
  0x26   :  { %750 = vmatprep.mubr.bf16.mxu1 %v1410_v38  ;;  %1338 = vmatprep.subr.bf16.mxu0 %v1420_v42 }
  0x27   :  { %1361 = vmatprep.subr.bf16.mxu1 %v1420_v42 }
  0x28   :  { %1339 = vmatpush3.bf16.msra.mxu0 %v1420_v42 }
  0x29   :  { %1365 = vmatpush3.bf16.msra.mxu1 %v1420_v42  ;;  %1340 = vmatprep.subr.bf16.mxu0 %v1433_v46 }
  0x2a   :  { %1362 = vmatprep.subr.bf16.mxu1 %v1433_v46 }
  0x2b   :  { %654 = vmatmul.mubr.bf16.gmra.mrb[4].mxu0 %v1412_v39 }
  0x2c   :  { %751 = vmatmul.mubr.bf16.gmra.mrb[4].mxu1 %v1413_v40  ;;  %661 = vmatprep.mubr.bf16.mxu0 %v1414_v41 }
  0x2d   :  { %758 = vmatprep.mubr.bf16.mxu1 %v1416_v43  ;;  %1341 = vmatpush3.bf16.msra.mxu0 %v1433_v46 }
  0x2e   :  { %1366 = vmatpush3.bf16.msra.mxu1 %v1433_v46  ;;  %1342 = vmatprep.subr.bf16.mxu0 %v1446_v49 }
  0x2f   :  { %1363 = vmatprep.subr.bf16.mxu1 %v1446_v49 }
  0x31   :  { %1343 = vmatpush3.bf16.msra.mxu0 %v1446_v49 }
  0x32   :  { %1367 = vmatpush3.bf16.msra.mxu1 %v1446_v49 }
  0x33   :  { %662 = vmatmul.mubr.bf16.gmra.mrb[8].mxu0 %v1418_v44 }
  0x34   :  { %759 = vmatmul.mubr.bf16.gmra.mrb[8].mxu1 %v1419_v45  ;;  %669 = vmatprep.mubr.bf16.mxu0 %v1421_v47 }
  0x35   :  { %766 = vmatprep.mubr.bf16.mxu1 %v1423_v48 }
  0x3b   :  { %670 = vmatmul.mubr.bf16.gmra.mrb[12].mxu0 %v1425_v50 }
  0x3c   :  { %767 = vmatmul.mubr.bf16.gmra.mrb[12].mxu1 %v1426_v51  ;;  %677 = vmatprep.mubr.bf16.mxu0 %v1427_v52 }
  0x3d   :  { %774 = vmatprep.mubr.bf16.mxu1 %v1429_v53 }
  0x43   :  { %678 = vmatmul.mubr.bf16.gmra.mrb[16].mxu0 %v1431_v54 }
  0x44   :  { %775 = vmatmul.mubr.bf16.gmra.mrb[16].mxu1 %v1432_v55  ;;  %685 = vmatprep.mubr.bf16.mxu0 %v1434_v56 }
  0x45   :  { %782 = vmatprep.mubr.bf16.mxu1 %v1436_v57 }
  0x4b   :  { %686 = vmatmul.mubr.bf16.gmra.mrb[20].mxu0 %v1438_v58 }
  0x4c   :  { %783 = vmatmul.mubr.bf16.gmra.mrb[20].mxu1 %v1439_v59  ;;  %693 = vmatprep.mubr.bf16.mxu0 %v1440_v60 }
  0x4d   :  { %790 = vmatprep.mubr.bf16.mxu1 %v1442_v61 }
  0x53   :  { %694 = vmatmul.mubr.bf16.gmra.mrb[24].mxu0 %v1444_v62 }
  0x54   :  { %791 = vmatmul.mubr.bf16.gmra.mrb[24].mxu1 %v1445_v63  ;;  %701 = vmatprep.mubr.bf16.mxu0 %v1447_v0 }
  0x55   :  { %798 = vmatprep.mubr.bf16.mxu1 %v1449_v1 }
  0x5b   :  { %702 = vmatmul.mubr.bf16.gmra.mrb[28].mxu0 %v1451_v2 }
  0x5c   :  { %799 = vmatmul.mubr.bf16.gmra.mrb[28].mxu1 %v1452_v3  ;;  %1344 = vmatprep.mubr.msk.bf16.mxu0 %vm19_vm0, %v1453_v4 }
  0x5d   :  { %1352 = vmatprep.mubr.msk.bf16.mxu1 %vm19_vm0, %v1454_v5 }
  0x63   :  { %1345 = vmatmul.mubr.msk.bf16.vlgmr.msra.gmra.mrb[32].mxu0 %vm19_vm0, %v1455_v6 }
  0x64   :  { %1353 = vmatmul.mubr.msk.bf16.vlgmr.msra.gmra.mrb[32].mxu1 %vm19_vm0, %v1456_v7  ;;  %1348 = vmatprep.mubr.msk.bf16.mxu0 %vm19_vm0, %v1457_v8 }
  0x65   :  { %1356 = vmatprep.mubr.msk.bf16.mxu1 %vm19_vm0, %v1458_v9 }
  0x6b   :  { %1349 = vmatmul.mubr.msk.bf16.gmra.mrb[36].mxu0 %vm19_vm0, %v1459_v10 }
  0x6c   :  { %1357 = vmatmul.mubr.msk.bf16.gmra.mrb[36].mxu1 %vm19_vm0, %v1460_v11 }
  0xf6   :  { %v1212_v13 = vpop.f32.mrb[0].mxu0 }
  0xf7   :  { %v1276_v14 = vpop.f32.mrb[0].mxu1  ;;  %v1213_v15 = vpop.f32.mrb[1].mxu0 }
  0xf8   :  { %v1214_v16 = vadd.f32 %v1213_v15, %v1212_v13  ;;  %v1277_v17 = vpop.f32.mrb[1].mxu1  ;;  %v1215_v18 = vpop.f32.mrb[2].mxu0 }
  0xf9   :  { %v1278_v19 = vadd.f32 %v1277_v17, %v1276_v14  ;;  %v1279_v20 = vpop.f32.mrb[2].mxu1  ;;  %v1216_v21 = vpop.f32.mrb[3].mxu0 }
  0xfa   :  { %v1217_v22 = vadd.f32 %v1216_v21, %v1215_v18  ;;  %v1280_v23 = vpop.f32.mrb[3].mxu1 }
  0xfb   :  { %v1281_v24 = vadd.f32 %v1280_v23, %v1279_v20  ;;  %v1734_v25 = vadd.f32 %v1278_v19, %v1214_v16 }
  0xfd   :  { %v1736_v26 = vadd.f32 %v1281_v24, %v1217_v22 }
  0xfe   :  { %v1218_v27 = vpop.f32.mrb[4].mxu0 }
  0xff   :  { %v1282_v28 = vpop.f32.mrb[4].mxu1  ;;  %v1219_v29 = vpop.f32.mrb[5].mxu0 }
 0x100   :  { %v1220_v30 = vadd.f32 %v1219_v29, %v1218_v27  ;;  %v1283_v31 = vpop.f32.mrb[5].mxu1  ;;  %v1221_v32 = vpop.f32.mrb[6].mxu0 }
 0x101   :  { %v1284_v33 = vadd.f32 %v1283_v31, %v1282_v28  ;;  %v1285_v34 = vpop.f32.mrb[6].mxu1  ;;  %v1222_v35 = vpop.f32.mrb[7].mxu0 }
 0x102   :  { %v1223_v36 = vadd.f32 %v1222_v35, %v1221_v32  ;;  %v1286_v37 = vpop.f32.mrb[7].mxu1 }
 0x103   :  { %v1287_v38 = vadd.f32 %v1286_v37, %v1285_v34  ;;  %v1738_v39 = vadd.f32 %v1284_v33, %v1220_v30 }
 0x105   :  { %v1740_v40 = vadd.f32 %v1287_v38, %v1223_v36 }
 0x106   :  { %v1224_v41 = vpop.f32.mrb[8].mxu0 }
 0x107   :  { %v1288_v42 = vpop.f32.mrb[8].mxu1  ;;  %v1225_v43 = vpop.f32.mrb[9].mxu0 }
 0x108   :  { %v1226_v44 = vadd.f32 %v1225_v43, %v1224_v41  ;;  %v1289_v45 = vpop.f32.mrb[9].mxu1  ;;  %v1227_v46 = vpop.f32.mrb[10].mxu0 }
 0x109   :  { %v1290_v47 = vadd.f32 %v1289_v45, %v1288_v42  ;;  %v1291_v48 = vpop.f32.mrb[10].mxu1  ;;  %v1228_v49 = vpop.f32.mrb[11].mxu0 }
 0x10a   :  { %v1229_v50 = vadd.f32 %v1228_v49, %v1227_v46  ;;  %v1292_v51 = vpop.f32.mrb[11].mxu1 }
 0x10b   :  { %v1293_v52 = vadd.f32 %v1292_v51, %v1291_v48  ;;  %v1742_v53 = vadd.f32 %v1290_v47, %v1226_v44 }
 0x10d   :  { %v1744_v54 = vadd.f32 %v1293_v52, %v1229_v50 }
 0x10e   :  { %v1230_v55 = vpop.f32.mrb[12].mxu0 }
 0x10f   :  { %v1294_v56 = vpop.f32.mrb[12].mxu1  ;;  %v1231_v57 = vpop.f32.mrb[13].mxu0 }
 0x110   :  { %v1232_v58 = vadd.f32 %v1231_v57, %v1230_v55  ;;  %v1295_v59 = vpop.f32.mrb[13].mxu1  ;;  %v1233_v60 = vpop.f32.mrb[14].mxu0 }
 0x111   :  { %v1296_v61 = vadd.f32 %v1295_v59, %v1294_v56  ;;  %v1297_v62 = vpop.f32.mrb[14].mxu1  ;;  %v1234_v63 = vpop.f32.mrb[15].mxu0 }
 0x112   :  { %v1235_v0 = vadd.f32 %v1234_v63, %v1233_v60  ;;  %v1298_v1 = vpop.f32.mrb[15].mxu1 }
 0x113   :  { %v1299_v2 = vadd.f32 %v1298_v1, %v1297_v62  ;;  %v1746_v3 = vadd.f32 %v1296_v61, %v1232_v58 }
 0x115   :  { %v1748_v4 = vadd.f32 %v1299_v2, %v1235_v0 }
 0x116   :  { %v1236_v5 = vpop.f32.mrb[16].mxu0 }
 0x117   :  { %v1300_v6 = vpop.f32.mrb[16].mxu1  ;;  %v1237_v7 = vpop.f32.mrb[17].mxu0 }
 0x118   :  { %v1238_v8 = vadd.f32 %v1237_v7, %v1236_v5  ;;  %v1301_v9 = vpop.f32.mrb[17].mxu1  ;;  %v1239_v10 = vpop.f32.mrb[18].mxu0  ;;  %v38_v5 = vld [vmem:[#allocation2 + $0x10] sm:$0xff] }
 0x119   :  { %v1302_v11 = vadd.f32 %v1301_v9, %v1300_v6  ;;  %v1303_v12 = vpop.f32.mrb[18].mxu1  ;;  %v1240_v13 = vpop.f32.mrb[19].mxu0 }
 0x11a   :  { %v1241_v14 = vadd.f32 %v1240_v13, %v1239_v10  ;;  %v1304_v15 = vpop.f32.mrb[19].mxu1  ;;  %v36_v10 = vld [vmem:[#allocation2] sm:$0xff] }
 0x11b   :  { %v1305_v16 = vadd.f32 %v1304_v15, %v1303_v12  ;;  %v777_v17 = vadd.f32 %v1302_v11, %v1238_v8  ;;  %v46_v8 = vld [vmem:[#allocation2 + $0x50] sm:$0xff] }
 0x11d   :  { %v1750_v18 = vadd.f32 %v1305_v16, %v1241_v14  ;;  %v44_v14 = vld [vmem:[#allocation2 + $0x40] sm:$0xff]  ;;  %v39_v16 = vld [vmem:[#allocation2 + $0x18] sm:$0xff] }
 0x11e   :  { %v1242_v19 = vpop.f32.mrb[20].mxu0 }
 0x11f   :  { %v1306_v20 = vpop.f32.mrb[20].mxu1  ;;  %v1243_v21 = vpop.f32.mrb[21].mxu0 }
 0x120   :  { %v1244_v22 = vadd.f32 %v1243_v21, %v1242_v19  ;;  %v1307_v23 = vpop.f32.mrb[21].mxu1  ;;  %v1245_v24 = vpop.f32.mrb[22].mxu0 }
 0x121   :  { %v1308_v27 = vadd.f32 %v1307_v23, %v1306_v20  ;;  %v1309_v28 = vpop.f32.mrb[22].mxu1  ;;  %v1246_v29 = vpop.f32.mrb[23].mxu0  ;;  %v47_v23 = vld [vmem:[#allocation2 + $0x58] sm:$0xff] }
 0x122   :  { %v1247_v30 = vadd.f32 %v1246_v29, %v1245_v24  ;;  %v1310_v31 = vpop.f32.mrb[23].mxu1 }
 0x123   :  { %v1311_v32 = vadd.f32 %v1310_v31, %v1309_v28  ;;  %v785_v33 = vadd.f32 %v1308_v27, %v1244_v22  ;;  %v37_v27 = vld [vmem:[#allocation2 + $0x8] sm:$0xff] }
 0x125   :  { %v788_v34 = vadd.f32 %v1311_v32, %v1247_v30  ;;  %v45_v32 = vld [vmem:[#allocation2 + $0x48] sm:$0xff] }
 0x126   :  { %v1248_v35 = vpop.f32.mrb[24].mxu0 }
 0x127   :  { %v1312_v36 = vpop.f32.mrb[24].mxu1  ;;  %v1249_v37 = vpop.f32.mrb[25].mxu0 }
 0x128   :  { %v1250_v38 = vadd.f32 %v1249_v37, %v1248_v35  ;;  %v1313_v41 = vpop.f32.mrb[25].mxu1  ;;  %v1251_v42 = vpop.f32.mrb[26].mxu0 }
 0x129   :  { %v1314_v43 = vadd.f32 %v1313_v41, %v1312_v36  ;;  %v1315_v44 = vpop.f32.mrb[26].mxu1  ;;  %v1252_v45 = vpop.f32.mrb[27].mxu0 }
 0x12a   :  { %v1253_v46 = vadd.f32 %v1252_v45, %v1251_v42  ;;  %v1316_v47 = vpop.f32.mrb[27].mxu1  ;;  %v40_v42 = vld [vmem:[#allocation2 + $0x20] sm:$0xff] }
 0x12b   :  { %v1317_v48 = vadd.f32 %v1316_v47, %v1315_v44  ;;  %v1752_v49 = vadd.f32 %v1314_v43, %v1250_v38  ;;  %v50_v38 = vld [vmem:[#allocation2 + $0x70] sm:$0xff]  ;;  %v1775_v44 = vld [vmem:[%s1873_s2] ss:$0 sm:$0xff] }
 0x12c   :  { %v48_v47 = vld [vmem:[#allocation2 + $0x60] sm:$0xff] }
 0x12d   :  { %v1754_v50 = vadd.f32 %v1317_v48, %v1253_v46 }
 0x12e   :  { %v1254_v51 = vpop.f32.mrb[28].mxu0 }
 0x12f   :  { %v1318_v52 = vpop.f32.mrb[28].mxu1  ;;  %v1255_v55 = vpop.f32.mrb[29].mxu0 }
 0x130   :  { %v1256_v56 = vadd.f32 %v1255_v55, %v1254_v51  ;;  %v1319_v57 = vpop.f32.mrb[29].mxu1  ;;  %v1257_v58 = vpop.f32.mrb[30].mxu0  ;;  %v43_v51 = vld [vmem:[#allocation2 + $0x38] sm:$0xff] }
 0x131   :  { %v1320_v59 = vadd.f32 %v1319_v57, %v1318_v52  ;;  %v1321_v60 = vpop.f32.mrb[30].mxu1  ;;  %v1258_v61 = vpop.f32.mrb[31].mxu0  ;;  %v51_v57 = vld [vmem:[#allocation2 + $0x78] sm:$0xff] }
 0x132   :  { %v1259_v62 = vadd.f32 %v1258_v61, %v1257_v58  ;;  %v1322_v63 = vpop.f32.mrb[31].mxu1 }
 0x133   :  { %v1323_v0 = vadd.f32 %v1322_v63, %v1321_v60  ;;  %v801_v1 = vadd.f32 %v1320_v59, %v1256_v56  ;;  %v41_v59 = vld [vmem:[#allocation2 + $0x28] sm:$0xff] }
 0x135   :  { %v1756_v2 = vadd.f32 %v1323_v0, %v1259_v62 }
 0x136   :  { %v1346_v6 = vpop.f32.mrb[32].mxu0 }
 0x137   :  { %v850_v7 = vadd.f32 %v1346_v6, %v1738_v39  ;;  %v1354_v9 = vpop.f32.mrb[32].mxu1  ;;  %v841_v11 = vpop.f32.mrb[33].mxu0 }
 0x138   :  { %v882_v12 = vadd.f32 %v1354_v9, %v785_v33  ;;  %v842_v13 = vadd.f32 %v841_v11, %v1734_v25  ;;  %v873_v15 = vpop.f32.mrb[33].mxu1  ;;  %v1347_v19 = vpop.f32.mrb[34].mxu0 }
 0x139   :  { %v906_v20 = vadd.f32 %v850_v7, %v38_v5  ;;  %v874_v21 = vadd.f32 %v873_v15, %v777_v17  ;;  %v853_v22 = vadd.f32 %v1347_v19, %v1740_v40  ;;  %v1355_v24 = vpop.f32.mrb[34].mxu1  ;;  %v844_v28 = vpop.f32.mrb[35].mxu0 }
 0x13a   :  { %v914_v39 = vadd.f32 %v882_v12, %v46_v8  ;;  %v904_v29 = vadd.f32 %v842_v13, %v36_v10  ;;  %v885_v30 = vadd.f32 %v1355_v24, %v788_v34  ;;  %v845_v31 = vadd.f32 %v844_v28, %v1736_v26  ;;  %v876_v33 = vpop.f32.mrb[35].mxu1  ;;  %v42_v26 = vld [vmem:[#allocation2 + $0x30] sm:$0xff] }
 0x13b   :  { %922 = vst.msk [vmem:[#allocation2 + $0x10] sm:$0xff] %vm19_vm0, %v906_v20  ;;  %v912_v25 = vadd.f32 %v874_v21, %v44_v14  ;;  %v907_v35 = vadd.f32 %v853_v22, %v39_v16  ;;  %v877_v36 = vadd.f32 %v876_v33, %v1750_v18 }
 0x13c   :  { %930 = vst.msk [vmem:[#allocation2 + $0x50] sm:$0xff] %vm19_vm0, %v914_v39  ;;  %920 = vst.msk [vmem:[#allocation2] sm:$0xff] %vm19_vm0, %v904_v29  ;;  %v915_v40 = vadd.f32 %v885_v30, %v47_v23  ;;  %v905_v17 = vadd.f32 %v845_v31, %v37_v27 }
 0x13d   :  { %928 = vst.msk [vmem:[#allocation2 + $0x40] sm:$0xff] %vm19_vm0, %v912_v25  ;;  %923 = vst.msk [vmem:[#allocation2 + $0x18] sm:$0xff] %vm19_vm0, %v907_v35  ;;  %v913_v34 = vadd.f32 %v877_v36, %v45_v32 }
 0x13e   :  { %931 = vst.msk [vmem:[#allocation2 + $0x58] sm:$0xff] %vm19_vm0, %v915_v40  ;;  %921 = vst.msk [vmem:[#allocation2 + $0x8] sm:$0xff] %vm19_vm0, %v905_v17  ;;  %v1350_v37 = vpop.f32.mrb[36].mxu0 }
 0x13f   :  { %929 = vst.msk [vmem:[#allocation2 + $0x48] sm:$0xff] %vm19_vm0, %v913_v34  ;;  %v866_v18 = vadd.f32 %v1350_v37, %v1746_v3  ;;  %v1358_v41 = vpop.f32.mrb[36].mxu1  ;;  %v857_v43 = vpop.f32.mrb[37].mxu0 }
 0x140   :  { %v898_v45 = vadd.f32 %v1358_v41, %v801_v1  ;;  %v858_v46 = vadd.f32 %v857_v43, %v1742_v53  ;;  %v889_v48 = vpop.f32.mrb[37].mxu1  ;;  %v1351_v52 = vpop.f32.mrb[38].mxu0  ;;  %v49_v1 = vld [vmem:[#allocation2 + $0x68] sm:$0xff] }
 0x141   :  { %v910_v55 = vadd.f32 %v866_v18, %v42_v26  ;;  %v890_v3 = vadd.f32 %v889_v48, %v1752_v49  ;;  %v869_v56 = vadd.f32 %v1351_v52, %v1748_v4  ;;  %v1359_v58 = vpop.f32.mrb[38].mxu1  ;;  %v860_v60 = vpop.f32.mrb[39].mxu0 }
 0x142   :  { %v941_v61 = vld [vmem:[#allocation2 + $0x10] sm:$0xff]  ;;  %v918_v62 = vadd.f32 %v898_v45, %v50_v38  ;;  %v908_v63 = vadd.f32 %v858_v46, %v40_v42  ;;  %v901_v0 = vadd.f32 %v1359_v58, %v1756_v2  ;;  %v861_v53 = vadd.f32 %v860_v60, %v1744_v54  ;;  %v892_v5 = vpop.f32.mrb[39].mxu1 }
 0x143   :  { %v964_v6 = vadd.f32 %v1775_v44, %v941_v61  ;;  %v949_v7 = vld [vmem:[#allocation2 + $0x50] sm:$0xff]  ;;  %v939_v8 = vld [vmem:[#allocation2] sm:$0xff]  ;;  %926 = vst.msk [vmem:[#allocation2 + $0x30] sm:$0xff] %vm19_vm0, %v910_v55  ;;  %v916_v4 = vadd.f32 %v890_v3, %v48_v47  ;;  %v911_v49 = vadd.f32 %v869_v56, %v43_v51  ;;  %v893_v9 = vadd.f32 %v892_v5, %v1754_v50 }
 0x144   :  { %v972_v10 = vadd.f32 %v1775_v44, %v949_v7  ;;  %v962_v11 = vadd.f32 %v1775_v44, %v939_v8  ;;  %v947_v12 = vld [vmem:[#allocation2 + $0x40] sm:$0xff]  ;;  %v942_v2 = vld [vmem:[#allocation2 + $0x18] sm:$0xff]  ;;  %934 = vst.msk [vmem:[#allocation2 + $0x70] sm:$0xff] %vm19_vm0, %v918_v62  ;;  %924 = vst.msk [vmem:[#allocation2 + $0x20] sm:$0xff] %vm19_vm0, %v908_v63  ;;  %v919_v54 = vadd.f32 %v901_v0, %v51_v57 }
 0x145   :  { %v909_v13 = vadd.f32 %v861_v53, %v41_v59  ;;  %v980_v14 = vmax.f32 %v964_v6, 0.0  ;;  %v970_v15 = vadd.f32 %v1775_v44, %v947_v12  ;;  %v965_v16 = vadd.f32 %v1775_v44, %v942_v2  ;;  %v950_v19 = vld [vmem:[#allocation2 + $0x58] sm:$0xff]  ;;  %v940_v20 = vld [vmem:[#allocation2 + $0x8] sm:$0xff]  ;;  %932 = vst.msk [vmem:[#allocation2 + $0x60] sm:$0xff] %vm19_vm0, %v916_v4  ;;  %927 = vst.msk [vmem:[#allocation2 + $0x38] sm:$0xff] %vm19_vm0, %v911_v49 }
 0x146   :  { %v917_v50 = vadd.f32 %v893_v9, %v49_v1  ;;  %v988_v21 = vmax.f32 %v972_v10, 0.0  ;;  %v978_v22 = vmax.f32 %v962_v11, 0.0  ;;  %v973_v23 = vadd.f32 %v1775_v44, %v950_v19  ;;  %v948_v27 = vld [vmem:[#allocation2 + $0x48] sm:$0xff]  ;;  %935 = vst.msk [vmem:[#allocation2 + $0x78] sm:$0xff] %vm19_vm0, %v919_v54 }
 0x147   :  { %v963_v24 = vadd.f32 %v1775_v44, %v940_v20  ;;  %925 = vst.msk [vmem:[#allocation2 + $0x28] sm:$0xff] %vm19_vm0, %v909_v13  ;;  %v1182_v28 = vpack.c.bf16 %v980_v14, %v980_v14  ;;  %v986_v39 = vmax.f32 %v970_v15, 0.0  ;;  %v981_v29 = vmax.f32 %v965_v16, 0.0 }
 0x148   :  { %v971_v30 = vadd.f32 %v1775_v44, %v948_v27  ;;  %933 = vst.msk [vmem:[#allocation2 + $0x68] sm:$0xff] %vm19_vm0, %v917_v50  ;;  %v1190_v31 = vpack.c.bf16 %v988_v21, %v988_v21  ;;  %v1180_v32 = vpack.c.bf16 %v978_v22, %v978_v22  ;;  %v989_v33 = vmax.f32 %v973_v23, 0.0 }
 0x149   :  { %v979_v25 = vmax.f32 %v963_v24, 0.0  ;;  %1061 = vst.msk [vmem:[%s1874_s3 + $0x8] sm:$0xf] %vm1058_vm1, %v1182_v28  ;;  %v1188_v35 = vpack.c.bf16 %v986_v39, %v986_v39  ;;  %v1183_v36 = vpack.c.bf16 %v981_v29, %v981_v29 }
 0x14a   :  { %v987_v40 = vmax.f32 %v971_v30, 0.0  ;;  %1069 = vst.msk [vmem:[%s1874_s3 + $0x28] sm:$0xf] %vm1058_vm1, %v1190_v31  ;;  %1059 = vst.msk [vmem:[%s1874_s3] sm:$0xf] %vm1058_vm1, %v1180_v32  ;;  %v1191_v17 = vpack.c.bf16 %v989_v33, %v989_v33  ;;  %v945_v26 = vld [vmem:[#allocation2 + $0x30] sm:$0xff] }
 0x14b   :  { %v1181_v34 = vpack.c.bf16 %v979_v25, %v979_v25  ;;  %1067 = vst.msk [vmem:[%s1874_s3 + $0x20] sm:$0xf] %vm1058_vm1, %v1188_v35  ;;  %1062 = vst.msk [vmem:[%s1874_s3 + $0xc] sm:$0xf] %vm1058_vm1, %v1183_v36  ;;  %v968_v18 = vadd.f32 %v1775_v44, %v945_v26  ;;  %v953_v38 = vld [vmem:[#allocation2 + $0x70] sm:$0xff]  ;;  %v943_v41 = vld [vmem:[#allocation2 + $0x20] sm:$0xff] }
 0x14c   :  { %v1189_v37 = vpack.c.bf16 %v987_v40, %v987_v40  ;;  %1070 = vst.msk [vmem:[%s1874_s3 + $0x2c] sm:$0xf] %vm1058_vm1, %v1191_v17  ;;  %v976_v42 = vadd.f32 %v1775_v44, %v953_v38  ;;  %v966_v43 = vadd.f32 %v1775_v44, %v943_v41  ;;  %v951_v45 = vld [vmem:[#allocation2 + $0x60] sm:$0xff]  ;;  %v946_v46 = vld [vmem:[#allocation2 + $0x38] sm:$0xff] }
 0x14d   :  { %1060 = vst.msk [vmem:[%s1874_s3 + $0x4] sm:$0xf] %vm1058_vm1, %v1181_v34  ;;  %v984_v47 = vmax.f32 %v968_v18, 0.0  ;;  %v974_v48 = vadd.f32 %v1775_v44, %v951_v45  ;;  %v969_v51 = vadd.f32 %v1775_v44, %v946_v46  ;;  %v954_v52 = vld [vmem:[#allocation2 + $0x78] sm:$0xff] }
 0x14e   :  { %1068 = vst.msk [vmem:[%s1874_s3 + $0x24] sm:$0xf] %vm1058_vm1, %v1189_v37  ;;  %v944_v55 = vld [vmem:[#allocation2 + $0x28] sm:$0xff]  ;;  %v992_v3 = vmax.f32 %v976_v42, 0.0  ;;  %v982_v56 = vmax.f32 %v966_v43, 0.0  ;;  %v977_v57 = vadd.f32 %v1775_v44, %v954_v52 }
 0x14f   :  { %v967_v58 = vadd.f32 %v1775_v44, %v944_v55  ;;  %v952_v59 = vld [vmem:[#allocation2 + $0x68] sm:$0xff]  ;;  %v1186_v60 = vpack.c.bf16 %v984_v47, %v984_v47  ;;  %v990_v61 = vmax.f32 %v974_v48, 0.0  ;;  %v985_v62 = vmax.f32 %v969_v51, 0.0 }
 0x150   :  { %v975_v63 = vadd.f32 %v1775_v44, %v952_v59  ;;  %v1194_v0 = vpack.c.bf16 %v992_v3, %v992_v3  ;;  %v1184_v53 = vpack.c.bf16 %v982_v56, %v982_v56  ;;  %v993_v1 = vmax.f32 %v977_v57, 0.0 }
 0x151   :  { %v983_v5 = vmax.f32 %v967_v58, 0.0  ;;  %1065 = vst.msk [vmem:[%s1874_s3 + $0x18] sm:$0xf] %vm1058_vm1, %v1186_v60  ;;  %v1192_v6 = vpack.c.bf16 %v990_v61, %v990_v61  ;;  %v1187_v7 = vpack.c.bf16 %v985_v62, %v985_v62 }
 0x152   :  { %v991_v8 = vmax.f32 %v975_v63, 0.0  ;;  %1073 = vst.msk [vmem:[%s1874_s3 + $0x38] sm:$0xf] %vm1058_vm1, %v1194_v0  ;;  %1063 = vst.msk [vmem:[%s1874_s3 + $0x10] sm:$0xf] %vm1058_vm1, %v1184_v53  ;;  %v1195_v44 = vpack.c.bf16 %v993_v1, %v993_v1 }
 0x153   :  { %v1185_v4 = vpack.c.bf16 %v983_v5, %v983_v5  ;;  %1071 = vst.msk [vmem:[%s1874_s3 + $0x30] sm:$0xf] %vm1058_vm1, %v1192_v6  ;;  %1066 = vst.msk [vmem:[%s1874_s3 + $0x1c] sm:$0xf] %vm1058_vm1, %v1187_v7 }
 0x154   :  { %v1193_v49 = vpack.c.bf16 %v991_v8, %v991_v8  ;;  %1074 = vst.msk [vmem:[%s1874_s3 + $0x3c] sm:$0xf] %vm1058_vm1, %v1195_v44 }
 0x155   :  { %1064 = vst.msk [vmem:[%s1874_s3 + $0x14] sm:$0xf] %vm1058_vm1, %v1185_v4 }
 0x156   :  { %1072 = vst.msk [vmem:[%s1874_s3 + $0x34] sm:$0xf] %vm1058_vm1, %v1193_v49 }

// kernel: tbmodel_forward.23
= control target key start
LH: loop header
LB: loop body
LE: loop exit
PB: predicated region body
PF: predicated region fallthrough
CT: control target
= control target key end

     0   :  { %vm22_vm0 = vcmask 523264   ;;  %vm1109_vm1 = vcmask 519168   ;;  %s2060_s1 = inlined_call_operand.vmem [shape: bf16[576,64], index: 1, kind: input, shape index: {}]   ;;  %s2061_s0 = inlined_call_operand.vmem [shape: bf16[128,576], index: 0, kind: input, shape index: {}]   ;;  %s2062_s3 = inlined_call_operand.vmem [shape: bf16[128,64], index: 3, kind: input, shape index: {}]   ;;  %s2063_s2 = inlined_call_operand.vmem [shape: f32[1,64], index: 2, kind: input, shape index: {}]   ;;  %s2064_s4 = inlined_call_operand.vmem [shape: bf16[128,64], index: 4, kind: output, shape index: {}]  }
   0x1   :  { %v1459_v0 = vld [vmem:[%s2060_s1 + $0x40] sm:$0xff]   ;;  %v1463_v4 = vld [vmem:[%s2060_s1 + $0x48] sm:$0xff]   ;;  %v1467_v8 = vld [vmem:[%s2060_s1 + $0x50] sm:$0xff]  }
   0x2   :  { %v1460_v1 = vld [vmem:[%s2060_s1 + $0xc0] sm:$0xff]   ;;  %1286 = vmatprep.subr.bf16.mxu0 %v1459_v0  ;;  %v1464_v5 = vld [vmem:[%s2060_s1 + $0xc8] sm:$0xff]   ;;  %v1468_v9 = vld [vmem:[%s2060_s1 + $0xd0] sm:$0xff]  }
   0x3   :  { %v1461_v2 = vld [vmem:[%s2060_s1] sm:$0xff]   ;;  %1350 = vmatprep.subr.bf16.mxu1 %v1460_v1  ;;  %v1465_v6 = vld [vmem:[%s2060_s1 + $0x8] sm:$0xff]   ;;  %v1469_v10 = vld [vmem:[%s2060_s1 + $0x10] sm:$0xff]  }
   0x4   :  { %v1462_v3 = vld [vmem:[%s2060_s1 + $0x80] sm:$0xff]   ;;  %1287 = vmatpush3.bf16.msra.mxu0 %v1461_v2  ;;  %v1466_v7 = vld [vmem:[%s2060_s1 + $0x88] sm:$0xff]   ;;  %v1470_v11 = vld [vmem:[%s2060_s1 + $0x90] sm:$0xff]  }
   0x5   :  { %1351 = vmatpush3.bf16.msra.mxu1 %v1462_v3  ;;  %1288 = vmatprep.subr.bf16.mxu0 %v1463_v4  ;;  %v1471_v12 = vld [vmem:[%s2060_s1 + $0x58] sm:$0xff]   ;;  %v1475_v16 = vld [vmem:[%s2060_s1 + $0x60] sm:$0xff]   ;;  %v1479_v20 = vld [vmem:[%s2060_s1 + $0x68] sm:$0xff]  }
   0x6   :  { %1352 = vmatprep.subr.bf16.mxu1 %v1464_v5  ;;  %v1472_v13 = vld [vmem:[%s2060_s1 + $0xd8] sm:$0xff]   ;;  %v1476_v17 = vld [vmem:[%s2060_s1 + $0xe0] sm:$0xff]   ;;  %v1480_v21 = vld [vmem:[%s2060_s1 + $0xe8] sm:$0xff]  }
   0x7   :  { %v1473_v14 = vld [vmem:[%s2060_s1 + $0x18] sm:$0xff]   ;;  %v1477_v18 = vld [vmem:[%s2060_s1 + $0x20] sm:$0xff]   ;;  %v1481_v22 = vld [vmem:[%s2060_s1 + $0x28] sm:$0xff]  }
   0x8   :  { %1289 = vmatpush3.bf16.msra.mxu0 %v1465_v6  ;;  %v1474_v15 = vld [vmem:[%s2060_s1 + $0x98] sm:$0xff]   ;;  %v1478_v19 = vld [vmem:[%s2060_s1 + $0xa0] sm:$0xff]   ;;  %v1482_v23 = vld [vmem:[%s2060_s1 + $0xa8] sm:$0xff]  }
   0x9   :  { %1353 = vmatpush3.bf16.msra.mxu1 %v1466_v7  ;;  %1290 = vmatprep.subr.bf16.mxu0 %v1467_v8  ;;  %v1483_v24 = vld [vmem:[%s2060_s1 + $0x70] sm:$0xff]   ;;  %v1487_v28 = vld [vmem:[%s2060_s1 + $0x78] sm:$0xff]   ;;  %v1496_v35 = vld [vmem:[%s2061_s0 + $0xc] ss:$20 sps:$4 sm:$0xff]  }
   0xa   :  { %1354 = vmatprep.subr.bf16.mxu1 %v1468_v9  ;;  %v1484_v25 = vld [vmem:[%s2060_s1 + $0xf0] sm:$0xff]   ;;  %v1488_v29 = vld [vmem:[%s2060_s1 + $0xf8] sm:$0xff]   ;;  %v1497_v36 = vld [vmem:[%s2060_s1 + $0x100] sm:$0xff]   ;;  %745 = vmatprep.mubr.bf16.mxu1 %v1496_v35 }
   0xb   :  { %v1485_v26 = vld [vmem:[%s2060_s1 + $0x30] sm:$0xff]   ;;  %v1489_v30 = vld [vmem:[%s2060_s1 + $0x38] sm:$0xff]   ;;  %v1498_v37 = vld [vmem:[%s2061_s0 + $0x2c] ss:$20 sps:$4 sm:$0xff]  }
   0xc   :  { %1291 = vmatpush3.bf16.msra.mxu0 %v1469_v10  ;;  %v1486_v27 = vld [vmem:[%s2060_s1 + $0xb0] sm:$0xff]   ;;  %v1490_v31 = vld [vmem:[%s2060_s1 + $0xb8] sm:$0xff]   ;;  %v1510_v42 = vld [vmem:[%s2060_s1 + $0x108] sm:$0xff]  }
   0xd   :  { %1355 = vmatpush3.bf16.msra.mxu1 %v1470_v11  ;;  %1292 = vmatprep.subr.bf16.mxu0 %v1471_v12  ;;  %v1491_v32 = vld [vmem:[%s2061_s0] ss:$20 sps:$4 sm:$0xff]   ;;  %v1493_v33 = vld [vmem:[%s2061_s0 + $0x4] ss:$20 sps:$4 sm:$0xff]   ;;  %v1494_v34 = vld [vmem:[%s2061_s0 + $0x8] ss:$20 sps:$4 sm:$0xff]  }
   0xe   :  { %1356 = vmatprep.subr.bf16.mxu1 %v1472_v13  ;;  %648 = vmatprep.mubr.bf16.mxu0 %v1493_v33  ;;  %v1500_v38 = vld [vmem:[%s2061_s0 + $0x34] ss:$20 sps:$4 sm:$0xff]   ;;  %v1503_v40 = vld [vmem:[%s2061_s0 + $0x30] ss:$20 sps:$4 sm:$0xff]   ;;  %v1509_v45 = vld [vmem:[%s2061_s0 + $0x58] ss:$20 sps:$4 sm:$0xff]  }
   0xf   :  { %v1502_v39 = vld [vmem:[%s2061_s0 + $0x28] ss:$20 sps:$4 sm:$0xff]   ;;  %v1508_v44 = vld [vmem:[%s2061_s0 + $0x50] ss:$20 sps:$4 sm:$0xff]   ;;  %v1515_v50 = vld [vmem:[%s2061_s0 + $0x78] ss:$20 sps:$4 sm:$0xff]  }
  0x10   :  { %1293 = vmatpush3.bf16.msra.mxu0 %v1473_v14  ;;  %v1504_v41 = vld [vmem:[%s2061_s0 + $0x54] ss:$20 sps:$4 sm:$0xff]   ;;  %v1506_v43 = vld [vmem:[%s2061_s0 + $0x5c] ss:$20 sps:$4 sm:$0xff]   ;;  %v1513_v48 = vld [vmem:[%s2061_s0 + $0x84] ss:$20 sps:$4 sm:$0xff]  }
  0x11   :  { %1357 = vmatpush3.bf16.msra.mxu1 %v1474_v15  ;;  %1294 = vmatprep.subr.bf16.mxu0 %v1475_v16  ;;  %v1523_v46 = vld [vmem:[%s2060_s1 + $0x110] sm:$0xff]   ;;  %v1536_v49 = vld [vmem:[%s2060_s1 + $0x118] sm:$0xff]   ;;  %v1519_v53 = vld [vmem:[%s2061_s0 + $0xac] ss:$20 sps:$4 sm:$0xff]   ;;  %v1551_v12 = vmov 0.0  }
  0x12   :  { %1358 = vmatprep.subr.bf16.mxu1 %v1476_v17  ;;  %v1511_v47 = vld [vmem:[%s2061_s0 + $0x7c] ss:$20 sps:$4 sm:$0xff]   ;;  %v1516_v51 = vld [vmem:[%s2061_s0 + $0x80] ss:$20 sps:$4 sm:$0xff]   ;;  %v1517_v52 = vld [vmem:[%s2061_s0 + $0xa4] ss:$20 sps:$4 sm:$0xff]  }
  0x13   :  { %v1521_v54 = vld [vmem:[%s2061_s0 + $0xa0] ss:$20 sps:$4 sm:$0xff]   ;;  %v1522_v55 = vld [vmem:[%s2061_s0 + $0xa8] ss:$20 sps:$4 sm:$0xff]   ;;  %v1529_v59 = vld [vmem:[%s2061_s0 + $0xd0] ss:$20 sps:$4 sm:$0xff]  }
  0x14   :  { %1295 = vmatpush3.bf16.msra.mxu0 %v1477_v18  ;;  %v1524_v56 = vld [vmem:[%s2061_s0 + $0xcc] ss:$20 sps:$4 sm:$0xff]   ;;  %v1526_v57 = vld [vmem:[%s2061_s0 + $0xd4] ss:$20 sps:$4 sm:$0xff]   ;;  %v1532_v61 = vld [vmem:[%s2061_s0 + $0xfc] ss:$20 sps:$4 sm:$0xff]  }
  0x15   :  { %1359 = vmatpush3.bf16.msra.mxu1 %v1478_v19  ;;  %1296 = vmatprep.subr.bf16.mxu0 %v1479_v20  ;;  %v1528_v58 = vld [vmem:[%s2061_s0 + $0xc8] ss:$20 sps:$4 sm:$0xff]   ;;  %v1534_v62 = vld [vmem:[%s2061_s0 + $0xf0] ss:$20 sps:$4 sm:$0xff]   ;;  %v1535_v63 = vld [vmem:[%s2061_s0 + $0xf8] ss:$20 sps:$4 sm:$0xff]  }
  0x16   :  { %1360 = vmatprep.subr.bf16.mxu1 %v1480_v21  ;;  %v1530_v60 = vld [vmem:[%s2061_s0 + $0xf4] ss:$20 sps:$4 sm:$0xff]   ;;  %v1537_v0 = vld [vmem:[%s2061_s0 + $0x11c] ss:$20 sps:$4 sm:$0xff]   ;;  %v1539_v1 = vld [vmem:[%s2061_s0 + $0x124] ss:$20 sps:$4 sm:$0xff]  }
  0x17   :  { %v1541_v2 = vld [vmem:[%s2061_s0 + $0x118] ss:$20 sps:$4 sm:$0xff]   ;;  %v1542_v3 = vld [vmem:[%s2061_s0 + $0x120] ss:$20 sps:$4 sm:$0xff]   ;;  %v1543_v4 = vld [vmem:[%s2061_s0 + $0x10] ss:$20 sps:$4 sm:$0xff]  }
  0x18   :  { %1297 = vmatpush3.bf16.msra.mxu0 %v1481_v22  ;;  %v1544_v5 = vld [vmem:[%s2061_s0 + $0xb0] ss:$20 sps:$4 sm:$0xff]   ;;  %v1545_v6 = vld [vmem:[%s2061_s0 + $0x38] ss:$20 sps:$4 sm:$0xff]   ;;  %v1547_v8 = vld [vmem:[%s2061_s0 + $0x60] ss:$20 sps:$4 sm:$0xff]  }
  0x19   :  { %1361 = vmatpush3.bf16.msra.mxu1 %v1482_v23  ;;  %1298 = vmatprep.subr.bf16.mxu0 %v1483_v24  ;;  %v1546_v7 = vld [vmem:[%s2061_s0 + $0xd8] ss:$20 sps:$4 sm:$0xff]   ;;  %v1548_v9 = vld [vmem:[%s2061_s0 + $0x100] ss:$20 sps:$4 sm:$0xff]   ;;  %v1549_v10 = vld [vmem:[%s2061_s0 + $0x88] ss:$20 sps:$4 sm:$0xff]  }
  0x1a   :  { %1362 = vmatprep.subr.bf16.mxu1 %v1484_v25  ;;  %v1550_v11 = vld [vmem:[%s2061_s0 + $0x128] ss:$20 sps:$4 sm:$0xff]   ;;  %25 = vst.msk [vmem:[#allocation2 + $0x10] sm:$0xff] %vm22_vm0, %v1551_v12  ;;  %23 = vst.msk [vmem:[#allocation2] sm:$0xff] %vm22_vm0, %v1551_v12 }
  0x1b   :  { %24 = vst.msk [vmem:[#allocation2 + $0x8] sm:$0xff] %vm22_vm0, %v1551_v12  ;;  %26 = vst.msk [vmem:[#allocation2 + $0x18] sm:$0xff] %vm22_vm0, %v1551_v12 }
  0x1c   :  { %1299 = vmatpush3.bf16.msra.mxu0 %v1485_v26  ;;  %27 = vst.msk [vmem:[#allocation2 + $0x20] sm:$0xff] %vm22_vm0, %v1551_v12  ;;  %28 = vst.msk [vmem:[#allocation2 + $0x28] sm:$0xff] %vm22_vm0, %v1551_v12 }
  0x1d   :  { %1363 = vmatpush3.bf16.msra.mxu1 %v1486_v27  ;;  %1300 = vmatprep.subr.bf16.mxu0 %v1487_v28  ;;  %29 = vst.msk [vmem:[#allocation2 + $0x30] sm:$0xff] %vm22_vm0, %v1551_v12  ;;  %30 = vst.msk [vmem:[#allocation2 + $0x38] sm:$0xff] %vm22_vm0, %v1551_v12 }
  0x1e   :  { %1364 = vmatprep.subr.bf16.mxu1 %v1488_v29  ;;  %31 = vst.msk [vmem:[#allocation2 + $0x40] sm:$0xff] %vm22_vm0, %v1551_v12  ;;  %32 = vst.msk [vmem:[#allocation2 + $0x48] sm:$0xff] %vm22_vm0, %v1551_v12 }
  0x1f   :  { %33 = vst.msk [vmem:[#allocation2 + $0x50] sm:$0xff] %vm22_vm0, %v1551_v12  ;;  %34 = vst.msk [vmem:[#allocation2 + $0x58] sm:$0xff] %vm22_vm0, %v1551_v12 }
  0x20   :  { %1301 = vmatpush3.bf16.msra.mxu0 %v1489_v30  ;;  %35 = vst.msk [vmem:[#allocation2 + $0x60] sm:$0xff] %vm22_vm0, %v1551_v12  ;;  %36 = vst.msk [vmem:[#allocation2 + $0x68] sm:$0xff] %vm22_vm0, %v1551_v12 }
  0x21   :  { %1365 = vmatpush3.bf16.msra.mxu1 %v1490_v31  ;;  %1426 = vmatprep.subr.bf16.mxu0 %v1497_v36  ;;  %37 = vst.msk [vmem:[#allocation2 + $0x70] sm:$0xff] %vm22_vm0, %v1551_v12  ;;  %38 = vst.msk [vmem:[#allocation2 + $0x78] sm:$0xff] %vm22_vm0, %v1551_v12 }
  0x22   :  { %1450 = vmatprep.subr.bf16.mxu1 %v1497_v36 }
  0x23   :  { %649 = vmatmul.mubr.bf16.vlgmr.msra.gmra.mrb[0].mxu0 %v1491_v32 }
  0x24   :  { %746 = vmatmul.mubr.bf16.vlgmr.msra.gmra.mrb[0].mxu1 %v1494_v34  ;;  %1427 = vmatpush3.bf16.msra.mxu0 %v1497_v36 }
  0x25   :  { %1454 = vmatpush3.bf16.msra.mxu1 %v1497_v36  ;;  %656 = vmatprep.mubr.bf16.mxu0 %v1498_v37 }
  0x26   :  { %753 = vmatprep.mubr.bf16.mxu1 %v1500_v38  ;;  %1428 = vmatprep.subr.bf16.mxu0 %v1510_v42 }
  0x27   :  { %1451 = vmatprep.subr.bf16.mxu1 %v1510_v42 }
  0x28   :  { %1429 = vmatpush3.bf16.msra.mxu0 %v1510_v42 }
  0x29   :  { %1455 = vmatpush3.bf16.msra.mxu1 %v1510_v42  ;;  %1430 = vmatprep.subr.bf16.mxu0 %v1523_v46 }
  0x2a   :  { %1452 = vmatprep.subr.bf16.mxu1 %v1523_v46 }
  0x2b   :  { %657 = vmatmul.mubr.bf16.gmra.mrb[4].mxu0 %v1502_v39 }
  0x2c   :  { %754 = vmatmul.mubr.bf16.gmra.mrb[4].mxu1 %v1503_v40  ;;  %664 = vmatprep.mubr.bf16.mxu0 %v1504_v41 }
  0x2d   :  { %761 = vmatprep.mubr.bf16.mxu1 %v1506_v43  ;;  %1431 = vmatpush3.bf16.msra.mxu0 %v1523_v46 }
  0x2e   :  { %1456 = vmatpush3.bf16.msra.mxu1 %v1523_v46  ;;  %1432 = vmatprep.subr.bf16.mxu0 %v1536_v49 }
  0x2f   :  { %1453 = vmatprep.subr.bf16.mxu1 %v1536_v49 }
  0x31   :  { %1433 = vmatpush3.bf16.msra.mxu0 %v1536_v49 }
  0x32   :  { %1457 = vmatpush3.bf16.msra.mxu1 %v1536_v49 }
  0x33   :  { %665 = vmatmul.mubr.bf16.gmra.mrb[8].mxu0 %v1508_v44 }
  0x34   :  { %762 = vmatmul.mubr.bf16.gmra.mrb[8].mxu1 %v1509_v45  ;;  %672 = vmatprep.mubr.bf16.mxu0 %v1511_v47 }
  0x35   :  { %769 = vmatprep.mubr.bf16.mxu1 %v1513_v48 }
  0x3b   :  { %673 = vmatmul.mubr.bf16.gmra.mrb[12].mxu0 %v1515_v50 }
  0x3c   :  { %770 = vmatmul.mubr.bf16.gmra.mrb[12].mxu1 %v1516_v51  ;;  %680 = vmatprep.mubr.bf16.mxu0 %v1517_v52 }
  0x3d   :  { %777 = vmatprep.mubr.bf16.mxu1 %v1519_v53 }
  0x43   :  { %681 = vmatmul.mubr.bf16.gmra.mrb[16].mxu0 %v1521_v54 }
  0x44   :  { %778 = vmatmul.mubr.bf16.gmra.mrb[16].mxu1 %v1522_v55  ;;  %688 = vmatprep.mubr.bf16.mxu0 %v1524_v56 }
  0x45   :  { %785 = vmatprep.mubr.bf16.mxu1 %v1526_v57 }
  0x4b   :  { %689 = vmatmul.mubr.bf16.gmra.mrb[20].mxu0 %v1528_v58 }
  0x4c   :  { %786 = vmatmul.mubr.bf16.gmra.mrb[20].mxu1 %v1529_v59  ;;  %696 = vmatprep.mubr.bf16.mxu0 %v1530_v60 }
  0x4d   :  { %793 = vmatprep.mubr.bf16.mxu1 %v1532_v61 }
  0x53   :  { %697 = vmatmul.mubr.bf16.gmra.mrb[24].mxu0 %v1534_v62 }
  0x54   :  { %794 = vmatmul.mubr.bf16.gmra.mrb[24].mxu1 %v1535_v63  ;;  %704 = vmatprep.mubr.bf16.mxu0 %v1537_v0 }
  0x55   :  { %801 = vmatprep.mubr.bf16.mxu1 %v1539_v1 }
  0x5b   :  { %705 = vmatmul.mubr.bf16.gmra.mrb[28].mxu0 %v1541_v2 }
  0x5c   :  { %802 = vmatmul.mubr.bf16.gmra.mrb[28].mxu1 %v1542_v3  ;;  %1434 = vmatprep.mubr.msk.bf16.mxu0 %vm22_vm0, %v1543_v4 }
  0x5d   :  { %1442 = vmatprep.mubr.msk.bf16.mxu1 %vm22_vm0, %v1544_v5 }
  0x63   :  { %1435 = vmatmul.mubr.msk.bf16.vlgmr.msra.gmra.mrb[32].mxu0 %vm22_vm0, %v1545_v6 }
  0x64   :  { %1443 = vmatmul.mubr.msk.bf16.vlgmr.msra.gmra.mrb[32].mxu1 %vm22_vm0, %v1546_v7  ;;  %1438 = vmatprep.mubr.msk.bf16.mxu0 %vm22_vm0, %v1547_v8 }
  0x65   :  { %1446 = vmatprep.mubr.msk.bf16.mxu1 %vm22_vm0, %v1548_v9 }
  0x6b   :  { %1439 = vmatmul.mubr.msk.bf16.gmra.mrb[36].mxu0 %vm22_vm0, %v1549_v10 }
  0x6c   :  { %1447 = vmatmul.mubr.msk.bf16.gmra.mrb[36].mxu1 %vm22_vm0, %v1550_v11 }
  0xf6   :  { %v1302_v13 = vpop.f32.mrb[0].mxu0 }
  0xf7   :  { %v1366_v14 = vpop.f32.mrb[0].mxu1  ;;  %v1303_v15 = vpop.f32.mrb[1].mxu0 }
  0xf8   :  { %v1304_v16 = vadd.f32 %v1303_v15, %v1302_v13  ;;  %v1367_v17 = vpop.f32.mrb[1].mxu1  ;;  %v1305_v18 = vpop.f32.mrb[2].mxu0 }
  0xf9   :  { %v1368_v19 = vadd.f32 %v1367_v17, %v1366_v14  ;;  %v1369_v20 = vpop.f32.mrb[2].mxu1  ;;  %v1306_v21 = vpop.f32.mrb[3].mxu0 }
  0xfa   :  { %v1307_v22 = vadd.f32 %v1306_v21, %v1305_v18  ;;  %v1370_v23 = vpop.f32.mrb[3].mxu1 }
  0xfb   :  { %v1371_v24 = vadd.f32 %v1370_v23, %v1369_v20  ;;  %v1829_v25 = vadd.f32 %v1368_v19, %v1304_v16 }
  0xfd   :  { %v1831_v26 = vadd.f32 %v1371_v24, %v1307_v22 }
  0xfe   :  { %v1308_v27 = vpop.f32.mrb[4].mxu0 }
  0xff   :  { %v1372_v28 = vpop.f32.mrb[4].mxu1  ;;  %v1309_v29 = vpop.f32.mrb[5].mxu0 }
 0x100   :  { %v1310_v30 = vadd.f32 %v1309_v29, %v1308_v27  ;;  %v1373_v31 = vpop.f32.mrb[5].mxu1  ;;  %v1311_v32 = vpop.f32.mrb[6].mxu0 }
 0x101   :  { %v1374_v33 = vadd.f32 %v1373_v31, %v1372_v28  ;;  %v1375_v34 = vpop.f32.mrb[6].mxu1  ;;  %v1312_v35 = vpop.f32.mrb[7].mxu0 }
 0x102   :  { %v1313_v36 = vadd.f32 %v1312_v35, %v1311_v32  ;;  %v1376_v37 = vpop.f32.mrb[7].mxu1 }
 0x103   :  { %v1377_v38 = vadd.f32 %v1376_v37, %v1375_v34  ;;  %v1833_v39 = vadd.f32 %v1374_v33, %v1310_v30 }
 0x105   :  { %v1835_v40 = vadd.f32 %v1377_v38, %v1313_v36 }
 0x106   :  { %v1314_v41 = vpop.f32.mrb[8].mxu0 }
 0x107   :  { %v1378_v42 = vpop.f32.mrb[8].mxu1  ;;  %v1315_v43 = vpop.f32.mrb[9].mxu0 }
 0x108   :  { %v1316_v44 = vadd.f32 %v1315_v43, %v1314_v41  ;;  %v1379_v45 = vpop.f32.mrb[9].mxu1  ;;  %v1317_v46 = vpop.f32.mrb[10].mxu0 }
 0x109   :  { %v1380_v47 = vadd.f32 %v1379_v45, %v1378_v42  ;;  %v1381_v48 = vpop.f32.mrb[10].mxu1  ;;  %v1318_v49 = vpop.f32.mrb[11].mxu0 }
 0x10a   :  { %v1319_v50 = vadd.f32 %v1318_v49, %v1317_v46  ;;  %v1382_v51 = vpop.f32.mrb[11].mxu1 }
 0x10b   :  { %v1383_v52 = vadd.f32 %v1382_v51, %v1381_v48  ;;  %v1837_v53 = vadd.f32 %v1380_v47, %v1316_v44 }
 0x10d   :  { %v1839_v54 = vadd.f32 %v1383_v52, %v1319_v50 }
 0x10e   :  { %v1320_v55 = vpop.f32.mrb[12].mxu0 }
 0x10f   :  { %v1384_v56 = vpop.f32.mrb[12].mxu1  ;;  %v1321_v57 = vpop.f32.mrb[13].mxu0 }
 0x110   :  { %v1322_v58 = vadd.f32 %v1321_v57, %v1320_v55  ;;  %v1385_v59 = vpop.f32.mrb[13].mxu1  ;;  %v1323_v60 = vpop.f32.mrb[14].mxu0 }
 0x111   :  { %v1386_v61 = vadd.f32 %v1385_v59, %v1384_v56  ;;  %v1387_v62 = vpop.f32.mrb[14].mxu1  ;;  %v1324_v63 = vpop.f32.mrb[15].mxu0 }
 0x112   :  { %v1325_v0 = vadd.f32 %v1324_v63, %v1323_v60  ;;  %v1388_v1 = vpop.f32.mrb[15].mxu1 }
 0x113   :  { %v1389_v2 = vadd.f32 %v1388_v1, %v1387_v62  ;;  %v1841_v3 = vadd.f32 %v1386_v61, %v1322_v58 }
 0x115   :  { %v1843_v4 = vadd.f32 %v1389_v2, %v1325_v0 }
 0x116   :  { %v1326_v5 = vpop.f32.mrb[16].mxu0 }
 0x117   :  { %v1390_v6 = vpop.f32.mrb[16].mxu1  ;;  %v1327_v7 = vpop.f32.mrb[17].mxu0 }
 0x118   :  { %v1328_v8 = vadd.f32 %v1327_v7, %v1326_v5  ;;  %v1391_v9 = vpop.f32.mrb[17].mxu1  ;;  %v1329_v10 = vpop.f32.mrb[18].mxu0  ;;  %v41_v5 = vld [vmem:[#allocation2 + $0x10] sm:$0xff] }
 0x119   :  { %v1392_v11 = vadd.f32 %v1391_v9, %v1390_v6  ;;  %v1393_v12 = vpop.f32.mrb[18].mxu1  ;;  %v1330_v13 = vpop.f32.mrb[19].mxu0 }
 0x11a   :  { %v1331_v14 = vadd.f32 %v1330_v13, %v1329_v10  ;;  %v1394_v15 = vpop.f32.mrb[19].mxu1  ;;  %v39_v10 = vld [vmem:[#allocation2] sm:$0xff]  ;;  %v1861_v13 = vld [vmem:[%s2062_s3 + $0x8] sm:$0xff]  }
 0x11b   :  { %v1395_v16 = vadd.f32 %v1394_v15, %v1393_v12  ;;  %v1845_v17 = vadd.f32 %v1392_v11, %v1328_v8  ;;  %v49_v8 = vld [vmem:[#allocation2 + $0x50] sm:$0xff]  ;;  %v47_v12 = vld [vmem:[#allocation2 + $0x40] sm:$0xff] }
 0x11d   :  { %v1847_v18 = vadd.f32 %v1395_v16, %v1331_v14 }
 0x11e   :  { %v1332_v19 = vpop.f32.mrb[20].mxu0 }
 0x11f   :  { %v1396_v20 = vpop.f32.mrb[20].mxu1  ;;  %v1333_v21 = vpop.f32.mrb[21].mxu0 }
 0x120   :  { %v1334_v22 = vadd.f32 %v1333_v21, %v1332_v19  ;;  %v1397_v23 = vpop.f32.mrb[21].mxu1  ;;  %v1335_v24 = vpop.f32.mrb[22].mxu0  ;;  %v42_v19 = vld [vmem:[#allocation2 + $0x18] sm:$0xff] }
 0x121   :  { %v1398_v27 = vadd.f32 %v1397_v23, %v1396_v20  ;;  %v1399_v28 = vpop.f32.mrb[22].mxu1  ;;  %v1336_v29 = vpop.f32.mrb[23].mxu0  ;;  %v50_v21 = vld [vmem:[#allocation2 + $0x58] sm:$0xff]  ;;  %v1872_v23 = vld [vmem:[%s2062_s3] sm:$0xff]  }
 0x122   :  { %v1337_v30 = vadd.f32 %v1336_v29, %v1335_v24  ;;  %v1400_v31 = vpop.f32.mrb[23].mxu1 }
 0x123   :  { %v1401_v32 = vadd.f32 %v1400_v31, %v1399_v28  ;;  %v788_v33 = vadd.f32 %v1398_v27, %v1334_v22  ;;  %v40_v28 = vld [vmem:[#allocation2 + $0x8] sm:$0xff] }
 0x125   :  { %v791_v34 = vadd.f32 %v1401_v32, %v1337_v30  ;;  %v1879_v32 = vld [vmem:[%s2062_s3 + $0x20] sm:$0xff]  }
 0x126   :  { %v1338_v35 = vpop.f32.mrb[24].mxu0 }
 0x127   :  { %v1402_v36 = vpop.f32.mrb[24].mxu1  ;;  %v1339_v37 = vpop.f32.mrb[25].mxu0 }
 0x128   :  { %v1340_v38 = vadd.f32 %v1339_v37, %v1338_v35  ;;  %v1403_v41 = vpop.f32.mrb[25].mxu1  ;;  %v1341_v42 = vpop.f32.mrb[26].mxu0 }
 0x129   :  { %v1404_v43 = vadd.f32 %v1403_v41, %v1402_v36  ;;  %v1405_v44 = vpop.f32.mrb[26].mxu1  ;;  %v1342_v45 = vpop.f32.mrb[27].mxu0  ;;  %v48_v36 = vld [vmem:[#allocation2 + $0x48] sm:$0xff] }
 0x12a   :  { %v1343_v46 = vadd.f32 %v1342_v45, %v1341_v42  ;;  %v1406_v47 = vpop.f32.mrb[27].mxu1  ;;  %v1888_v42 = vld [vmem:[%s2062_s3 + $0x18] sm:$0xff]   ;;  %v1902_v45 = vld [vmem:[%s2062_s3 + $0x10] sm:$0xff]  }
 0x12b   :  { %v1407_v48 = vadd.f32 %v1406_v47, %v1405_v44  ;;  %v1849_v49 = vadd.f32 %v1404_v43, %v1340_v38  ;;  %v1249_v43 = vunpack.c.l.bf16 %v1872_v23  ;;  %v1265_v47 = vunpack.c.l.bf16 %v1879_v32 }
 0x12d   :  { %v1851_v50 = vadd.f32 %v1407_v48, %v1343_v46  ;;  %v1907_v46 = vld [vmem:[%s2062_s3 + $0x30] sm:$0xff]   ;;  %v1254_v48 = vunpack.c.h.bf16 %v1861_v13 }
 0x12e   :  { %v1344_v51 = vpop.f32.mrb[28].mxu0 }
 0x12f   :  { %v1408_v52 = vpop.f32.mrb[28].mxu1  ;;  %v1345_v55 = vpop.f32.mrb[29].mxu0 }
 0x130   :  { %v1346_v56 = vadd.f32 %v1345_v55, %v1344_v51  ;;  %v1409_v57 = vpop.f32.mrb[29].mxu1  ;;  %v1347_v58 = vpop.f32.mrb[30].mxu0  ;;  %v1250_v55 = vunpack.c.h.bf16 %v1872_v23 }
 0x131   :  { %v1410_v59 = vadd.f32 %v1409_v57, %v1408_v52  ;;  %v1411_v60 = vpop.f32.mrb[30].mxu1  ;;  %v1348_v61 = vpop.f32.mrb[31].mxu0  ;;  %v45_v57 = vld [vmem:[#allocation2 + $0x30] sm:$0xff] }
 0x132   :  { %v1349_v62 = vadd.f32 %v1348_v61, %v1347_v58  ;;  %v1412_v63 = vpop.f32.mrb[31].mxu1 }
 0x133   :  { %v1413_v0 = vadd.f32 %v1412_v63, %v1411_v60  ;;  %v1853_v1 = vadd.f32 %v1410_v59, %v1346_v56  ;;  %v1266_v56 = vunpack.c.h.bf16 %v1879_v32  ;;  %v1261_v59 = vunpack.c.l.bf16 %v1888_v42 }
 0x135   :  { %v1855_v2 = vadd.f32 %v1413_v0, %v1349_v62  ;;  %v53_v62 = vld [vmem:[#allocation2 + $0x70] sm:$0xff]  ;;  %v43_v0 = vld [vmem:[#allocation2 + $0x20] sm:$0xff] }
 0x136   :  { %v1436_v6 = vpop.f32.mrb[32].mxu0 }
 0x137   :  { %v853_v7 = vadd.f32 %v1436_v6, %v1833_v39  ;;  %v1444_v9 = vpop.f32.mrb[32].mxu1  ;;  %v844_v11 = vpop.f32.mrb[33].mxu0  ;;  %v1867_v39 = vld [vmem:[%s2062_s3 + $0x28] sm:$0xff]   ;;  %v1257_v6 = vunpack.c.l.bf16 %v1902_v45 }
 0x138   :  { %v885_v14 = vadd.f32 %v1444_v9, %v788_v33  ;;  %v845_v15 = vadd.f32 %v844_v11, %v1829_v25  ;;  %v876_v16 = vpop.f32.mrb[33].mxu1  ;;  %v1437_v20 = vpop.f32.mrb[34].mxu0  ;;  %v1270_v51 = vunpack.c.h.bf16 %v1867_v39  ;;  %v1928_v9 = vld [vmem:[%s2063_s2] ss:$0 sm:$0xff] }
 0x139   :  { %v909_v22 = vadd.f32 %v853_v7, %v41_v5  ;;  %v877_v24 = vadd.f32 %v876_v16, %v1845_v17  ;;  %v856_v27 = vadd.f32 %v1437_v20, %v1835_v40  ;;  %v1445_v25 = vpop.f32.mrb[34].mxu1  ;;  %v847_v29 = vpop.f32.mrb[35].mxu0  ;;  %v1253_v17 = vunpack.c.l.bf16 %v1861_v13  ;;  %v51_v11 = vld [vmem:[#allocation2 + $0x60] sm:$0xff] }
 0x13a   :  { %v917_v30 = vadd.f32 %v885_v14, %v49_v8  ;;  %v907_v31 = vadd.f32 %v845_v15, %v39_v10  ;;  %v888_v33 = vadd.f32 %v1445_v25, %v791_v34  ;;  %v848_v35 = vadd.f32 %v847_v29, %v1831_v26  ;;  %v879_v37 = vpop.f32.mrb[35].mxu1  ;;  %v1893_v34 = vld [vmem:[%s2062_s3 + $0x38] sm:$0xff]   ;;  %v44_v25 = vld [vmem:[#allocation2 + $0x28] sm:$0xff] }
 0x13b   :  { %925 = vst.msk [vmem:[#allocation2 + $0x10] sm:$0xff] %vm22_vm0, %v909_v22  ;;  %v915_v40 = vadd.f32 %v877_v24, %v47_v12  ;;  %v910_v38 = vadd.f32 %v856_v27, %v42_v19  ;;  %v880_v41 = vadd.f32 %v879_v37, %v1847_v18  ;;  %v1269_v26 = vunpack.c.l.bf16 %v1867_v39  ;;  %v46_v14 = vld [vmem:[#allocation2 + $0x38] sm:$0xff] }
 0x13c   :  { %933 = vst.msk [vmem:[#allocation2 + $0x50] sm:$0xff] %vm22_vm0, %v917_v30  ;;  %923 = vst.msk [vmem:[#allocation2] sm:$0xff] %vm22_vm0, %v907_v31  ;;  %v918_v44 = vadd.f32 %v888_v33, %v50_v21  ;;  %v908_v18 = vadd.f32 %v848_v35, %v40_v28  ;;  %v1277_v60 = vunpack.c.l.bf16 %v1893_v34  ;;  %v1273_v7 = vunpack.c.l.bf16 %v1907_v46  ;;  %v54_v24 = vld [vmem:[#allocation2 + $0x78] sm:$0xff]  ;;  %v52_v35 = vld [vmem:[#allocation2 + $0x68] sm:$0xff] }
 0x13d   :  { %931 = vst.msk [vmem:[#allocation2 + $0x40] sm:$0xff] %vm22_vm0, %v915_v40  ;;  %926 = vst.msk [vmem:[#allocation2 + $0x18] sm:$0xff] %vm22_vm0, %v910_v38  ;;  %v916_v52 = vadd.f32 %v880_v41, %v48_v36  ;;  %v1262_v8 = vunpack.c.h.bf16 %v1888_v42  ;;  %v1278_v16 = vunpack.c.h.bf16 %v1893_v34  ;;  %v1258_v19 = vunpack.c.h.bf16 %v1902_v45 }
 0x13e   :  { %934 = vst.msk [vmem:[#allocation2 + $0x58] sm:$0xff] %vm22_vm0, %v918_v44  ;;  %924 = vst.msk [vmem:[#allocation2 + $0x8] sm:$0xff] %vm22_vm0, %v908_v18  ;;  %v1440_v58 = vpop.f32.mrb[36].mxu0 }
 0x13f   :  { %932 = vst.msk [vmem:[#allocation2 + $0x48] sm:$0xff] %vm22_vm0, %v916_v52  ;;  %v869_v61 = vadd.f32 %v1440_v58, %v1841_v3  ;;  %v1448_v63 = vpop.f32.mrb[36].mxu1  ;;  %v860_v5 = vpop.f32.mrb[37].mxu0 }
 0x140   :  { %v901_v10 = vadd.f32 %v1448_v63, %v1853_v1  ;;  %v861_v3 = vadd.f32 %v860_v5, %v1837_v53  ;;  %v892_v12 = vpop.f32.mrb[37].mxu1  ;;  %v1441_v15 = vpop.f32.mrb[38].mxu0  ;;  %v1274_v1 = vunpack.c.h.bf16 %v1907_v46 }
 0x141   :  { %v913_v20 = vadd.f32 %v869_v61, %v45_v57  ;;  %v893_v21 = vadd.f32 %v892_v12, %v1849_v49  ;;  %v872_v22 = vadd.f32 %v1441_v15, %v1843_v4  ;;  %v1449_v27 = vpop.f32.mrb[38].mxu1  ;;  %v863_v28 = vpop.f32.mrb[39].mxu0 }
 0x142   :  { %v944_v53 = vld [vmem:[#allocation2 + $0x10] sm:$0xff]  ;;  %v921_v29 = vadd.f32 %v901_v10, %v53_v62  ;;  %v911_v30 = vadd.f32 %v861_v3, %v43_v0  ;;  %v904_v31 = vadd.f32 %v1449_v27, %v1855_v2  ;;  %v864_v33 = vadd.f32 %v863_v28, %v1839_v54  ;;  %v895_v36 = vpop.f32.mrb[39].mxu1 }
 0x143   :  { %v967_v37 = vadd.f32 %v1928_v9, %v944_v53  ;;  %v952_v49 = vld [vmem:[#allocation2 + $0x50] sm:$0xff]  ;;  %v942_v40 = vld [vmem:[#allocation2] sm:$0xff]  ;;  %929 = vst.msk [vmem:[#allocation2 + $0x30] sm:$0xff] %vm22_vm0, %v913_v20  ;;  %v919_v4 = vadd.f32 %v893_v21, %v51_v11  ;;  %v914_v38 = vadd.f32 %v872_v22, %v46_v14  ;;  %v896_v41 = vadd.f32 %v895_v36, %v1851_v50 }
 0x144   :  { %v975_v44 = vadd.f32 %v1928_v9, %v952_v49  ;;  %v965_v18 = vadd.f32 %v1928_v9, %v942_v40  ;;  %v950_v52 = vld [vmem:[#allocation2 + $0x40] sm:$0xff]  ;;  %v945_v2 = vld [vmem:[#allocation2 + $0x18] sm:$0xff]  ;;  %937 = vst.msk [vmem:[#allocation2 + $0x70] sm:$0xff] %vm22_vm0, %v921_v29  ;;  %927 = vst.msk [vmem:[#allocation2 + $0x20] sm:$0xff] %vm22_vm0, %v911_v30  ;;  %v922_v54 = vadd.f32 %v904_v31, %v54_v24 }
 0x145   :  { %v912_v57 = vadd.f32 %v864_v33, %v44_v25  ;;  %v1015_v58 = vadd.f32 %v1253_v17, %v967_v37  ;;  %v973_v61 = vadd.f32 %v1928_v9, %v950_v52  ;;  %v968_v62 = vadd.f32 %v1928_v9, %v945_v2  ;;  %v953_v50 = vld [vmem:[#allocation2 + $0x58] sm:$0xff]  ;;  %v943_v63 = vld [vmem:[#allocation2 + $0x8] sm:$0xff]  ;;  %935 = vst.msk [vmem:[#allocation2 + $0x60] sm:$0xff] %vm22_vm0, %v919_v4 }
 0x146   :  { %930 = vst.msk [vmem:[#allocation2 + $0x38] sm:$0xff] %vm22_vm0, %v914_v38  ;;  %v920_v0 = vadd.f32 %v896_v41, %v52_v35  ;;  %v1023_v5 = vadd.f32 %v1269_v26, %v975_v44  ;;  %v1013_v10 = vadd.f32 %v1249_v43, %v965_v18  ;;  %v976_v3 = vadd.f32 %v1928_v9, %v953_v50  ;;  %v951_v11 = vld [vmem:[#allocation2 + $0x48] sm:$0xff] }
 0x147   :  { %v966_v17 = vadd.f32 %v1928_v9, %v943_v63  ;;  %938 = vst.msk [vmem:[#allocation2 + $0x78] sm:$0xff] %vm22_vm0, %v922_v54  ;;  %928 = vst.msk [vmem:[#allocation2 + $0x28] sm:$0xff] %vm22_vm0, %v912_v57  ;;  %v1031_v12 = vmax.f32 %v1015_v58, 0.0  ;;  %v1021_v14 = vadd.f32 %v1265_v47, %v973_v61  ;;  %v1016_v15 = vadd.f32 %v1254_v48, %v968_v62 }
 0x148   :  { %v974_v26 = vadd.f32 %v1928_v9, %v951_v11  ;;  %936 = vst.msk [vmem:[#allocation2 + $0x68] sm:$0xff] %vm22_vm0, %v920_v0  ;;  %v1039_v43 = vmax.f32 %v1023_v5, 0.0  ;;  %v1029_v20 = vmax.f32 %v1013_v10, 0.0  ;;  %v1024_v21 = vadd.f32 %v1270_v51, %v976_v3 }
 0x149   :  { %v1014_v22 = vadd.f32 %v1250_v55, %v966_v17  ;;  %v1233_v24 = vpack.c.bf16 %v1031_v12, %v1031_v12  ;;  %v1037_v27 = vmax.f32 %v1021_v14, 0.0  ;;  %v1032_v25 = vmax.f32 %v1016_v15, 0.0 }
 0x14a   :  { %v1022_v47 = vadd.f32 %v1266_v56, %v974_v26  ;;  %v1241_v13 = vpack.c.bf16 %v1039_v43, %v1039_v43  ;;  %v1231_v48 = vpack.c.bf16 %v1029_v20, %v1029_v20  ;;  %v1040_v28 = vmax.f32 %v1024_v21, 0.0  ;;  %v948_v29 = vld [vmem:[#allocation2 + $0x30] sm:$0xff] }
 0x14b   :  { %v1030_v53 = vmax.f32 %v1014_v22, 0.0  ;;  %1112 = vst.msk [vmem:[%s2064_s4 + $0x8] sm:$0xf] %vm1109_vm1, %v1233_v24  ;;  %v1239_v39 = vpack.c.bf16 %v1037_v27, %v1037_v27  ;;  %v1234_v51 = vpack.c.bf16 %v1032_v25, %v1032_v25  ;;  %v971_v55 = vadd.f32 %v1928_v9, %v948_v29  ;;  %v956_v30 = vld [vmem:[#allocation2 + $0x70] sm:$0xff]  ;;  %v946_v31 = vld [vmem:[#allocation2 + $0x20] sm:$0xff] }
 0x14c   :  { %v1038_v23 = vmax.f32 %v1022_v47, 0.0  ;;  %1120 = vst.msk [vmem:[%s2064_s4 + $0x28] sm:$0xf] %vm1109_vm1, %v1241_v13  ;;  %1110 = vst.msk [vmem:[%s2064_s4] sm:$0xf] %vm1109_vm1, %v1231_v48  ;;  %v1242_v32 = vpack.c.bf16 %v1040_v28, %v1040_v28  ;;  %v979_v33 = vadd.f32 %v1928_v9, %v956_v30  ;;  %v969_v35 = vadd.f32 %v1928_v9, %v946_v31  ;;  %v954_v36 = vld [vmem:[#allocation2 + $0x60] sm:$0xff] }
 0x14d   :  { %v1232_v56 = vpack.c.bf16 %v1030_v53, %v1030_v53  ;;  %v949_v37 = vld [vmem:[#allocation2 + $0x38] sm:$0xff]  ;;  %1118 = vst.msk [vmem:[%s2064_s4 + $0x20] sm:$0xf] %vm1109_vm1, %v1239_v39  ;;  %1113 = vst.msk [vmem:[%s2064_s4 + $0xc] sm:$0xf] %vm1109_vm1, %v1234_v51  ;;  %v1019_v40 = vadd.f32 %v1261_v59, %v971_v55  ;;  %v977_v4 = vadd.f32 %v1928_v9, %v954_v36 }
 0x14e   :  { %v1240_v49 = vpack.c.bf16 %v1038_v23, %v1038_v23  ;;  %v972_v38 = vadd.f32 %v1928_v9, %v949_v37  ;;  %v957_v41 = vld [vmem:[#allocation2 + $0x78] sm:$0xff]  ;;  %v947_v44 = vld [vmem:[#allocation2 + $0x28] sm:$0xff]  ;;  %1121 = vst.msk [vmem:[%s2064_s4 + $0x2c] sm:$0xf] %vm1109_vm1, %v1242_v32  ;;  %v1027_v18 = vadd.f32 %v1277_v60, %v979_v33  ;;  %v1017_v59 = vadd.f32 %v1257_v6, %v969_v35 }
 0x14f   :  { %1111 = vst.msk [vmem:[%s2064_s4 + $0x4] sm:$0xf] %vm1109_vm1, %v1232_v56  ;;  %v980_v52 = vadd.f32 %v1928_v9, %v957_v41  ;;  %v970_v2 = vadd.f32 %v1928_v9, %v947_v44  ;;  %v955_v54 = vld [vmem:[#allocation2 + $0x68] sm:$0xff]  ;;  %v1035_v57 = vmax.f32 %v1019_v40, 0.0  ;;  %v1025_v58 = vadd.f32 %v1273_v7, %v977_v4 }
 0x150   :  { %1119 = vst.msk [vmem:[%s2064_s4 + $0x24] sm:$0xf] %vm1109_vm1, %v1240_v49  ;;  %v1020_v60 = vadd.f32 %v1262_v8, %v972_v38  ;;  %v978_v61 = vadd.f32 %v1928_v9, %v955_v54  ;;  %v1043_v6 = vmax.f32 %v1027_v18, 0.0  ;;  %v1033_v62 = vmax.f32 %v1017_v59, 0.0 }
 0x151   :  { %v1028_v50 = vadd.f32 %v1278_v16, %v980_v52  ;;  %v1018_v63 = vadd.f32 %v1258_v19, %v970_v2  ;;  %v1237_v0 = vpack.c.bf16 %v1035_v57, %v1035_v57  ;;  %v1041_v5 = vmax.f32 %v1025_v58, 0.0 }
 0x152   :  { %v1036_v10 = vmax.f32 %v1020_v60, 0.0  ;;  %v1026_v3 = vadd.f32 %v1274_v1, %v978_v61  ;;  %v1245_v7 = vpack.c.bf16 %v1043_v6, %v1043_v6  ;;  %v1235_v17 = vpack.c.bf16 %v1033_v62, %v1033_v62 }
 0x153   :  { %v1044_v42 = vmax.f32 %v1028_v50, 0.0  ;;  %v1034_v8 = vmax.f32 %v1018_v63, 0.0  ;;  %1116 = vst.msk [vmem:[%s2064_s4 + $0x18] sm:$0xf] %vm1109_vm1, %v1237_v0  ;;  %v1243_v34 = vpack.c.bf16 %v1041_v5, %v1041_v5 }
 0x154   :  { %v1238_v9 = vpack.c.bf16 %v1036_v10, %v1036_v10  ;;  %v1042_v16 = vmax.f32 %v1026_v3, 0.0  ;;  %1124 = vst.msk [vmem:[%s2064_s4 + $0x38] sm:$0xf] %vm1109_vm1, %v1245_v7  ;;  %1114 = vst.msk [vmem:[%s2064_s4 + $0x10] sm:$0xf] %vm1109_vm1, %v1235_v17 }
 0x155   :  { %v1246_v45 = vpack.c.bf16 %v1044_v42, %v1044_v42  ;;  %v1236_v46 = vpack.c.bf16 %v1034_v8, %v1034_v8  ;;  %1122 = vst.msk [vmem:[%s2064_s4 + $0x30] sm:$0xf] %vm1109_vm1, %v1243_v34 }
 0x156   :  { %1117 = vst.msk [vmem:[%s2064_s4 + $0x1c] sm:$0xf] %vm1109_vm1, %v1238_v9  ;;  %v1244_v19 = vpack.c.bf16 %v1042_v16, %v1042_v16 }
 0x157   :  { %1125 = vst.msk [vmem:[%s2064_s4 + $0x3c] sm:$0xf] %vm1109_vm1, %v1246_v45  ;;  %1115 = vst.msk [vmem:[%s2064_s4 + $0x14] sm:$0xf] %vm1109_vm1, %v1236_v46 }
 0x158   :  { %1123 = vst.msk [vmem:[%s2064_s4 + $0x34] sm:$0xf] %vm1109_vm1, %v1244_v19 }

// kernel: tbmodel_forward.26
= control target key start
LH: loop header
LB: loop body
LE: loop exit
PB: predicated region body
PF: predicated region fallthrough
CT: control target
= control target key end

     0   :  { %vm377_vm0 = vcmask 523264   ;;  %s944_s1 = inlined_call_operand.vmem [shape: bf16[576,128], index: 1, kind: input, shape index: {}]   ;;  %s945_s0 = inlined_call_operand.vmem [shape: bf16[32,576], index: 0, kind: input, shape index: {}]   ;;  %s946_s2 = inlined_call_operand.vmem [shape: f32[1,128], index: 2, kind: input, shape index: {}]   ;;  %s947_s3 = inlined_call_operand.vmem [shape: bf16[32,128], index: 3, kind: output, shape index: {}]  }
   0x1   :  { %v727_v0 = vld [vmem:[%s944_s1 + $0x40] sm:$0xff]   ;;  %v731_v4 = vld [vmem:[%s944_s1 + $0x48] sm:$0xff]   ;;  %v735_v8 = vld [vmem:[%s944_s1 + $0x50] sm:$0xff]  }
   0x2   :  { %v728_v1 = vld [vmem:[%s944_s1 + $0xc0] sm:$0xff]   ;;  %653 = vmatprep.subr.bf16.mxu0 %v727_v0  ;;  %v732_v5 = vld [vmem:[%s944_s1 + $0xc8] sm:$0xff]   ;;  %v736_v9 = vld [vmem:[%s944_s1 + $0xd0] sm:$0xff]  }
   0x3   :  { %v729_v2 = vld [vmem:[%s944_s1] sm:$0xff]   ;;  %681 = vmatprep.subr.bf16.mxu1 %v728_v1  ;;  %v733_v6 = vld [vmem:[%s944_s1 + $0x8] sm:$0xff]   ;;  %v737_v10 = vld [vmem:[%s944_s1 + $0x10] sm:$0xff]  }
   0x4   :  { %v730_v3 = vld [vmem:[%s944_s1 + $0x80] sm:$0xff]   ;;  %654 = vmatpush3.bf16.msra.mxu0 %v729_v2  ;;  %v734_v7 = vld [vmem:[%s944_s1 + $0x88] sm:$0xff]   ;;  %v738_v11 = vld [vmem:[%s944_s1 + $0x90] sm:$0xff]  }
   0x5   :  { %682 = vmatpush3.bf16.msra.mxu1 %v730_v3  ;;  %655 = vmatprep.subr.bf16.mxu0 %v731_v4  ;;  %v739_v12 = vld [vmem:[%s944_s1 + $0x58] sm:$0xff]   ;;  %v743_v16 = vld [vmem:[%s944_s1 + $0x60] sm:$0xff]   ;;  %v747_v20 = vld [vmem:[%s944_s1 + $0x68] sm:$0xff]  }
   0x6   :  { %683 = vmatprep.subr.bf16.mxu1 %v732_v5  ;;  %v740_v13 = vld [vmem:[%s944_s1 + $0xd8] sm:$0xff]   ;;  %v744_v17 = vld [vmem:[%s944_s1 + $0xe0] sm:$0xff]   ;;  %v748_v21 = vld [vmem:[%s944_s1 + $0xe8] sm:$0xff]  }
   0x7   :  { %v741_v14 = vld [vmem:[%s944_s1 + $0x18] sm:$0xff]   ;;  %v745_v18 = vld [vmem:[%s944_s1 + $0x20] sm:$0xff]   ;;  %v749_v22 = vld [vmem:[%s944_s1 + $0x28] sm:$0xff]  }
   0x8   :  { %656 = vmatpush3.bf16.msra.mxu0 %v733_v6  ;;  %v742_v15 = vld [vmem:[%s944_s1 + $0x98] sm:$0xff]   ;;  %v746_v19 = vld [vmem:[%s944_s1 + $0xa0] sm:$0xff]   ;;  %v750_v23 = vld [vmem:[%s944_s1 + $0xa8] sm:$0xff]  }
   0x9   :  { %684 = vmatpush3.bf16.msra.mxu1 %v734_v7  ;;  %657 = vmatprep.subr.bf16.mxu0 %v735_v8  ;;  %v751_v24 = vld [vmem:[%s944_s1 + $0x70] sm:$0xff]   ;;  %v755_v28 = vld [vmem:[%s944_s1 + $0x78] sm:$0xff]   ;;  %v764_v35 = vld [vmem:[%s945_s0 + $0xc] ss:$20 sps:$4 sm:$0xff]  }
   0xa   :  { %685 = vmatprep.subr.bf16.mxu1 %v736_v9  ;;  %v752_v25 = vld [vmem:[%s944_s1 + $0xf0] sm:$0xff]   ;;  %v756_v29 = vld [vmem:[%s944_s1 + $0xf8] sm:$0xff]   ;;  %v765_v36 = vld [vmem:[%s944_s1 + $0x100] sm:$0xff]   ;;  %465 = vmatprep.mubr.bf16.mxu1 %v764_v35 }
   0xb   :  { %v753_v26 = vld [vmem:[%s944_s1 + $0x30] sm:$0xff]   ;;  %v757_v30 = vld [vmem:[%s944_s1 + $0x38] sm:$0xff]   ;;  %v766_v37 = vld [vmem:[%s944_s1 + $0x108] sm:$0xff]  }
   0xc   :  { %658 = vmatpush3.bf16.msra.mxu0 %v737_v10  ;;  %v754_v27 = vld [vmem:[%s944_s1 + $0xb0] sm:$0xff]   ;;  %v758_v31 = vld [vmem:[%s944_s1 + $0xb8] sm:$0xff]   ;;  %v767_v38 = vld [vmem:[%s945_s0 + $0x2c] ss:$20 sps:$4 sm:$0xff]  }
   0xd   :  { %686 = vmatpush3.bf16.msra.mxu1 %v738_v11  ;;  %659 = vmatprep.subr.bf16.mxu0 %v739_v12  ;;  %v759_v32 = vld [vmem:[%s945_s0] ss:$20 sps:$4 sm:$0xff]   ;;  %v761_v33 = vld [vmem:[%s945_s0 + $0x4] ss:$20 sps:$4 sm:$0xff]   ;;  %v762_v34 = vld [vmem:[%s945_s0 + $0x8] ss:$20 sps:$4 sm:$0xff]  }
   0xe   :  { %687 = vmatprep.subr.bf16.mxu1 %v740_v13  ;;  %416 = vmatprep.mubr.bf16.mxu0 %v761_v33  ;;  %v769_v39 = vld [vmem:[%s945_s0 + $0x34] ss:$20 sps:$4 sm:$0xff]   ;;  %v772_v42 = vld [vmem:[%s945_s0 + $0x30] ss:$20 sps:$4 sm:$0xff]   ;;  %v774_v44 = vld [vmem:[%s944_s1 + $0x118] sm:$0xff]  }
   0xf   :  { %v771_v40 = vld [vmem:[%s945_s0 + $0x28] ss:$20 sps:$4 sm:$0xff]   ;;  %v773_v41 = vld [vmem:[%s944_s1 + $0x110] sm:$0xff]   ;;  %v776_v45 = vld [vmem:[%s945_s0 + $0x38] ss:$20 sps:$4 sm:$0xff]  }
  0x10   :  { %660 = vmatpush3.bf16.msra.mxu0 %v741_v14  ;;  %v775_v43 = vld [vmem:[%s945_s0 + $0x10] ss:$20 sps:$4 sm:$0xff]   ;;  %v633_v11 = vld [vmem:[%s946_s2] ss:$0 sm:$0xff] }
  0x11   :  { %688 = vmatpush3.bf16.msra.mxu1 %v742_v15  ;;  %661 = vmatprep.subr.bf16.mxu0 %v743_v16 }
  0x12   :  { %689 = vmatprep.subr.bf16.mxu1 %v744_v17 }
  0x14   :  { %662 = vmatpush3.bf16.msra.mxu0 %v745_v18 }
  0x15   :  { %690 = vmatpush3.bf16.msra.mxu1 %v746_v19  ;;  %663 = vmatprep.subr.bf16.mxu0 %v747_v20 }
  0x16   :  { %691 = vmatprep.subr.bf16.mxu1 %v748_v21 }
  0x18   :  { %664 = vmatpush3.bf16.msra.mxu0 %v749_v22 }
  0x19   :  { %692 = vmatpush3.bf16.msra.mxu1 %v750_v23  ;;  %665 = vmatprep.subr.bf16.mxu0 %v751_v24 }
  0x1a   :  { %693 = vmatprep.subr.bf16.mxu1 %v752_v25 }
  0x1c   :  { %666 = vmatpush3.bf16.msra.mxu0 %v753_v26 }
  0x1d   :  { %694 = vmatpush3.bf16.msra.mxu1 %v754_v27  ;;  %667 = vmatprep.subr.bf16.mxu0 %v755_v28 }
  0x1e   :  { %695 = vmatprep.subr.bf16.mxu1 %v756_v29 }
  0x20   :  { %668 = vmatpush3.bf16.msra.mxu0 %v757_v30 }
  0x21   :  { %696 = vmatpush3.bf16.msra.mxu1 %v758_v31  ;;  %715 = vmatprep.subr.bf16.mxu0 %v765_v36 }
  0x23   :  { %417 = vmatmul.mubr.bf16.vlgmr.msra.gmra.mrb[0].mxu0 %v759_v32 }
  0x24   :  { %466 = vmatmul.mubr.bf16.vlgmr.msra.gmra.mrb[0].mxu1 %v762_v34  ;;  %716 = vmatpush3.bf16.msra.mxu0 %v765_v36 }
  0x25   :  { %717 = vmatprep.subr.bf16.mxu0 %v766_v37  ;;  %424 = vmatprep.mubr.bf16.mxu0 %v767_v38 }
  0x26   :  { %473 = vmatprep.mubr.bf16.mxu1 %v769_v39 }
  0x28   :  { %718 = vmatpush3.bf16.msra.mxu0 %v766_v37 }
  0x29   :  { %719 = vmatprep.subr.bf16.mxu0 %v773_v41 }
  0x2b   :  { %425 = vmatmul.mubr.bf16.gmra.mrb[4].mxu0 %v771_v40 }
  0x2c   :  { %474 = vmatmul.mubr.bf16.gmra.mrb[4].mxu1 %v772_v42  ;;  %723 = vmatprep.mubr.msk.bf16.mxu0 %vm377_vm0, %v775_v43 }
  0x2d   :  { %720 = vmatpush3.bf16.msra.mxu0 %v773_v41 }
  0x2e   :  { %721 = vmatprep.subr.bf16.mxu0 %v774_v44 }
  0x31   :  { %722 = vmatpush3.bf16.msra.mxu0 %v774_v44 }
  0x34   :  { %724 = vmatmul.mubr.msk.bf16.vlgmr.msra.gmra.mrb[8].mxu0 %vm377_vm0, %v776_v45 }
  0xf6   :  { %v669_v46 = vpop.f32.mrb[0].mxu0 }
  0xf7   :  { %v697_v47 = vpop.f32.mrb[0].mxu1  ;;  %v670_v48 = vpop.f32.mrb[1].mxu0 }
  0xf8   :  { %v671_v49 = vadd.f32 %v670_v48, %v669_v46  ;;  %v698_v50 = vpop.f32.mrb[1].mxu1  ;;  %v672_v51 = vpop.f32.mrb[2].mxu0 }
  0xf9   :  { %v699_v52 = vadd.f32 %v698_v50, %v697_v47  ;;  %v700_v53 = vpop.f32.mrb[2].mxu1  ;;  %v673_v54 = vpop.f32.mrb[3].mxu0 }
  0xfa   :  { %v674_v55 = vadd.f32 %v673_v54, %v672_v51  ;;  %v701_v56 = vpop.f32.mrb[3].mxu1 }
  0xfb   :  { %v702_v57 = vadd.f32 %v701_v56, %v700_v53  ;;  %v468_v58 = vadd.f32 %v699_v52, %v671_v49 }
  0xfd   :  { %v471_v59 = vadd.f32 %v702_v57, %v674_v55 }
  0xfe   :  { %v675_v60 = vpop.f32.mrb[4].mxu0 }
  0xff   :  { %v703_v61 = vpop.f32.mrb[4].mxu1  ;;  %v676_v62 = vpop.f32.mrb[5].mxu0 }
 0x100   :  { %v677_v63 = vadd.f32 %v676_v62, %v675_v60  ;;  %v704_v0 = vpop.f32.mrb[5].mxu1  ;;  %v678_v1 = vpop.f32.mrb[6].mxu0 }
 0x101   :  { %v705_v2 = vadd.f32 %v704_v0, %v703_v61  ;;  %v706_v3 = vpop.f32.mrb[6].mxu1  ;;  %v679_v4 = vpop.f32.mrb[7].mxu0 }
 0x102   :  { %v680_v5 = vadd.f32 %v679_v4, %v678_v1  ;;  %v707_v6 = vpop.f32.mrb[7].mxu1 }
 0x103   :  { %v708_v7 = vadd.f32 %v707_v6, %v706_v3  ;;  %v476_v8 = vadd.f32 %v705_v2, %v677_v63 }
 0x105   :  { %v479_v9 = vadd.f32 %v708_v7, %v680_v5 }
 0x107   :  { %v725_v10 = vpop.f32.mrb[8].mxu0 }
 0x108   :  { %v525_v12 = vadd.f32 %v725_v10, %v476_v8  ;;  %v516_v13 = vpop.f32.mrb[9].mxu0 }
 0x109   :  { %v517_v14 = vadd.f32 %v516_v13, %v468_v58  ;;  %v726_v15 = vpop.f32.mrb[10].mxu0 }
 0x10a   :  { %v555_v16 = vadd.f32 %v633_v11, %v525_v12  ;;  %v528_v17 = vadd.f32 %v726_v15, %v479_v9  ;;  %v519_v18 = vpop.f32.mrb[11].mxu0 }
 0x10b   :  { %v553_v19 = vadd.f32 %v633_v11, %v517_v14  ;;  %v520_v20 = vadd.f32 %v519_v18, %v471_v59 }
 0x10c   :  { %v556_v21 = vadd.f32 %v633_v11, %v528_v17  ;;  %v559_v23 = vmax.f32 %v555_v16, 0.0 }
 0x10d   :  { %v554_v22 = vadd.f32 %v633_v11, %v520_v20  ;;  %v557_v25 = vmax.f32 %v553_v19, 0.0 }
 0x10e   :  { %v560_v24 = vmax.f32 %v556_v21, 0.0 }
 0x10f   :  { %v558_v26 = vmax.f32 %v554_v22, 0.0 }
 0x110   :  { %v650_v27 = vpack.c.bf16 %v560_v24, %v559_v23 }
 0x111   :  { %v645_v28 = vpack.c.bf16 %v558_v26, %v557_v25 }
 0x112   :  { %652 = vst [vmem:[%s947_s3 + $0x8] sm:$0xff] %v650_v27  }
 0x113   :  { %646 = vst [vmem:[%s947_s3] sm:$0xff] %v645_v28  }

// kernel: tbmodel_forward.28
= control target key start
LH: loop header
LB: loop body
LE: loop exit
PB: predicated region body
PF: predicated region fallthrough
CT: control target
= control target key end

     0   :  { %s901_s15 = smov 0   ;;  %s903_s16 = smov 0   ;;  %s1000_s0 = inlined_call_operand.vmem [shape: bf16[32,1152], index: 0, kind: input, shape index: {}]   ;;  %s1001_s1 = inlined_call_operand.vmem [shape: bf16[1152,128], index: 1, kind: input, shape index: {}]   ;;  %s1002_s2 = inlined_call_operand.vmem [shape: f32[1,128], index: 2, kind: input, shape index: {}]   ;;  %s1003_s3 = inlined_call_operand.vmem [shape: bf16[32,128], index: 3, kind: input, shape index: {}]   ;;  %s1004_s4 = inlined_call_operand.vmem [shape: bf16[32,128], index: 4, kind: output, shape index: {}]  }
   0x1   :  { %s905_s17 = smov 0   ;;  %s907_s18 = smov 0  }
   0x2   :  { %s909_s19 = smov 0  }
   0x3 LB: > { %s26_s20 = sadd.s32 1, %s869_s18  ;;  %p49_p1 = scmp.ne.s32.totalorder %s861_s16, %s857_s15  ;;  %s873_s19 = sphi %s909_s19, %s14_s19   ;;  %s869_s18 = sphi %s907_s18, %s1008_s18   ;;  %s865_s17 = sphi %s905_s17, %s1007_s17   ;;  %s861_s16 = sphi %s903_s16, %s1006_s16   ;;  %s857_s15 = sphi %s901_s15, %s1005_s15  }
   0x4   : > { %p27_p0 = scmp.ge.s32.totalorder %s26_s20, 9  ;;  %p50_p2 = scmp.eq.s32.totalorder %s873_s19, 0 }
   0x5   : > { %s42_s22 = sadd.s32 1, %s861_s16  ;;  %p702_p5 = scmp.ge.s32.totalorder %s873_s19, 9 }
   0x6   : > { %s1010_s20 = smov (%p27_p0, %s26_s20), 0  ;;  %p51_p3 = por %p50_p2, %p49_p1 }
   0x7   : > { %s38_s21 = ssub.s32 %s869_s18, %s1010_s20  ;;  %203 = sbr.rel (%p702_p5) target bundleno = 21 (0x15), region = 24 }
   0x8   : > { %p40_p4 = scmp.eq.s32.totalorder %s38_s21, 0 }
   0xa   : > { %s936_s23 = scalar_select %p40_p4, %s861_s16, %s42_s22  }
   0xe   : > { %206 = sbr.rel (!%p51_p3) target bundleno = 21 (0x15), region = 28  ;;  %s208_s24 = sand.u32 (%p51_p3), 1, %s861_s16  }
   0xf   : > { %s704_s25 = sshll.u32 (%p51_p3), %s869_s18, 2  ;;  %s703_s26 = sshll.u32 (%p51_p3), %s208_s24, 4 }
  0x10   : > { %s215_s29 = scalar_lea.vmem (%p51_p3), %s1000_s0, %s704_s25  ;;  %s210_s30 = scalar_lea.vmem (%p51_p3), [#allocation3], %s703_s26 }
  0x11   : > { %v231_v0 = vld [vmem:[%s215_s29] sm:$0xf] (%p51_p3)  ;;  %v233_v1 = vld [vmem:[%s215_s29 + $0x24] sm:$0xf] (%p51_p3)  ;;  %v235_v2 = vld [vmem:[%s215_s29 + $0x48] sm:$0xf] (%p51_p3) }
  0x12   : > { %232 = vst [vmem:[%s210_s30] sm:$0xf] (%p51_p3), %v231_v0  ;;  %234 = vst [vmem:[%s210_s30 + $0x4] sm:$0xf] (%p51_p3), %v233_v1  ;;  %v237_v3 = vld [vmem:[%s215_s29 + $0x6c] sm:$0xf] (%p51_p3) }
  0x13   : > { %236 = vst [vmem:[%s210_s30 + $0x8] sm:$0xf] (%p51_p3), %v235_v2  ;;  %238 = vst [vmem:[%s210_s30 + $0xc] sm:$0xf] (%p51_p3), %v237_v3 }
  0x15 PF: > { %p705_p6 = scmp.ge.s32.totalorder %s873_s19, 1  ;;  %p280_p7 = scmp.lt.s32.totalorder %s873_s19, 10 }
  0x17   : > { %p281_p8 = pnand %p705_p6, %p280_p7 }
  0x18   : > { %s287_s5 = sand.u32 (!%p281_p8), 1, %s857_s15   ;;  %s707_s6 = sshll.u32 (!%p281_p8), %s865_s17, 4 }
  0x19   : > { %284 = sbr.rel (%p281_p8) target bundleno = 306 (0x132), region = 73  ;;  %s948_s7 = sshll.u32 (!%p281_p8), %s287_s5, 4 }
  0x1a   : > { %p336_p9 = scmp.lt.s32.totalorder (!%p281_p8), %s707_s6, 143  ;;  %s289_s12 = scalar_lea.vmem (!%p281_p8), [#allocation3], %s948_s7 }
  0x1b   : > { %p709_p10 = scmp.ne.s32.totalorder (!%p281_p8), %s865_s17, 0 }
  0x20   : > { %s1012_s6 = smov (!%p336_p9, %s707_s6), 143  ;;  %369 = sbr.rel (%p709_p10) target bundleno = 39 (0x27), region = 81 }
  0x21   : > { %s708_s8 = sshll.u32 %s1012_s6, 2  ;;  %v875_v4 = vmov (!%p709_p10), 0.0  }
  0x22   : > { %s953_s11 = scalar_lea.vmem %s1001_s1, %s708_s8  ;;  %370 = vst [vmem:[#allocation2] sm:$0xff] (!%p709_p10), %v875_v4  ;;  %371 = vst [vmem:[#allocation2 + $0x8] sm:$0xff] (!%p709_p10), %v875_v4 }
  0x23   : > { %372 = vst [vmem:[#allocation2 + $0x10] sm:$0xff] (!%p709_p10), %v875_v4  ;;  %373 = vst [vmem:[#allocation2 + $0x18] sm:$0xff] (!%p709_p10), %v875_v4 }
  0x27 PF: > { %v825_v5 = vld [vmem:[%s953_s11] sm:$0xff]   ;;  %v826_v6 = vld [vmem:[%s953_s11 + $0x8] sm:$0xff]   ;;  %v827_v7 = vld [vmem:[%s953_s11 + $0x10] sm:$0xff]   ;;  %p720_p11 = scmp.ne.s32.totalorder %s865_s17, 8 }
  0x28   : > { %764 = vmatprep.subr.bf16.mxu0 %v825_v5  ;;  %v828_v8 = vld [vmem:[%s953_s11 + $0x18] sm:$0xff]   ;;  %v833_v9 = vld [vmem:[%s289_s12] sm:$0xff]   ;;  %v830_v11 = vld [vmem:[%s953_s11 + $0x28] sm:$0xff]  }
  0x29   : > { %765 = vmatpush3.bf16.msra.mxu0 %v825_v5  ;;  %780 = vmatprep.mubr.bf16.mxu0 %v833_v9  ;;  %v829_v10 = vld [vmem:[%s953_s11 + $0x20] sm:$0xff]   ;;  %v831_v12 = vld [vmem:[%s953_s11 + $0x30] sm:$0xff]   ;;  %v832_v13 = vld [vmem:[%s953_s11 + $0x38] sm:$0xff]  }
  0x2a   : > { %766 = vmatprep.subr.bf16.mxu0 %v826_v6  ;;  %v834_v14 = vld [vmem:[%s289_s12 + $0x8] sm:$0xff]   ;;  %v376_v15 = vld [vmem:[#allocation2 + $0x10] sm:$0xff]  ;;  %v374_v16 = vld [vmem:[#allocation2] sm:$0xff] }
  0x2b   : > { %v377_v18 = vld [vmem:[#allocation2 + $0x18] sm:$0xff]  ;;  %v375_v21 = vld [vmem:[#allocation2 + $0x8] sm:$0xff]  ;;  %v721_v29 = vld [vmem:[%s1002_s2] ss:$0 sm:$0xff] (!%p720_p11) }
  0x2c   : > { %v735_v32 = vld [vmem:[%s1003_s3] sm:$0xff] (!%p720_p11)   ;;  %v752_v39 = vld [vmem:[%s1003_s3 + $0x8] sm:$0xff] (!%p720_p11)  }
  0x2d   : > { %767 = vmatpush3.bf16.msra.mxu0 %v826_v6  ;;  %v736_v35 = vunpack.c.l.bf16 (!%p720_p11), %v735_v32  ;;  %v737_v36 = vunpack.c.h.bf16 (!%p720_p11), %v735_v32  ;;  %v740_v40 = vunpack.c.l.bf16 (!%p720_p11), %v752_v39  ;;  %v741_v41 = vunpack.c.h.bf16 (!%p720_p11), %v752_v39 }
  0x2e   : > { %768 = vmatprep.subr.bf16.mxu0 %v827_v7 }
  0x31   : > { %769 = vmatpush3.bf16.msra.mxu0 %v827_v7 }
  0x32   : > { %770 = vmatprep.subr.bf16.mxu0 %v828_v8 }
  0x35   : > { %771 = vmatpush3.bf16.msra.mxu0 %v828_v8 }
  0x36   : > { %772 = vmatprep.subr.bf16.mxu0 %v829_v10 }
  0x39   : > { %773 = vmatpush3.bf16.msra.mxu0 %v829_v10 }
  0x3a   : > { %774 = vmatprep.subr.bf16.mxu0 %v830_v11 }
  0x3d   : > { %775 = vmatpush3.bf16.msra.mxu0 %v830_v11 }
  0x3e   : > { %776 = vmatprep.subr.bf16.mxu0 %v831_v12 }
  0x41   : > { %777 = vmatpush3.bf16.msra.mxu0 %v831_v12 }
  0x42   : > { %778 = vmatprep.subr.bf16.mxu0 %v832_v13 }
  0x45   : > { %779 = vmatpush3.bf16.msra.mxu0 %v832_v13 }
  0x48   : > { %781 = vmatmul.mubr.bf16.vlgmr.msra.gmra.mrb[0].mxu0 %v834_v14 }
 0x11b   : > { %v782_v17 = vpop.f32.mrb[0].mxu0  ;;  %518 = sbr.rel (%p720_p11) target bundleno = 306 (0x132), region = 85 }
 0x11c   : > { %v509_v19 = vadd.f32 %v782_v17, %v376_v15  ;;  %v492_v20 = vpop.f32.mrb[1].mxu0 }
 0x11d   : > { %v507_v22 = vadd.f32 %v492_v20, %v374_v16  ;;  %v783_v23 = vpop.f32.mrb[2].mxu0 }
 0x11e   : > { %513 = vst [vmem:[#allocation2 + $0x10] sm:$0xff] %v509_v19  ;;  %v510_v24 = vadd.f32 %v783_v23, %v377_v18  ;;  %v495_v25 = vpop.f32.mrb[3].mxu0 }
 0x11f   : > { %511 = vst [vmem:[#allocation2] sm:$0xff] %v507_v22  ;;  %v508_v26 = vadd.f32 %v495_v25, %v375_v21 }
 0x120   : > { %514 = vst [vmem:[#allocation2 + $0x18] sm:$0xff] %v510_v24 }
 0x121   : > { %512 = vst [vmem:[#allocation2 + $0x8] sm:$0xff] %v508_v26 }
 0x125   : > { %v521_v33 = vld [vmem:[#allocation2 + $0x10] sm:$0xff] }
 0x126   : > { %v519_v27 = vld [vmem:[#allocation2] sm:$0xff]  ;;  %v532_v37 = vadd.f32 %v721_v29, %v521_v33 }
 0x127   : > { %v530_v30 = vadd.f32 %v721_v29, %v519_v27  ;;  %v522_v34 = vld [vmem:[#allocation2 + $0x18] sm:$0xff] }
 0x128   : > { %v520_v28 = vld [vmem:[#allocation2 + $0x8] sm:$0xff]  ;;  %v533_v38 = vadd.f32 %v721_v29, %v522_v34  ;;  %v544_v44 = vadd.f32 %v740_v40, %v532_v37 }
 0x129   : > { %v531_v31 = vadd.f32 %v721_v29, %v520_v28  ;;  %v542_v42 = vadd.f32 %v736_v35, %v530_v30 }
 0x12a   : > { %v545_v45 = vadd.f32 %v741_v41, %v533_v38  ;;  %v548_v48 = vmax.f32 %v544_v44, 0.0 }
 0x12b   : > { %v543_v43 = vadd.f32 %v737_v36, %v531_v31  ;;  %v546_v46 = vmax.f32 %v542_v42, 0.0 }
 0x12c   : > { %v549_v49 = vmax.f32 %v545_v45, 0.0 }
 0x12d   : > { %v547_v47 = vmax.f32 %v543_v43, 0.0 }
 0x12e   : > { %v750_v51 = vpack.c.bf16 %v549_v49, %v548_v48 }
 0x12f   : > { %v745_v50 = vpack.c.bf16 %v547_v47, %v546_v46 }
 0x130   : > { %753 = vst [vmem:[%s1004_s4 + $0x8] sm:$0xff] %v750_v51  }
 0x131   : > { %746 = vst [vmem:[%s1004_s4] sm:$0xff] %v745_v50  }
 0x132 PF: > { %s14_s19 = sadd.s32 1, %s873_s19   ;;  %s1005_s15 = smov %s861_s16 }
 0x133   : > { %p11_p12 = scmp.ge.s32.totalorder %s14_s19, 11   ;;  %s1006_s16 = smov %s936_s23 }
 0x134   : > { %s1007_s17 = smov %s869_s18  ;;  %s1008_s18 = smov %s1010_s20 }
 0x135   :  { %13 = sbr.rel (!%p11_p12) target bundleno = 3 (0x3), region = 129 }

// kernel: tbmodel_forward.27
= control target key start
LH: loop header
LB: loop body
LE: loop exit
PB: predicated region body
PF: predicated region fallthrough
CT: control target
= control target key end

     0   :  { %vm73_vm0 = vcmask 523264   ;;  %s278_s1 = inlined_call_operand.vmem [shape: bf16[64,128], index: 1, kind: input, shape index: {}]   ;;  %s279_s0 = inlined_call_operand.vmem [shape: bf16[32,64], index: 0, kind: input, shape index: {}]   ;;  %s280_s2 = inlined_call_operand.vmem [shape: f32[1,128], index: 2, kind: input, shape index: {}]   ;;  %s281_s3 = inlined_call_operand.vmem [shape: bf16[32,128], index: 3, kind: output, shape index: {}]  }
   0x1   :  { %v225_v0 = vld [vmem:[%s278_s1] sm:$0xff]   ;;  %v226_v1 = vld [vmem:[%s278_s1 + $0x8] sm:$0xff]   ;;  %v227_v2 = vld [vmem:[%s278_s1 + $0x10] sm:$0xff]  }
   0x2   :  { %213 = vmatprep.subr.bf16.mxu0 %v225_v0  ;;  %v229_v3 = vld [vmem:[%s279_s0] sm:$0xff]   ;;  %v228_v4 = vld [vmem:[%s278_s1 + $0x18] sm:$0xff]   ;;  %v230_v5 = vld [vmem:[%s279_s0 + $0x8] sm:$0xff]  }
   0x3   :  { %214 = vmatpush3.bf16.msra.mxu0 %v225_v0  ;;  %221 = vmatprep.mubr.msk.bf16.mxu0 %vm73_vm0, %v229_v3  ;;  %v187_v7 = vld [vmem:[%s280_s2] ss:$0 sm:$0xff] }
   0x4   :  { %215 = vmatprep.subr.bf16.mxu0 %v226_v1 }
   0x7   :  { %216 = vmatpush3.bf16.msra.mxu0 %v226_v1 }
   0x8   :  { %217 = vmatprep.subr.bf16.mxu0 %v227_v2 }
   0xb   :  { %218 = vmatpush3.bf16.msra.mxu0 %v227_v2 }
   0xc   :  { %219 = vmatprep.subr.bf16.mxu0 %v228_v4 }
   0xf   :  { %220 = vmatpush3.bf16.msra.mxu0 %v228_v4 }
  0x12   :  { %222 = vmatmul.mubr.msk.bf16.vlgmr.msra.gmra.mrb[0].mxu0 %vm73_vm0, %v230_v5 }
  0xe5   :  { %v223_v6 = vpop.f32.mrb[0].mxu0 }
  0xe6   :  { %v114_v8 = vpop.f32.mrb[1].mxu0  ;;  %v153_v10 = vadd.f32 %v223_v6, %v187_v7 }
  0xe7   :  { %v224_v9 = vpop.f32.mrb[2].mxu0  ;;  %v151_v13 = vadd.f32 %v187_v7, %v114_v8 }
  0xe8   :  { %v154_v11 = vadd.f32 %v224_v9, %v187_v7  ;;  %v117_v12 = vpop.f32.mrb[3].mxu0 }
  0xe9   :  { %v152_v14 = vadd.f32 %v187_v7, %v117_v12 }
  0xea   :  { %v204_v15 = vpack.c.bf16 %v154_v11, %v153_v10 }
  0xeb   :  { %v199_v16 = vpack.c.bf16 %v152_v14, %v151_v13 }
  0xec   :  { %206 = vst [vmem:[%s281_s3 + $0x8] sm:$0xff] %v204_v15  }
  0xed   :  { %200 = vst [vmem:[%s281_s3] sm:$0xff] %v199_v16  }

// kernel: tbmodel_forward.29
= control target key start
LH: loop header
LB: loop body
LE: loop exit
PB: predicated region body
PF: predicated region fallthrough
CT: control target
= control target key end

     0   :  { %s796_s12 = smov 0   ;;  %s798_s13 = smov 0   ;;  %s889_s0 = inlined_call_operand.vmem [shape: bf16[32,1152], index: 0, kind: input, shape index: {}]   ;;  %s890_s1 = inlined_call_operand.vmem [shape: bf16[1152,128], index: 1, kind: input, shape index: {}]   ;;  %s891_s2 = inlined_call_operand.vmem [shape: f32[1,128], index: 2, kind: input, shape index: {}]   ;;  %s892_s3 = inlined_call_operand.vmem [shape: bf16[32,128], index: 3, kind: output, shape index: {}]  }
   0x1   :  { %s800_s14 = smov 0   ;;  %s802_s15 = smov 0  }
   0x2   :  { %s804_s16 = smov 0  }
   0x3 LB: > { %s25_s17 = sadd.s32 1, %s769_s15  ;;  %p48_p1 = scmp.ne.s32.totalorder %s761_s13, %s757_s12  ;;  %s773_s16 = sphi %s804_s16, %s13_s16   ;;  %s769_s15 = sphi %s802_s15, %s896_s15   ;;  %s765_s14 = sphi %s800_s14, %s895_s14   ;;  %s761_s13 = sphi %s798_s13, %s894_s13   ;;  %s757_s12 = sphi %s796_s12, %s893_s12  }
   0x4   : > { %p26_p0 = scmp.ge.s32.totalorder %s25_s17, 9  ;;  %p49_p2 = scmp.eq.s32.totalorder %s773_s16, 0 }
   0x5   : > { %s41_s19 = sadd.s32 1, %s761_s13  ;;  %p611_p5 = scmp.ge.s32.totalorder %s773_s16, 9 }
   0x6   : > { %s898_s17 = smov (%p26_p0, %s25_s17), 0  ;;  %p50_p3 = por %p49_p2, %p48_p1 }
   0x7   : > { %s37_s18 = ssub.s32 %s769_s15, %s898_s17  ;;  %162 = sbr.rel (%p611_p5) target bundleno = 21 (0x15), region = 20 }
   0x8   : > { %p39_p4 = scmp.eq.s32.totalorder %s37_s18, 0 }
   0xa   : > { %s831_s20 = scalar_select %p39_p4, %s761_s13, %s41_s19  }
   0xe   : > { %165 = sbr.rel (!%p50_p3) target bundleno = 21 (0x15), region = 24  ;;  %s167_s21 = sand.u32 (%p50_p3), 1, %s761_s13  }
   0xf   : > { %s613_s22 = sshll.u32 (%p50_p3), %s769_s15, 2  ;;  %s612_s23 = sshll.u32 (%p50_p3), %s167_s21, 4 }
  0x10   : > { %s174_s26 = scalar_lea.vmem (%p50_p3), %s889_s0, %s613_s22  ;;  %s169_s27 = scalar_lea.vmem (%p50_p3), [#allocation3], %s612_s23 }
  0x11   : > { %v190_v0 = vld [vmem:[%s174_s26] sm:$0xf] (%p50_p3)  ;;  %v192_v1 = vld [vmem:[%s174_s26 + $0x24] sm:$0xf] (%p50_p3)  ;;  %v194_v2 = vld [vmem:[%s174_s26 + $0x48] sm:$0xf] (%p50_p3) }
  0x12   : > { %191 = vst [vmem:[%s169_s27] sm:$0xf] (%p50_p3), %v190_v0  ;;  %193 = vst [vmem:[%s169_s27 + $0x4] sm:$0xf] (%p50_p3), %v192_v1  ;;  %v196_v3 = vld [vmem:[%s174_s26 + $0x6c] sm:$0xf] (%p50_p3) }
  0x13   : > { %195 = vst [vmem:[%s169_s27 + $0x8] sm:$0xf] (%p50_p3), %v194_v2  ;;  %197 = vst [vmem:[%s169_s27 + $0xc] sm:$0xf] (%p50_p3), %v196_v3 }
  0x15 PF: > { %p614_p6 = scmp.ge.s32.totalorder %s773_s16, 1  ;;  %p239_p7 = scmp.lt.s32.totalorder %s773_s16, 10 }
  0x17   : > { %p240_p8 = pnand %p614_p6, %p239_p7 }
  0x18   : > { %s246_s28 = sand.u32 (!%p240_p8), 1, %s757_s12   ;;  %s616_s29 = sshll.u32 (!%p240_p8), %s765_s14, 4 }
  0x19   : > { %243 = sbr.rel (%p240_p8) target bundleno = 304 (0x130), region = 69  ;;  %s843_s30 = sshll.u32 (!%p240_p8), %s246_s28, 4 }
  0x1a   : > { %p285_p9 = scmp.lt.s32.totalorder (!%p240_p8), %s616_s29, 143  ;;  %s248_s8 = scalar_lea.vmem (!%p240_p8), [#allocation3], %s843_s30 }
  0x1b   : > { %p618_p10 = scmp.ne.s32.totalorder (!%p240_p8), %s765_s14, 0 }
  0x20   : > { %s900_s29 = smov (!%p285_p9, %s616_s29), 143  ;;  %309 = sbr.rel (%p618_p10) target bundleno = 39 (0x27), region = 77 }
  0x21   : > { %s617_s4 = sshll.u32 %s900_s29, 2  ;;  %v775_v4 = vmov (!%p618_p10), 0.0  }
  0x22   : > { %s848_s7 = scalar_lea.vmem %s890_s1, %s617_s4  ;;  %310 = vst [vmem:[#allocation2] sm:$0xff] (!%p618_p10), %v775_v4  ;;  %311 = vst [vmem:[#allocation2 + $0x8] sm:$0xff] (!%p618_p10), %v775_v4 }
  0x23   : > { %312 = vst [vmem:[#allocation2 + $0x10] sm:$0xff] (!%p618_p10), %v775_v4  ;;  %313 = vst [vmem:[#allocation2 + $0x18] sm:$0xff] (!%p618_p10), %v775_v4 }
  0x27 PF: > { %v725_v5 = vld [vmem:[%s848_s7] sm:$0xff]   ;;  %v726_v6 = vld [vmem:[%s848_s7 + $0x8] sm:$0xff]   ;;  %v727_v7 = vld [vmem:[%s848_s7 + $0x10] sm:$0xff]   ;;  %p629_p11 = scmp.ne.s32.totalorder %s765_s14, 8 }
  0x28   : > { %664 = vmatprep.subr.bf16.mxu0 %v725_v5  ;;  %v728_v8 = vld [vmem:[%s848_s7 + $0x18] sm:$0xff]   ;;  %v733_v9 = vld [vmem:[%s248_s8] sm:$0xff]   ;;  %v730_v11 = vld [vmem:[%s848_s7 + $0x28] sm:$0xff]  }
  0x29   : > { %665 = vmatpush3.bf16.msra.mxu0 %v725_v5  ;;  %680 = vmatprep.mubr.bf16.mxu0 %v733_v9  ;;  %v729_v10 = vld [vmem:[%s848_s7 + $0x20] sm:$0xff]   ;;  %v731_v12 = vld [vmem:[%s848_s7 + $0x30] sm:$0xff]   ;;  %v732_v13 = vld [vmem:[%s848_s7 + $0x38] sm:$0xff]  }
  0x2a   : > { %666 = vmatprep.subr.bf16.mxu0 %v726_v6  ;;  %v734_v14 = vld [vmem:[%s248_s8 + $0x8] sm:$0xff]   ;;  %v316_v15 = vld [vmem:[#allocation2 + $0x10] sm:$0xff]  ;;  %v314_v16 = vld [vmem:[#allocation2] sm:$0xff] }
  0x2b   : > { %v317_v18 = vld [vmem:[#allocation2 + $0x18] sm:$0xff]  ;;  %v315_v21 = vld [vmem:[#allocation2 + $0x8] sm:$0xff]  ;;  %v630_v29 = vld [vmem:[%s891_s2] ss:$0 sm:$0xff] (!%p629_p11) }
  0x2d   : > { %667 = vmatpush3.bf16.msra.mxu0 %v726_v6 }
  0x2e   : > { %668 = vmatprep.subr.bf16.mxu0 %v727_v7 }
  0x31   : > { %669 = vmatpush3.bf16.msra.mxu0 %v727_v7 }
  0x32   : > { %670 = vmatprep.subr.bf16.mxu0 %v728_v8 }
  0x35   : > { %671 = vmatpush3.bf16.msra.mxu0 %v728_v8 }
  0x36   : > { %672 = vmatprep.subr.bf16.mxu0 %v729_v10 }
  0x39   : > { %673 = vmatpush3.bf16.msra.mxu0 %v729_v10 }
  0x3a   : > { %674 = vmatprep.subr.bf16.mxu0 %v730_v11 }
  0x3d   : > { %675 = vmatpush3.bf16.msra.mxu0 %v730_v11 }
  0x3e   : > { %676 = vmatprep.subr.bf16.mxu0 %v731_v12 }
  0x41   : > { %677 = vmatpush3.bf16.msra.mxu0 %v731_v12 }
  0x42   : > { %678 = vmatprep.subr.bf16.mxu0 %v732_v13 }
  0x45   : > { %679 = vmatpush3.bf16.msra.mxu0 %v732_v13 }
  0x48   : > { %681 = vmatmul.mubr.bf16.vlgmr.msra.gmra.mrb[0].mxu0 %v734_v14 }
 0x11b   : > { %v682_v17 = vpop.f32.mrb[0].mxu0  ;;  %458 = sbr.rel (%p629_p11) target bundleno = 304 (0x130), region = 81 }
 0x11c   : > { %v449_v19 = vadd.f32 %v682_v17, %v316_v15  ;;  %v432_v20 = vpop.f32.mrb[1].mxu0 }
 0x11d   : > { %v447_v22 = vadd.f32 %v432_v20, %v314_v16  ;;  %v683_v23 = vpop.f32.mrb[2].mxu0 }
 0x11e   : > { %453 = vst [vmem:[#allocation2 + $0x10] sm:$0xff] %v449_v19  ;;  %v450_v24 = vadd.f32 %v683_v23, %v317_v18  ;;  %v435_v25 = vpop.f32.mrb[3].mxu0 }
 0x11f   : > { %451 = vst [vmem:[#allocation2] sm:$0xff] %v447_v22  ;;  %v448_v26 = vadd.f32 %v435_v25, %v315_v21 }
 0x120   : > { %454 = vst [vmem:[#allocation2 + $0x18] sm:$0xff] %v450_v24 }
 0x121   : > { %452 = vst [vmem:[#allocation2 + $0x8] sm:$0xff] %v448_v26 }
 0x125   : > { %v461_v32 = vld [vmem:[#allocation2 + $0x10] sm:$0xff] }
 0x126   : > { %v459_v27 = vld [vmem:[#allocation2] sm:$0xff]  ;;  %v472_v34 = vadd.f32 %v630_v29, %v461_v32 }
 0x127   : > { %v470_v30 = vadd.f32 %v630_v29, %v459_v27  ;;  %v462_v33 = vld [vmem:[#allocation2 + $0x18] sm:$0xff] }
 0x128   : > { %v460_v28 = vld [vmem:[#allocation2 + $0x8] sm:$0xff]  ;;  %v473_v35 = vadd.f32 %v630_v29, %v462_v33  ;;  %v476_v38 = vmax.f32 %v472_v34, 0.0 }
 0x129   : > { %v471_v31 = vadd.f32 %v630_v29, %v460_v28  ;;  %v474_v36 = vmax.f32 %v470_v30, 0.0 }
 0x12a   : > { %v477_v39 = vmax.f32 %v473_v35, 0.0 }
 0x12b   : > { %v475_v37 = vmax.f32 %v471_v31, 0.0 }
 0x12c   : > { %v651_v41 = vpack.c.bf16 %v477_v39, %v476_v38 }
 0x12d   : > { %v646_v40 = vpack.c.bf16 %v475_v37, %v474_v36 }
 0x12e   : > { %653 = vst [vmem:[%s892_s3 + $0x8] sm:$0xff] %v651_v41  }
 0x12f   : > { %647 = vst [vmem:[%s892_s3] sm:$0xff] %v646_v40  }
 0x130 PF: > { %s13_s16 = sadd.s32 1, %s773_s16   ;;  %s893_s12 = smov %s761_s13 }
 0x131   : > { %p10_p12 = scmp.ge.s32.totalorder %s13_s16, 11   ;;  %s894_s13 = smov %s831_s20 }
 0x132   : > { %s895_s14 = smov %s769_s15  ;;  %s896_s15 = smov %s898_s17 }
 0x133   :  { %12 = sbr.rel (!%p10_p12) target bundleno = 3 (0x3), region = 122 }

// kernel: tbmodel_forward.31
= control target key start
LH: loop header
LB: loop body
LE: loop exit
PB: predicated region body
PF: predicated region fallthrough
CT: control target
= control target key end

     0   :  { %s815_s12 = smov 0   ;;  %s817_s13 = smov 0   ;;  %s914_s0 = inlined_call_operand.vmem [shape: bf16[16,1152], index: 0, kind: input, shape index: {}]   ;;  %s915_s1 = inlined_call_operand.vmem [shape: bf16[1152,256], index: 1, kind: input, shape index: {}]   ;;  %s916_s2 = inlined_call_operand.vmem [shape: f32[1,256], index: 2, kind: input, shape index: {}]   ;;  %s917_s3 = inlined_call_operand.vmem [shape: bf16[16,256], index: 3, kind: output, shape index: {}]  }
   0x1   :  { %s819_s14 = smov 0   ;;  %s821_s15 = smov 0  }
   0x2   :  { %s823_s16 = smov 0  }
   0x3 LB: > { %s25_s17 = sadd.s32 1, %s787_s15  ;;  %p48_p1 = scmp.ne.s32.totalorder %s779_s13, %s775_s12  ;;  %s791_s16 = sphi %s823_s16, %s13_s16   ;;  %s787_s15 = sphi %s821_s15, %s921_s15   ;;  %s783_s14 = sphi %s819_s14, %s920_s14   ;;  %s779_s13 = sphi %s817_s13, %s919_s13   ;;  %s775_s12 = sphi %s815_s12, %s918_s12  }
   0x4   : > { %p26_p0 = scmp.ge.s32.totalorder %s25_s17, 9  ;;  %p49_p2 = scmp.eq.s32.totalorder %s791_s16, 0 }
   0x5   : > { %s41_s19 = sadd.s32 1, %s779_s13  ;;  %p650_p5 = scmp.ge.s32.totalorder %s791_s16, 9 }
   0x6   : > { %s923_s17 = smov (%p26_p0, %s25_s17), 0  ;;  %p50_p3 = por %p49_p2, %p48_p1 }
   0x7   : > { %s37_s18 = ssub.s32 %s787_s15, %s923_s17  ;;  %164 = sbr.rel (%p650_p5) target bundleno = 21 (0x15), region = 20 }
   0x8   : > { %p39_p4 = scmp.eq.s32.totalorder %s37_s18, 0 }
   0xa   : > { %s850_s20 = scalar_select %p39_p4, %s779_s13, %s41_s19  }
   0xe   : > { %167 = sbr.rel (!%p50_p3) target bundleno = 21 (0x15), region = 24  ;;  %s169_s21 = sand.u32 (%p50_p3), 1, %s779_s13  }
   0xf   : > { %s652_s22 = sshll.u32 (%p50_p3), %s787_s15, 2  ;;  %s651_s23 = sshll.u32 (%p50_p3), %s169_s21, 3 }
  0x10   : > { %s176_s26 = scalar_lea.vmem (%p50_p3), %s914_s0, %s652_s22  ;;  %s171_s27 = scalar_lea.vmem (%p50_p3), [#allocation3], %s651_s23 }
  0x11   : > { %v192_v0 = vld [vmem:[%s176_s26] sm:$0xf] (%p50_p3)  ;;  %v194_v1 = vld [vmem:[%s176_s26 + $0x24] sm:$0xf] (%p50_p3) }
  0x12   : > { %193 = vst [vmem:[%s171_s27] sm:$0xf] (%p50_p3), %v192_v0  ;;  %195 = vst [vmem:[%s171_s27 + $0x4] sm:$0xf] (%p50_p3), %v194_v1 }
  0x15 PF: > { %p653_p6 = scmp.ge.s32.totalorder %s791_s16, 1  ;;  %p236_p7 = scmp.lt.s32.totalorder %s791_s16, 10 }
  0x17   : > { %p237_p8 = pnand %p653_p6, %p236_p7 }
  0x18   : > { %s243_s28 = sand.u32 (!%p237_p8), 1, %s775_s12   ;;  %s655_s29 = sshll.u32 (!%p237_p8), %s783_s14, 4 }
  0x19   : > { %240 = sbr.rel (%p237_p8) target bundleno = 304 (0x130), region = 69  ;;  %s862_s30 = sshll.u32 (!%p237_p8), %s243_s28, 3 }
  0x1a   : > { %p288_p9 = scmp.lt.s32.totalorder (!%p237_p8), %s655_s29, 143  ;;  %s245_s8 = scalar_lea.vmem (!%p237_p8), [#allocation3], %s862_s30 }
  0x1b   : > { %p658_p10 = scmp.ne.s32.totalorder (!%p237_p8), %s783_s14, 0 }
  0x20   : > { %s925_s29 = smov (!%p288_p9, %s655_s29), 143  ;;  %319 = sbr.rel (%p658_p10) target bundleno = 39 (0x27), region = 77 }
  0x21   : > { %s683_s4 = sshll.u32 %s925_s29, 3  ;;  %v793_v2 = vmov (!%p658_p10), 0.0  }
  0x22   : > { %s867_s7 = scalar_lea.vmem %s915_s1, %s683_s4  ;;  %320 = vst [vmem:[#allocation2] sm:$0xff] (!%p658_p10), %v793_v2  ;;  %321 = vst [vmem:[#allocation2 + $0x8] sm:$0xff] (!%p658_p10), %v793_v2 }
  0x23   : > { %322 = vst [vmem:[#allocation2 + $0x10] sm:$0xff] (!%p658_p10), %v793_v2  ;;  %323 = vst [vmem:[#allocation2 + $0x18] sm:$0xff] (!%p658_p10), %v793_v2 }
  0x27 PF: > { %v728_v3 = vld [vmem:[%s867_s7 + $0x4] ss:$8 sps:$4 sm:$0xff]   ;;  %v730_v4 = vld [vmem:[%s867_s7] ss:$8 sps:$4 sm:$0xff]   ;;  %v794_v5 = vmov 0   ;;  %p676_p11 = scmp.ne.s32.totalorder %s783_s14, 8 }
  0x28   : > { %464 = vmatprep.mubr.bf16.mxu0 %v794_v5  ;;  %432 = vmatprep.subr.bf16.mxu0 %v728_v3  ;;  %v731_v6 = vld [vmem:[%s867_s7 + $0x14] ss:$8 sps:$4 sm:$0xff]   ;;  %v733_v7 = vld [vmem:[%s867_s7 + $0x10] ss:$8 sps:$4 sm:$0xff]   ;;  %v734_v8 = vld [vmem:[%s867_s7 + $0x24] ss:$8 sps:$4 sm:$0xff]   ;;  %v493_v33 = vlaneseq (!%p676_p11) }
  0x29   : > { %433 = vmatpush1.bf16.msra.mxu0 %v730_v4  ;;  %v736_v9 = vld [vmem:[%s867_s7 + $0x20] ss:$8 sps:$4 sm:$0xff]   ;;  %v737_v10 = vld [vmem:[%s867_s7 + $0x34] ss:$8 sps:$4 sm:$0xff]   ;;  %v739_v11 = vld [vmem:[%s867_s7 + $0x30] ss:$8 sps:$4 sm:$0xff]  }
  0x2a   : > { %434 = vmatprep.subr.bf16.mxu0 %v731_v6  ;;  %v740_v12 = vld [vmem:[%s867_s7 + $0x44] ss:$8 sps:$4 sm:$0xff]   ;;  %v742_v13 = vld [vmem:[%s867_s7 + $0x40] ss:$8 sps:$4 sm:$0xff]   ;;  %v743_v14 = vld [vmem:[%s867_s7 + $0x54] ss:$8 sps:$4 sm:$0xff]  }
  0x2b   : > { %v745_v15 = vld [vmem:[%s867_s7 + $0x50] ss:$8 sps:$4 sm:$0xff]   ;;  %v746_v16 = vld [vmem:[%s867_s7 + $0x64] ss:$8 sps:$4 sm:$0xff]   ;;  %v748_v17 = vld [vmem:[%s867_s7 + $0x60] ss:$8 sps:$4 sm:$0xff]  }
  0x2c   : > { %v749_v18 = vld [vmem:[%s867_s7 + $0x74] ss:$8 sps:$4 sm:$0xff]   ;;  %v751_v19 = vld [vmem:[%s867_s7 + $0x70] ss:$8 sps:$4 sm:$0xff]   ;;  %v752_v20 = vld [vmem:[%s245_s8] sm:$0xff]   ;;  %v494_v34 = vshrl.u32 (!%p676_p11), %v493_v33, 7 }
  0x2d   : > { %435 = vmatpush1.bf16.msra.mxu0 %v733_v7  ;;  %v324_v21 = vld [vmem:[#allocation2] sm:$0xff]  ;;  %v325_v22 = vld [vmem:[#allocation2 + $0x8] sm:$0xff]  ;;  %v326_v24 = vld [vmem:[#allocation2 + $0x10] sm:$0xff] }
  0x2e   : > { %436 = vmatprep.subr.bf16.mxu0 %v734_v8  ;;  %v327_v27 = vld [vmem:[#allocation2 + $0x18] sm:$0xff]  ;;  %v491_v35 = vld [vmem:[%s916_s2] sm:$0x3] (!%p676_p11)  ;;  %v495_v37 = vsub.s32 (!%p676_p11), 0, %v494_v34  ;;  %v499_v38 = vsub.s32 (!%p676_p11), 1, %v494_v34 }
  0x30   : > { %v496_v42 = vrot.slane (!%p676_p11), %v491_v35, %v495_v37  ;;  %v500_v43 = vrot.slane (!%p676_p11), %v491_v35, %v499_v38 }
  0x31   : > { %437 = vmatpush1.bf16.msra.mxu0 %v736_v9 }
  0x32   : > { %438 = vmatprep.subr.bf16.mxu0 %v737_v10 }
  0x35   : > { %439 = vmatpush1.bf16.msra.mxu0 %v739_v11 }
  0x36   : > { %440 = vmatprep.subr.bf16.mxu0 %v740_v12 }
  0x39   : > { %441 = vmatpush1.bf16.msra.mxu0 %v742_v13 }
  0x3a   : > { %442 = vmatprep.subr.bf16.mxu0 %v743_v14 }
  0x3d   : > { %443 = vmatpush1.bf16.msra.mxu0 %v745_v15 }
  0x3e   : > { %444 = vmatprep.subr.bf16.mxu0 %v746_v16 }
  0x41   : > { %445 = vmatpush1.bf16.msra.mxu0 %v748_v17 }
  0x42   : > { %446 = vmatprep.subr.bf16.mxu0 %v749_v18 }
  0x45   : > { %447 = vmatpush1.bf16.msra.mxu0 %v751_v19 }
  0x48   : > { %465 = vmatmul.mubr.bf16.vlgmr.msra.gmra.mrb[0].mxu0 %v752_v20 }
 0x11b   : > { %v466_v23 = vpop.f32.mrb[0].mxu0  ;;  %486 = sbr.rel (%p676_p11) target bundleno = 304 (0x130), region = 81 }
 0x11c   : > { %v475_v25 = vadd.f32 %v466_v23, %v324_v21  ;;  %v468_v26 = vpop.f32.mrb[1].mxu0 }
 0x11d   : > { %v476_v28 = vadd.f32 %v468_v26, %v325_v22  ;;  %v470_v29 = vpop.f32.mrb[2].mxu0 }
 0x11e   : > { %479 = vst [vmem:[#allocation2] sm:$0xff] %v475_v25  ;;  %v477_v30 = vadd.f32 %v470_v29, %v326_v24  ;;  %v472_v31 = vpop.f32.mrb[3].mxu0 }
 0x11f   : > { %480 = vst [vmem:[#allocation2 + $0x8] sm:$0xff] %v476_v28  ;;  %v478_v32 = vadd.f32 %v472_v31, %v327_v27 }
 0x120   : > { %481 = vst [vmem:[#allocation2 + $0x10] sm:$0xff] %v477_v30 }
 0x121   : > { %482 = vst [vmem:[#allocation2 + $0x18] sm:$0xff] %v478_v32 }
 0x125   : > { %v487_v36 = vld [vmem:[#allocation2] sm:$0xff] }
 0x126   : > { %v488_v39 = vld [vmem:[#allocation2 + $0x8] sm:$0xff]  ;;  %v503_v44 = vadd.f32 %v496_v42, %v487_v36 }
 0x127   : > { %v489_v40 = vld [vmem:[#allocation2 + $0x10] sm:$0xff]  ;;  %v504_v45 = vadd.f32 %v500_v43, %v488_v39 }
 0x128   : > { %v490_v41 = vld [vmem:[#allocation2 + $0x18] sm:$0xff]  ;;  %v505_v46 = vadd.f32 %v496_v42, %v489_v40  ;;  %v507_v48 = vmax.f32 %v503_v44, 0.0 }
 0x129   : > { %v506_v47 = vadd.f32 %v500_v43, %v490_v41  ;;  %v508_v49 = vmax.f32 %v504_v45, 0.0 }
 0x12a   : > { %v509_v50 = vmax.f32 %v505_v46, 0.0 }
 0x12b   : > { %v510_v51 = vmax.f32 %v506_v47, 0.0  ;;  %v684_v52 = vpack.c.bf16 %v508_v49, %v507_v48 }
 0x12d   : > { %v685_v53 = vpack.c.bf16 %v510_v51, %v509_v50  ;;  %523 = vst [vmem:[%s917_s3] sm:$0xff] %v684_v52 }
 0x12f   : > { %524 = vst [vmem:[%s917_s3 + $0x8] sm:$0xff] %v685_v53 }
 0x130 PF: > { %s13_s16 = sadd.s32 1, %s791_s16   ;;  %s918_s12 = smov %s779_s13 }
 0x131   : > { %p10_p12 = scmp.ge.s32.totalorder %s13_s16, 11   ;;  %s919_s13 = smov %s850_s20 }
 0x132   : > { %s920_s14 = smov %s787_s15  ;;  %s921_s15 = smov %s923_s17 }
 0x133   :  { %12 = sbr.rel (!%p10_p12) target bundleno = 3 (0x3), region = 122 }

// kernel: tbmodel_forward.32
= control target key start
LH: loop header
LB: loop body
LE: loop exit
PB: predicated region body
PF: predicated region fallthrough
CT: control target
= control target key end

     0   :  { %v270_v1 = vmov 0   ;;  %v191_v18 = vlaneseq  ;;  %s351_s1 = inlined_call_operand.vmem [shape: bf16[128,256], index: 1, kind: input, shape index: {}]   ;;  %s352_s0 = inlined_call_operand.vmem [shape: bf16[16,128], index: 0, kind: input, shape index: {}]   ;;  %s353_s2 = inlined_call_operand.vmem [shape: f32[1,256], index: 2, kind: input, shape index: {}]   ;;  %s354_s3 = inlined_call_operand.vmem [shape: bf16[16,256], index: 3, kind: output, shape index: {}]  }
   0x1   :  { %v245_v0 = vld [vmem:[%s351_s1 + $0x4] ss:$8 sps:$4 sm:$0xff]   ;;  %163 = vmatprep.mubr.bf16.mxu0 %v270_v1  ;;  %v247_v2 = vld [vmem:[%s351_s1] ss:$8 sps:$4 sm:$0xff]   ;;  %v248_v3 = vld [vmem:[%s351_s1 + $0x14] ss:$8 sps:$4 sm:$0xff]  }
   0x2   :  { %131 = vmatprep.subr.bf16.mxu0 %v245_v0  ;;  %v250_v4 = vld [vmem:[%s351_s1 + $0x10] ss:$8 sps:$4 sm:$0xff]   ;;  %v251_v5 = vld [vmem:[%s351_s1 + $0x24] ss:$8 sps:$4 sm:$0xff]   ;;  %v253_v6 = vld [vmem:[%s351_s1 + $0x20] ss:$8 sps:$4 sm:$0xff]  }
   0x3   :  { %132 = vmatpush1.bf16.msra.mxu0 %v247_v2  ;;  %v254_v7 = vld [vmem:[%s351_s1 + $0x34] ss:$8 sps:$4 sm:$0xff]   ;;  %v256_v8 = vld [vmem:[%s351_s1 + $0x30] ss:$8 sps:$4 sm:$0xff]   ;;  %v257_v9 = vld [vmem:[%s351_s1 + $0x44] ss:$8 sps:$4 sm:$0xff]  }
   0x4   :  { %133 = vmatprep.subr.bf16.mxu0 %v248_v3  ;;  %v259_v10 = vld [vmem:[%s351_s1 + $0x40] ss:$8 sps:$4 sm:$0xff]   ;;  %v260_v11 = vld [vmem:[%s351_s1 + $0x54] ss:$8 sps:$4 sm:$0xff]   ;;  %v262_v12 = vld [vmem:[%s351_s1 + $0x50] ss:$8 sps:$4 sm:$0xff]  }
   0x5   :  { %v263_v13 = vld [vmem:[%s351_s1 + $0x64] ss:$8 sps:$4 sm:$0xff]   ;;  %v265_v14 = vld [vmem:[%s351_s1 + $0x60] ss:$8 sps:$4 sm:$0xff]   ;;  %v266_v15 = vld [vmem:[%s351_s1 + $0x74] ss:$8 sps:$4 sm:$0xff]  }
   0x6   :  { %v268_v16 = vld [vmem:[%s351_s1 + $0x70] ss:$8 sps:$4 sm:$0xff]   ;;  %v269_v17 = vld [vmem:[%s352_s0] sm:$0xff]   ;;  %v192_v19 = vshrl.u32 %v191_v18, 7 }
   0x7   :  { %134 = vmatpush1.bf16.msra.mxu0 %v250_v4  ;;  %v189_v21 = vld [vmem:[%s353_s2] sm:$0x3] }
   0x8   :  { %135 = vmatprep.subr.bf16.mxu0 %v251_v5  ;;  %v193_v20 = vsub.s32 0, %v192_v19  ;;  %v197_v22 = vsub.s32 1, %v192_v19 }
   0xa   :  { %v194_v23 = vrot.slane %v189_v21, %v193_v20  ;;  %v198_v24 = vrot.slane %v189_v21, %v197_v22 }
   0xb   :  { %136 = vmatpush1.bf16.msra.mxu0 %v253_v6 }
   0xc   :  { %137 = vmatprep.subr.bf16.mxu0 %v254_v7 }
   0xf   :  { %138 = vmatpush1.bf16.msra.mxu0 %v256_v8 }
  0x10   :  { %139 = vmatprep.subr.bf16.mxu0 %v257_v9 }
  0x13   :  { %140 = vmatpush1.bf16.msra.mxu0 %v259_v10 }
  0x14   :  { %141 = vmatprep.subr.bf16.mxu0 %v260_v11 }
  0x17   :  { %142 = vmatpush1.bf16.msra.mxu0 %v262_v12 }
  0x18   :  { %143 = vmatprep.subr.bf16.mxu0 %v263_v13 }
  0x1b   :  { %144 = vmatpush1.bf16.msra.mxu0 %v265_v14 }
  0x1c   :  { %145 = vmatprep.subr.bf16.mxu0 %v266_v15 }
  0x1f   :  { %146 = vmatpush1.bf16.msra.mxu0 %v268_v16 }
  0x22   :  { %164 = vmatmul.mubr.bf16.vlgmr.msra.gmra.mrb[0].mxu0 %v269_v17 }
  0xf5   :  { %v165_v25 = vpop.f32.mrb[0].mxu0 }
  0xf6   :  { %v201_v26 = vadd.f32 %v194_v23, %v165_v25  ;;  %v167_v27 = vpop.f32.mrb[1].mxu0 }
  0xf7   :  { %v202_v28 = vadd.f32 %v198_v24, %v167_v27  ;;  %v169_v29 = vpop.f32.mrb[2].mxu0 }
  0xf8   :  { %v203_v30 = vadd.f32 %v194_v23, %v169_v29  ;;  %v171_v31 = vpop.f32.mrb[3].mxu0 }
  0xf9   :  { %v242_v32 = vpack.c.bf16 %v202_v28, %v201_v26  ;;  %v204_v33 = vadd.f32 %v198_v24, %v171_v31 }
  0xfb   :  { %217 = vst [vmem:[%s354_s3] sm:$0xff] %v242_v32  ;;  %v243_v34 = vpack.c.bf16 %v204_v33, %v203_v30 }
  0xfd   :  { %218 = vst [vmem:[%s354_s3 + $0x8] sm:$0xff] %v243_v34 }

// kernel: tbmodel_forward.34
= control target key start
LH: loop header
LB: loop body
LE: loop exit
PB: predicated region body
PF: predicated region fallthrough
CT: control target
= control target key end

     0   :  { %s953_s12 = smov 0   ;;  %s955_s13 = smov 0   ;;  %s1070_s0 = inlined_call_operand.vmem [shape: bf16[16,2304], index: 0, kind: input, shape index: {}]   ;;  %s1071_s1 = inlined_call_operand.vmem [shape: bf16[2304,256], index: 1, kind: input, shape index: {}]   ;;  %s1072_s2 = inlined_call_operand.vmem [shape: f32[1,256], index: 2, kind: input, shape index: {}]   ;;  %s1073_s3 = inlined_call_operand.vmem [shape: bf16[16,256], index: 3, kind: output, shape index: {}]  }
   0x1   :  { %s957_s14 = smov 0   ;;  %s959_s15 = smov 0  }
   0x2   :  { %s961_s16 = smov 0  }
   0x3 LB: > { %s25_s17 = sadd.s32 1, %s926_s15  ;;  %p48_p1 = scmp.ne.s32.totalorder %s918_s13, %s914_s12  ;;  %s930_s16 = sphi %s961_s16, %s13_s16   ;;  %s926_s15 = sphi %s959_s15, %s1077_s15   ;;  %s922_s14 = sphi %s957_s14, %s1076_s14   ;;  %s918_s13 = sphi %s955_s13, %s1075_s13   ;;  %s914_s12 = sphi %s953_s12, %s1074_s12  }
   0x4   : > { %p26_p0 = scmp.ge.s32.totalorder %s25_s17, 9  ;;  %p49_p2 = scmp.eq.s32.totalorder %s930_s16, 0 }
   0x5   : > { %s41_s19 = sadd.s32 1, %s918_s13  ;;  %p745_p5 = scmp.ge.s32.totalorder %s930_s16, 9 }
   0x6   : > { %s1079_s17 = smov (%p26_p0, %s25_s17), 0  ;;  %p50_p3 = por %p49_p2, %p48_p1 }
   0x7   : > { %s37_s18 = ssub.s32 %s926_s15, %s1079_s17  ;;  %164 = sbr.rel (%p745_p5) target bundleno = 21 (0x15), region = 20 }
   0x8   : > { %p39_p4 = scmp.eq.s32.totalorder %s37_s18, 0 }
   0xa   : > { %s988_s20 = scalar_select %p39_p4, %s918_s13, %s41_s19  }
   0xe   : > { %167 = sbr.rel (!%p50_p3) target bundleno = 21 (0x15), region = 24  ;;  %s169_s21 = sand.u32 (%p50_p3), 1, %s918_s13  }
   0xf   : > { %s796_s22 = sshll.u32 (%p50_p3), %s926_s15, 3  ;;  %s746_s23 = sshll.u32 (%p50_p3), %s169_s21, 4 }
  0x10   : > { %s177_s26 = scalar_lea.vmem (%p50_p3), %s1070_s0, %s796_s22  ;;  %s171_s27 = scalar_lea.vmem (%p50_p3), [#allocation3], %s746_s23 }
  0x11   : > { %v207_v0 = vld [vmem:[%s177_s26] sm:$0xff] (%p50_p3)  ;;  %v209_v1 = vld [vmem:[%s177_s26 + $0x48] sm:$0xff] (%p50_p3) }
  0x12   : > { %208 = vst [vmem:[%s171_s27] sm:$0xff] (%p50_p3), %v207_v0  ;;  %210 = vst [vmem:[%s171_s27 + $0x8] sm:$0xff] (%p50_p3), %v209_v1 }
  0x15 PF: > { %p749_p6 = scmp.ge.s32.totalorder %s930_s16, 1  ;;  %p230_p7 = scmp.lt.s32.totalorder %s930_s16, 10 }
  0x17   : > { %p231_p8 = pnand %p749_p6, %p230_p7 }
  0x18   : > { %s237_s28 = sand.u32 (!%p231_p8), 1, %s914_s12   ;;  %s751_s29 = sshll.u32 (!%p231_p8), %s922_s14, 5 }
  0x19   : > { %234 = sbr.rel (%p231_p8) target bundleno = 336 (0x150), region = 66  ;;  %s1000_s30 = sshll.u32 (!%p231_p8), %s237_s28, 4 }
  0x1a   : > { %p283_p9 = scmp.lt.s32.totalorder (!%p231_p8), %s751_s29, 287  ;;  %s239_s8 = scalar_lea.vmem (!%p231_p8), [#allocation3], %s1000_s30 }
  0x1b   : > { %p754_p10 = scmp.ne.s32.totalorder (!%p231_p8), %s922_s14, 0 }
  0x20   : > { %s1081_s29 = smov (!%p283_p9, %s751_s29), 287  ;;  %313 = sbr.rel (%p754_p10) target bundleno = 39 (0x27), region = 74 }
  0x21   : > { %s797_s4 = sshll.u32 %s1081_s29, 3  ;;  %v932_v2 = vmov (!%p754_p10), 0.0  }
  0x22   : > { %s1005_s7 = scalar_lea.vmem %s1071_s1, %s797_s4  ;;  %314 = vst [vmem:[#allocation2] sm:$0xff] (!%p754_p10), %v932_v2  ;;  %315 = vst [vmem:[#allocation2 + $0x8] sm:$0xff] (!%p754_p10), %v932_v2 }
  0x23   : > { %316 = vst [vmem:[#allocation2 + $0x10] sm:$0xff] (!%p754_p10), %v932_v2  ;;  %317 = vst [vmem:[#allocation2 + $0x18] sm:$0xff] (!%p754_p10), %v932_v2 }
  0x27 PF: > { %v841_v3 = vld [vmem:[%s1005_s7 + $0x4] ss:$8 sps:$4 sm:$0xff]   ;;  %v843_v4 = vld [vmem:[%s1005_s7] ss:$8 sps:$4 sm:$0xff]   ;;  %v844_v5 = vld [vmem:[%s1005_s7 + $0x14] ss:$8 sps:$4 sm:$0xff]  }
  0x28   : > { %526 = vmatprep.subr.bf16.mxu0 %v841_v3  ;;  %v846_v6 = vld [vmem:[%s1005_s7 + $0x10] ss:$8 sps:$4 sm:$0xff]   ;;  %v847_v7 = vld [vmem:[%s1005_s7 + $0x24] ss:$8 sps:$4 sm:$0xff]   ;;  %v849_v8 = vld [vmem:[%s1005_s7 + $0x20] ss:$8 sps:$4 sm:$0xff]  }
  0x29   : > { %527 = vmatpush1.bf16.msra.mxu0 %v843_v4  ;;  %v850_v9 = vld [vmem:[%s1005_s7 + $0x34] ss:$8 sps:$4 sm:$0xff]   ;;  %v852_v10 = vld [vmem:[%s1005_s7 + $0x30] ss:$8 sps:$4 sm:$0xff]   ;;  %v853_v11 = vld [vmem:[%s1005_s7 + $0x44] ss:$8 sps:$4 sm:$0xff]  }
  0x2a   : > { %528 = vmatprep.subr.bf16.mxu0 %v844_v5  ;;  %v855_v12 = vld [vmem:[%s1005_s7 + $0x40] ss:$8 sps:$4 sm:$0xff]   ;;  %v856_v13 = vld [vmem:[%s1005_s7 + $0x54] ss:$8 sps:$4 sm:$0xff]   ;;  %v858_v14 = vld [vmem:[%s1005_s7 + $0x50] ss:$8 sps:$4 sm:$0xff]  }
  0x2b   : > { %v859_v15 = vld [vmem:[%s1005_s7 + $0x64] ss:$8 sps:$4 sm:$0xff]   ;;  %v861_v17 = vld [vmem:[%s1005_s7 + $0x60] ss:$8 sps:$4 sm:$0xff]   ;;  %v862_v18 = vld [vmem:[%s1005_s7 + $0x74] ss:$8 sps:$4 sm:$0xff]  }
  0x2c   : > { %v891_v16 = vld [vmem:[%s239_s8 + $0x4] ss:$8 sps:$4 sm:$0xff]   ;;  %v864_v19 = vld [vmem:[%s1005_s7 + $0x70] ss:$8 sps:$4 sm:$0xff]   ;;  %v867_v21 = vld [vmem:[%s1005_s7 + $0x80] ss:$8 sps:$4 sm:$0xff]  }
  0x2d   : > { %529 = vmatpush1.bf16.msra.mxu0 %v846_v6  ;;  %558 = vmatprep.mubr.bf16.mxu0 %v891_v16  ;;  %v865_v20 = vld [vmem:[%s1005_s7 + $0x84] ss:$8 sps:$4 sm:$0xff]   ;;  %v868_v22 = vld [vmem:[%s1005_s7 + $0x94] ss:$8 sps:$4 sm:$0xff]   ;;  %v870_v23 = vld [vmem:[%s1005_s7 + $0x90] ss:$8 sps:$4 sm:$0xff]  }
  0x2e   : > { %530 = vmatprep.subr.bf16.mxu0 %v847_v7  ;;  %v871_v24 = vld [vmem:[%s1005_s7 + $0xa4] ss:$8 sps:$4 sm:$0xff]   ;;  %v873_v25 = vld [vmem:[%s1005_s7 + $0xa0] ss:$8 sps:$4 sm:$0xff]   ;;  %v874_v26 = vld [vmem:[%s1005_s7 + $0xb4] ss:$8 sps:$4 sm:$0xff]  }
  0x2f   : > { %v876_v27 = vld [vmem:[%s1005_s7 + $0xb0] ss:$8 sps:$4 sm:$0xff]   ;;  %v877_v28 = vld [vmem:[%s1005_s7 + $0xc4] ss:$8 sps:$4 sm:$0xff]   ;;  %v879_v29 = vld [vmem:[%s1005_s7 + $0xc0] ss:$8 sps:$4 sm:$0xff]  }
  0x30   : > { %v880_v30 = vld [vmem:[%s1005_s7 + $0xd4] ss:$8 sps:$4 sm:$0xff]   ;;  %v882_v31 = vld [vmem:[%s1005_s7 + $0xd0] ss:$8 sps:$4 sm:$0xff]   ;;  %v883_v32 = vld [vmem:[%s1005_s7 + $0xe4] ss:$8 sps:$4 sm:$0xff]  }
  0x31   : > { %531 = vmatpush1.bf16.msra.mxu0 %v849_v8  ;;  %v885_v33 = vld [vmem:[%s1005_s7 + $0xe0] ss:$8 sps:$4 sm:$0xff]   ;;  %v886_v34 = vld [vmem:[%s1005_s7 + $0xf4] ss:$8 sps:$4 sm:$0xff]   ;;  %v888_v35 = vld [vmem:[%s1005_s7 + $0xf0] ss:$8 sps:$4 sm:$0xff]  }
  0x32   : > { %532 = vmatprep.subr.bf16.mxu0 %v850_v9  ;;  %v889_v36 = vld [vmem:[%s239_s8] ss:$8 sps:$4 sm:$0xff]   ;;  %p789_p11 = scmp.ne.s32.totalorder %s922_s14, 8 }
  0x33   : > { %v318_v37 = vld [vmem:[#allocation2] sm:$0xff]  ;;  %v319_v38 = vld [vmem:[#allocation2 + $0x8] sm:$0xff]  ;;  %v320_v40 = vld [vmem:[#allocation2 + $0x10] sm:$0xff]  ;;  %v587_v49 = vlaneseq (!%p789_p11) }
  0x34   : > { %v321_v43 = vld [vmem:[#allocation2 + $0x18] sm:$0xff]  ;;  %v585_v51 = vld [vmem:[%s1072_s2] sm:$0x3] (!%p789_p11) }
  0x35   : > { %533 = vmatpush1.bf16.msra.mxu0 %v852_v10  ;;  %v588_v50 = vshrl.u32 (!%p789_p11), %v587_v49, 7 }
  0x36   : > { %534 = vmatprep.subr.bf16.mxu0 %v853_v11 }
  0x37   : > { %v589_v53 = vsub.s32 (!%p789_p11), 0, %v588_v50  ;;  %v593_v54 = vsub.s32 (!%p789_p11), 1, %v588_v50 }
  0x39   : > { %535 = vmatpush1.bf16.msra.mxu0 %v855_v12  ;;  %v590_v58 = vrot.slane (!%p789_p11), %v585_v51, %v589_v53  ;;  %v594_v59 = vrot.slane (!%p789_p11), %v585_v51, %v593_v54 }
  0x3a   : > { %536 = vmatprep.subr.bf16.mxu0 %v856_v13 }
  0x3d   : > { %537 = vmatpush1.bf16.msra.mxu0 %v858_v14 }
  0x3e   : > { %538 = vmatprep.subr.bf16.mxu0 %v859_v15 }
  0x41   : > { %539 = vmatpush1.bf16.msra.mxu0 %v861_v17 }
  0x42   : > { %540 = vmatprep.subr.bf16.mxu0 %v862_v18 }
  0x45   : > { %541 = vmatpush1.bf16.msra.mxu0 %v864_v19 }
  0x46   : > { %542 = vmatprep.subr.bf16.mxu0 %v865_v20 }
  0x49   : > { %543 = vmatpush1.bf16.msra.mxu0 %v867_v21 }
  0x4a   : > { %544 = vmatprep.subr.bf16.mxu0 %v868_v22 }
  0x4d   : > { %545 = vmatpush1.bf16.msra.mxu0 %v870_v23 }
  0x4e   : > { %546 = vmatprep.subr.bf16.mxu0 %v871_v24 }
  0x51   : > { %547 = vmatpush1.bf16.msra.mxu0 %v873_v25 }
  0x52   : > { %548 = vmatprep.subr.bf16.mxu0 %v874_v26 }
  0x55   : > { %549 = vmatpush1.bf16.msra.mxu0 %v876_v27 }
  0x56   : > { %550 = vmatprep.subr.bf16.mxu0 %v877_v28 }
  0x59   : > { %551 = vmatpush1.bf16.msra.mxu0 %v879_v29 }
  0x5a   : > { %552 = vmatprep.subr.bf16.mxu0 %v880_v30 }
  0x5d   : > { %553 = vmatpush1.bf16.msra.mxu0 %v882_v31 }
  0x5e   : > { %554 = vmatprep.subr.bf16.mxu0 %v883_v32 }
  0x61   : > { %555 = vmatpush1.bf16.msra.mxu0 %v885_v33 }
  0x62   : > { %556 = vmatprep.subr.bf16.mxu0 %v886_v34 }
  0x65   : > { %557 = vmatpush1.bf16.msra.mxu0 %v888_v35 }
  0x68   : > { %559 = vmatmul.mubr.bf16.vlgmr.msra.gmra.mrb[0].mxu0 %v889_v36 }
 0x13b   : > { %v560_v39 = vpop.f32.mrb[0].mxu0  ;;  %580 = sbr.rel (%p789_p11) target bundleno = 336 (0x150), region = 78 }
 0x13c   : > { %v569_v41 = vadd.f32 %v560_v39, %v318_v37  ;;  %v562_v42 = vpop.f32.mrb[1].mxu0 }
 0x13d   : > { %v570_v44 = vadd.f32 %v562_v42, %v319_v38  ;;  %v564_v45 = vpop.f32.mrb[2].mxu0 }
 0x13e   : > { %573 = vst [vmem:[#allocation2] sm:$0xff] %v569_v41  ;;  %v571_v46 = vadd.f32 %v564_v45, %v320_v40  ;;  %v566_v47 = vpop.f32.mrb[3].mxu0 }
 0x13f   : > { %574 = vst [vmem:[#allocation2 + $0x8] sm:$0xff] %v570_v44  ;;  %v572_v48 = vadd.f32 %v566_v47, %v321_v43 }
 0x140   : > { %575 = vst [vmem:[#allocation2 + $0x10] sm:$0xff] %v571_v46 }
 0x141   : > { %576 = vst [vmem:[#allocation2 + $0x18] sm:$0xff] %v572_v48 }
 0x145   : > { %v581_v52 = vld [vmem:[#allocation2] sm:$0xff] }
 0x146   : > { %v582_v55 = vld [vmem:[#allocation2 + $0x8] sm:$0xff]  ;;  %v597_v60 = vadd.f32 %v590_v58, %v581_v52 }
 0x147   : > { %v583_v56 = vld [vmem:[#allocation2 + $0x10] sm:$0xff]  ;;  %v598_v61 = vadd.f32 %v594_v59, %v582_v55 }
 0x148   : > { %v584_v57 = vld [vmem:[#allocation2 + $0x18] sm:$0xff]  ;;  %v599_v62 = vadd.f32 %v590_v58, %v583_v56  ;;  %v601_v0 = vmax.f32 %v597_v60, 0.0 }
 0x149   : > { %v600_v63 = vadd.f32 %v594_v59, %v584_v57  ;;  %v602_v1 = vmax.f32 %v598_v61, 0.0 }
 0x14a   : > { %v603_v2 = vmax.f32 %v599_v62, 0.0 }
 0x14b   : > { %v604_v3 = vmax.f32 %v600_v63, 0.0  ;;  %v798_v4 = vpack.c.bf16 %v602_v1, %v601_v0 }
 0x14d   : > { %v799_v5 = vpack.c.bf16 %v604_v3, %v603_v2  ;;  %617 = vst [vmem:[%s1073_s3] sm:$0xff] %v798_v4 }
 0x14f   : > { %618 = vst [vmem:[%s1073_s3 + $0x8] sm:$0xff] %v799_v5 }
 0x150 PF: > { %s13_s16 = sadd.s32 1, %s930_s16   ;;  %s1074_s12 = smov %s918_s13 }
 0x151   : > { %p10_p12 = scmp.ge.s32.totalorder %s13_s16, 11   ;;  %s1075_s13 = smov %s988_s20 }
 0x152   : > { %s1076_s14 = smov %s926_s15  ;;  %s1077_s15 = smov %s1079_s17 }
 0x153   :  { %12 = sbr.rel (!%p10_p12) target bundleno = 3 (0x3), region = 119 }

// kernel: tbmodel_forward.33
= control target key start
LH: loop header
LB: loop body
LE: loop exit
PB: predicated region body
PF: predicated region fallthrough
CT: control target
= control target key end

     0   :  { %s1058_s15 = smov 0   ;;  %s1060_s16 = smov 0   ;;  %s1181_s0 = inlined_call_operand.vmem [shape: bf16[16,2304], index: 0, kind: input, shape index: {}]   ;;  %s1182_s1 = inlined_call_operand.vmem [shape: bf16[2304,256], index: 1, kind: input, shape index: {}]   ;;  %s1183_s2 = inlined_call_operand.vmem [shape: f32[1,256], index: 2, kind: input, shape index: {}]   ;;  %s1184_s3 = inlined_call_operand.vmem [shape: bf16[16,256], index: 3, kind: input, shape index: {}]   ;;  %s1185_s4 = inlined_call_operand.vmem [shape: bf16[16,256], index: 4, kind: output, shape index: {}]  }
   0x1   :  { %s1062_s17 = smov 0   ;;  %s1064_s18 = smov 0  }
   0x2   :  { %s1066_s19 = smov 0  }
   0x3 LB: > { %s26_s20 = sadd.s32 1, %s1026_s18  ;;  %p49_p1 = scmp.ne.s32.totalorder %s1018_s16, %s1014_s15  ;;  %s1030_s19 = sphi %s1066_s19, %s14_s19   ;;  %s1026_s18 = sphi %s1064_s18, %s1189_s18   ;;  %s1022_s17 = sphi %s1062_s17, %s1188_s17   ;;  %s1018_s16 = sphi %s1060_s16, %s1187_s16   ;;  %s1014_s15 = sphi %s1058_s15, %s1186_s15  }
   0x4   : > { %p27_p0 = scmp.ge.s32.totalorder %s26_s20, 9  ;;  %p50_p2 = scmp.eq.s32.totalorder %s1030_s19, 0 }
   0x5   : > { %s42_s22 = sadd.s32 1, %s1018_s16  ;;  %p845_p5 = scmp.ge.s32.totalorder %s1030_s19, 9 }
   0x6   : > { %s1191_s20 = smov (%p27_p0, %s26_s20), 0  ;;  %p51_p3 = por %p50_p2, %p49_p1 }
   0x7   : > { %s38_s21 = ssub.s32 %s1026_s18, %s1191_s20  ;;  %208 = sbr.rel (%p845_p5) target bundleno = 21 (0x15), region = 24 }
   0x8   : > { %p40_p4 = scmp.eq.s32.totalorder %s38_s21, 0 }
   0xa   : > { %s1093_s23 = scalar_select %p40_p4, %s1018_s16, %s42_s22  }
   0xe   : > { %211 = sbr.rel (!%p51_p3) target bundleno = 21 (0x15), region = 28  ;;  %s213_s24 = sand.u32 (%p51_p3), 1, %s1018_s16  }
   0xf   : > { %s896_s25 = sshll.u32 (%p51_p3), %s1026_s18, 3  ;;  %s846_s26 = sshll.u32 (%p51_p3), %s213_s24, 4 }
  0x10   : > { %s221_s29 = scalar_lea.vmem (%p51_p3), %s1181_s0, %s896_s25  ;;  %s215_s30 = scalar_lea.vmem (%p51_p3), [#allocation3], %s846_s26 }
  0x11   : > { %v251_v0 = vld [vmem:[%s221_s29] sm:$0xff] (%p51_p3)  ;;  %v253_v1 = vld [vmem:[%s221_s29 + $0x48] sm:$0xff] (%p51_p3) }
  0x12   : > { %252 = vst [vmem:[%s215_s30] sm:$0xff] (%p51_p3), %v251_v0  ;;  %254 = vst [vmem:[%s215_s30 + $0x8] sm:$0xff] (%p51_p3), %v253_v1 }
  0x15 PF: > { %p849_p6 = scmp.ge.s32.totalorder %s1030_s19, 1  ;;  %p274_p7 = scmp.lt.s32.totalorder %s1030_s19, 10 }
  0x17   : > { %p275_p8 = pnand %p849_p6, %p274_p7 }
  0x18   : > { %s281_s5 = sand.u32 (!%p275_p8), 1, %s1014_s15   ;;  %s851_s6 = sshll.u32 (!%p275_p8), %s1022_s17, 5 }
  0x19   : > { %278 = sbr.rel (%p275_p8) target bundleno = 338 (0x152), region = 70  ;;  %s1105_s7 = sshll.u32 (!%p275_p8), %s281_s5, 4 }
  0x1a   : > { %p339_p9 = scmp.lt.s32.totalorder (!%p275_p8), %s851_s6, 287  ;;  %s283_s12 = scalar_lea.vmem (!%p275_p8), [#allocation3], %s1105_s7 }
  0x1b   : > { %p854_p10 = scmp.ne.s32.totalorder (!%p275_p8), %s1022_s17, 0 }
  0x20   : > { %s1193_s6 = smov (!%p339_p9, %s851_s6), 287  ;;  %381 = sbr.rel (%p854_p10) target bundleno = 39 (0x27), region = 78 }
  0x21   : > { %s897_s8 = sshll.u32 %s1193_s6, 3  ;;  %v1032_v2 = vmov (!%p854_p10), 0.0  }
  0x22   : > { %s1110_s11 = scalar_lea.vmem %s1182_s1, %s897_s8  ;;  %382 = vst [vmem:[#allocation2] sm:$0xff] (!%p854_p10), %v1032_v2  ;;  %383 = vst [vmem:[#allocation2 + $0x8] sm:$0xff] (!%p854_p10), %v1032_v2 }
  0x23   : > { %384 = vst [vmem:[#allocation2 + $0x10] sm:$0xff] (!%p854_p10), %v1032_v2  ;;  %385 = vst [vmem:[#allocation2 + $0x18] sm:$0xff] (!%p854_p10), %v1032_v2 }
  0x27 PF: > { %v941_v3 = vld [vmem:[%s1110_s11 + $0x4] ss:$8 sps:$4 sm:$0xff]   ;;  %v943_v4 = vld [vmem:[%s1110_s11] ss:$8 sps:$4 sm:$0xff]   ;;  %v944_v5 = vld [vmem:[%s1110_s11 + $0x14] ss:$8 sps:$4 sm:$0xff]  }
  0x28   : > { %594 = vmatprep.subr.bf16.mxu0 %v941_v3  ;;  %v946_v6 = vld [vmem:[%s1110_s11 + $0x10] ss:$8 sps:$4 sm:$0xff]   ;;  %v947_v7 = vld [vmem:[%s1110_s11 + $0x24] ss:$8 sps:$4 sm:$0xff]   ;;  %v949_v8 = vld [vmem:[%s1110_s11 + $0x20] ss:$8 sps:$4 sm:$0xff]  }
  0x29   : > { %595 = vmatpush1.bf16.msra.mxu0 %v943_v4  ;;  %v950_v9 = vld [vmem:[%s1110_s11 + $0x34] ss:$8 sps:$4 sm:$0xff]   ;;  %v952_v10 = vld [vmem:[%s1110_s11 + $0x30] ss:$8 sps:$4 sm:$0xff]   ;;  %v953_v11 = vld [vmem:[%s1110_s11 + $0x44] ss:$8 sps:$4 sm:$0xff]  }
  0x2a   : > { %596 = vmatprep.subr.bf16.mxu0 %v944_v5  ;;  %v955_v12 = vld [vmem:[%s1110_s11 + $0x40] ss:$8 sps:$4 sm:$0xff]   ;;  %v956_v13 = vld [vmem:[%s1110_s11 + $0x54] ss:$8 sps:$4 sm:$0xff]   ;;  %v958_v14 = vld [vmem:[%s1110_s11 + $0x50] ss:$8 sps:$4 sm:$0xff]  }
  0x2b   : > { %v959_v15 = vld [vmem:[%s1110_s11 + $0x64] ss:$8 sps:$4 sm:$0xff]   ;;  %v961_v17 = vld [vmem:[%s1110_s11 + $0x60] ss:$8 sps:$4 sm:$0xff]   ;;  %v962_v18 = vld [vmem:[%s1110_s11 + $0x74] ss:$8 sps:$4 sm:$0xff]  }
  0x2c   : > { %v991_v16 = vld [vmem:[%s283_s12 + $0x4] ss:$8 sps:$4 sm:$0xff]   ;;  %v964_v19 = vld [vmem:[%s1110_s11 + $0x70] ss:$8 sps:$4 sm:$0xff]   ;;  %v967_v21 = vld [vmem:[%s1110_s11 + $0x80] ss:$8 sps:$4 sm:$0xff]  }
  0x2d   : > { %597 = vmatpush1.bf16.msra.mxu0 %v946_v6  ;;  %626 = vmatprep.mubr.bf16.mxu0 %v991_v16  ;;  %v965_v20 = vld [vmem:[%s1110_s11 + $0x84] ss:$8 sps:$4 sm:$0xff]   ;;  %v968_v22 = vld [vmem:[%s1110_s11 + $0x94] ss:$8 sps:$4 sm:$0xff]   ;;  %v970_v23 = vld [vmem:[%s1110_s11 + $0x90] ss:$8 sps:$4 sm:$0xff]  }
  0x2e   : > { %598 = vmatprep.subr.bf16.mxu0 %v947_v7  ;;  %v971_v24 = vld [vmem:[%s1110_s11 + $0xa4] ss:$8 sps:$4 sm:$0xff]   ;;  %v973_v25 = vld [vmem:[%s1110_s11 + $0xa0] ss:$8 sps:$4 sm:$0xff]   ;;  %v974_v26 = vld [vmem:[%s1110_s11 + $0xb4] ss:$8 sps:$4 sm:$0xff]  }
  0x2f   : > { %v976_v27 = vld [vmem:[%s1110_s11 + $0xb0] ss:$8 sps:$4 sm:$0xff]   ;;  %v977_v28 = vld [vmem:[%s1110_s11 + $0xc4] ss:$8 sps:$4 sm:$0xff]   ;;  %v979_v29 = vld [vmem:[%s1110_s11 + $0xc0] ss:$8 sps:$4 sm:$0xff]  }
  0x30   : > { %v980_v30 = vld [vmem:[%s1110_s11 + $0xd4] ss:$8 sps:$4 sm:$0xff]   ;;  %v982_v31 = vld [vmem:[%s1110_s11 + $0xd0] ss:$8 sps:$4 sm:$0xff]   ;;  %v983_v32 = vld [vmem:[%s1110_s11 + $0xe4] ss:$8 sps:$4 sm:$0xff]  }
  0x31   : > { %599 = vmatpush1.bf16.msra.mxu0 %v949_v8  ;;  %v985_v33 = vld [vmem:[%s1110_s11 + $0xe0] ss:$8 sps:$4 sm:$0xff]   ;;  %v986_v34 = vld [vmem:[%s1110_s11 + $0xf4] ss:$8 sps:$4 sm:$0xff]   ;;  %v988_v35 = vld [vmem:[%s1110_s11 + $0xf0] ss:$8 sps:$4 sm:$0xff]  }
  0x32   : > { %600 = vmatprep.subr.bf16.mxu0 %v950_v9  ;;  %v989_v36 = vld [vmem:[%s283_s12] ss:$8 sps:$4 sm:$0xff]   ;;  %p889_p11 = scmp.ne.s32.totalorder %s1022_s17, 8 }
  0x33   : > { %v386_v37 = vld [vmem:[#allocation2] sm:$0xff]  ;;  %v387_v38 = vld [vmem:[#allocation2 + $0x8] sm:$0xff]  ;;  %v388_v40 = vld [vmem:[#allocation2 + $0x10] sm:$0xff]  ;;  %v655_v49 = vlaneseq (!%p889_p11) }
  0x34   : > { %v389_v43 = vld [vmem:[#allocation2 + $0x18] sm:$0xff]  ;;  %v669_v51 = vld [vmem:[%s1184_s3] sm:$0xff] (!%p889_p11)  ;;  %v670_v53 = vld [vmem:[%s1184_s3 + $0x8] sm:$0xff] (!%p889_p11) }
  0x35   : > { %601 = vmatpush1.bf16.msra.mxu0 %v952_v10  ;;  %v656_v50 = vshrl.u32 (!%p889_p11), %v655_v49, 7  ;;  %v653_v52 = vld [vmem:[%s1183_s2] sm:$0x3] (!%p889_p11)  ;;  %v671_v58 = vunpack.c.l.bf16 (!%p889_p11), %v669_v51  ;;  %v672_v59 = vunpack.c.h.bf16 (!%p889_p11), %v669_v51  ;;  %v673_v0 = vunpack.c.l.bf16 (!%p889_p11), %v670_v53 }
  0x36   : > { %602 = vmatprep.subr.bf16.mxu0 %v953_v11  ;;  %v674_v1 = vunpack.c.h.bf16 (!%p889_p11), %v670_v53 }
  0x37   : > { %v657_v55 = vsub.s32 (!%p889_p11), 0, %v656_v50  ;;  %v661_v56 = vsub.s32 (!%p889_p11), 1, %v656_v50 }
  0x39   : > { %603 = vmatpush1.bf16.msra.mxu0 %v955_v12  ;;  %v658_v62 = vrot.slane (!%p889_p11), %v653_v52, %v657_v55  ;;  %v662_v63 = vrot.slane (!%p889_p11), %v653_v52, %v661_v56 }
  0x3a   : > { %604 = vmatprep.subr.bf16.mxu0 %v956_v13 }
  0x3d   : > { %605 = vmatpush1.bf16.msra.mxu0 %v958_v14 }
  0x3e   : > { %606 = vmatprep.subr.bf16.mxu0 %v959_v15 }
  0x41   : > { %607 = vmatpush1.bf16.msra.mxu0 %v961_v17 }
  0x42   : > { %608 = vmatprep.subr.bf16.mxu0 %v962_v18 }
  0x45   : > { %609 = vmatpush1.bf16.msra.mxu0 %v964_v19 }
  0x46   : > { %610 = vmatprep.subr.bf16.mxu0 %v965_v20 }
  0x49   : > { %611 = vmatpush1.bf16.msra.mxu0 %v967_v21 }
  0x4a   : > { %612 = vmatprep.subr.bf16.mxu0 %v968_v22 }
  0x4d   : > { %613 = vmatpush1.bf16.msra.mxu0 %v970_v23 }
  0x4e   : > { %614 = vmatprep.subr.bf16.mxu0 %v971_v24 }
  0x51   : > { %615 = vmatpush1.bf16.msra.mxu0 %v973_v25 }
  0x52   : > { %616 = vmatprep.subr.bf16.mxu0 %v974_v26 }
  0x55   : > { %617 = vmatpush1.bf16.msra.mxu0 %v976_v27 }
  0x56   : > { %618 = vmatprep.subr.bf16.mxu0 %v977_v28 }
  0x59   : > { %619 = vmatpush1.bf16.msra.mxu0 %v979_v29 }
  0x5a   : > { %620 = vmatprep.subr.bf16.mxu0 %v980_v30 }
  0x5d   : > { %621 = vmatpush1.bf16.msra.mxu0 %v982_v31 }
  0x5e   : > { %622 = vmatprep.subr.bf16.mxu0 %v983_v32 }
  0x61   : > { %623 = vmatpush1.bf16.msra.mxu0 %v985_v33 }
  0x62   : > { %624 = vmatprep.subr.bf16.mxu0 %v986_v34 }
  0x65   : > { %625 = vmatpush1.bf16.msra.mxu0 %v988_v35 }
  0x68   : > { %627 = vmatmul.mubr.bf16.vlgmr.msra.gmra.mrb[0].mxu0 %v989_v36 }
 0x13b   : > { %v628_v39 = vpop.f32.mrb[0].mxu0  ;;  %648 = sbr.rel (%p889_p11) target bundleno = 338 (0x152), region = 82 }
 0x13c   : > { %v637_v41 = vadd.f32 %v628_v39, %v386_v37  ;;  %v630_v42 = vpop.f32.mrb[1].mxu0 }
 0x13d   : > { %v638_v44 = vadd.f32 %v630_v42, %v387_v38  ;;  %v632_v45 = vpop.f32.mrb[2].mxu0 }
 0x13e   : > { %641 = vst [vmem:[#allocation2] sm:$0xff] %v637_v41  ;;  %v639_v46 = vadd.f32 %v632_v45, %v388_v40  ;;  %v634_v47 = vpop.f32.mrb[3].mxu0 }
 0x13f   : > { %642 = vst [vmem:[#allocation2 + $0x8] sm:$0xff] %v638_v44  ;;  %v640_v48 = vadd.f32 %v634_v47, %v389_v43 }
 0x140   : > { %643 = vst [vmem:[#allocation2 + $0x10] sm:$0xff] %v639_v46 }
 0x141   : > { %644 = vst [vmem:[#allocation2 + $0x18] sm:$0xff] %v640_v48 }
 0x145   : > { %v649_v54 = vld [vmem:[#allocation2] sm:$0xff] }
 0x146   : > { %v650_v57 = vld [vmem:[#allocation2 + $0x8] sm:$0xff]  ;;  %v665_v2 = vadd.f32 %v658_v62, %v649_v54 }
 0x147   : > { %v651_v60 = vld [vmem:[#allocation2 + $0x10] sm:$0xff]  ;;  %v666_v3 = vadd.f32 %v662_v63, %v650_v57 }
 0x148   : > { %v652_v61 = vld [vmem:[#allocation2 + $0x18] sm:$0xff]  ;;  %v667_v4 = vadd.f32 %v658_v62, %v651_v60  ;;  %v675_v6 = vadd.f32 %v671_v58, %v665_v2 }
 0x149   : > { %v668_v5 = vadd.f32 %v662_v63, %v652_v61  ;;  %v676_v7 = vadd.f32 %v672_v59, %v666_v3 }
 0x14a   : > { %v677_v8 = vadd.f32 %v673_v0, %v667_v4  ;;  %v679_v10 = vmax.f32 %v675_v6, 0.0 }
 0x14b   : > { %v678_v9 = vadd.f32 %v674_v1, %v668_v5  ;;  %v680_v11 = vmax.f32 %v676_v7, 0.0 }
 0x14c   : > { %v681_v12 = vmax.f32 %v677_v8, 0.0 }
 0x14d   : > { %v682_v13 = vmax.f32 %v678_v9, 0.0  ;;  %v898_v14 = vpack.c.bf16 %v680_v11, %v679_v10 }
 0x14f   : > { %v899_v15 = vpack.c.bf16 %v682_v13, %v681_v12  ;;  %695 = vst [vmem:[%s1185_s4] sm:$0xff] %v898_v14 }
 0x151   : > { %696 = vst [vmem:[%s1185_s4 + $0x8] sm:$0xff] %v899_v15 }
 0x152 PF: > { %s14_s19 = sadd.s32 1, %s1030_s19   ;;  %s1186_s15 = smov %s1018_s16 }
 0x153   : > { %p11_p12 = scmp.ge.s32.totalorder %s14_s19, 11   ;;  %s1187_s16 = smov %s1093_s23 }
 0x154   : > { %s1188_s17 = smov %s1026_s18  ;;  %s1189_s18 = smov %s1191_s20 }
 0x155   :  { %13 = sbr.rel (!%p11_p12) target bundleno = 3 (0x3), region = 126 }

// kernel: tbmodel_forward.36
= control target key start
LH: loop header
LB: loop body
LE: loop exit
PB: predicated region body
PF: predicated region fallthrough
CT: control target
= control target key end

     0   :  { %s1218_s12 = smov 0   ;;  %s1220_s13 = smov 0   ;;  %s1505_s0 = inlined_call_operand.vmem [shape: bf16[16,2304], index: 0, kind: input, shape index: {}]   ;;  %s1506_s1 = inlined_call_operand.vmem [shape: bf16[2304,512], index: 1, kind: input, shape index: {}]   ;;  %s1507_s2 = inlined_call_operand.vmem [shape: f32[1,512], index: 2, kind: input, shape index: {}]   ;;  %s1508_s3 = inlined_call_operand.vmem [shape: bf16[16,512], index: 3, kind: output, shape index: {}]  }
   0x1   :  { %s1222_s14 = smov 0   ;;  %s1224_s15 = smov 0  }
   0x2   :  { %s1226_s16 = smov 0   ;;  %s1228_s17 = smov 0  }
   0x3   :  { %s1230_s18 = smov 0   ;;  %s1232_s19 = smov 0  }
   0x4   :  { %s1234_s20 = smov 0   ;;  %s1236_s21 = smov 0  }
   0x5   :  { %s1238_s22 = smov 0  }
   0x6 LB: > { %s904_s23 = sadd.s32 4294967295, %s1195_s22   ;;  %s25_s24 = sadd.s32 1, %s1187_s20  ;;  %s1195_s22 = sphi %s1238_s22, %s13_s22   ;;  %s1191_s21 = sphi %s1236_s21, %s1529_s21   ;;  %s1187_s20 = sphi %s1234_s20, %s1528_s20   ;;  %s1183_s19 = sphi %s1232_s19, %s1527_s19   ;;  %s1179_s18 = sphi %s1230_s18, %s1526_s18   ;;  %s1175_s17 = sphi %s1228_s17, %s1525_s17   ;;  %s1171_s16 = sphi %s1226_s16, %s1524_s16   ;;  %s1167_s15 = sphi %s1224_s15, %s1523_s15   ;;  %s1163_s14 = sphi %s1222_s14, %s1522_s14   ;;  %s1159_s13 = sphi %s1220_s13, %s1521_s13   ;;  %s1155_s12 = sphi %s1218_s12, %s1520_s12  }
   0x7   : > { %p26_p0 = scmp.ge.s32.totalorder %s25_s24, 9  ;;  %s28_s25 = sadd.s32 1, %s1191_s21 }
   0x8   : > { %s41_s26 = sadd.s32 1, %s1175_s17  ;;  %p48_p1 = scmp.ne.s32.totalorder %s1175_s17, %s1171_s16 }
   0x9   : > { %s1531_s24 = smov (%p26_p0, %s25_s24), 0  ;;  %s1533_s25 = smov (!%p26_p0, %s28_s25), %s1191_s21 }
   0xa   : > { %1511 = sst [smem:[#allocation6_spill]] %s1531_s24  ;;  %s37_s27 = ssub.s32 %s1187_s20, %s1531_s24 }
   0xb   : > { %p49_p2 = scmp.eq.s32.totalorder %s1195_s22, 0  ;;  %p30_p3 = scmp.ge.s32.totalorder %s1533_s25, 2 }
   0xc   : > { %p39_p4 = scmp.eq.s32.totalorder %s37_s27, 0  ;;  %s69_s29 = sadd.s32 1, %s1167_s15 }
   0xd   : > { %p1285_p5 = por %p49_p2, %p48_p1  ;;  %s1535_s25 = smov (%p30_p3, %s1533_s25), 0 }
   0xe   : > { %1513 = sst [smem:[#allocation7_spill]] %s1535_s25  ;;  %s65_s4 = ssub.s32 %s1191_s21, %s1535_s25 }
   0xf   : > { %s1293_s30 = scalar_select %p39_p4, %s1175_s17, %s41_s26  }
  0x10   : > { %p76_p6 = scmp.ne.s32.totalorder %s1167_s15, %s1163_s14  ;;  %s66_s5 = sor.u32 %s65_s4, %s37_s27 }
  0x11   : > { %1514 = sst [smem:[#allocation8_spill]] %s1293_s30  ;;  %p121_p7 = scmp.eq.s32.totalorder %s65_s4, 0 }
  0x12   : > { %p67_p8 = scmp.eq.s32.totalorder %s66_s5, 0  ;;  %p1299_p9 = por %p76_p6, %p49_p2 }
  0x13   : > { %s123_s7 = sadd.s32 1, %s1159_s13  ;;  %p133_p10 = scmp.ne.s32.totalorder %s1159_s13, %s1155_s12 }
  0x14   : > { %s1307_s8 = scalar_select %p67_p8, %s1167_s15, %s69_s29  }
  0x15   : > { %s1310_s9 = scalar_select %p121_p7, %s1159_s13, %s123_s7  }
  0x16   : > { %p134_p11 = scmp.eq.s32.totalorder %s904_s23, 17  ;;  %p907_p13 = scmp.ge.s32.totalorder %s1195_s22, 18 }
  0x18   : > { %p1312_p12 = por %p134_p11, %p133_p10  ;;  %156 = sbr.rel (%p907_p13) target bundleno = 61 (0x3d), region = 16 }
  0x1f   : > { %159 = sbr.rel (!%p1285_p5) target bundleno = 38 (0x26), region = 20  ;;  %s161_s11 = sand.u32 (%p1285_p5), 1, %s1175_s17  }
  0x20   : > { %s964_s26 = sshll.u32 (%p1285_p5), %s1187_s20, 3  ;;  %s908_s27 = sshll.u32 (%p1285_p5), %s161_s11, 4 }
  0x21   : > { %s169_s5 = scalar_lea.vmem (%p1285_p5), %s1505_s0, %s964_s26  ;;  %s163_s23 = scalar_lea.vmem (%p1285_p5), [#allocation3], %s908_s27 }
  0x22   : > { %v199_v0 = vld [vmem:[%s169_s5] sm:$0xff] (%p1285_p5)  ;;  %v201_v1 = vld [vmem:[%s169_s5 + $0x48] sm:$0xff] (%p1285_p5) }
  0x23   : > { %200 = vst [vmem:[%s163_s23] sm:$0xff] (%p1285_p5), %v199_v0  ;;  %202 = vst [vmem:[%s163_s23 + $0x8] sm:$0xff] (%p1285_p5), %v201_v1 }
  0x26 PF: > { %208 = sbr.rel (!%p1299_p9) target bundleno = 61 (0x3d), region = 58  ;;  %s210_s28 = sand.u32 (%p1299_p9), 1, %s1167_s15  }
  0x27   : > { %s913_s7 = sshll.u32 (%p1299_p9), %s1191_s21, 1  ;;  %s911_s25 = sshll.u32 (%p1299_p9), %s210_s28, 8 }
  0x28   : > { %s965_s11 = sshll.u32 (%p1299_p9), %s1187_s20, 7  ;;  %s1337_s6 = scalar_lea.vmem (%p1299_p9), [#allocation4], %s911_s25 }
  0x29   : > { %s216_s24 = sadd.s32 (%p1299_p9), %s965_s11, %s913_s7 }
  0x2a   : > { %s915_s30 = sshll.u32 (%p1299_p9), %s216_s24, 2 }
  0x2b   : > { %s1332_s4 = scalar_lea.vmem (%p1299_p9), %s1506_s1, %s915_s30 }
  0x2c   : > { %v308_v2 = vld [vmem:[%s1332_s4] sm:$0xff] (%p1299_p9)  ;;  %v310_v3 = vld [vmem:[%s1332_s4 + $0x10] sm:$0xff] (%p1299_p9) }
  0x2d   : > { %v312_v4 = vld [vmem:[%s1332_s4 + $0x20] sm:$0xff]  ;;  %309 = vst [vmem:[%s1337_s6] sm:$0xff] %v308_v2  ;;  %311 = vst [vmem:[%s1337_s6 + $0x8] sm:$0xff] %v310_v3  ;;  %v314_v5 = vld [vmem:[%s1332_s4 + $0x30] sm:$0xff] }
  0x2e   : > { %313 = vst [vmem:[%s1337_s6 + $0x10] sm:$0xff] %v312_v4  ;;  %v316_v6 = vld [vmem:[%s1332_s4 + $0x40] sm:$0xff]  ;;  %v318_v7 = vld [vmem:[%s1332_s4 + $0x50] sm:$0xff]  ;;  %315 = vst [vmem:[%s1337_s6 + $0x18] sm:$0xff] %v314_v5 }
  0x2f   : > { %317 = vst [vmem:[%s1337_s6 + $0x20] sm:$0xff] %v316_v6  ;;  %319 = vst [vmem:[%s1337_s6 + $0x28] sm:$0xff] %v318_v7  ;;  %v320_v8 = vld [vmem:[%s1332_s4 + $0x60] sm:$0xff]  ;;  %v322_v9 = vld [vmem:[%s1332_s4 + $0x70] sm:$0xff] }
  0x30   : > { %v324_v10 = vld [vmem:[%s1332_s4 + $0x80] sm:$0xff]  ;;  %321 = vst [vmem:[%s1337_s6 + $0x30] sm:$0xff] %v320_v8  ;;  %323 = vst [vmem:[%s1337_s6 + $0x38] sm:$0xff] %v322_v9  ;;  %v326_v11 = vld [vmem:[%s1332_s4 + $0x90] sm:$0xff] }
  0x31   : > { %325 = vst [vmem:[%s1337_s6 + $0x40] sm:$0xff] %v324_v10  ;;  %v328_v12 = vld [vmem:[%s1332_s4 + $0xa0] sm:$0xff]  ;;  %v330_v13 = vld [vmem:[%s1332_s4 + $0xb0] sm:$0xff]  ;;  %327 = vst [vmem:[%s1337_s6 + $0x48] sm:$0xff] %v326_v11 }
  0x32   : > { %329 = vst [vmem:[%s1337_s6 + $0x50] sm:$0xff] %v328_v12  ;;  %331 = vst [vmem:[%s1337_s6 + $0x58] sm:$0xff] %v330_v13  ;;  %v332_v14 = vld [vmem:[%s1332_s4 + $0xc0] sm:$0xff]  ;;  %v334_v15 = vld [vmem:[%s1332_s4 + $0xd0] sm:$0xff] }
  0x33   : > { %v336_v16 = vld [vmem:[%s1332_s4 + $0xe0] sm:$0xff]  ;;  %333 = vst [vmem:[%s1337_s6 + $0x60] sm:$0xff] %v332_v14  ;;  %335 = vst [vmem:[%s1337_s6 + $0x68] sm:$0xff] %v334_v15  ;;  %v338_v17 = vld [vmem:[%s1332_s4 + $0xf0] sm:$0xff] }
  0x34   : > { %337 = vst [vmem:[%s1337_s6 + $0x70] sm:$0xff] %v336_v16  ;;  %v340_v18 = vld [vmem:[%s1332_s4 + $0x100] sm:$0xff]  ;;  %v342_v19 = vld [vmem:[%s1332_s4 + $0x110] sm:$0xff]  ;;  %339 = vst [vmem:[%s1337_s6 + $0x78] sm:$0xff] %v338_v17 }
  0x35   : > { %341 = vst [vmem:[%s1337_s6 + $0x80] sm:$0xff] %v340_v18  ;;  %343 = vst [vmem:[%s1337_s6 + $0x88] sm:$0xff] %v342_v19  ;;  %v344_v20 = vld [vmem:[%s1332_s4 + $0x120] sm:$0xff]  ;;  %v346_v21 = vld [vmem:[%s1332_s4 + $0x130] sm:$0xff] }
  0x36   : > { %v348_v22 = vld [vmem:[%s1332_s4 + $0x140] sm:$0xff]  ;;  %345 = vst [vmem:[%s1337_s6 + $0x90] sm:$0xff] %v344_v20  ;;  %347 = vst [vmem:[%s1337_s6 + $0x98] sm:$0xff] %v346_v21  ;;  %v350_v23 = vld [vmem:[%s1332_s4 + $0x150] sm:$0xff] }
  0x37   : > { %349 = vst [vmem:[%s1337_s6 + $0xa0] sm:$0xff] %v348_v22  ;;  %v352_v24 = vld [vmem:[%s1332_s4 + $0x160] sm:$0xff]  ;;  %v354_v25 = vld [vmem:[%s1332_s4 + $0x170] sm:$0xff]  ;;  %351 = vst [vmem:[%s1337_s6 + $0xa8] sm:$0xff] %v350_v23 }
  0x38   : > { %353 = vst [vmem:[%s1337_s6 + $0xb0] sm:$0xff] %v352_v24  ;;  %355 = vst [vmem:[%s1337_s6 + $0xb8] sm:$0xff] %v354_v25  ;;  %v356_v26 = vld [vmem:[%s1332_s4 + $0x180] sm:$0xff]  ;;  %v358_v27 = vld [vmem:[%s1332_s4 + $0x190] sm:$0xff] }
  0x39   : > { %v360_v28 = vld [vmem:[%s1332_s4 + $0x1a0] sm:$0xff]  ;;  %357 = vst [vmem:[%s1337_s6 + $0xc0] sm:$0xff] %v356_v26  ;;  %359 = vst [vmem:[%s1337_s6 + $0xc8] sm:$0xff] %v358_v27  ;;  %v362_v29 = vld [vmem:[%s1332_s4 + $0x1b0] sm:$0xff] }
  0x3a   : > { %361 = vst [vmem:[%s1337_s6 + $0xd0] sm:$0xff] %v360_v28  ;;  %v364_v30 = vld [vmem:[%s1332_s4 + $0x1c0] sm:$0xff]  ;;  %v366_v31 = vld [vmem:[%s1332_s4 + $0x1d0] sm:$0xff]  ;;  %363 = vst [vmem:[%s1337_s6 + $0xd8] sm:$0xff] %v362_v29 }
  0x3b   : > { %365 = vst [vmem:[%s1337_s6 + $0xe0] sm:$0xff] %v364_v30  ;;  %367 = vst [vmem:[%s1337_s6 + $0xe8] sm:$0xff] %v366_v31  ;;  %v368_v32 = vld [vmem:[%s1332_s4 + $0x1e0] sm:$0xff]  ;;  %v370_v33 = vld [vmem:[%s1332_s4 + $0x1f0] sm:$0xff] }
  0x3c   : > { %369 = vst [vmem:[%s1337_s6 + $0xf0] sm:$0xff] %v368_v32  ;;  %371 = vst [vmem:[%s1337_s6 + $0xf8] sm:$0xff] %v370_v33 }
  0x3d PF: > { %p916_p0 = scmp.ge.s32.totalorder %s1195_s22, 1  ;;  %p384_p1 = scmp.lt.s32.totalorder %s1195_s22, 19 }
  0x3f   : > { %p385_p2 = pnand %p916_p0, %p384_p1 }
  0x40   : > { %s391_s24 = sand.u32 (!%p385_p2), 1, %s1171_s16   ;;  %s398_s25 = sand.u32 (!%p385_p2), 1, %s1163_s14  }
  0x41   : > { %388 = sbr.rel (%p385_p2) target bundleno = 384 (0x180), region = 100  ;;  %s1404_s30 = sshll.u32 (!%p385_p2), %s391_s24, 4 }
  0x42   : > { %s918_s27 = sshll.u32 (!%p385_p2), %s398_s25, 8  ;;  %s425_s5 = sand.u32 (!%p385_p2), 1, %s1155_s12  }
  0x43   : > { %s920_s23 = sshll.u32 (!%p385_p2), %s1183_s19, 1  ;;  %s919_s28 = sshll.u32 (!%p385_p2), %s425_s5, 4 }
  0x44   : > { %p433_p3 = scmp.lt.s32.totalorder (!%p385_p2), %s920_s23, 3  ;;  %s393_s26 = scalar_lea.vmem (!%p385_p2), [#allocation3], %s1404_s30 }
  0x45   : > { %s1415_s4 = scalar_lea.vmem (!%p385_p2), [#allocation4], %s918_s27  ;;  %s1417_s16 = scalar_lea.vmem (!%p385_p2), [#allocation5], %s919_s28 }
  0x46   : > { %p921_p4 = scmp.ne.s32.totalorder (!%p385_p2), %s1179_s18, 0 }
  0x48   : > { %s1537_s23 = smov (!%p433_p3, %s920_s23), 3  ;;  %442 = sbr.rel (%p921_p4) target bundleno = 79 (0x4f), region = 112 }
  0x49   : > { %s435_s29 = scalar_lea.vmem %s1507_s2, %s1537_s23  ;;  %v1197_v34 = vmov (!%p921_p4), 0.0  }
  0x4a   : > { %443 = vst [vmem:[#allocation2] sm:$0xff] (!%p921_p4), %v1197_v34  ;;  %444 = vst [vmem:[#allocation2 + $0x8] sm:$0xff] (!%p921_p4), %v1197_v34 }
  0x4b   : > { %445 = vst [vmem:[#allocation2 + $0x10] sm:$0xff] (!%p921_p4), %v1197_v34  ;;  %446 = vst [vmem:[#allocation2 + $0x18] sm:$0xff] (!%p921_p4), %v1197_v34 }
  0x4f PF: > { %v1058_v35 = vld [vmem:[%s1415_s4 + $0x4] ss:$8 sps:$4 sm:$0xff]   ;;  %v1060_v36 = vld [vmem:[%s1415_s4] ss:$8 sps:$4 sm:$0xff]   ;;  %v1061_v37 = vld [vmem:[%s1415_s4 + $0x14] ss:$8 sps:$4 sm:$0xff]  }
  0x50   : > { %655 = vmatprep.subr.bf16.mxu0 %v1058_v35  ;;  %v1063_v38 = vld [vmem:[%s1415_s4 + $0x10] ss:$8 sps:$4 sm:$0xff]   ;;  %v1064_v39 = vld [vmem:[%s1415_s4 + $0x24] ss:$8 sps:$4 sm:$0xff]   ;;  %v1066_v40 = vld [vmem:[%s1415_s4 + $0x20] ss:$8 sps:$4 sm:$0xff]  }
  0x51   : > { %656 = vmatpush1.bf16.msra.mxu0 %v1060_v36  ;;  %v1067_v41 = vld [vmem:[%s1415_s4 + $0x34] ss:$8 sps:$4 sm:$0xff]   ;;  %v1069_v42 = vld [vmem:[%s1415_s4 + $0x30] ss:$8 sps:$4 sm:$0xff]   ;;  %v1070_v43 = vld [vmem:[%s1415_s4 + $0x44] ss:$8 sps:$4 sm:$0xff]  }
  0x52   : > { %657 = vmatprep.subr.bf16.mxu0 %v1061_v37  ;;  %v1072_v44 = vld [vmem:[%s1415_s4 + $0x40] ss:$8 sps:$4 sm:$0xff]   ;;  %v1073_v45 = vld [vmem:[%s1415_s4 + $0x54] ss:$8 sps:$4 sm:$0xff]   ;;  %v1075_v46 = vld [vmem:[%s1415_s4 + $0x50] ss:$8 sps:$4 sm:$0xff]  }
  0x53   : > { %v1076_v47 = vld [vmem:[%s1415_s4 + $0x64] ss:$8 sps:$4 sm:$0xff]   ;;  %v1078_v49 = vld [vmem:[%s1415_s4 + $0x60] ss:$8 sps:$4 sm:$0xff]   ;;  %v1079_v50 = vld [vmem:[%s1415_s4 + $0x74] ss:$8 sps:$4 sm:$0xff]  }
  0x54   : > { %v1108_v48 = vld [vmem:[%s393_s26 + $0x4] ss:$8 sps:$4 sm:$0xff]   ;;  %v1081_v51 = vld [vmem:[%s1415_s4 + $0x70] ss:$8 sps:$4 sm:$0xff]   ;;  %v1084_v53 = vld [vmem:[%s1415_s4 + $0x80] ss:$8 sps:$4 sm:$0xff]  }
  0x55   : > { %658 = vmatpush1.bf16.msra.mxu0 %v1063_v38  ;;  %687 = vmatprep.mubr.bf16.mxu0 %v1108_v48  ;;  %v1082_v52 = vld [vmem:[%s1415_s4 + $0x84] ss:$8 sps:$4 sm:$0xff]   ;;  %v1085_v54 = vld [vmem:[%s1415_s4 + $0x94] ss:$8 sps:$4 sm:$0xff]   ;;  %v1087_v55 = vld [vmem:[%s1415_s4 + $0x90] ss:$8 sps:$4 sm:$0xff]  }
  0x56   : > { %659 = vmatprep.subr.bf16.mxu0 %v1064_v39  ;;  %v1088_v56 = vld [vmem:[%s1415_s4 + $0xa4] ss:$8 sps:$4 sm:$0xff]   ;;  %v1090_v57 = vld [vmem:[%s1415_s4 + $0xa0] ss:$8 sps:$4 sm:$0xff]   ;;  %v1091_v58 = vld [vmem:[%s1415_s4 + $0xb4] ss:$8 sps:$4 sm:$0xff]  }
  0x57   : > { %v1093_v59 = vld [vmem:[%s1415_s4 + $0xb0] ss:$8 sps:$4 sm:$0xff]   ;;  %v1094_v60 = vld [vmem:[%s1415_s4 + $0xc4] ss:$8 sps:$4 sm:$0xff]   ;;  %v1096_v61 = vld [vmem:[%s1415_s4 + $0xc0] ss:$8 sps:$4 sm:$0xff]  }
  0x58   : > { %v1097_v62 = vld [vmem:[%s1415_s4 + $0xd4] ss:$8 sps:$4 sm:$0xff]   ;;  %v1099_v63 = vld [vmem:[%s1415_s4 + $0xd0] ss:$8 sps:$4 sm:$0xff]   ;;  %v1100_v0 = vld [vmem:[%s1415_s4 + $0xe4] ss:$8 sps:$4 sm:$0xff]  }
  0x59   : > { %660 = vmatpush1.bf16.msra.mxu0 %v1066_v40  ;;  %v1102_v1 = vld [vmem:[%s1415_s4 + $0xe0] ss:$8 sps:$4 sm:$0xff]   ;;  %v1103_v2 = vld [vmem:[%s1415_s4 + $0xf4] ss:$8 sps:$4 sm:$0xff]   ;;  %v1105_v3 = vld [vmem:[%s1415_s4 + $0xf0] ss:$8 sps:$4 sm:$0xff]  }
  0x5a   : > { %661 = vmatprep.subr.bf16.mxu0 %v1067_v41  ;;  %v1106_v4 = vld [vmem:[%s393_s26] ss:$8 sps:$4 sm:$0xff]   ;;  %p956_p5 = scmp.ne.s32.totalorder %s1179_s18, 8 }
  0x5b   : > { %v447_v5 = vld [vmem:[#allocation2] sm:$0xff]  ;;  %v448_v6 = vld [vmem:[#allocation2 + $0x8] sm:$0xff]  ;;  %v449_v8 = vld [vmem:[#allocation2 + $0x10] sm:$0xff]  ;;  %v716_v17 = vlaneseq (!%p956_p5) }
  0x5c   : > { %v450_v11 = vld [vmem:[#allocation2 + $0x18] sm:$0xff]  ;;  %v714_v19 = vld [vmem:[%s435_s29] sm:$0x3] (!%p956_p5) }
  0x5d   : > { %662 = vmatpush1.bf16.msra.mxu0 %v1069_v42  ;;  %v717_v18 = vshrl.u32 (!%p956_p5), %v716_v17, 7 }
  0x5e   : > { %663 = vmatprep.subr.bf16.mxu0 %v1070_v43 }
  0x5f   : > { %v718_v21 = vsub.s32 (!%p956_p5), 0, %v717_v18  ;;  %v722_v22 = vsub.s32 (!%p956_p5), 1, %v717_v18 }
  0x61   : > { %664 = vmatpush1.bf16.msra.mxu0 %v1072_v44  ;;  %v719_v26 = vrot.slane (!%p956_p5), %v714_v19, %v718_v21  ;;  %v723_v27 = vrot.slane (!%p956_p5), %v714_v19, %v722_v22 }
  0x62   : > { %665 = vmatprep.subr.bf16.mxu0 %v1073_v45 }
  0x65   : > { %666 = vmatpush1.bf16.msra.mxu0 %v1075_v46 }
  0x66   : > { %667 = vmatprep.subr.bf16.mxu0 %v1076_v47 }
  0x69   : > { %668 = vmatpush1.bf16.msra.mxu0 %v1078_v49 }
  0x6a   : > { %669 = vmatprep.subr.bf16.mxu0 %v1079_v50 }
  0x6d   : > { %670 = vmatpush1.bf16.msra.mxu0 %v1081_v51 }
  0x6e   : > { %671 = vmatprep.subr.bf16.mxu0 %v1082_v52 }
  0x71   : > { %672 = vmatpush1.bf16.msra.mxu0 %v1084_v53 }
  0x72   : > { %673 = vmatprep.subr.bf16.mxu0 %v1085_v54 }
  0x75   : > { %674 = vmatpush1.bf16.msra.mxu0 %v1087_v55 }
  0x76   : > { %675 = vmatprep.subr.bf16.mxu0 %v1088_v56 }
  0x79   : > { %676 = vmatpush1.bf16.msra.mxu0 %v1090_v57 }
  0x7a   : > { %677 = vmatprep.subr.bf16.mxu0 %v1091_v58 }
  0x7d   : > { %678 = vmatpush1.bf16.msra.mxu0 %v1093_v59 }
  0x7e   : > { %679 = vmatprep.subr.bf16.mxu0 %v1094_v60 }
  0x81   : > { %680 = vmatpush1.bf16.msra.mxu0 %v1096_v61 }
  0x82   : > { %681 = vmatprep.subr.bf16.mxu0 %v1097_v62 }
  0x85   : > { %682 = vmatpush1.bf16.msra.mxu0 %v1099_v63 }
  0x86   : > { %683 = vmatprep.subr.bf16.mxu0 %v1100_v0 }
  0x89   : > { %684 = vmatpush1.bf16.msra.mxu0 %v1102_v1 }
  0x8a   : > { %685 = vmatprep.subr.bf16.mxu0 %v1103_v2 }
  0x8d   : > { %686 = vmatpush1.bf16.msra.mxu0 %v1105_v3 }
  0x90   : > { %688 = vmatmul.mubr.bf16.vlgmr.msra.gmra.mrb[0].mxu0 %v1106_v4 }
 0x163   : > { %v689_v7 = vpop.f32.mrb[0].mxu0  ;;  %709 = sbr.rel (%p956_p5) target bundleno = 376 (0x178), region = 116 }
 0x164   : > { %v698_v9 = vadd.f32 %v689_v7, %v447_v5  ;;  %v691_v10 = vpop.f32.mrb[1].mxu0 }
 0x165   : > { %v699_v12 = vadd.f32 %v691_v10, %v448_v6  ;;  %v693_v13 = vpop.f32.mrb[2].mxu0 }
 0x166   : > { %702 = vst [vmem:[#allocation2] sm:$0xff] %v698_v9  ;;  %v700_v14 = vadd.f32 %v693_v13, %v449_v8  ;;  %v695_v15 = vpop.f32.mrb[3].mxu0 }
 0x167   : > { %703 = vst [vmem:[#allocation2 + $0x8] sm:$0xff] %v699_v12  ;;  %v701_v16 = vadd.f32 %v695_v15, %v450_v11 }
 0x168   : > { %704 = vst [vmem:[#allocation2 + $0x10] sm:$0xff] %v700_v14 }
 0x169   : > { %705 = vst [vmem:[#allocation2 + $0x18] sm:$0xff] %v701_v16 }
 0x16d   : > { %v710_v20 = vld [vmem:[#allocation2] sm:$0xff] }
 0x16e   : > { %v711_v23 = vld [vmem:[#allocation2 + $0x8] sm:$0xff]  ;;  %v726_v28 = vadd.f32 %v719_v26, %v710_v20 }
 0x16f   : > { %v712_v24 = vld [vmem:[#allocation2 + $0x10] sm:$0xff]  ;;  %v727_v29 = vadd.f32 %v723_v27, %v711_v23 }
 0x170   : > { %v713_v25 = vld [vmem:[#allocation2 + $0x18] sm:$0xff]  ;;  %v728_v30 = vadd.f32 %v719_v26, %v712_v24  ;;  %v730_v32 = vmax.f32 %v726_v28, 0.0 }
 0x171   : > { %v729_v31 = vadd.f32 %v723_v27, %v713_v25  ;;  %v731_v33 = vmax.f32 %v727_v29, 0.0 }
 0x172   : > { %v732_v34 = vmax.f32 %v728_v30, 0.0 }
 0x173   : > { %v733_v35 = vmax.f32 %v729_v31, 0.0  ;;  %v966_v36 = vpack.c.bf16 %v731_v33, %v730_v32 }
 0x175   : > { %v967_v37 = vpack.c.bf16 %v733_v35, %v732_v34  ;;  %746 = vst [vmem:[%s1417_s16] sm:$0xff] %v966_v36 }
 0x177   : > { %747 = vst [vmem:[%s1417_s16 + $0x8] sm:$0xff] %v967_v37 }
 0x178 PF: > { %754 = sbr.rel (!%p1312_p12) target bundleno = 384 (0x180), region = 120  ;;  %s968_s18 = sshll.u32 (%p1312_p12), %s1183_s19, 3 }
 0x179   : > { %s760_s25 = scalar_lea.vmem (%p1312_p12), %s1508_s3, %s968_s18 }
 0x17c   : > { %v790_v38 = vld [vmem:[%s1417_s16] sm:$0xff] (%p1312_p12) }
 0x17d   : > { %791 = vst [vmem:[%s760_s25] sm:$0xff] (%p1312_p12), %v790_v38 }
 0x17e   : > { %v792_v39 = vld [vmem:[%s1417_s16 + $0x8] sm:$0xff] (%p1312_p12) }
 0x17f   : > { %793 = vst [vmem:[%s760_s25 + $0x10] sm:$0xff] %v792_v39 }
 0x180 PF: > { %s13_s22 = sadd.s32 1, %s1195_s22   ;;  %s1517_s10 = sld [smem:[#allocation8_spill]] }
 0x181   : > { %p10_p6 = scmp.ge.s32.totalorder %s13_s22, 20   ;;  %s1518_s30 = sld [smem:[#allocation6_spill]] }
 0x182   : > { %s1519_s27 = sld [smem:[#allocation7_spill]]  ;;  %s1520_s12 = smov %s1159_s13 }
 0x183   : > { %s1521_s13 = smov %s1310_s9  ;;  %s1522_s14 = smov %s1167_s15 }
 0x184   : > { %s1523_s15 = smov %s1307_s8  ;;  %s1524_s16 = smov %s1175_s17 }
 0x185   : > { %s1526_s18 = smov %s1187_s20  ;;  %s1527_s19 = smov %s1191_s21 }
 0x186   : > { %s1525_s17 = smov %s1517_s10  ;;  %12 = sbr.rel (!%p10_p6) target bundleno = 6 (0x6), region = 200 }
 0x187   : > { %s1528_s20 = smov %s1518_s30 }
 0x188   : > { %s1529_s21 = smov %s1519_s27 }

// kernel: tbmodel_forward.37
= control target key start
LH: loop header
LB: loop body
LE: loop exit
PB: predicated region body
PF: predicated region fallthrough
CT: control target
= control target key end

     0   :  { %s1079_s12 = smov 0   ;;  %s1081_s13 = smov 0   ;;  %s1267_s0 = inlined_call_operand.vmem [shape: bf16[16,256], index: 0, kind: input, shape index: {}]   ;;  %s1268_s1 = inlined_call_operand.vmem [shape: bf16[256,512], index: 1, kind: input, shape index: {}]   ;;  %s1269_s2 = inlined_call_operand.vmem [shape: f32[1,512], index: 2, kind: input, shape index: {}]   ;;  %s1270_s3 = inlined_call_operand.vmem [shape: bf16[16,512], index: 3, kind: output, shape index: {}]  }
   0x1   :  { %s1083_s14 = smov 0   ;;  %s1085_s15 = smov 0  }
   0x2   :  { %s1087_s16 = smov 0  }
   0x3 LB: > { %s28_s17 = sadd.s32 1, %s1053_s15  ;;  %s871_s18 = sadd.s32 4294967295, %s1057_s16   ;;  %s1057_s16 = sphi %s1087_s16, %s13_s16   ;;  %s1053_s15 = sphi %s1085_s15, %s1275_s15   ;;  %s1049_s14 = sphi %s1083_s14, %s1274_s14   ;;  %s1045_s13 = sphi %s1081_s13, %s1273_s13   ;;  %s1041_s12 = sphi %s1079_s12, %s1272_s12  }
   0x4   : > { %p30_p0 = scmp.ge.s32.totalorder %s28_s17, 2  ;;  %p76_p1 = scmp.ne.s32.totalorder %s1045_s13, %s1041_s12 }
   0x5   : > { %p77_p2 = scmp.eq.s32.totalorder %s1057_s16, 0  ;;  %p134_p4 = scmp.eq.s32.totalorder %s871_s18, 1 }
   0x6   : > { %s1277_s17 = smov (%p30_p0, %s28_s17), 0  ;;  %s69_s20 = sadd.s32 1, %s1045_s13 }
   0x7   : > { %p78_p3 = por %p77_p2, %p76_p1  ;;  %s65_s19 = ssub.s32 %s1053_s15, %s1277_s17 }
   0x8   : > { %p67_p5 = scmp.eq.s32.totalorder %s65_s19, 0  ;;  %p1114_p6 = por %p134_p4, %p76_p1 }
   0x9   : > { %p875_p7 = scmp.ge.s32.totalorder %s1057_s16, 2 }
   0xa   : > { %s1119_s22 = scalar_select %p67_p5, %s1045_s13, %s69_s20  }
   0xb   : > { %171 = sbr.rel (%p875_p7) target bundleno = 38 (0x26), region = 20 }
  0x12   : > { %174 = sbr.rel (!%p78_p3) target bundleno = 38 (0x26), region = 24  ;;  %s176_s23 = sand.u32 (%p78_p3), 1, %s1045_s13  }
  0x13   : > { %s924_s24 = sshll.u32 (%p78_p3), %s1053_s15, 3  ;;  %s876_s25 = sshll.u32 (%p78_p3), %s176_s23, 8 }
  0x14   : > { %s1127_s28 = scalar_lea.vmem (%p78_p3), %s1268_s1, %s924_s24  ;;  %s1132_s29 = scalar_lea.vmem (%p78_p3), [#allocation3], %s876_s25 }
  0x15   : > { %v274_v0 = vld [vmem:[%s1127_s28] sm:$0xff] (%p78_p3)  ;;  %v276_v1 = vld [vmem:[%s1127_s28 + $0x10] sm:$0xff] (%p78_p3) }
  0x16   : > { %v278_v2 = vld [vmem:[%s1127_s28 + $0x20] sm:$0xff] (%p78_p3)  ;;  %275 = vst [vmem:[%s1132_s29] sm:$0xff] (%p78_p3), %v274_v0  ;;  %277 = vst [vmem:[%s1132_s29 + $0x8] sm:$0xff] (%p78_p3), %v276_v1  ;;  %v280_v3 = vld [vmem:[%s1127_s28 + $0x30] sm:$0xff] (%p78_p3) }
  0x17   : > { %279 = vst [vmem:[%s1132_s29 + $0x10] sm:$0xff] (%p78_p3), %v278_v2  ;;  %v282_v4 = vld [vmem:[%s1127_s28 + $0x40] sm:$0xff] (%p78_p3)  ;;  %v284_v5 = vld [vmem:[%s1127_s28 + $0x50] sm:$0xff] (%p78_p3)  ;;  %281 = vst [vmem:[%s1132_s29 + $0x18] sm:$0xff] (%p78_p3), %v280_v3 }
  0x18   : > { %283 = vst [vmem:[%s1132_s29 + $0x20] sm:$0xff] (%p78_p3), %v282_v4  ;;  %285 = vst [vmem:[%s1132_s29 + $0x28] sm:$0xff] (%p78_p3), %v284_v5  ;;  %v286_v6 = vld [vmem:[%s1127_s28 + $0x60] sm:$0xff] (%p78_p3)  ;;  %v288_v7 = vld [vmem:[%s1127_s28 + $0x70] sm:$0xff] (%p78_p3) }
  0x19   : > { %v290_v8 = vld [vmem:[%s1127_s28 + $0x80] sm:$0xff]  ;;  %287 = vst [vmem:[%s1132_s29 + $0x30] sm:$0xff] %v286_v6  ;;  %289 = vst [vmem:[%s1132_s29 + $0x38] sm:$0xff] %v288_v7  ;;  %v292_v9 = vld [vmem:[%s1127_s28 + $0x90] sm:$0xff] }
  0x1a   : > { %291 = vst [vmem:[%s1132_s29 + $0x40] sm:$0xff] %v290_v8  ;;  %v294_v10 = vld [vmem:[%s1127_s28 + $0xa0] sm:$0xff]  ;;  %v296_v11 = vld [vmem:[%s1127_s28 + $0xb0] sm:$0xff]  ;;  %293 = vst [vmem:[%s1132_s29 + $0x48] sm:$0xff] %v292_v9 }
  0x1b   : > { %295 = vst [vmem:[%s1132_s29 + $0x50] sm:$0xff] %v294_v10  ;;  %297 = vst [vmem:[%s1132_s29 + $0x58] sm:$0xff] %v296_v11  ;;  %v298_v12 = vld [vmem:[%s1127_s28 + $0xc0] sm:$0xff]  ;;  %v300_v13 = vld [vmem:[%s1127_s28 + $0xd0] sm:$0xff] }
  0x1c   : > { %v302_v14 = vld [vmem:[%s1127_s28 + $0xe0] sm:$0xff]  ;;  %299 = vst [vmem:[%s1132_s29 + $0x60] sm:$0xff] %v298_v12  ;;  %301 = vst [vmem:[%s1132_s29 + $0x68] sm:$0xff] %v300_v13  ;;  %v304_v15 = vld [vmem:[%s1127_s28 + $0xf0] sm:$0xff] }
  0x1d   : > { %303 = vst [vmem:[%s1132_s29 + $0x70] sm:$0xff] %v302_v14  ;;  %v306_v16 = vld [vmem:[%s1127_s28 + $0x100] sm:$0xff]  ;;  %v308_v17 = vld [vmem:[%s1127_s28 + $0x110] sm:$0xff]  ;;  %305 = vst [vmem:[%s1132_s29 + $0x78] sm:$0xff] %v304_v15 }
  0x1e   : > { %307 = vst [vmem:[%s1132_s29 + $0x80] sm:$0xff] %v306_v16  ;;  %309 = vst [vmem:[%s1132_s29 + $0x88] sm:$0xff] %v308_v17  ;;  %v310_v18 = vld [vmem:[%s1127_s28 + $0x120] sm:$0xff]  ;;  %v312_v19 = vld [vmem:[%s1127_s28 + $0x130] sm:$0xff] }
  0x1f   : > { %v314_v20 = vld [vmem:[%s1127_s28 + $0x140] sm:$0xff]  ;;  %311 = vst [vmem:[%s1132_s29 + $0x90] sm:$0xff] %v310_v18  ;;  %313 = vst [vmem:[%s1132_s29 + $0x98] sm:$0xff] %v312_v19  ;;  %v316_v21 = vld [vmem:[%s1127_s28 + $0x150] sm:$0xff] }
  0x20   : > { %315 = vst [vmem:[%s1132_s29 + $0xa0] sm:$0xff] %v314_v20  ;;  %v318_v22 = vld [vmem:[%s1127_s28 + $0x160] sm:$0xff]  ;;  %v320_v23 = vld [vmem:[%s1127_s28 + $0x170] sm:$0xff]  ;;  %317 = vst [vmem:[%s1132_s29 + $0xa8] sm:$0xff] %v316_v21 }
  0x21   : > { %319 = vst [vmem:[%s1132_s29 + $0xb0] sm:$0xff] %v318_v22  ;;  %321 = vst [vmem:[%s1132_s29 + $0xb8] sm:$0xff] %v320_v23  ;;  %v322_v24 = vld [vmem:[%s1127_s28 + $0x180] sm:$0xff]  ;;  %v324_v25 = vld [vmem:[%s1127_s28 + $0x190] sm:$0xff] }
  0x22   : > { %v326_v26 = vld [vmem:[%s1127_s28 + $0x1a0] sm:$0xff]  ;;  %323 = vst [vmem:[%s1132_s29 + $0xc0] sm:$0xff] %v322_v24  ;;  %325 = vst [vmem:[%s1132_s29 + $0xc8] sm:$0xff] %v324_v25  ;;  %v328_v27 = vld [vmem:[%s1127_s28 + $0x1b0] sm:$0xff] }
  0x23   : > { %327 = vst [vmem:[%s1132_s29 + $0xd0] sm:$0xff] %v326_v26  ;;  %v330_v28 = vld [vmem:[%s1127_s28 + $0x1c0] sm:$0xff]  ;;  %v332_v29 = vld [vmem:[%s1127_s28 + $0x1d0] sm:$0xff]  ;;  %329 = vst [vmem:[%s1132_s29 + $0xd8] sm:$0xff] %v328_v27 }
  0x24   : > { %331 = vst [vmem:[%s1132_s29 + $0xe0] sm:$0xff] %v330_v28  ;;  %333 = vst [vmem:[%s1132_s29 + $0xe8] sm:$0xff] %v332_v29  ;;  %v334_v30 = vld [vmem:[%s1127_s28 + $0x1e0] sm:$0xff]  ;;  %v336_v31 = vld [vmem:[%s1127_s28 + $0x1f0] sm:$0xff] }
  0x25   : > { %335 = vst [vmem:[%s1132_s29 + $0xf0] sm:$0xff] %v334_v30  ;;  %337 = vst [vmem:[%s1132_s29 + $0xf8] sm:$0xff] %v336_v31 }
  0x26 PF: > { %p879_p8 = scmp.ge.s32.totalorder %s1057_s16, 1  ;;  %p350_p9 = scmp.lt.s32.totalorder %s1057_s16, 3 }
  0x28   : > { %p351_p10 = pnand %p879_p8, %p350_p9 }
  0x29   : > { %s357_s30 = sand.u32 (!%p351_p10), 1, %s1041_s12   ;;  %v1018_v32 = vld [vmem:[%s1267_s0 + $0x4] ss:$8 sps:$4 sm:$0xff] (!%p351_p10)   ;;  %v1016_v1 = vld [vmem:[%s1267_s0] ss:$8 sps:$4 sm:$0xff] (!%p351_p10)   ;;  %s882_s10 = sshll.u32 (!%p351_p10), %s1049_s14, 1  ;;  %v690_v2 = vlaneseq (!%p351_p10) }
  0x2a   : > { %354 = sbr.rel (%p351_p10) target bundleno = 337 (0x151), region = 66  ;;  %s880_s4 = sshll.u32 (!%p351_p10), %s357_s30, 8  ;;  %662 = vmatprep.mubr.bf16.mxu0 (!%p351_p10), %v1018_v32 }
  0x2b   : > { %s1203_s7 = scalar_lea.vmem (!%p351_p10), [#allocation3], %s880_s4  ;;  %p408_p11 = scmp.lt.s32.totalorder (!%p351_p10), %s882_s10, 3  ;;  %v691_v3 = vshrl.u32 (!%p351_p10), %v690_v2, 7 }
  0x2c   : > { %v968_v33 = vld [vmem:[%s1203_s7 + $0x4] ss:$8 sps:$4 sm:$0xff] (!%p351_p10)   ;;  %v970_v34 = vld [vmem:[%s1203_s7] ss:$8 sps:$4 sm:$0xff] (!%p351_p10)   ;;  %v971_v35 = vld [vmem:[%s1203_s7 + $0x14] ss:$8 sps:$4 sm:$0xff] (!%p351_p10)  }
  0x2d   : > { %630 = vmatprep.subr.bf16.mxu0 (!%p351_p10), %v968_v33  ;;  %v973_v36 = vld [vmem:[%s1203_s7 + $0x10] ss:$8 sps:$4 sm:$0xff] (!%p351_p10)   ;;  %v974_v37 = vld [vmem:[%s1203_s7 + $0x24] ss:$8 sps:$4 sm:$0xff] (!%p351_p10)   ;;  %v976_v38 = vld [vmem:[%s1203_s7 + $0x20] ss:$8 sps:$4 sm:$0xff] (!%p351_p10)  }
  0x2e   : > { %631 = vmatpush1.bf16.msra.mxu0 (!%p351_p10), %v970_v34  ;;  %v977_v39 = vld [vmem:[%s1203_s7 + $0x34] ss:$8 sps:$4 sm:$0xff] (!%p351_p10)   ;;  %v979_v40 = vld [vmem:[%s1203_s7 + $0x30] ss:$8 sps:$4 sm:$0xff] (!%p351_p10)   ;;  %v980_v41 = vld [vmem:[%s1203_s7 + $0x44] ss:$8 sps:$4 sm:$0xff] (!%p351_p10)  }
  0x2f   : > { %632 = vmatprep.subr.bf16.mxu0 (!%p351_p10), %v971_v35  ;;  %v982_v42 = vld [vmem:[%s1203_s7 + $0x40] ss:$8 sps:$4 sm:$0xff] (!%p351_p10)   ;;  %v983_v43 = vld [vmem:[%s1203_s7 + $0x54] ss:$8 sps:$4 sm:$0xff] (!%p351_p10)   ;;  %v985_v44 = vld [vmem:[%s1203_s7 + $0x50] ss:$8 sps:$4 sm:$0xff] (!%p351_p10)  }
  0x30   : > { %v986_v45 = vld [vmem:[%s1203_s7 + $0x64] ss:$8 sps:$4 sm:$0xff] (!%p351_p10)   ;;  %v988_v46 = vld [vmem:[%s1203_s7 + $0x60] ss:$8 sps:$4 sm:$0xff] (!%p351_p10)   ;;  %v989_v47 = vld [vmem:[%s1203_s7 + $0x74] ss:$8 sps:$4 sm:$0xff] (!%p351_p10)  }
  0x31   : > { %v991_v48 = vld [vmem:[%s1203_s7 + $0x70] ss:$8 sps:$4 sm:$0xff]   ;;  %v992_v49 = vld [vmem:[%s1203_s7 + $0x84] ss:$8 sps:$4 sm:$0xff]   ;;  %v994_v50 = vld [vmem:[%s1203_s7 + $0x80] ss:$8 sps:$4 sm:$0xff]  }
  0x32   : > { %633 = vmatpush1.bf16.msra.mxu0 %v973_v36  ;;  %v995_v51 = vld [vmem:[%s1203_s7 + $0x94] ss:$8 sps:$4 sm:$0xff]   ;;  %v997_v52 = vld [vmem:[%s1203_s7 + $0x90] ss:$8 sps:$4 sm:$0xff]   ;;  %v998_v53 = vld [vmem:[%s1203_s7 + $0xa4] ss:$8 sps:$4 sm:$0xff]  }
  0x33   : > { %634 = vmatprep.subr.bf16.mxu0 %v974_v37  ;;  %v1000_v54 = vld [vmem:[%s1203_s7 + $0xa0] ss:$8 sps:$4 sm:$0xff]   ;;  %v1001_v55 = vld [vmem:[%s1203_s7 + $0xb4] ss:$8 sps:$4 sm:$0xff]   ;;  %v1003_v56 = vld [vmem:[%s1203_s7 + $0xb0] ss:$8 sps:$4 sm:$0xff]  }
  0x34   : > { %v1004_v57 = vld [vmem:[%s1203_s7 + $0xc4] ss:$8 sps:$4 sm:$0xff]   ;;  %v1006_v58 = vld [vmem:[%s1203_s7 + $0xc0] ss:$8 sps:$4 sm:$0xff]   ;;  %v1007_v59 = vld [vmem:[%s1203_s7 + $0xd4] ss:$8 sps:$4 sm:$0xff]  }
  0x35   : > { %v1009_v60 = vld [vmem:[%s1203_s7 + $0xd0] ss:$8 sps:$4 sm:$0xff]   ;;  %v1010_v61 = vld [vmem:[%s1203_s7 + $0xe4] ss:$8 sps:$4 sm:$0xff]   ;;  %v1012_v62 = vld [vmem:[%s1203_s7 + $0xe0] ss:$8 sps:$4 sm:$0xff]  }
  0x36   : > { %635 = vmatpush1.bf16.msra.mxu0 %v976_v38  ;;  %v1013_v63 = vld [vmem:[%s1203_s7 + $0xf4] ss:$8 sps:$4 sm:$0xff]   ;;  %v1015_v0 = vld [vmem:[%s1203_s7 + $0xf0] ss:$8 sps:$4 sm:$0xff]   ;;  %s1279_s10 = smov (!%p408_p11, %s882_s10), 3  ;;  %v692_v4 = vsub.s32 0, %v691_v3 }
  0x37   : > { %636 = vmatprep.subr.bf16.mxu0 %v977_v39  ;;  %s410_s19 = scalar_lea.vmem %s1269_s2, %s1279_s10  ;;  %v696_v6 = vsub.s32 1, %v691_v3  ;;  %s881_s20 = sshll.u32 %s357_s30, 4 }
  0x38   : > { %v688_v5 = vld [vmem:[%s410_s19] sm:$0x3]  ;;  %s392_s23 = scalar_lea.vmem [#allocation4], %s881_s20  ;;  %s927_s24 = sshll.u32 (%p1114_p6), %s1049_s14, 3 }
  0x39   : > { %v693_v7 = vrot.slane %v688_v5, %v692_v4  ;;  %v697_v8 = vrot.slane %v688_v5, %v696_v6  ;;  %s730_s26 = scalar_lea.vmem (%p1114_p6), %s1270_s3, %s927_s24 }
  0x3a   : > { %637 = vmatpush1.bf16.msra.mxu0 %v979_v40 }
  0x3b   : > { %638 = vmatprep.subr.bf16.mxu0 %v980_v41 }
  0x3e   : > { %639 = vmatpush1.bf16.msra.mxu0 %v982_v42 }
  0x3f   : > { %640 = vmatprep.subr.bf16.mxu0 %v983_v43 }
  0x42   : > { %641 = vmatpush1.bf16.msra.mxu0 %v985_v44 }
  0x43   : > { %642 = vmatprep.subr.bf16.mxu0 %v986_v45 }
  0x46   : > { %643 = vmatpush1.bf16.msra.mxu0 %v988_v46 }
  0x47   : > { %644 = vmatprep.subr.bf16.mxu0 %v989_v47 }
  0x4a   : > { %645 = vmatpush1.bf16.msra.mxu0 %v991_v48 }
  0x4b   : > { %646 = vmatprep.subr.bf16.mxu0 %v992_v49 }
  0x4e   : > { %647 = vmatpush1.bf16.msra.mxu0 %v994_v50 }
  0x4f   : > { %648 = vmatprep.subr.bf16.mxu0 %v995_v51 }
  0x52   : > { %649 = vmatpush1.bf16.msra.mxu0 %v997_v52 }
  0x53   : > { %650 = vmatprep.subr.bf16.mxu0 %v998_v53 }
  0x56   : > { %651 = vmatpush1.bf16.msra.mxu0 %v1000_v54 }
  0x57   : > { %652 = vmatprep.subr.bf16.mxu0 %v1001_v55 }
  0x5a   : > { %653 = vmatpush1.bf16.msra.mxu0 %v1003_v56 }
  0x5b   : > { %654 = vmatprep.subr.bf16.mxu0 %v1004_v57 }
  0x5e   : > { %655 = vmatpush1.bf16.msra.mxu0 %v1006_v58 }
  0x5f   : > { %656 = vmatprep.subr.bf16.mxu0 %v1007_v59 }
  0x62   : > { %657 = vmatpush1.bf16.msra.mxu0 %v1009_v60 }
  0x63   : > { %658 = vmatprep.subr.bf16.mxu0 %v1010_v61 }
  0x66   : > { %659 = vmatpush1.bf16.msra.mxu0 %v1012_v62 }
  0x67   : > { %660 = vmatprep.subr.bf16.mxu0 %v1013_v63 }
  0x6a   : > { %661 = vmatpush1.bf16.msra.mxu0 %v1015_v0 }
  0x6d   : > { %663 = vmatmul.mubr.bf16.vlgmr.msra.gmra.mrb[0].mxu0 %v1016_v1 }
 0x140   : > { %v664_v9 = vpop.f32.mrb[0].mxu0 }
 0x141   : > { %v700_v10 = vadd.f32 %v693_v7, %v664_v9  ;;  %v666_v11 = vpop.f32.mrb[1].mxu0 }
 0x142   : > { %v701_v12 = vadd.f32 %v697_v8, %v666_v11  ;;  %v668_v13 = vpop.f32.mrb[2].mxu0  ;;  %724 = sbr.rel (!%p1114_p6) target bundleno = 337 (0x151), region = 82 }
 0x143   : > { %v702_v14 = vadd.f32 %v693_v7, %v668_v13  ;;  %v670_v15 = vpop.f32.mrb[3].mxu0 }
 0x144   : > { %v925_v16 = vpack.c.bf16 %v701_v12, %v700_v10  ;;  %v703_v17 = vadd.f32 %v697_v8, %v670_v15 }
 0x146   : > { %716 = vst [vmem:[%s392_s23] sm:$0xff] %v925_v16  ;;  %v926_v18 = vpack.c.bf16 %v703_v17, %v702_v14 }
 0x148   : > { %717 = vst [vmem:[%s392_s23 + $0x8] sm:$0xff] %v926_v18 }
 0x14d   : > { %v760_v19 = vld [vmem:[%s392_s23] sm:$0xff] }
 0x14e   : > { %761 = vst [vmem:[%s730_s26] sm:$0xff] %v760_v19 }
 0x14f   : > { %v762_v20 = vld [vmem:[%s392_s23 + $0x8] sm:$0xff] }
 0x150   : > { %763 = vst [vmem:[%s730_s26 + $0x10] sm:$0xff] %v762_v20 }
 0x151 PF: > { %s13_s16 = sadd.s32 1, %s1057_s16   ;;  %s1272_s12 = smov %s1045_s13 }
 0x152   : > { %p10_p12 = scmp.ge.s32.totalorder %s13_s16, 4   ;;  %s1273_s13 = smov %s1119_s22 }
 0x153   : > { %s1274_s14 = smov %s1053_s15  ;;  %s1275_s15 = smov %s1277_s17 }
 0x154   :  { %12 = sbr.rel (!%p10_p12) target bundleno = 3 (0x3), region = 157 }

// kernel: tbmodel_forward.38
= control target key start
LH: loop header
LB: loop body
LE: loop exit
PB: predicated region body
PF: predicated region fallthrough
CT: control target
= control target key end

     0   :  { %s2210_s0 = inlined_call_operand.vmem [shape: bf16[16,4608], index: 0, kind: input, shape index: {}]   ;;  %s2211_s1 = inlined_call_operand.vmem [shape: bf16[4608,512], index: 1, kind: input, shape index: {}]   ;;  %s2212_s2 = inlined_call_operand.vmem [shape: f32[1,512], index: 2, kind: input, shape index: {}]   ;;  %s2213_s3 = inlined_call_operand.vmem [shape: bf16[16,512], index: 3, kind: input, shape index: {}]   ;;  %s2214_s4 = inlined_call_operand.vmem [shape: bf16[16,512], index: 4, kind: output, shape index: {}]  }
   0x1   :  { %2217 = sst [smem:[#allocation10_spill]] %s2210_s0 }
   0x2   :  { %s1803_s15 = smov 0   ;;  %s1805_s16 = smov 0  }
   0x3   :  { %s1807_s17 = smov 0   ;;  %s1809_s18 = smov 0  }
   0x4   :  { %s1811_s19 = smov 0   ;;  %s1813_s20 = smov 0  }
   0x5   :  { %s1815_s21 = smov 0   ;;  %s1817_s22 = smov 0  }
   0x6   :  { %s1819_s23 = smov 0   ;;  %s1821_s24 = smov 0  }
   0x7   :  { %s1823_s25 = smov 0  }
   0x8 LB: > { %s1390_s26 = sadd.s32 4294967295, %s1775_s25   ;;  %s26_s27 = sadd.s32 1, %s1767_s23  ;;  %s1775_s25 = sphi %s1823_s25, %s14_s25   ;;  %s1771_s24 = sphi %s1821_s24, %s2238_s24   ;;  %s1767_s23 = sphi %s1819_s23, %s2237_s23   ;;  %s1763_s22 = sphi %s1817_s22, %s2236_s22   ;;  %s1759_s21 = sphi %s1815_s21, %s2235_s21   ;;  %s1755_s20 = sphi %s1813_s20, %s2234_s20   ;;  %s1751_s19 = sphi %s1811_s19, %s2233_s19   ;;  %s1747_s18 = sphi %s1809_s18, %s2232_s18   ;;  %s1743_s17 = sphi %s1807_s17, %s2231_s17   ;;  %s1739_s16 = sphi %s1805_s16, %s2230_s16   ;;  %s1735_s15 = sphi %s1803_s15, %s2229_s15  }
   0x9   : > { %p27_p0 = scmp.ge.s32.totalorder %s26_s27, 9  ;;  %s29_s28 = sadd.s32 1, %s1771_s24 }
   0xa   : > { %s42_s29 = sadd.s32 1, %s1755_s20  ;;  %p49_p1 = scmp.ne.s32.totalorder %s1755_s20, %s1751_s19 }
   0xb   : > { %s2240_s27 = smov (%p27_p0, %s26_s27), 0  ;;  %s2242_s28 = smov (!%p27_p0, %s29_s28), %s1771_s24 }
   0xc   : > { %2218 = sst [smem:[#allocation7_spill]] %s2240_s27  ;;  %s38_s30 = ssub.s32 %s1767_s23, %s2240_s27 }
   0xd   : > { %p50_p2 = scmp.eq.s32.totalorder %s1775_s25, 0  ;;  %p31_p3 = scmp.ge.s32.totalorder %s2242_s28, 2 }
   0xe   : > { %p40_p4 = scmp.eq.s32.totalorder %s38_s30, 0  ;;  %s70_s6 = sadd.s32 1, %s1747_s18 }
   0xf   : > { %p1872_p5 = por %p50_p2, %p49_p1  ;;  %s2244_s28 = smov (%p31_p3, %s2242_s28), 0 }
  0x10   : > { %2220 = sst [smem:[#allocation8_spill]] %s2244_s28  ;;  %s66_s8 = ssub.s32 %s1771_s24, %s2244_s28 }
  0x11   : > { %s1880_s7 = scalar_select %p40_p4, %s1755_s20, %s42_s29  }
  0x12   : > { %p77_p6 = scmp.ne.s32.totalorder %s1747_s18, %s1743_s17  ;;  %s67_s9 = sor.u32 %s66_s8, %s38_s30 }
  0x13   : > { %2221 = sst [smem:[#allocation9_spill]] %s1880_s7  ;;  %p122_p7 = scmp.eq.s32.totalorder %s66_s8, 0 }
  0x14   : > { %p68_p8 = scmp.eq.s32.totalorder %s67_s9, 0  ;;  %p1888_p9 = por %p77_p6, %p50_p2 }
  0x15   : > { %s124_s11 = sadd.s32 1, %s1739_s16  ;;  %p131_p10 = scmp.ne.s32.totalorder %s1739_s16, %s1735_s15 }
  0x16   : > { %s1896_s12 = scalar_select %p68_p8, %s1747_s18, %s70_s6  }
  0x17   : > { %s1899_s13 = scalar_select %p122_p7, %s1739_s16, %s124_s11  }
  0x18   : > { %p1903_p11 = por %p131_p10, %p50_p2  ;;  %p163_p12 = scmp.eq.s32.totalorder %s1390_s26, 17 }
  0x19   : > { %p1393_p0 = scmp.ge.s32.totalorder %s1775_s25, 18 }
  0x1a   : > { %p1907_p13 = por %p163_p12, %p131_p10 }
  0x1b   : > { %185 = sbr.rel (%p1393_p0) target bundleno = 92 (0x5c), region = 16 }
  0x22   : > { %188 = sbr.rel (!%p1872_p5) target bundleno = 46 (0x2e), region = 20  ;;  %s190_s30 = sand.u32 (%p1872_p5), 1, %s1755_s20  }
  0x23   : > { %s1488_s6 = sshll.u32 (%p1872_p5), %s1767_s23, 4  ;;  %s1394_s8 = sshll.u32 (%p1872_p5), %s190_s30, 5 }
  0x24   : > { %s2225_s0 = sld [smem:[#allocation10_spill]] (%p1872_p5)  ;;  %s192_s26 = scalar_lea.vmem (%p1872_p5), [#allocation3], %s1394_s8 }
  0x2a   : > { %s198_s28 = scalar_lea.vmem %s2225_s0, %s1488_s6 }
  0x2b   : > { %v211_v0 = vld [vmem:[%s198_s28] sm:$0xff]  ;;  %v213_v1 = vld [vmem:[%s198_s28 + $0x8] sm:$0xff]  ;;  %v215_v2 = vld [vmem:[%s198_s28 + $0x90] sm:$0xff] }
  0x2c   : > { %212 = vst [vmem:[%s192_s26] sm:$0xff] %v211_v0  ;;  %214 = vst [vmem:[%s192_s26 + $0x8] sm:$0xff] %v213_v1  ;;  %v217_v3 = vld [vmem:[%s198_s28 + $0x98] sm:$0xff] }
  0x2d   : > { %216 = vst [vmem:[%s192_s26 + $0x10] sm:$0xff] %v215_v2  ;;  %218 = vst [vmem:[%s192_s26 + $0x18] sm:$0xff] %v217_v3 }
  0x2e PF: > { %224 = sbr.rel (!%p1888_p9) target bundleno = 85 (0x55), region = 43  ;;  %s226_s5 = sand.u32 (%p1888_p9), 1, %s1747_s18  }
  0x2f   : > { %s1399_s30 = sshll.u32 (%p1888_p9), %s1771_s24, 1  ;;  %s1397_s9 = sshll.u32 (%p1888_p9), %s226_s5, 9 }
  0x30   : > { %s1489_s6 = sshll.u32 (%p1888_p9), %s1767_s23, 8  ;;  %s1932_s28 = scalar_lea.vmem (%p1888_p9), [#allocation4], %s1397_s9 }
  0x31   : > { %s232_s11 = sadd.s32 (%p1888_p9), %s1489_s6, %s1399_s30 }
  0x32   : > { %s1401_s0 = sshll.u32 (%p1888_p9), %s232_s11, 2 }
  0x33   : > { %s1927_s7 = scalar_lea.vmem (%p1888_p9), %s2211_s1, %s1401_s0 }
  0x34   : > { %v388_v4 = vld [vmem:[%s1927_s7] sm:$0xff] (%p1888_p9)  ;;  %v390_v5 = vld [vmem:[%s1927_s7 + $0x10] sm:$0xff] (%p1888_p9) }
  0x35   : > { %v392_v6 = vld [vmem:[%s1927_s7 + $0x20] sm:$0xff]  ;;  %389 = vst [vmem:[%s1932_s28] sm:$0xff] %v388_v4  ;;  %391 = vst [vmem:[%s1932_s28 + $0x8] sm:$0xff] %v390_v5  ;;  %v394_v7 = vld [vmem:[%s1927_s7 + $0x30] sm:$0xff] }
  0x36   : > { %393 = vst [vmem:[%s1932_s28 + $0x10] sm:$0xff] %v392_v6  ;;  %v396_v8 = vld [vmem:[%s1927_s7 + $0x40] sm:$0xff]  ;;  %v398_v9 = vld [vmem:[%s1927_s7 + $0x50] sm:$0xff]  ;;  %395 = vst [vmem:[%s1932_s28 + $0x18] sm:$0xff] %v394_v7 }
  0x37   : > { %397 = vst [vmem:[%s1932_s28 + $0x20] sm:$0xff] %v396_v8  ;;  %399 = vst [vmem:[%s1932_s28 + $0x28] sm:$0xff] %v398_v9  ;;  %v400_v10 = vld [vmem:[%s1927_s7 + $0x60] sm:$0xff]  ;;  %v402_v11 = vld [vmem:[%s1927_s7 + $0x70] sm:$0xff] }
  0x38   : > { %v404_v12 = vld [vmem:[%s1927_s7 + $0x80] sm:$0xff]  ;;  %401 = vst [vmem:[%s1932_s28 + $0x30] sm:$0xff] %v400_v10  ;;  %403 = vst [vmem:[%s1932_s28 + $0x38] sm:$0xff] %v402_v11  ;;  %v406_v13 = vld [vmem:[%s1927_s7 + $0x90] sm:$0xff] }
  0x39   : > { %405 = vst [vmem:[%s1932_s28 + $0x40] sm:$0xff] %v404_v12  ;;  %v408_v14 = vld [vmem:[%s1927_s7 + $0xa0] sm:$0xff]  ;;  %v410_v15 = vld [vmem:[%s1927_s7 + $0xb0] sm:$0xff]  ;;  %407 = vst [vmem:[%s1932_s28 + $0x48] sm:$0xff] %v406_v13 }
  0x3a   : > { %409 = vst [vmem:[%s1932_s28 + $0x50] sm:$0xff] %v408_v14  ;;  %411 = vst [vmem:[%s1932_s28 + $0x58] sm:$0xff] %v410_v15  ;;  %v412_v16 = vld [vmem:[%s1927_s7 + $0xc0] sm:$0xff]  ;;  %v414_v17 = vld [vmem:[%s1927_s7 + $0xd0] sm:$0xff] }
  0x3b   : > { %v416_v18 = vld [vmem:[%s1927_s7 + $0xe0] sm:$0xff]  ;;  %413 = vst [vmem:[%s1932_s28 + $0x60] sm:$0xff] %v412_v16  ;;  %415 = vst [vmem:[%s1932_s28 + $0x68] sm:$0xff] %v414_v17  ;;  %v418_v19 = vld [vmem:[%s1927_s7 + $0xf0] sm:$0xff] }
  0x3c   : > { %417 = vst [vmem:[%s1932_s28 + $0x70] sm:$0xff] %v416_v18  ;;  %v420_v20 = vld [vmem:[%s1927_s7 + $0x100] sm:$0xff]  ;;  %v422_v21 = vld [vmem:[%s1927_s7 + $0x110] sm:$0xff]  ;;  %419 = vst [vmem:[%s1932_s28 + $0x78] sm:$0xff] %v418_v19 }
  0x3d   : > { %421 = vst [vmem:[%s1932_s28 + $0x80] sm:$0xff] %v420_v20  ;;  %423 = vst [vmem:[%s1932_s28 + $0x88] sm:$0xff] %v422_v21  ;;  %v424_v22 = vld [vmem:[%s1927_s7 + $0x120] sm:$0xff]  ;;  %v426_v23 = vld [vmem:[%s1927_s7 + $0x130] sm:$0xff] }
  0x3e   : > { %v428_v24 = vld [vmem:[%s1927_s7 + $0x140] sm:$0xff]  ;;  %425 = vst [vmem:[%s1932_s28 + $0x90] sm:$0xff] %v424_v22  ;;  %427 = vst [vmem:[%s1932_s28 + $0x98] sm:$0xff] %v426_v23  ;;  %v430_v25 = vld [vmem:[%s1927_s7 + $0x150] sm:$0xff] }
  0x3f   : > { %429 = vst [vmem:[%s1932_s28 + $0xa0] sm:$0xff] %v428_v24  ;;  %v432_v26 = vld [vmem:[%s1927_s7 + $0x160] sm:$0xff]  ;;  %v434_v27 = vld [vmem:[%s1927_s7 + $0x170] sm:$0xff]  ;;  %431 = vst [vmem:[%s1932_s28 + $0xa8] sm:$0xff] %v430_v25 }
  0x40   : > { %433 = vst [vmem:[%s1932_s28 + $0xb0] sm:$0xff] %v432_v26  ;;  %435 = vst [vmem:[%s1932_s28 + $0xb8] sm:$0xff] %v434_v27  ;;  %v436_v28 = vld [vmem:[%s1927_s7 + $0x180] sm:$0xff]  ;;  %v438_v29 = vld [vmem:[%s1927_s7 + $0x190] sm:$0xff] }
  0x41   : > { %v440_v30 = vld [vmem:[%s1927_s7 + $0x1a0] sm:$0xff]  ;;  %437 = vst [vmem:[%s1932_s28 + $0xc0] sm:$0xff] %v436_v28  ;;  %439 = vst [vmem:[%s1932_s28 + $0xc8] sm:$0xff] %v438_v29  ;;  %v442_v31 = vld [vmem:[%s1927_s7 + $0x1b0] sm:$0xff] }
  0x42   : > { %441 = vst [vmem:[%s1932_s28 + $0xd0] sm:$0xff] %v440_v30  ;;  %v444_v32 = vld [vmem:[%s1927_s7 + $0x1c0] sm:$0xff]  ;;  %v446_v33 = vld [vmem:[%s1927_s7 + $0x1d0] sm:$0xff]  ;;  %443 = vst [vmem:[%s1932_s28 + $0xd8] sm:$0xff] %v442_v31 }
  0x43   : > { %445 = vst [vmem:[%s1932_s28 + $0xe0] sm:$0xff] %v444_v32  ;;  %447 = vst [vmem:[%s1932_s28 + $0xe8] sm:$0xff] %v446_v33  ;;  %v448_v34 = vld [vmem:[%s1927_s7 + $0x1e0] sm:$0xff]  ;;  %v450_v35 = vld [vmem:[%s1927_s7 + $0x1f0] sm:$0xff] }
  0x44   : > { %v452_v36 = vld [vmem:[%s1927_s7 + $0x200] sm:$0xff]  ;;  %449 = vst [vmem:[%s1932_s28 + $0xf0] sm:$0xff] %v448_v34  ;;  %451 = vst [vmem:[%s1932_s28 + $0xf8] sm:$0xff] %v450_v35  ;;  %v454_v37 = vld [vmem:[%s1927_s7 + $0x210] sm:$0xff] }
  0x45   : > { %453 = vst [vmem:[%s1932_s28 + $0x100] sm:$0xff] %v452_v36  ;;  %v456_v38 = vld [vmem:[%s1927_s7 + $0x220] sm:$0xff]  ;;  %v458_v39 = vld [vmem:[%s1927_s7 + $0x230] sm:$0xff]  ;;  %455 = vst [vmem:[%s1932_s28 + $0x108] sm:$0xff] %v454_v37 }
  0x46   : > { %457 = vst [vmem:[%s1932_s28 + $0x110] sm:$0xff] %v456_v38  ;;  %459 = vst [vmem:[%s1932_s28 + $0x118] sm:$0xff] %v458_v39  ;;  %v460_v40 = vld [vmem:[%s1927_s7 + $0x240] sm:$0xff]  ;;  %v462_v41 = vld [vmem:[%s1927_s7 + $0x250] sm:$0xff] }
  0x47   : > { %v464_v42 = vld [vmem:[%s1927_s7 + $0x260] sm:$0xff]  ;;  %461 = vst [vmem:[%s1932_s28 + $0x120] sm:$0xff] %v460_v40  ;;  %463 = vst [vmem:[%s1932_s28 + $0x128] sm:$0xff] %v462_v41  ;;  %v466_v43 = vld [vmem:[%s1927_s7 + $0x270] sm:$0xff] }
  0x48   : > { %465 = vst [vmem:[%s1932_s28 + $0x130] sm:$0xff] %v464_v42  ;;  %v468_v44 = vld [vmem:[%s1927_s7 + $0x280] sm:$0xff]  ;;  %v470_v45 = vld [vmem:[%s1927_s7 + $0x290] sm:$0xff]  ;;  %467 = vst [vmem:[%s1932_s28 + $0x138] sm:$0xff] %v466_v43 }
  0x49   : > { %469 = vst [vmem:[%s1932_s28 + $0x140] sm:$0xff] %v468_v44  ;;  %471 = vst [vmem:[%s1932_s28 + $0x148] sm:$0xff] %v470_v45  ;;  %v472_v46 = vld [vmem:[%s1927_s7 + $0x2a0] sm:$0xff]  ;;  %v474_v47 = vld [vmem:[%s1927_s7 + $0x2b0] sm:$0xff] }
  0x4a   : > { %v476_v48 = vld [vmem:[%s1927_s7 + $0x2c0] sm:$0xff]  ;;  %473 = vst [vmem:[%s1932_s28 + $0x150] sm:$0xff] %v472_v46  ;;  %475 = vst [vmem:[%s1932_s28 + $0x158] sm:$0xff] %v474_v47  ;;  %v478_v49 = vld [vmem:[%s1927_s7 + $0x2d0] sm:$0xff] }
  0x4b   : > { %477 = vst [vmem:[%s1932_s28 + $0x160] sm:$0xff] %v476_v48  ;;  %v480_v50 = vld [vmem:[%s1927_s7 + $0x2e0] sm:$0xff]  ;;  %v482_v51 = vld [vmem:[%s1927_s7 + $0x2f0] sm:$0xff]  ;;  %479 = vst [vmem:[%s1932_s28 + $0x168] sm:$0xff] %v478_v49 }
  0x4c   : > { %481 = vst [vmem:[%s1932_s28 + $0x170] sm:$0xff] %v480_v50  ;;  %483 = vst [vmem:[%s1932_s28 + $0x178] sm:$0xff] %v482_v51  ;;  %v484_v52 = vld [vmem:[%s1927_s7 + $0x300] sm:$0xff]  ;;  %v486_v53 = vld [vmem:[%s1927_s7 + $0x310] sm:$0xff] }
  0x4d   : > { %v488_v54 = vld [vmem:[%s1927_s7 + $0x320] sm:$0xff]  ;;  %485 = vst [vmem:[%s1932_s28 + $0x180] sm:$0xff] %v484_v52  ;;  %487 = vst [vmem:[%s1932_s28 + $0x188] sm:$0xff] %v486_v53  ;;  %v490_v55 = vld [vmem:[%s1927_s7 + $0x330] sm:$0xff] }
  0x4e   : > { %489 = vst [vmem:[%s1932_s28 + $0x190] sm:$0xff] %v488_v54  ;;  %v492_v56 = vld [vmem:[%s1927_s7 + $0x340] sm:$0xff]  ;;  %v494_v57 = vld [vmem:[%s1927_s7 + $0x350] sm:$0xff]  ;;  %491 = vst [vmem:[%s1932_s28 + $0x198] sm:$0xff] %v490_v55 }
  0x4f   : > { %493 = vst [vmem:[%s1932_s28 + $0x1a0] sm:$0xff] %v492_v56  ;;  %495 = vst [vmem:[%s1932_s28 + $0x1a8] sm:$0xff] %v494_v57  ;;  %v496_v58 = vld [vmem:[%s1927_s7 + $0x360] sm:$0xff]  ;;  %v498_v59 = vld [vmem:[%s1927_s7 + $0x370] sm:$0xff] }
  0x50   : > { %v500_v60 = vld [vmem:[%s1927_s7 + $0x380] sm:$0xff]  ;;  %497 = vst [vmem:[%s1932_s28 + $0x1b0] sm:$0xff] %v496_v58  ;;  %499 = vst [vmem:[%s1932_s28 + $0x1b8] sm:$0xff] %v498_v59  ;;  %v502_v61 = vld [vmem:[%s1927_s7 + $0x390] sm:$0xff] }
  0x51   : > { %501 = vst [vmem:[%s1932_s28 + $0x1c0] sm:$0xff] %v500_v60  ;;  %v504_v62 = vld [vmem:[%s1927_s7 + $0x3a0] sm:$0xff]  ;;  %v506_v63 = vld [vmem:[%s1927_s7 + $0x3b0] sm:$0xff]  ;;  %503 = vst [vmem:[%s1932_s28 + $0x1c8] sm:$0xff] %v502_v61 }
  0x52   : > { %505 = vst [vmem:[%s1932_s28 + $0x1d0] sm:$0xff] %v504_v62  ;;  %507 = vst [vmem:[%s1932_s28 + $0x1d8] sm:$0xff] %v506_v63  ;;  %v508_v0 = vld [vmem:[%s1927_s7 + $0x3c0] sm:$0xff]  ;;  %v510_v1 = vld [vmem:[%s1927_s7 + $0x3d0] sm:$0xff] }
  0x53   : > { %v512_v2 = vld [vmem:[%s1927_s7 + $0x3e0] sm:$0xff]  ;;  %509 = vst [vmem:[%s1932_s28 + $0x1e0] sm:$0xff] %v508_v0  ;;  %511 = vst [vmem:[%s1932_s28 + $0x1e8] sm:$0xff] %v510_v1  ;;  %v514_v3 = vld [vmem:[%s1927_s7 + $0x3f0] sm:$0xff] }
  0x54   : > { %513 = vst [vmem:[%s1932_s28 + $0x1f0] sm:$0xff] %v512_v2  ;;  %515 = vst [vmem:[%s1932_s28 + $0x1f8] sm:$0xff] %v514_v3 }
  0x55 PF: > { %529 = sbr.rel (!%p1903_p11) target bundleno = 92 (0x5c), region = 85  ;;  %s531_s0 = sand.u32 (%p1903_p11), 1, %s1739_s16  }
  0x56   : > { %s1490_s27 = sshll.u32 (%p1903_p11), %s1771_s24, 3  ;;  %s1402_s10 = sshll.u32 (%p1903_p11), %s531_s0, 4 }
  0x57   : > { %s539_s30 = scalar_lea.vmem (%p1903_p11), %s2213_s3, %s1490_s27  ;;  %s533_s9 = scalar_lea.vmem (%p1903_p11), [#allocation5], %s1402_s10 }
  0x58   : > { %v569_v4 = vld [vmem:[%s539_s30] sm:$0xff] (%p1903_p11)  ;;  %v571_v5 = vld [vmem:[%s539_s30 + $0x10] sm:$0xff] (%p1903_p11) }
  0x59   : > { %570 = vst [vmem:[%s533_s9] sm:$0xff] (%p1903_p11), %v569_v4  ;;  %572 = vst [vmem:[%s533_s9 + $0x8] sm:$0xff] (%p1903_p11), %v571_v5 }
  0x5c PF: > { %p1405_p1 = scmp.ge.s32.totalorder %s1775_s25, 1  ;;  %p577_p2 = scmp.lt.s32.totalorder %s1775_s25, 19 }
  0x5e   : > { %p578_p3 = pnand %p1405_p1, %p577_p2 }
  0x5f   : > { %s584_s7 = sand.u32 (!%p578_p3), 1, %s1751_s19   ;;  %s591_s14 = sand.u32 (!%p578_p3), 1, %s1743_s17  }
  0x60   : > { %581 = sbr.rel (%p578_p3) target bundleno = 420 (0x1a4), region = 123  ;;  %s1406_s6 = sshll.u32 (!%p578_p3), %s584_s7, 5 }
  0x61   : > { %s1407_s11 = sshll.u32 (!%p578_p3), %s591_s14, 9  ;;  %s598_s8 = sand.u32 (!%p578_p3), 1, %s1735_s15  }
  0x62   : > { %s1410_s28 = sshll.u32 (!%p578_p3), %s1763_s22, 1  ;;  %s2072_s0 = sshll.u32 (!%p578_p3), %s598_s8, 4 }
  0x63   : > { %p639_p4 = scmp.lt.s32.totalorder (!%p578_p3), %s1410_s28, 3  ;;  %s2080_s5 = scalar_lea.vmem (!%p578_p3), [#allocation3], %s1406_s6 }
  0x64   : > { %s2082_s19 = scalar_lea.vmem (!%p578_p3), [#allocation4], %s1407_s11  ;;  %s600_s17 = scalar_lea.vmem (!%p578_p3), [#allocation5], %s2072_s0 }
  0x65   : > { %s2086_s30 = scalar_lea.vmem (!%p578_p3), [#allocation6], %s2072_s0  ;;  %p1411_p5 = scmp.ne.s32.totalorder (!%p578_p3), %s1759_s21, 0 }
  0x67   : > { %s2246_s28 = smov (!%p639_p4, %s1410_s28), 3  ;;  %650 = sbr.rel (%p1411_p5) target bundleno = 110 (0x6e), region = 139 }
  0x68   : > { %s641_s26 = scalar_lea.vmem %s2212_s2, %s2246_s28  ;;  %v1777_v6 = vmov (!%p1411_p5), 0.0  }
  0x69   : > { %651 = vst [vmem:[#allocation2] sm:$0xff] (!%p1411_p5), %v1777_v6  ;;  %652 = vst [vmem:[#allocation2 + $0x8] sm:$0xff] (!%p1411_p5), %v1777_v6 }
  0x6a   : > { %653 = vst [vmem:[#allocation2 + $0x10] sm:$0xff] (!%p1411_p5), %v1777_v6  ;;  %654 = vst [vmem:[#allocation2 + $0x18] sm:$0xff] (!%p1411_p5), %v1777_v6 }
  0x6e PF: > { %v1587_v7 = vld [vmem:[%s2082_s19 + $0x4] ss:$8 sps:$4 sm:$0xff]   ;;  %v1591_v9 = vld [vmem:[%s2082_s19] ss:$8 sps:$4 sm:$0xff]   ;;  %v1593_v11 = vld [vmem:[%s2082_s19 + $0x14] ss:$8 sps:$4 sm:$0xff]  }
  0x6f   : > { %v1589_v8 = vld [vmem:[%s2082_s19 + $0x104] ss:$8 sps:$4 sm:$0xff]   ;;  %1067 = vmatprep.subr.bf16.mxu1 %v1587_v7  ;;  %v1592_v10 = vld [vmem:[%s2082_s19 + $0x100] ss:$8 sps:$4 sm:$0xff]   ;;  %v1595_v12 = vld [vmem:[%s2082_s19 + $0x114] ss:$8 sps:$4 sm:$0xff]  }
  0x70   : > { %1110 = vmatprep.subr.bf16.mxu0 %v1589_v8  ;;  %1068 = vmatpush1.bf16.msra.mxu1 %v1591_v9  ;;  %v1597_v13 = vld [vmem:[%s2082_s19 + $0x10] ss:$8 sps:$4 sm:$0xff]   ;;  %v1599_v15 = vld [vmem:[%s2082_s19 + $0x24] ss:$8 sps:$4 sm:$0xff]   ;;  %v1603_v17 = vld [vmem:[%s2082_s19 + $0x20] ss:$8 sps:$4 sm:$0xff]  }
  0x71   : > { %1111 = vmatpush1.bf16.msra.mxu0 %v1592_v10  ;;  %1069 = vmatprep.subr.bf16.mxu1 %v1593_v11  ;;  %v1598_v14 = vld [vmem:[%s2082_s19 + $0x110] ss:$8 sps:$4 sm:$0xff]   ;;  %v1601_v16 = vld [vmem:[%s2082_s19 + $0x124] ss:$8 sps:$4 sm:$0xff]   ;;  %v1604_v18 = vld [vmem:[%s2082_s19 + $0x120] ss:$8 sps:$4 sm:$0xff]  }
  0x72   : > { %1112 = vmatprep.subr.bf16.mxu0 %v1595_v12  ;;  %v1605_v19 = vld [vmem:[%s2082_s19 + $0x34] ss:$8 sps:$4 sm:$0xff]   ;;  %v1609_v21 = vld [vmem:[%s2082_s19 + $0x30] ss:$8 sps:$4 sm:$0xff]   ;;  %v1611_v23 = vld [vmem:[%s2082_s19 + $0x44] ss:$8 sps:$4 sm:$0xff]  }
  0x73   : > { %v1607_v20 = vld [vmem:[%s2082_s19 + $0x134] ss:$8 sps:$4 sm:$0xff]   ;;  %v1610_v22 = vld [vmem:[%s2082_s19 + $0x130] ss:$8 sps:$4 sm:$0xff]   ;;  %v1613_v24 = vld [vmem:[%s2082_s19 + $0x144] ss:$8 sps:$4 sm:$0xff]  }
  0x74   : > { %1070 = vmatpush1.bf16.msra.mxu1 %v1597_v13  ;;  %v1615_v25 = vld [vmem:[%s2082_s19 + $0x40] ss:$8 sps:$4 sm:$0xff]   ;;  %v1617_v27 = vld [vmem:[%s2082_s19 + $0x54] ss:$8 sps:$4 sm:$0xff]   ;;  %v1621_v29 = vld [vmem:[%s2082_s19 + $0x50] ss:$8 sps:$4 sm:$0xff]  }
  0x75   : > { %1113 = vmatpush1.bf16.msra.mxu0 %v1598_v14  ;;  %1071 = vmatprep.subr.bf16.mxu1 %v1599_v15  ;;  %v1616_v26 = vld [vmem:[%s2082_s19 + $0x140] ss:$8 sps:$4 sm:$0xff]   ;;  %v1619_v28 = vld [vmem:[%s2082_s19 + $0x154] ss:$8 sps:$4 sm:$0xff]   ;;  %v1622_v30 = vld [vmem:[%s2082_s19 + $0x150] ss:$8 sps:$4 sm:$0xff]  }
  0x76   : > { %1114 = vmatprep.subr.bf16.mxu0 %v1601_v16  ;;  %v1623_v31 = vld [vmem:[%s2082_s19 + $0x64] ss:$8 sps:$4 sm:$0xff]   ;;  %v1627_v33 = vld [vmem:[%s2082_s19 + $0x60] ss:$8 sps:$4 sm:$0xff]   ;;  %v1629_v35 = vld [vmem:[%s2082_s19 + $0x74] ss:$8 sps:$4 sm:$0xff]  }
  0x77   : > { %v1625_v32 = vld [vmem:[%s2082_s19 + $0x164] ss:$8 sps:$4 sm:$0xff]   ;;  %v1628_v34 = vld [vmem:[%s2082_s19 + $0x160] ss:$8 sps:$4 sm:$0xff]   ;;  %v1631_v36 = vld [vmem:[%s2082_s19 + $0x174] ss:$8 sps:$4 sm:$0xff]  }
  0x78   : > { %1072 = vmatpush1.bf16.msra.mxu1 %v1603_v17  ;;  %v1633_v37 = vld [vmem:[%s2082_s19 + $0x70] ss:$8 sps:$4 sm:$0xff]   ;;  %v1635_v39 = vld [vmem:[%s2082_s19 + $0x84] ss:$8 sps:$4 sm:$0xff]   ;;  %v1639_v41 = vld [vmem:[%s2082_s19 + $0x80] ss:$8 sps:$4 sm:$0xff]  }
  0x79   : > { %1115 = vmatpush1.bf16.msra.mxu0 %v1604_v18  ;;  %1073 = vmatprep.subr.bf16.mxu1 %v1605_v19  ;;  %v1634_v38 = vld [vmem:[%s2082_s19 + $0x170] ss:$8 sps:$4 sm:$0xff]   ;;  %v1637_v40 = vld [vmem:[%s2082_s19 + $0x184] ss:$8 sps:$4 sm:$0xff]   ;;  %v1640_v42 = vld [vmem:[%s2082_s19 + $0x180] ss:$8 sps:$4 sm:$0xff]  }
  0x7a   : > { %1116 = vmatprep.subr.bf16.mxu0 %v1607_v20  ;;  %v1641_v43 = vld [vmem:[%s2082_s19 + $0x94] ss:$8 sps:$4 sm:$0xff]   ;;  %v1645_v45 = vld [vmem:[%s2082_s19 + $0x90] ss:$8 sps:$4 sm:$0xff]   ;;  %v1647_v47 = vld [vmem:[%s2082_s19 + $0xa4] ss:$8 sps:$4 sm:$0xff]  }
  0x7b   : > { %v1643_v44 = vld [vmem:[%s2082_s19 + $0x194] ss:$8 sps:$4 sm:$0xff]   ;;  %v1646_v46 = vld [vmem:[%s2082_s19 + $0x190] ss:$8 sps:$4 sm:$0xff]   ;;  %v1649_v48 = vld [vmem:[%s2082_s19 + $0x1a4] ss:$8 sps:$4 sm:$0xff]  }
  0x7c   : > { %1074 = vmatpush1.bf16.msra.mxu1 %v1609_v21  ;;  %v1651_v49 = vld [vmem:[%s2082_s19 + $0xa0] ss:$8 sps:$4 sm:$0xff]   ;;  %v1653_v51 = vld [vmem:[%s2082_s19 + $0xb4] ss:$8 sps:$4 sm:$0xff]   ;;  %v1657_v53 = vld [vmem:[%s2082_s19 + $0xb0] ss:$8 sps:$4 sm:$0xff]  }
  0x7d   : > { %1117 = vmatpush1.bf16.msra.mxu0 %v1610_v22  ;;  %1075 = vmatprep.subr.bf16.mxu1 %v1611_v23  ;;  %v1652_v50 = vld [vmem:[%s2082_s19 + $0x1a0] ss:$8 sps:$4 sm:$0xff]   ;;  %v1655_v52 = vld [vmem:[%s2082_s19 + $0x1b4] ss:$8 sps:$4 sm:$0xff]   ;;  %v1658_v55 = vld [vmem:[%s2082_s19 + $0x1b0] ss:$8 sps:$4 sm:$0xff]  }
  0x7e   : > { %1118 = vmatprep.subr.bf16.mxu0 %v1613_v24  ;;  %v1685_v54 = vld [vmem:[%s2080_s5 + $0x4] ss:$16 sps:$4 sm:$0xff]   ;;  %v1688_v58 = vld [vmem:[%s2080_s5 + $0xc] ss:$16 sps:$4 sm:$0xff]   ;;  %v1663_v59 = vld [vmem:[%s2082_s19 + $0xc0] ss:$8 sps:$4 sm:$0xff]  }
  0x7f   : > { %v1659_v56 = vld [vmem:[%s2082_s19 + $0xc4] ss:$8 sps:$4 sm:$0xff]   ;;  %1099 = vmatprep.mubr.bf16.mxu1 %v1685_v54  ;;  %1142 = vmatprep.mubr.bf16.mxu0 %v1688_v58  ;;  %v1664_v60 = vld [vmem:[%s2082_s19 + $0x1c0] ss:$8 sps:$4 sm:$0xff]   ;;  %v1665_v61 = vld [vmem:[%s2082_s19 + $0xd4] ss:$8 sps:$4 sm:$0xff]  }
  0x80   : > { %1076 = vmatpush1.bf16.msra.mxu1 %v1615_v25  ;;  %v1661_v57 = vld [vmem:[%s2082_s19 + $0x1c4] ss:$8 sps:$4 sm:$0xff]   ;;  %v1667_v62 = vld [vmem:[%s2082_s19 + $0x1d4] ss:$8 sps:$4 sm:$0xff]   ;;  %v1669_v63 = vld [vmem:[%s2082_s19 + $0xd0] ss:$8 sps:$4 sm:$0xff]  }
  0x81   : > { %1119 = vmatpush1.bf16.msra.mxu0 %v1616_v26  ;;  %1077 = vmatprep.subr.bf16.mxu1 %v1617_v27  ;;  %v1670_v0 = vld [vmem:[%s2082_s19 + $0x1d0] ss:$8 sps:$4 sm:$0xff]   ;;  %v1671_v1 = vld [vmem:[%s2082_s19 + $0xe4] ss:$8 sps:$4 sm:$0xff]   ;;  %v1675_v3 = vld [vmem:[%s2082_s19 + $0xe0] ss:$8 sps:$4 sm:$0xff]  }
  0x82   : > { %1120 = vmatprep.subr.bf16.mxu0 %v1619_v28  ;;  %v1673_v2 = vld [vmem:[%s2082_s19 + $0x1e4] ss:$8 sps:$4 sm:$0xff]   ;;  %v1676_v4 = vld [vmem:[%s2082_s19 + $0x1e0] ss:$8 sps:$4 sm:$0xff]   ;;  %v1677_v5 = vld [vmem:[%s2082_s19 + $0xf4] ss:$8 sps:$4 sm:$0xff]  }
  0x83   : > { %v1679_v6 = vld [vmem:[%s2082_s19 + $0x1f4] ss:$8 sps:$4 sm:$0xff]   ;;  %v1681_v7 = vld [vmem:[%s2082_s19 + $0xf0] ss:$8 sps:$4 sm:$0xff]   ;;  %v655_v12 = vld [vmem:[#allocation2] sm:$0xff]  ;;  %p1480_p6 = scmp.ne.s32.totalorder %s1759_s21, 8 }
  0x84   : > { %1078 = vmatpush1.bf16.msra.mxu1 %v1621_v29  ;;  %v1682_v8 = vld [vmem:[%s2082_s19 + $0x1f0] ss:$8 sps:$4 sm:$0xff]   ;;  %v656_v16 = vld [vmem:[#allocation2 + $0x8] sm:$0xff] }
  0x85   : > { %1121 = vmatpush1.bf16.msra.mxu0 %v1622_v30  ;;  %1079 = vmatprep.subr.bf16.mxu1 %v1623_v31  ;;  %v1683_v9 = vld [vmem:[%s2080_s5] ss:$16 sps:$4 sm:$0xff]   ;;  %v1686_v10 = vld [vmem:[%s2080_s5 + $0x8] ss:$16 sps:$4 sm:$0xff]   ;;  %v1171_v31 = vlaneseq (!%p1480_p6) }
  0x86   : > { %1122 = vmatprep.subr.bf16.mxu0 %v1625_v32  ;;  %v657_v20 = vld [vmem:[#allocation2 + $0x10] sm:$0xff]  ;;  %v658_v25 = vld [vmem:[#allocation2 + $0x18] sm:$0xff] }
  0x87   : > { %v1172_v32 = vshrl.u32 (!%p1480_p6), %v1171_v31, 7 }
  0x88   : > { %1080 = vmatpush1.bf16.msra.mxu1 %v1627_v33  ;;  %v1185_v33 = vld [vmem:[%s600_s17] sm:$0xff] (!%p1480_p6) }
  0x89   : > { %1123 = vmatpush1.bf16.msra.mxu0 %v1628_v34  ;;  %1081 = vmatprep.subr.bf16.mxu1 %v1629_v35  ;;  %v1169_v34 = vld [vmem:[%s641_s26] sm:$0x3] (!%p1480_p6)  ;;  %v1186_v35 = vld [vmem:[%s600_s17 + $0x8] sm:$0xff] (!%p1480_p6) }
  0x8a   : > { %1124 = vmatprep.subr.bf16.mxu0 %v1631_v36 }
  0x8c   : > { %1082 = vmatpush1.bf16.msra.mxu1 %v1633_v37  ;;  %v1173_v37 = vsub.s32 (!%p1480_p6), 0, %v1172_v32 }
  0x8d   : > { %1125 = vmatpush1.bf16.msra.mxu0 %v1634_v38  ;;  %1083 = vmatprep.subr.bf16.mxu1 %v1635_v39  ;;  %v1177_v38 = vsub.s32 (!%p1480_p6), 1, %v1172_v32 }
  0x8e   : > { %1126 = vmatprep.subr.bf16.mxu0 %v1637_v40  ;;  %v1187_v40 = vunpack.c.l.bf16 (!%p1480_p6), %v1185_v33 }
  0x90   : > { %1084 = vmatpush1.bf16.msra.mxu1 %v1639_v41  ;;  %v1188_v41 = vunpack.c.h.bf16 (!%p1480_p6), %v1185_v33 }
  0x91   : > { %1127 = vmatpush1.bf16.msra.mxu0 %v1640_v42  ;;  %1085 = vmatprep.subr.bf16.mxu1 %v1641_v43 }
  0x92   : > { %1128 = vmatprep.subr.bf16.mxu0 %v1643_v44  ;;  %v1174_v44 = vrot.slane (!%p1480_p6), %v1169_v34, %v1173_v37 }
  0x94   : > { %1086 = vmatpush1.bf16.msra.mxu1 %v1645_v45  ;;  %v1178_v45 = vrot.slane (!%p1480_p6), %v1169_v34, %v1177_v38 }
  0x95   : > { %1129 = vmatpush1.bf16.msra.mxu0 %v1646_v46  ;;  %1087 = vmatprep.subr.bf16.mxu1 %v1647_v47  ;;  %v1189_v46 = vunpack.c.l.bf16 (!%p1480_p6), %v1186_v35  ;;  %v1190_v47 = vunpack.c.h.bf16 (!%p1480_p6), %v1186_v35 }
  0x96   : > { %1130 = vmatprep.subr.bf16.mxu0 %v1649_v48 }
  0x98   : > { %1088 = vmatpush1.bf16.msra.mxu1 %v1651_v49 }
  0x99   : > { %1131 = vmatpush1.bf16.msra.mxu0 %v1652_v50  ;;  %1089 = vmatprep.subr.bf16.mxu1 %v1653_v51 }
  0x9a   : > { %1132 = vmatprep.subr.bf16.mxu0 %v1655_v52 }
  0x9c   : > { %1090 = vmatpush1.bf16.msra.mxu1 %v1657_v53 }
  0x9d   : > { %1133 = vmatpush1.bf16.msra.mxu0 %v1658_v55  ;;  %1091 = vmatprep.subr.bf16.mxu1 %v1659_v56 }
  0x9e   : > { %1134 = vmatprep.subr.bf16.mxu0 %v1661_v57 }
  0xa0   : > { %1092 = vmatpush1.bf16.msra.mxu1 %v1663_v59 }
  0xa1   : > { %1135 = vmatpush1.bf16.msra.mxu0 %v1664_v60  ;;  %1093 = vmatprep.subr.bf16.mxu1 %v1665_v61 }
  0xa2   : > { %1136 = vmatprep.subr.bf16.mxu0 %v1667_v62 }
  0xa4   : > { %1094 = vmatpush1.bf16.msra.mxu1 %v1669_v63 }
  0xa5   : > { %1137 = vmatpush1.bf16.msra.mxu0 %v1670_v0  ;;  %1095 = vmatprep.subr.bf16.mxu1 %v1671_v1 }
  0xa6   : > { %1138 = vmatprep.subr.bf16.mxu0 %v1673_v2 }
  0xa8   : > { %1096 = vmatpush1.bf16.msra.mxu1 %v1675_v3 }
  0xa9   : > { %1139 = vmatpush1.bf16.msra.mxu0 %v1676_v4  ;;  %1097 = vmatprep.subr.bf16.mxu1 %v1677_v5 }
  0xaa   : > { %1140 = vmatprep.subr.bf16.mxu0 %v1679_v6 }
  0xac   : > { %1098 = vmatpush1.bf16.msra.mxu1 %v1681_v7 }
  0xad   : > { %1141 = vmatpush1.bf16.msra.mxu0 %v1682_v8 }
  0xaf   : > { %1100 = vmatmul.mubr.bf16.vlgmr.msra.gmra.mrb[0].mxu1 %v1683_v9 }
  0xb0   : > { %1143 = vmatmul.mubr.bf16.vlgmr.msra.gmra.mrb[0].mxu0 %v1686_v10 }
 0x182   : > { %v1101_v11 = vpop.f32.mrb[0].mxu1 }
 0x183   : > { %v1144_v13 = vpop.f32.mrb[0].mxu0  ;;  %v1103_v15 = vpop.f32.mrb[1].mxu1 }
 0x184   : > { %v1145_v14 = vadd.f32 %v1144_v13, %v1101_v11  ;;  %v1146_v17 = vpop.f32.mrb[1].mxu0  ;;  %v1105_v19 = vpop.f32.mrb[2].mxu1 }
 0x185   : > { %v1147_v18 = vadd.f32 %v1146_v17, %v1103_v15  ;;  %v1148_v21 = vpop.f32.mrb[2].mxu0  ;;  %v1107_v24 = vpop.f32.mrb[3].mxu1  ;;  %1164 = sbr.rel (%p1480_p6) target bundleno = 412 (0x19c), region = 143 }
 0x186   : > { %v1153_v22 = vadd.f32 %v1145_v14, %v655_v12  ;;  %v1149_v23 = vadd.f32 %v1148_v21, %v1105_v19  ;;  %v1150_v26 = vpop.f32.mrb[3].mxu0 }
 0x187   : > { %v1154_v27 = vadd.f32 %v1147_v18, %v656_v16  ;;  %v1151_v28 = vadd.f32 %v1150_v26, %v1107_v24 }
 0x188   : > { %1157 = vst [vmem:[#allocation2] sm:$0xff] %v1153_v22  ;;  %v1155_v29 = vadd.f32 %v1149_v23, %v657_v20 }
 0x189   : > { %1158 = vst [vmem:[#allocation2 + $0x8] sm:$0xff] %v1154_v27  ;;  %v1156_v30 = vadd.f32 %v1151_v28, %v658_v25 }
 0x18a   : > { %1159 = vst [vmem:[#allocation2 + $0x10] sm:$0xff] %v1155_v29 }
 0x18b   : > { %1160 = vst [vmem:[#allocation2 + $0x18] sm:$0xff] %v1156_v30 }
 0x18f   : > { %v1165_v36 = vld [vmem:[#allocation2] sm:$0xff] }
 0x190   : > { %v1166_v39 = vld [vmem:[#allocation2 + $0x8] sm:$0xff]  ;;  %v1181_v48 = vadd.f32 %v1174_v44, %v1165_v36 }
 0x191   : > { %v1167_v42 = vld [vmem:[#allocation2 + $0x10] sm:$0xff]  ;;  %v1182_v49 = vadd.f32 %v1178_v45, %v1166_v39 }
 0x192   : > { %v1168_v43 = vld [vmem:[#allocation2 + $0x18] sm:$0xff]  ;;  %v1183_v50 = vadd.f32 %v1174_v44, %v1167_v42  ;;  %v1191_v52 = vadd.f32 %v1187_v40, %v1181_v48 }
 0x193   : > { %v1184_v51 = vadd.f32 %v1178_v45, %v1168_v43  ;;  %v1192_v53 = vadd.f32 %v1188_v41, %v1182_v49 }
 0x194   : > { %v1193_v54 = vadd.f32 %v1189_v46, %v1183_v50  ;;  %v1195_v56 = vmax.f32 %v1191_v52, 0.0 }
 0x195   : > { %v1194_v55 = vadd.f32 %v1190_v47, %v1184_v51  ;;  %v1196_v57 = vmax.f32 %v1192_v53, 0.0 }
 0x196   : > { %v1197_v58 = vmax.f32 %v1193_v54, 0.0 }
 0x197   : > { %v1198_v59 = vmax.f32 %v1194_v55, 0.0  ;;  %v1491_v60 = vpack.c.bf16 %v1196_v57, %v1195_v56 }
 0x199   : > { %v1492_v61 = vpack.c.bf16 %v1198_v59, %v1197_v58  ;;  %1211 = vst [vmem:[%s2086_s30] sm:$0xff] %v1491_v60 }
 0x19b   : > { %1212 = vst [vmem:[%s2086_s30 + $0x8] sm:$0xff] %v1492_v61 }
 0x19c PF: > { %1219 = sbr.rel (!%p1907_p13) target bundleno = 420 (0x1a4), region = 147  ;;  %s1493_s21 = sshll.u32 (%p1907_p13), %s1763_s22, 3 }
 0x19d   : > { %s1225_s6 = scalar_lea.vmem (%p1907_p13), %s2214_s4, %s1493_s21 }
 0x1a0   : > { %v1255_v62 = vld [vmem:[%s2086_s30] sm:$0xff] (%p1907_p13) }
 0x1a1   : > { %1256 = vst [vmem:[%s1225_s6] sm:$0xff] (%p1907_p13), %v1255_v62 }
 0x1a2   : > { %v1257_v63 = vld [vmem:[%s2086_s30 + $0x8] sm:$0xff] (%p1907_p13) }
 0x1a3   : > { %1258 = vst [vmem:[%s1225_s6 + $0x10] sm:$0xff] %v1257_v63 }
 0x1a4 PF: > { %s14_s25 = sadd.s32 1, %s1775_s25   ;;  %s2226_s29 = sld [smem:[#allocation9_spill]] }
 0x1a5   : > { %p11_p7 = scmp.ge.s32.totalorder %s14_s25, 20   ;;  %s2227_s11 = sld [smem:[#allocation7_spill]] }
 0x1a6   : > { %s2228_s8 = sld [smem:[#allocation8_spill]]  ;;  %s2229_s15 = smov %s1739_s16 }
 0x1a7   : > { %s2230_s16 = smov %s1899_s13  ;;  %s2231_s17 = smov %s1747_s18 }
 0x1a8   : > { %s2232_s18 = smov %s1896_s12  ;;  %s2233_s19 = smov %s1755_s20 }
 0x1a9   : > { %s2235_s21 = smov %s1767_s23  ;;  %s2236_s22 = smov %s1771_s24 }
 0x1aa   : > { %s2234_s20 = smov %s2226_s29  ;;  %13 = sbr.rel (!%p11_p7) target bundleno = 8 (0x8), region = 235 }
 0x1ab   : > { %s2237_s23 = smov %s2227_s11 }
 0x1ac   : > { %s2238_s24 = smov %s2228_s8 }

// kernel: tbmodel_forward.39
= control target key start
LH: loop header
LB: loop body
LE: loop exit
PB: predicated region body
PF: predicated region fallthrough
CT: control target
= control target key end

     0   :  { %s2051_s0 = inlined_call_operand.vmem [shape: bf16[16,4608], index: 0, kind: input, shape index: {}]   ;;  %s2052_s1 = inlined_call_operand.vmem [shape: bf16[4608,512], index: 1, kind: input, shape index: {}]   ;;  %s2053_s2 = inlined_call_operand.vmem [shape: f32[1,512], index: 2, kind: input, shape index: {}]   ;;  %s2054_s3 = inlined_call_operand.vmem [shape: bf16[16,512], index: 3, kind: output, shape index: {}]  }
   0x1   :  { %2056 = sst [smem:[#allocation7_spill]] %s2051_s0 }
   0x2   :  { %2057 = sst [smem:[#allocation8_spill]] %s2052_s1 }
   0x3   :  { %s1669_s12 = smov 0   ;;  %s1671_s13 = smov 0  }
   0x4   :  { %s1673_s14 = smov 0   ;;  %s1675_s15 = smov 0  }
   0x5   :  { %s1677_s16 = smov 0   ;;  %s1679_s17 = smov 0  }
   0x6   :  { %s1681_s18 = smov 0   ;;  %s1683_s19 = smov 0  }
   0x7   :  { %s1685_s20 = smov 0   ;;  %s1687_s21 = smov 0  }
   0x8   :  { %s1689_s22 = smov 0  }
   0x9 LB: > { %s1266_s23 = sadd.s32 4294967295, %s1646_s22   ;;  %s25_s24 = sadd.s32 1, %s1638_s20  ;;  %s1646_s22 = sphi %s1689_s22, %s13_s22   ;;  %s1642_s21 = sphi %s1687_s21, %s2074_s21   ;;  %s1638_s20 = sphi %s1685_s20, %s2073_s20   ;;  %s1634_s19 = sphi %s1683_s19, %s2072_s19   ;;  %s1630_s18 = sphi %s1681_s18, %s2071_s18   ;;  %s1626_s17 = sphi %s1679_s17, %s2070_s17   ;;  %s1622_s16 = sphi %s1677_s16, %s2069_s16   ;;  %s1618_s15 = sphi %s1675_s15, %s2068_s15   ;;  %s1614_s14 = sphi %s1673_s14, %s2067_s14   ;;  %s1610_s13 = sphi %s1671_s13, %s2066_s13   ;;  %s1606_s12 = sphi %s1669_s12, %s2065_s12  }
   0xa   : > { %p26_p0 = scmp.ge.s32.totalorder %s25_s24, 9  ;;  %s28_s25 = sadd.s32 1, %s1642_s21 }
   0xb   : > { %s41_s26 = sadd.s32 1, %s1626_s17  ;;  %p48_p1 = scmp.ne.s32.totalorder %s1626_s17, %s1622_s16 }
   0xc   : > { %s2076_s24 = smov (%p26_p0, %s25_s24), 0  ;;  %s2078_s25 = smov (!%p26_p0, %s28_s25), %s1642_s21 }
   0xd   : > { %s37_s27 = ssub.s32 %s1638_s20, %s2076_s24  ;;  %p49_p2 = scmp.eq.s32.totalorder %s1646_s22, 0 }
   0xe   : > { %p30_p3 = scmp.ge.s32.totalorder %s2078_s25, 2  ;;  %p39_p4 = scmp.eq.s32.totalorder %s37_s27, 0 }
   0xf   : > { %p1736_p5 = por %p49_p2, %p48_p1  ;;  %s69_s29 = sadd.s32 1, %s1618_s15 }
  0x10   : > { %s2080_s25 = smov (%p30_p3, %s2078_s25), 0  ;;  %p76_p6 = scmp.ne.s32.totalorder %s1618_s15, %s1614_s14 }
  0x11   : > { %2059 = sst [smem:[#allocation6_spill]] %s2080_s25  ;;  %s65_s4 = ssub.s32 %s1642_s21, %s2080_s25 }
  0x12   : > { %s1744_s30 = scalar_select %p39_p4, %s1626_s17, %s41_s26  }
  0x13   : > { %s66_s5 = sor.u32 %s65_s4, %s37_s27  ;;  %p121_p7 = scmp.eq.s32.totalorder %s65_s4, 0 }
  0x14   : > { %p67_p8 = scmp.eq.s32.totalorder %s66_s5, 0  ;;  %p1750_p9 = por %p76_p6, %p49_p2 }
  0x15   : > { %s123_s7 = sadd.s32 1, %s1610_s13  ;;  %p133_p10 = scmp.ne.s32.totalorder %s1610_s13, %s1606_s12 }
  0x16   : > { %s1758_s8 = scalar_select %p67_p8, %s1618_s15, %s69_s29  }
  0x17   : > { %s1761_s9 = scalar_select %p121_p7, %s1610_s13, %s123_s7  }
  0x18   : > { %p134_p11 = scmp.eq.s32.totalorder %s1266_s23, 17  ;;  %p1269_p13 = scmp.ge.s32.totalorder %s1646_s22, 18 }
  0x1a   : > { %p1763_p12 = por %p134_p11, %p133_p10  ;;  %156 = sbr.rel (%p1269_p13) target bundleno = 87 (0x57), region = 16 }
  0x21   : > { %159 = sbr.rel (!%p1736_p5) target bundleno = 45 (0x2d), region = 20  ;;  %s161_s11 = sand.u32 (%p1736_p5), 1, %s1626_s17  }
  0x22   : > { %s1360_s26 = sshll.u32 (%p1736_p5), %s1638_s20, 4  ;;  %s1270_s27 = sshll.u32 (%p1736_p5), %s161_s11, 5 }
  0x23   : > { %s2062_s0 = sld [smem:[#allocation7_spill]] (%p1736_p5)  ;;  %s163_s23 = scalar_lea.vmem (%p1736_p5), [#allocation3], %s1270_s27 }
  0x29   : > { %s169_s5 = scalar_lea.vmem %s2062_s0, %s1360_s26 }
  0x2a   : > { %v182_v0 = vld [vmem:[%s169_s5] sm:$0xff]  ;;  %v184_v1 = vld [vmem:[%s169_s5 + $0x8] sm:$0xff]  ;;  %v186_v2 = vld [vmem:[%s169_s5 + $0x90] sm:$0xff] }
  0x2b   : > { %183 = vst [vmem:[%s163_s23] sm:$0xff] %v182_v0  ;;  %185 = vst [vmem:[%s163_s23 + $0x8] sm:$0xff] %v184_v1  ;;  %v188_v3 = vld [vmem:[%s169_s5 + $0x98] sm:$0xff] }
  0x2c   : > { %187 = vst [vmem:[%s163_s23 + $0x10] sm:$0xff] %v186_v2  ;;  %189 = vst [vmem:[%s163_s23 + $0x18] sm:$0xff] %v188_v3 }
  0x2d PF: > { %195 = sbr.rel (!%p1750_p9) target bundleno = 87 (0x57), region = 43  ;;  %s197_s28 = sand.u32 (%p1750_p9), 1, %s1618_s15  }
  0x2e   : > { %s1275_s7 = sshll.u32 (%p1750_p9), %s1642_s21, 1  ;;  %s1273_s11 = sshll.u32 (%p1750_p9), %s197_s28, 9 }
  0x2f   : > { %s1361_s26 = sshll.u32 (%p1750_p9), %s1638_s20, 8  ;;  %s2063_s1 = sld [smem:[#allocation8_spill]] (%p1750_p9) }
  0x30   : > { %s203_s29 = sadd.s32 (%p1750_p9), %s1361_s26, %s1275_s7  ;;  %s1788_s6 = scalar_lea.vmem (%p1750_p9), [#allocation4], %s1273_s11 }
  0x31   : > { %s1277_s4 = sshll.u32 (%p1750_p9), %s203_s29, 2 }
  0x35   : > { %s1783_s25 = scalar_lea.vmem %s2063_s1, %s1277_s4 }
  0x36   : > { %v359_v4 = vld [vmem:[%s1783_s25] sm:$0xff]  ;;  %v361_v5 = vld [vmem:[%s1783_s25 + $0x10] sm:$0xff] }
  0x37   : > { %v363_v6 = vld [vmem:[%s1783_s25 + $0x20] sm:$0xff]  ;;  %360 = vst [vmem:[%s1788_s6] sm:$0xff] %v359_v4  ;;  %362 = vst [vmem:[%s1788_s6 + $0x8] sm:$0xff] %v361_v5  ;;  %v365_v7 = vld [vmem:[%s1783_s25 + $0x30] sm:$0xff] }
  0x38   : > { %364 = vst [vmem:[%s1788_s6 + $0x10] sm:$0xff] %v363_v6  ;;  %v367_v8 = vld [vmem:[%s1783_s25 + $0x40] sm:$0xff]  ;;  %v369_v9 = vld [vmem:[%s1783_s25 + $0x50] sm:$0xff]  ;;  %366 = vst [vmem:[%s1788_s6 + $0x18] sm:$0xff] %v365_v7 }
  0x39   : > { %368 = vst [vmem:[%s1788_s6 + $0x20] sm:$0xff] %v367_v8  ;;  %370 = vst [vmem:[%s1788_s6 + $0x28] sm:$0xff] %v369_v9  ;;  %v371_v10 = vld [vmem:[%s1783_s25 + $0x60] sm:$0xff]  ;;  %v373_v11 = vld [vmem:[%s1783_s25 + $0x70] sm:$0xff] }
  0x3a   : > { %v375_v12 = vld [vmem:[%s1783_s25 + $0x80] sm:$0xff]  ;;  %372 = vst [vmem:[%s1788_s6 + $0x30] sm:$0xff] %v371_v10  ;;  %374 = vst [vmem:[%s1788_s6 + $0x38] sm:$0xff] %v373_v11  ;;  %v377_v13 = vld [vmem:[%s1783_s25 + $0x90] sm:$0xff] }
  0x3b   : > { %376 = vst [vmem:[%s1788_s6 + $0x40] sm:$0xff] %v375_v12  ;;  %v379_v14 = vld [vmem:[%s1783_s25 + $0xa0] sm:$0xff]  ;;  %v381_v15 = vld [vmem:[%s1783_s25 + $0xb0] sm:$0xff]  ;;  %378 = vst [vmem:[%s1788_s6 + $0x48] sm:$0xff] %v377_v13 }
  0x3c   : > { %380 = vst [vmem:[%s1788_s6 + $0x50] sm:$0xff] %v379_v14  ;;  %382 = vst [vmem:[%s1788_s6 + $0x58] sm:$0xff] %v381_v15  ;;  %v383_v16 = vld [vmem:[%s1783_s25 + $0xc0] sm:$0xff]  ;;  %v385_v17 = vld [vmem:[%s1783_s25 + $0xd0] sm:$0xff] }
  0x3d   : > { %v387_v18 = vld [vmem:[%s1783_s25 + $0xe0] sm:$0xff]  ;;  %384 = vst [vmem:[%s1788_s6 + $0x60] sm:$0xff] %v383_v16  ;;  %386 = vst [vmem:[%s1788_s6 + $0x68] sm:$0xff] %v385_v17  ;;  %v389_v19 = vld [vmem:[%s1783_s25 + $0xf0] sm:$0xff] }
  0x3e   : > { %388 = vst [vmem:[%s1788_s6 + $0x70] sm:$0xff] %v387_v18  ;;  %v391_v20 = vld [vmem:[%s1783_s25 + $0x100] sm:$0xff]  ;;  %v393_v21 = vld [vmem:[%s1783_s25 + $0x110] sm:$0xff]  ;;  %390 = vst [vmem:[%s1788_s6 + $0x78] sm:$0xff] %v389_v19 }
  0x3f   : > { %392 = vst [vmem:[%s1788_s6 + $0x80] sm:$0xff] %v391_v20  ;;  %394 = vst [vmem:[%s1788_s6 + $0x88] sm:$0xff] %v393_v21  ;;  %v395_v22 = vld [vmem:[%s1783_s25 + $0x120] sm:$0xff]  ;;  %v397_v23 = vld [vmem:[%s1783_s25 + $0x130] sm:$0xff] }
  0x40   : > { %v399_v24 = vld [vmem:[%s1783_s25 + $0x140] sm:$0xff]  ;;  %396 = vst [vmem:[%s1788_s6 + $0x90] sm:$0xff] %v395_v22  ;;  %398 = vst [vmem:[%s1788_s6 + $0x98] sm:$0xff] %v397_v23  ;;  %v401_v25 = vld [vmem:[%s1783_s25 + $0x150] sm:$0xff] }
  0x41   : > { %400 = vst [vmem:[%s1788_s6 + $0xa0] sm:$0xff] %v399_v24  ;;  %v403_v26 = vld [vmem:[%s1783_s25 + $0x160] sm:$0xff]  ;;  %v405_v27 = vld [vmem:[%s1783_s25 + $0x170] sm:$0xff]  ;;  %402 = vst [vmem:[%s1788_s6 + $0xa8] sm:$0xff] %v401_v25 }
  0x42   : > { %404 = vst [vmem:[%s1788_s6 + $0xb0] sm:$0xff] %v403_v26  ;;  %406 = vst [vmem:[%s1788_s6 + $0xb8] sm:$0xff] %v405_v27  ;;  %v407_v28 = vld [vmem:[%s1783_s25 + $0x180] sm:$0xff]  ;;  %v409_v29 = vld [vmem:[%s1783_s25 + $0x190] sm:$0xff] }
  0x43   : > { %v411_v30 = vld [vmem:[%s1783_s25 + $0x1a0] sm:$0xff]  ;;  %408 = vst [vmem:[%s1788_s6 + $0xc0] sm:$0xff] %v407_v28  ;;  %410 = vst [vmem:[%s1788_s6 + $0xc8] sm:$0xff] %v409_v29  ;;  %v413_v31 = vld [vmem:[%s1783_s25 + $0x1b0] sm:$0xff] }
  0x44   : > { %412 = vst [vmem:[%s1788_s6 + $0xd0] sm:$0xff] %v411_v30  ;;  %v415_v32 = vld [vmem:[%s1783_s25 + $0x1c0] sm:$0xff]  ;;  %v417_v33 = vld [vmem:[%s1783_s25 + $0x1d0] sm:$0xff]  ;;  %414 = vst [vmem:[%s1788_s6 + $0xd8] sm:$0xff] %v413_v31 }
  0x45   : > { %416 = vst [vmem:[%s1788_s6 + $0xe0] sm:$0xff] %v415_v32  ;;  %418 = vst [vmem:[%s1788_s6 + $0xe8] sm:$0xff] %v417_v33  ;;  %v419_v34 = vld [vmem:[%s1783_s25 + $0x1e0] sm:$0xff]  ;;  %v421_v35 = vld [vmem:[%s1783_s25 + $0x1f0] sm:$0xff] }
  0x46   : > { %v423_v36 = vld [vmem:[%s1783_s25 + $0x200] sm:$0xff]  ;;  %420 = vst [vmem:[%s1788_s6 + $0xf0] sm:$0xff] %v419_v34  ;;  %422 = vst [vmem:[%s1788_s6 + $0xf8] sm:$0xff] %v421_v35  ;;  %v425_v37 = vld [vmem:[%s1783_s25 + $0x210] sm:$0xff] }
  0x47   : > { %424 = vst [vmem:[%s1788_s6 + $0x100] sm:$0xff] %v423_v36  ;;  %v427_v38 = vld [vmem:[%s1783_s25 + $0x220] sm:$0xff]  ;;  %v429_v39 = vld [vmem:[%s1783_s25 + $0x230] sm:$0xff]  ;;  %426 = vst [vmem:[%s1788_s6 + $0x108] sm:$0xff] %v425_v37 }
  0x48   : > { %428 = vst [vmem:[%s1788_s6 + $0x110] sm:$0xff] %v427_v38  ;;  %430 = vst [vmem:[%s1788_s6 + $0x118] sm:$0xff] %v429_v39  ;;  %v431_v40 = vld [vmem:[%s1783_s25 + $0x240] sm:$0xff]  ;;  %v433_v41 = vld [vmem:[%s1783_s25 + $0x250] sm:$0xff] }
  0x49   : > { %v435_v42 = vld [vmem:[%s1783_s25 + $0x260] sm:$0xff]  ;;  %432 = vst [vmem:[%s1788_s6 + $0x120] sm:$0xff] %v431_v40  ;;  %434 = vst [vmem:[%s1788_s6 + $0x128] sm:$0xff] %v433_v41  ;;  %v437_v43 = vld [vmem:[%s1783_s25 + $0x270] sm:$0xff] }
  0x4a   : > { %436 = vst [vmem:[%s1788_s6 + $0x130] sm:$0xff] %v435_v42  ;;  %v439_v44 = vld [vmem:[%s1783_s25 + $0x280] sm:$0xff]  ;;  %v441_v45 = vld [vmem:[%s1783_s25 + $0x290] sm:$0xff]  ;;  %438 = vst [vmem:[%s1788_s6 + $0x138] sm:$0xff] %v437_v43 }
  0x4b   : > { %440 = vst [vmem:[%s1788_s6 + $0x140] sm:$0xff] %v439_v44  ;;  %442 = vst [vmem:[%s1788_s6 + $0x148] sm:$0xff] %v441_v45  ;;  %v443_v46 = vld [vmem:[%s1783_s25 + $0x2a0] sm:$0xff]  ;;  %v445_v47 = vld [vmem:[%s1783_s25 + $0x2b0] sm:$0xff] }
  0x4c   : > { %v447_v48 = vld [vmem:[%s1783_s25 + $0x2c0] sm:$0xff]  ;;  %444 = vst [vmem:[%s1788_s6 + $0x150] sm:$0xff] %v443_v46  ;;  %446 = vst [vmem:[%s1788_s6 + $0x158] sm:$0xff] %v445_v47  ;;  %v449_v49 = vld [vmem:[%s1783_s25 + $0x2d0] sm:$0xff] }
  0x4d   : > { %448 = vst [vmem:[%s1788_s6 + $0x160] sm:$0xff] %v447_v48  ;;  %v451_v50 = vld [vmem:[%s1783_s25 + $0x2e0] sm:$0xff]  ;;  %v453_v51 = vld [vmem:[%s1783_s25 + $0x2f0] sm:$0xff]  ;;  %450 = vst [vmem:[%s1788_s6 + $0x168] sm:$0xff] %v449_v49 }
  0x4e   : > { %452 = vst [vmem:[%s1788_s6 + $0x170] sm:$0xff] %v451_v50  ;;  %454 = vst [vmem:[%s1788_s6 + $0x178] sm:$0xff] %v453_v51  ;;  %v455_v52 = vld [vmem:[%s1783_s25 + $0x300] sm:$0xff]  ;;  %v457_v53 = vld [vmem:[%s1783_s25 + $0x310] sm:$0xff] }
  0x4f   : > { %v459_v54 = vld [vmem:[%s1783_s25 + $0x320] sm:$0xff]  ;;  %456 = vst [vmem:[%s1788_s6 + $0x180] sm:$0xff] %v455_v52  ;;  %458 = vst [vmem:[%s1788_s6 + $0x188] sm:$0xff] %v457_v53  ;;  %v461_v55 = vld [vmem:[%s1783_s25 + $0x330] sm:$0xff] }
  0x50   : > { %460 = vst [vmem:[%s1788_s6 + $0x190] sm:$0xff] %v459_v54  ;;  %v463_v56 = vld [vmem:[%s1783_s25 + $0x340] sm:$0xff]  ;;  %v465_v57 = vld [vmem:[%s1783_s25 + $0x350] sm:$0xff]  ;;  %462 = vst [vmem:[%s1788_s6 + $0x198] sm:$0xff] %v461_v55 }
  0x51   : > { %464 = vst [vmem:[%s1788_s6 + $0x1a0] sm:$0xff] %v463_v56  ;;  %466 = vst [vmem:[%s1788_s6 + $0x1a8] sm:$0xff] %v465_v57  ;;  %v467_v58 = vld [vmem:[%s1783_s25 + $0x360] sm:$0xff]  ;;  %v469_v59 = vld [vmem:[%s1783_s25 + $0x370] sm:$0xff] }
  0x52   : > { %v471_v60 = vld [vmem:[%s1783_s25 + $0x380] sm:$0xff]  ;;  %468 = vst [vmem:[%s1788_s6 + $0x1b0] sm:$0xff] %v467_v58  ;;  %470 = vst [vmem:[%s1788_s6 + $0x1b8] sm:$0xff] %v469_v59  ;;  %v473_v61 = vld [vmem:[%s1783_s25 + $0x390] sm:$0xff] }
  0x53   : > { %472 = vst [vmem:[%s1788_s6 + $0x1c0] sm:$0xff] %v471_v60  ;;  %v475_v62 = vld [vmem:[%s1783_s25 + $0x3a0] sm:$0xff]  ;;  %v477_v63 = vld [vmem:[%s1783_s25 + $0x3b0] sm:$0xff]  ;;  %474 = vst [vmem:[%s1788_s6 + $0x1c8] sm:$0xff] %v473_v61 }
  0x54   : > { %476 = vst [vmem:[%s1788_s6 + $0x1d0] sm:$0xff] %v475_v62  ;;  %478 = vst [vmem:[%s1788_s6 + $0x1d8] sm:$0xff] %v477_v63  ;;  %v479_v0 = vld [vmem:[%s1783_s25 + $0x3c0] sm:$0xff]  ;;  %v481_v1 = vld [vmem:[%s1783_s25 + $0x3d0] sm:$0xff] }
  0x55   : > { %v483_v2 = vld [vmem:[%s1783_s25 + $0x3e0] sm:$0xff]  ;;  %480 = vst [vmem:[%s1788_s6 + $0x1e0] sm:$0xff] %v479_v0  ;;  %482 = vst [vmem:[%s1788_s6 + $0x1e8] sm:$0xff] %v481_v1  ;;  %v485_v3 = vld [vmem:[%s1783_s25 + $0x3f0] sm:$0xff] }
  0x56   : > { %484 = vst [vmem:[%s1788_s6 + $0x1f0] sm:$0xff] %v483_v2  ;;  %486 = vst [vmem:[%s1788_s6 + $0x1f8] sm:$0xff] %v485_v3 }
  0x57 PF: > { %p1278_p0 = scmp.ge.s32.totalorder %s1646_s22, 1  ;;  %p499_p1 = scmp.lt.s32.totalorder %s1646_s22, 19 }
  0x59   : > { %p500_p2 = pnand %p1278_p0, %p499_p1 }
  0x5a   : > { %s506_s0 = sand.u32 (!%p500_p2), 1, %s1622_s16   ;;  %s513_s5 = sand.u32 (!%p500_p2), 1, %s1614_s14  }
  0x5b   : > { %503 = sbr.rel (%p500_p2) target bundleno = 413 (0x19d), region = 85  ;;  %s1279_s23 = sshll.u32 (!%p500_p2), %s506_s0, 5 }
  0x5c   : > { %s1280_s28 = sshll.u32 (!%p500_p2), %s513_s5, 9  ;;  %s540_s7 = sand.u32 (!%p500_p2), 1, %s1606_s12  }
  0x5d   : > { %s1282_s11 = sshll.u32 (!%p500_p2), %s1634_s19, 1  ;;  %s1281_s25 = sshll.u32 (!%p500_p2), %s540_s7, 4 }
  0x5e   : > { %p548_p3 = scmp.lt.s32.totalorder (!%p500_p2), %s1282_s11, 3  ;;  %s1927_s27 = scalar_lea.vmem (!%p500_p2), [#allocation3], %s1279_s23 }
  0x5f   : > { %s1929_s6 = scalar_lea.vmem (!%p500_p2), [#allocation4], %s1280_s28  ;;  %s1931_s1 = scalar_lea.vmem (!%p500_p2), [#allocation5], %s1281_s25 }
  0x60   : > { %p1283_p4 = scmp.ne.s32.totalorder (!%p500_p2), %s1630_s18, 0 }
  0x62   : > { %s2082_s11 = smov (!%p548_p3, %s1282_s11), 3  ;;  %557 = sbr.rel (%p1283_p4) target bundleno = 105 (0x69), region = 97 }
  0x63   : > { %s550_s4 = scalar_lea.vmem %s2053_s2, %s2082_s11  ;;  %v1648_v4 = vmov (!%p1283_p4), 0.0  }
  0x64   : > { %558 = vst [vmem:[#allocation2] sm:$0xff] (!%p1283_p4), %v1648_v4  ;;  %559 = vst [vmem:[#allocation2 + $0x8] sm:$0xff] (!%p1283_p4), %v1648_v4 }
  0x65   : > { %560 = vst [vmem:[#allocation2 + $0x10] sm:$0xff] (!%p1283_p4), %v1648_v4  ;;  %561 = vst [vmem:[#allocation2 + $0x18] sm:$0xff] (!%p1283_p4), %v1648_v4 }
  0x69 PF: > { %v1458_v5 = vld [vmem:[%s1929_s6 + $0x4] ss:$8 sps:$4 sm:$0xff]   ;;  %v1462_v7 = vld [vmem:[%s1929_s6] ss:$8 sps:$4 sm:$0xff]   ;;  %v1464_v9 = vld [vmem:[%s1929_s6 + $0x14] ss:$8 sps:$4 sm:$0xff]  }
  0x6a   : > { %v1460_v6 = vld [vmem:[%s1929_s6 + $0x104] ss:$8 sps:$4 sm:$0xff]   ;;  %974 = vmatprep.subr.bf16.mxu1 %v1458_v5  ;;  %v1463_v8 = vld [vmem:[%s1929_s6 + $0x100] ss:$8 sps:$4 sm:$0xff]   ;;  %v1466_v10 = vld [vmem:[%s1929_s6 + $0x114] ss:$8 sps:$4 sm:$0xff]  }
  0x6b   : > { %1017 = vmatprep.subr.bf16.mxu0 %v1460_v6  ;;  %975 = vmatpush1.bf16.msra.mxu1 %v1462_v7  ;;  %v1468_v11 = vld [vmem:[%s1929_s6 + $0x10] ss:$8 sps:$4 sm:$0xff]   ;;  %v1470_v13 = vld [vmem:[%s1929_s6 + $0x24] ss:$8 sps:$4 sm:$0xff]   ;;  %v1474_v15 = vld [vmem:[%s1929_s6 + $0x20] ss:$8 sps:$4 sm:$0xff]  }
  0x6c   : > { %1018 = vmatpush1.bf16.msra.mxu0 %v1463_v8  ;;  %976 = vmatprep.subr.bf16.mxu1 %v1464_v9  ;;  %v1469_v12 = vld [vmem:[%s1929_s6 + $0x110] ss:$8 sps:$4 sm:$0xff]   ;;  %v1472_v14 = vld [vmem:[%s1929_s6 + $0x124] ss:$8 sps:$4 sm:$0xff]   ;;  %v1475_v16 = vld [vmem:[%s1929_s6 + $0x120] ss:$8 sps:$4 sm:$0xff]  }
  0x6d   : > { %1019 = vmatprep.subr.bf16.mxu0 %v1466_v10  ;;  %v1476_v17 = vld [vmem:[%s1929_s6 + $0x34] ss:$8 sps:$4 sm:$0xff]   ;;  %v1480_v19 = vld [vmem:[%s1929_s6 + $0x30] ss:$8 sps:$4 sm:$0xff]   ;;  %v1482_v21 = vld [vmem:[%s1929_s6 + $0x44] ss:$8 sps:$4 sm:$0xff]  }
  0x6e   : > { %v1478_v18 = vld [vmem:[%s1929_s6 + $0x134] ss:$8 sps:$4 sm:$0xff]   ;;  %v1481_v20 = vld [vmem:[%s1929_s6 + $0x130] ss:$8 sps:$4 sm:$0xff]   ;;  %v1484_v22 = vld [vmem:[%s1929_s6 + $0x144] ss:$8 sps:$4 sm:$0xff]  }
  0x6f   : > { %977 = vmatpush1.bf16.msra.mxu1 %v1468_v11  ;;  %v1486_v23 = vld [vmem:[%s1929_s6 + $0x40] ss:$8 sps:$4 sm:$0xff]   ;;  %v1488_v25 = vld [vmem:[%s1929_s6 + $0x54] ss:$8 sps:$4 sm:$0xff]   ;;  %v1492_v27 = vld [vmem:[%s1929_s6 + $0x50] ss:$8 sps:$4 sm:$0xff]  }
  0x70   : > { %1020 = vmatpush1.bf16.msra.mxu0 %v1469_v12  ;;  %978 = vmatprep.subr.bf16.mxu1 %v1470_v13  ;;  %v1487_v24 = vld [vmem:[%s1929_s6 + $0x140] ss:$8 sps:$4 sm:$0xff]   ;;  %v1490_v26 = vld [vmem:[%s1929_s6 + $0x154] ss:$8 sps:$4 sm:$0xff]   ;;  %v1493_v28 = vld [vmem:[%s1929_s6 + $0x150] ss:$8 sps:$4 sm:$0xff]  }
  0x71   : > { %1021 = vmatprep.subr.bf16.mxu0 %v1472_v14  ;;  %v1494_v29 = vld [vmem:[%s1929_s6 + $0x64] ss:$8 sps:$4 sm:$0xff]   ;;  %v1498_v31 = vld [vmem:[%s1929_s6 + $0x60] ss:$8 sps:$4 sm:$0xff]   ;;  %v1500_v33 = vld [vmem:[%s1929_s6 + $0x74] ss:$8 sps:$4 sm:$0xff]  }
  0x72   : > { %v1496_v30 = vld [vmem:[%s1929_s6 + $0x164] ss:$8 sps:$4 sm:$0xff]   ;;  %v1499_v32 = vld [vmem:[%s1929_s6 + $0x160] ss:$8 sps:$4 sm:$0xff]   ;;  %v1502_v34 = vld [vmem:[%s1929_s6 + $0x174] ss:$8 sps:$4 sm:$0xff]  }
  0x73   : > { %979 = vmatpush1.bf16.msra.mxu1 %v1474_v15  ;;  %v1504_v35 = vld [vmem:[%s1929_s6 + $0x70] ss:$8 sps:$4 sm:$0xff]   ;;  %v1506_v37 = vld [vmem:[%s1929_s6 + $0x84] ss:$8 sps:$4 sm:$0xff]   ;;  %v1510_v39 = vld [vmem:[%s1929_s6 + $0x80] ss:$8 sps:$4 sm:$0xff]  }
  0x74   : > { %1022 = vmatpush1.bf16.msra.mxu0 %v1475_v16  ;;  %980 = vmatprep.subr.bf16.mxu1 %v1476_v17  ;;  %v1505_v36 = vld [vmem:[%s1929_s6 + $0x170] ss:$8 sps:$4 sm:$0xff]   ;;  %v1508_v38 = vld [vmem:[%s1929_s6 + $0x184] ss:$8 sps:$4 sm:$0xff]   ;;  %v1511_v40 = vld [vmem:[%s1929_s6 + $0x180] ss:$8 sps:$4 sm:$0xff]  }
  0x75   : > { %1023 = vmatprep.subr.bf16.mxu0 %v1478_v18  ;;  %v1512_v41 = vld [vmem:[%s1929_s6 + $0x94] ss:$8 sps:$4 sm:$0xff]   ;;  %v1516_v43 = vld [vmem:[%s1929_s6 + $0x90] ss:$8 sps:$4 sm:$0xff]   ;;  %v1518_v45 = vld [vmem:[%s1929_s6 + $0xa4] ss:$8 sps:$4 sm:$0xff]  }
  0x76   : > { %v1514_v42 = vld [vmem:[%s1929_s6 + $0x194] ss:$8 sps:$4 sm:$0xff]   ;;  %v1517_v44 = vld [vmem:[%s1929_s6 + $0x190] ss:$8 sps:$4 sm:$0xff]   ;;  %v1520_v46 = vld [vmem:[%s1929_s6 + $0x1a4] ss:$8 sps:$4 sm:$0xff]  }
  0x77   : > { %981 = vmatpush1.bf16.msra.mxu1 %v1480_v19  ;;  %v1522_v47 = vld [vmem:[%s1929_s6 + $0xa0] ss:$8 sps:$4 sm:$0xff]   ;;  %v1524_v49 = vld [vmem:[%s1929_s6 + $0xb4] ss:$8 sps:$4 sm:$0xff]   ;;  %v1528_v51 = vld [vmem:[%s1929_s6 + $0xb0] ss:$8 sps:$4 sm:$0xff]  }
  0x78   : > { %1024 = vmatpush1.bf16.msra.mxu0 %v1481_v20  ;;  %982 = vmatprep.subr.bf16.mxu1 %v1482_v21  ;;  %v1523_v48 = vld [vmem:[%s1929_s6 + $0x1a0] ss:$8 sps:$4 sm:$0xff]   ;;  %v1526_v50 = vld [vmem:[%s1929_s6 + $0x1b4] ss:$8 sps:$4 sm:$0xff]   ;;  %v1529_v53 = vld [vmem:[%s1929_s6 + $0x1b0] ss:$8 sps:$4 sm:$0xff]  }
  0x79   : > { %1025 = vmatprep.subr.bf16.mxu0 %v1484_v22  ;;  %v1556_v52 = vld [vmem:[%s1927_s27 + $0x4] ss:$16 sps:$4 sm:$0xff]   ;;  %v1559_v56 = vld [vmem:[%s1927_s27 + $0xc] ss:$16 sps:$4 sm:$0xff]   ;;  %v1534_v57 = vld [vmem:[%s1929_s6 + $0xc0] ss:$8 sps:$4 sm:$0xff]  }
  0x7a   : > { %v1530_v54 = vld [vmem:[%s1929_s6 + $0xc4] ss:$8 sps:$4 sm:$0xff]   ;;  %1006 = vmatprep.mubr.bf16.mxu1 %v1556_v52  ;;  %1049 = vmatprep.mubr.bf16.mxu0 %v1559_v56  ;;  %v1535_v58 = vld [vmem:[%s1929_s6 + $0x1c0] ss:$8 sps:$4 sm:$0xff]   ;;  %v1536_v59 = vld [vmem:[%s1929_s6 + $0xd4] ss:$8 sps:$4 sm:$0xff]  }
  0x7b   : > { %983 = vmatpush1.bf16.msra.mxu1 %v1486_v23  ;;  %v1532_v55 = vld [vmem:[%s1929_s6 + $0x1c4] ss:$8 sps:$4 sm:$0xff]   ;;  %v1538_v60 = vld [vmem:[%s1929_s6 + $0x1d4] ss:$8 sps:$4 sm:$0xff]   ;;  %v1540_v61 = vld [vmem:[%s1929_s6 + $0xd0] ss:$8 sps:$4 sm:$0xff]  }
  0x7c   : > { %1026 = vmatpush1.bf16.msra.mxu0 %v1487_v24  ;;  %984 = vmatprep.subr.bf16.mxu1 %v1488_v25  ;;  %v1541_v62 = vld [vmem:[%s1929_s6 + $0x1d0] ss:$8 sps:$4 sm:$0xff]   ;;  %v1542_v63 = vld [vmem:[%s1929_s6 + $0xe4] ss:$8 sps:$4 sm:$0xff]   ;;  %v1546_v1 = vld [vmem:[%s1929_s6 + $0xe0] ss:$8 sps:$4 sm:$0xff]  }
  0x7d   : > { %1027 = vmatprep.subr.bf16.mxu0 %v1490_v26  ;;  %v1544_v0 = vld [vmem:[%s1929_s6 + $0x1e4] ss:$8 sps:$4 sm:$0xff]   ;;  %v1547_v2 = vld [vmem:[%s1929_s6 + $0x1e0] ss:$8 sps:$4 sm:$0xff]   ;;  %v1548_v3 = vld [vmem:[%s1929_s6 + $0xf4] ss:$8 sps:$4 sm:$0xff]  }
  0x7e   : > { %v1550_v4 = vld [vmem:[%s1929_s6 + $0x1f4] ss:$8 sps:$4 sm:$0xff]   ;;  %v1552_v5 = vld [vmem:[%s1929_s6 + $0xf0] ss:$8 sps:$4 sm:$0xff]   ;;  %v562_v10 = vld [vmem:[#allocation2] sm:$0xff]  ;;  %p1352_p5 = scmp.ne.s32.totalorder %s1630_s18, 8 }
  0x7f   : > { %985 = vmatpush1.bf16.msra.mxu1 %v1492_v27  ;;  %v1553_v6 = vld [vmem:[%s1929_s6 + $0x1f0] ss:$8 sps:$4 sm:$0xff]   ;;  %v563_v14 = vld [vmem:[#allocation2 + $0x8] sm:$0xff] }
  0x80   : > { %1028 = vmatpush1.bf16.msra.mxu0 %v1493_v28  ;;  %986 = vmatprep.subr.bf16.mxu1 %v1494_v29  ;;  %v1554_v7 = vld [vmem:[%s1927_s27] ss:$16 sps:$4 sm:$0xff]   ;;  %v1557_v8 = vld [vmem:[%s1927_s27 + $0x8] ss:$16 sps:$4 sm:$0xff]   ;;  %v1078_v29 = vlaneseq (!%p1352_p5) }
  0x81   : > { %1029 = vmatprep.subr.bf16.mxu0 %v1496_v30  ;;  %v564_v18 = vld [vmem:[#allocation2 + $0x10] sm:$0xff]  ;;  %v565_v23 = vld [vmem:[#allocation2 + $0x18] sm:$0xff] }
  0x82   : > { %v1079_v30 = vshrl.u32 (!%p1352_p5), %v1078_v29, 7 }
  0x83   : > { %987 = vmatpush1.bf16.msra.mxu1 %v1498_v31  ;;  %v1076_v31 = vld [vmem:[%s550_s4] sm:$0x3] (!%p1352_p5) }
  0x84   : > { %1030 = vmatpush1.bf16.msra.mxu0 %v1499_v32  ;;  %988 = vmatprep.subr.bf16.mxu1 %v1500_v33  ;;  %v1080_v33 = vsub.s32 (!%p1352_p5), 0, %v1079_v30 }
  0x85   : > { %1031 = vmatprep.subr.bf16.mxu0 %v1502_v34  ;;  %v1084_v34 = vsub.s32 (!%p1352_p5), 1, %v1079_v30 }
  0x87   : > { %989 = vmatpush1.bf16.msra.mxu1 %v1504_v35 }
  0x88   : > { %1032 = vmatpush1.bf16.msra.mxu0 %v1505_v36  ;;  %990 = vmatprep.subr.bf16.mxu1 %v1506_v37 }
  0x89   : > { %1033 = vmatprep.subr.bf16.mxu0 %v1508_v38  ;;  %v1081_v38 = vrot.slane (!%p1352_p5), %v1076_v31, %v1080_v33 }
  0x8b   : > { %991 = vmatpush1.bf16.msra.mxu1 %v1510_v39  ;;  %v1085_v39 = vrot.slane (!%p1352_p5), %v1076_v31, %v1084_v34 }
  0x8c   : > { %1034 = vmatpush1.bf16.msra.mxu0 %v1511_v40  ;;  %992 = vmatprep.subr.bf16.mxu1 %v1512_v41 }
  0x8d   : > { %1035 = vmatprep.subr.bf16.mxu0 %v1514_v42 }
  0x8f   : > { %993 = vmatpush1.bf16.msra.mxu1 %v1516_v43 }
  0x90   : > { %1036 = vmatpush1.bf16.msra.mxu0 %v1517_v44  ;;  %994 = vmatprep.subr.bf16.mxu1 %v1518_v45 }
  0x91   : > { %1037 = vmatprep.subr.bf16.mxu0 %v1520_v46 }
  0x93   : > { %995 = vmatpush1.bf16.msra.mxu1 %v1522_v47 }
  0x94   : > { %1038 = vmatpush1.bf16.msra.mxu0 %v1523_v48  ;;  %996 = vmatprep.subr.bf16.mxu1 %v1524_v49 }
  0x95   : > { %1039 = vmatprep.subr.bf16.mxu0 %v1526_v50 }
  0x97   : > { %997 = vmatpush1.bf16.msra.mxu1 %v1528_v51 }
  0x98   : > { %1040 = vmatpush1.bf16.msra.mxu0 %v1529_v53  ;;  %998 = vmatprep.subr.bf16.mxu1 %v1530_v54 }
  0x99   : > { %1041 = vmatprep.subr.bf16.mxu0 %v1532_v55 }
  0x9b   : > { %999 = vmatpush1.bf16.msra.mxu1 %v1534_v57 }
  0x9c   : > { %1042 = vmatpush1.bf16.msra.mxu0 %v1535_v58  ;;  %1000 = vmatprep.subr.bf16.mxu1 %v1536_v59 }
  0x9d   : > { %1043 = vmatprep.subr.bf16.mxu0 %v1538_v60 }
  0x9f   : > { %1001 = vmatpush1.bf16.msra.mxu1 %v1540_v61 }
  0xa0   : > { %1044 = vmatpush1.bf16.msra.mxu0 %v1541_v62  ;;  %1002 = vmatprep.subr.bf16.mxu1 %v1542_v63 }
  0xa1   : > { %1045 = vmatprep.subr.bf16.mxu0 %v1544_v0 }
  0xa3   : > { %1003 = vmatpush1.bf16.msra.mxu1 %v1546_v1 }
  0xa4   : > { %1046 = vmatpush1.bf16.msra.mxu0 %v1547_v2  ;;  %1004 = vmatprep.subr.bf16.mxu1 %v1548_v3 }
  0xa5   : > { %1047 = vmatprep.subr.bf16.mxu0 %v1550_v4 }
  0xa7   : > { %1005 = vmatpush1.bf16.msra.mxu1 %v1552_v5 }
  0xa8   : > { %1048 = vmatpush1.bf16.msra.mxu0 %v1553_v6 }
  0xaa   : > { %1007 = vmatmul.mubr.bf16.vlgmr.msra.gmra.mrb[0].mxu1 %v1554_v7 }
  0xab   : > { %1050 = vmatmul.mubr.bf16.vlgmr.msra.gmra.mrb[0].mxu0 %v1557_v8 }
 0x17d   : > { %v1008_v9 = vpop.f32.mrb[0].mxu1 }
 0x17e   : > { %v1051_v11 = vpop.f32.mrb[0].mxu0  ;;  %v1010_v13 = vpop.f32.mrb[1].mxu1 }
 0x17f   : > { %v1052_v12 = vadd.f32 %v1051_v11, %v1008_v9  ;;  %v1053_v15 = vpop.f32.mrb[1].mxu0  ;;  %v1012_v17 = vpop.f32.mrb[2].mxu1 }
 0x180   : > { %v1054_v16 = vadd.f32 %v1053_v15, %v1010_v13  ;;  %v1055_v19 = vpop.f32.mrb[2].mxu0  ;;  %v1014_v22 = vpop.f32.mrb[3].mxu1  ;;  %1071 = sbr.rel (%p1352_p5) target bundleno = 405 (0x195), region = 101 }
 0x181   : > { %v1060_v20 = vadd.f32 %v1052_v12, %v562_v10  ;;  %v1056_v21 = vadd.f32 %v1055_v19, %v1012_v17  ;;  %v1057_v24 = vpop.f32.mrb[3].mxu0 }
 0x182   : > { %v1061_v25 = vadd.f32 %v1054_v16, %v563_v14  ;;  %v1058_v26 = vadd.f32 %v1057_v24, %v1014_v22 }
 0x183   : > { %1064 = vst [vmem:[#allocation2] sm:$0xff] %v1060_v20  ;;  %v1062_v27 = vadd.f32 %v1056_v21, %v564_v18 }
 0x184   : > { %1065 = vst [vmem:[#allocation2 + $0x8] sm:$0xff] %v1061_v25  ;;  %v1063_v28 = vadd.f32 %v1058_v26, %v565_v23 }
 0x185   : > { %1066 = vst [vmem:[#allocation2 + $0x10] sm:$0xff] %v1062_v27 }
 0x186   : > { %1067 = vst [vmem:[#allocation2 + $0x18] sm:$0xff] %v1063_v28 }
 0x18a   : > { %v1072_v32 = vld [vmem:[#allocation2] sm:$0xff] }
 0x18b   : > { %v1073_v35 = vld [vmem:[#allocation2 + $0x8] sm:$0xff]  ;;  %v1088_v40 = vadd.f32 %v1081_v38, %v1072_v32 }
 0x18c   : > { %v1074_v36 = vld [vmem:[#allocation2 + $0x10] sm:$0xff]  ;;  %v1089_v41 = vadd.f32 %v1085_v39, %v1073_v35 }
 0x18d   : > { %v1075_v37 = vld [vmem:[#allocation2 + $0x18] sm:$0xff]  ;;  %v1090_v42 = vadd.f32 %v1081_v38, %v1074_v36  ;;  %v1092_v44 = vmax.f32 %v1088_v40, 0.0 }
 0x18e   : > { %v1091_v43 = vadd.f32 %v1085_v39, %v1075_v37  ;;  %v1093_v45 = vmax.f32 %v1089_v41, 0.0 }
 0x18f   : > { %v1094_v46 = vmax.f32 %v1090_v42, 0.0 }
 0x190   : > { %v1095_v47 = vmax.f32 %v1091_v43, 0.0  ;;  %v1362_v48 = vpack.c.bf16 %v1093_v45, %v1092_v44 }
 0x192   : > { %v1363_v49 = vpack.c.bf16 %v1095_v47, %v1094_v46  ;;  %1108 = vst [vmem:[%s1931_s1] sm:$0xff] %v1362_v48 }
 0x194   : > { %1109 = vst [vmem:[%s1931_s1 + $0x8] sm:$0xff] %v1363_v49 }
 0x195 PF: > { %1116 = sbr.rel (!%p1763_p12) target bundleno = 413 (0x19d), region = 105  ;;  %s1364_s16 = sshll.u32 (%p1763_p12), %s1634_s19, 3 }
 0x196   : > { %s1122_s5 = scalar_lea.vmem (%p1763_p12), %s2054_s3, %s1364_s16 }
 0x199   : > { %v1152_v50 = vld [vmem:[%s1931_s1] sm:$0xff] (%p1763_p12) }
 0x19a   : > { %1153 = vst [vmem:[%s1122_s5] sm:$0xff] (%p1763_p12), %v1152_v50 }
 0x19b   : > { %v1154_v51 = vld [vmem:[%s1931_s1 + $0x8] sm:$0xff] (%p1763_p12) }
 0x19c   : > { %1155 = vst [vmem:[%s1122_s5 + $0x10] sm:$0xff] %v1154_v51 }
 0x19d PF: > { %s13_s22 = sadd.s32 1, %s1646_s22   ;;  %s2064_s1 = sld [smem:[#allocation6_spill]] }
 0x19e   : > { %p10_p6 = scmp.ge.s32.totalorder %s13_s22, 20   ;;  %s2065_s12 = smov %s1610_s13 }
 0x19f   : > { %s2066_s13 = smov %s1761_s9  ;;  %s2067_s14 = smov %s1618_s15 }
 0x1a0   : > { %s2068_s15 = smov %s1758_s8  ;;  %s2069_s16 = smov %s1626_s17 }
 0x1a1   : > { %s2070_s17 = smov %s1744_s30  ;;  %s2071_s18 = smov %s1638_s20 }
 0x1a2   : > { %s2072_s19 = smov %s1642_s21  ;;  %s2073_s20 = smov %s2076_s24 }
 0x1a3   : > { %s2074_s21 = smov %s2064_s1  ;;  %12 = sbr.rel (!%p10_p6) target bundleno = 9 (0x9), region = 185 }

// kernel: tbmodel_forward.41
= control target key start
LH: loop header
LB: loop body
LE: loop exit
PB: predicated region body
PF: predicated region fallthrough
CT: control target
= control target key end

     0   :  { %vm340_vm0 = vcmask 1041409   ;;  %vm663_vm1 = vcmask 1041408   ;;  %vm685_vm2 = vcmask 1024   ;;  %s1815_s1 = inlined_call_operand.vmem [shape: f32[512,512], index: 1, kind: input, shape index: {}]   ;;  %s1816_s0 = inlined_call_operand.vmem [shape: bf16[2,1,512], index: 0, kind: input, shape index: {}]   ;;  %s1817_s4 = inlined_call_operand.<no memory space> [shape: f32[1,1], index: 4, kind: input, shape index: {}]   ;;  %s1818_s2 = inlined_call_operand.vmem [shape: f32[1,512], index: 2, kind: input, shape index: {}]   ;;  %s1819_s3 = inlined_call_operand.vmem [shape: f32[1,512], index: 3, kind: input, shape index: {}]   ;;  %s1820_s5 = inlined_call_operand.vmem [shape: f32[2,1], index: 5, kind: output, shape index: {}]  }
   0x1   :  { %v29_v0 = vld [vmem:[%s1815_s1 + $0x8] sm:$0xff]  ;;  %v31_v2 = vld [vmem:[%s1815_s1 + $0x18] sm:$0xff]  ;;  %v28_v5 = vld [vmem:[%s1815_s1] sm:$0xff] }
   0x2   :  { %v33_v1 = vld [vmem:[%s1815_s1 + $0x28] sm:$0xff]  ;;  %v35_v4 = vld [vmem:[%s1815_s1 + $0x38] sm:$0xff]  ;;  %v32_v6 = vld [vmem:[%s1815_s1 + $0x20] sm:$0xff] }
   0x3   :  { %v696_v3 = vpack.c.bf16 %v33_v1, %v29_v0  ;;  %v824_v7 = vpack.c.bf16 %v35_v4, %v31_v2  ;;  %v698_v8 = vpack.c.bf16 %v32_v6, %v28_v5  ;;  %v30_v9 = vld [vmem:[%s1815_s1 + $0x10] sm:$0xff]  ;;  %v37_v11 = vld [vmem:[%s1815_s1 + $0x48] sm:$0xff]  ;;  %v39_v14 = vld [vmem:[%s1815_s1 + $0x58] sm:$0xff] }
   0x4   :  { %v34_v10 = vld [vmem:[%s1815_s1 + $0x30] sm:$0xff]  ;;  %v41_v13 = vld [vmem:[%s1815_s1 + $0x68] sm:$0xff]  ;;  %v43_v15 = vld [vmem:[%s1815_s1 + $0x78] sm:$0xff] }
   0x5   :  { %697 = vmatprep.subr.bf16.mxu0 %v696_v3  ;;  %v826_v12 = vpack.c.bf16 %v34_v10, %v30_v9  ;;  %825 = vmatprep.subr.bf16.mxu1 %v824_v7  ;;  %v700_v16 = vpack.c.bf16 %v41_v13, %v37_v11  ;;  %v828_v17 = vpack.c.bf16 %v43_v15, %v39_v14  ;;  %v36_v18 = vld [vmem:[%s1815_s1 + $0x40] sm:$0xff]  ;;  %v38_v20 = vld [vmem:[%s1815_s1 + $0x50] sm:$0xff]  ;;  %v45_v23 = vld [vmem:[%s1815_s1 + $0x88] sm:$0xff] }
   0x6   :  { %699 = vmatpush1.bf16.msra.mxu0 %v698_v8  ;;  %v40_v19 = vld [vmem:[%s1815_s1 + $0x60] sm:$0xff]  ;;  %v42_v22 = vld [vmem:[%s1815_s1 + $0x70] sm:$0xff]  ;;  %v49_v24 = vld [vmem:[%s1815_s1 + $0xa8] sm:$0xff] }
   0x7   :  { %827 = vmatpush1.bf16.msra.mxu1 %v826_v12  ;;  %v702_v21 = vpack.c.bf16 %v40_v19, %v36_v18  ;;  %701 = vmatprep.subr.bf16.mxu0 %v700_v16  ;;  %v830_v25 = vpack.c.bf16 %v42_v22, %v38_v20  ;;  %v704_v26 = vpack.c.bf16 %v49_v24, %v45_v23  ;;  %v47_v27 = vld [vmem:[%s1815_s1 + $0x98] sm:$0xff]  ;;  %v44_v29 = vld [vmem:[%s1815_s1 + $0x80] sm:$0xff]  ;;  %v46_v32 = vld [vmem:[%s1815_s1 + $0x90] sm:$0xff] }
   0x8   :  { %829 = vmatprep.subr.bf16.mxu1 %v828_v17  ;;  %v51_v28 = vld [vmem:[%s1815_s1 + $0xb8] sm:$0xff]  ;;  %v48_v31 = vld [vmem:[%s1815_s1 + $0xa0] sm:$0xff]  ;;  %v50_v33 = vld [vmem:[%s1815_s1 + $0xb0] sm:$0xff] }
   0x9   :  { %v832_v30 = vpack.c.bf16 %v51_v28, %v47_v27  ;;  %v706_v34 = vpack.c.bf16 %v48_v31, %v44_v29  ;;  %v53_v35 = vld [vmem:[%s1815_s1 + $0xc8] sm:$0xff]  ;;  %v55_v37 = vld [vmem:[%s1815_s1 + $0xd8] sm:$0xff]  ;;  %v834_v38 = vpack.c.bf16 %v50_v33, %v46_v32  ;;  %v52_v41 = vld [vmem:[%s1815_s1 + $0xc0] sm:$0xff] }
   0xa   :  { %703 = vmatpush1.bf16.msra.mxu0 %v702_v21  ;;  %v57_v36 = vld [vmem:[%s1815_s1 + $0xe8] sm:$0xff]  ;;  %v59_v40 = vld [vmem:[%s1815_s1 + $0xf8] sm:$0xff]  ;;  %v56_v42 = vld [vmem:[%s1815_s1 + $0xe0] sm:$0xff] }
   0xb   :  { %831 = vmatpush1.bf16.msra.mxu1 %v830_v25  ;;  %705 = vmatprep.subr.bf16.mxu0 %v704_v26  ;;  %v708_v39 = vpack.c.bf16 %v57_v36, %v53_v35  ;;  %v836_v43 = vpack.c.bf16 %v59_v40, %v55_v37  ;;  %v54_v44 = vld [vmem:[%s1815_s1 + $0xd0] sm:$0xff]  ;;  %v61_v46 = vld [vmem:[%s1815_s1 + $0x108] sm:$0xff]  ;;  %v63_v48 = vld [vmem:[%s1815_s1 + $0x118] sm:$0xff]  ;;  %v710_v50 = vpack.c.bf16 %v56_v42, %v52_v41 }
   0xc   :  { %833 = vmatprep.subr.bf16.mxu1 %v832_v30  ;;  %v58_v45 = vld [vmem:[%s1815_s1 + $0xf0] sm:$0xff]  ;;  %v65_v47 = vld [vmem:[%s1815_s1 + $0x128] sm:$0xff]  ;;  %v67_v49 = vld [vmem:[%s1815_s1 + $0x138] sm:$0xff] }
   0xd   :  { %v838_v51 = vpack.c.bf16 %v58_v45, %v54_v44  ;;  %v712_v52 = vpack.c.bf16 %v65_v47, %v61_v46  ;;  %v60_v53 = vld [vmem:[%s1815_s1 + $0x100] sm:$0xff]  ;;  %v62_v55 = vld [vmem:[%s1815_s1 + $0x110] sm:$0xff]  ;;  %v840_v56 = vpack.c.bf16 %v67_v49, %v63_v48  ;;  %v69_v58 = vld [vmem:[%s1815_s1 + $0x148] sm:$0xff] }
   0xe   :  { %707 = vmatpush1.bf16.msra.mxu0 %v706_v34  ;;  %v64_v54 = vld [vmem:[%s1815_s1 + $0x120] sm:$0xff]  ;;  %v66_v57 = vld [vmem:[%s1815_s1 + $0x130] sm:$0xff]  ;;  %v73_v59 = vld [vmem:[%s1815_s1 + $0x168] sm:$0xff] }
   0xf   :  { %835 = vmatpush1.bf16.msra.mxu1 %v834_v38  ;;  %709 = vmatprep.subr.bf16.mxu0 %v708_v39  ;;  %v71_v60 = vld [vmem:[%s1815_s1 + $0x158] sm:$0xff]  ;;  %v714_v62 = vpack.c.bf16 %v64_v54, %v60_v53  ;;  %v842_v63 = vpack.c.bf16 %v66_v57, %v62_v55  ;;  %v716_v0 = vpack.c.bf16 %v73_v59, %v69_v58  ;;  %v68_v1 = vld [vmem:[%s1815_s1 + $0x140] sm:$0xff]  ;;  %v70_v3 = vld [vmem:[%s1815_s1 + $0x150] sm:$0xff] }
  0x10   :  { %837 = vmatprep.subr.bf16.mxu1 %v836_v43  ;;  %v75_v61 = vld [vmem:[%s1815_s1 + $0x178] sm:$0xff]  ;;  %v72_v2 = vld [vmem:[%s1815_s1 + $0x160] sm:$0xff]  ;;  %v74_v5 = vld [vmem:[%s1815_s1 + $0x170] sm:$0xff] }
  0x11   :  { %v844_v4 = vpack.c.bf16 %v75_v61, %v71_v60  ;;  %v77_v6 = vld [vmem:[%s1815_s1 + $0x188] sm:$0xff]  ;;  %v79_v8 = vld [vmem:[%s1815_s1 + $0x198] sm:$0xff]  ;;  %v718_v10 = vpack.c.bf16 %v72_v2, %v68_v1  ;;  %v846_v11 = vpack.c.bf16 %v74_v5, %v70_v3  ;;  %v76_v13 = vld [vmem:[%s1815_s1 + $0x180] sm:$0xff] }
  0x12   :  { %711 = vmatpush1.bf16.msra.mxu0 %v710_v50  ;;  %v81_v7 = vld [vmem:[%s1815_s1 + $0x1a8] sm:$0xff]  ;;  %v83_v9 = vld [vmem:[%s1815_s1 + $0x1b8] sm:$0xff]  ;;  %v80_v14 = vld [vmem:[%s1815_s1 + $0x1a0] sm:$0xff] }
  0x13   :  { %839 = vmatpush1.bf16.msra.mxu1 %v838_v51  ;;  %713 = vmatprep.subr.bf16.mxu0 %v712_v52  ;;  %v720_v12 = vpack.c.bf16 %v81_v7, %v77_v6  ;;  %v78_v15 = vld [vmem:[%s1815_s1 + $0x190] sm:$0xff]  ;;  %v848_v16 = vpack.c.bf16 %v83_v9, %v79_v8  ;;  %v85_v18 = vld [vmem:[%s1815_s1 + $0x1c8] sm:$0xff]  ;;  %v87_v20 = vld [vmem:[%s1815_s1 + $0x1d8] sm:$0xff]  ;;  %v722_v22 = vpack.c.bf16 %v80_v14, %v76_v13  ;;  %v286_v52 = vlaneseq }
  0x14   :  { %841 = vmatprep.subr.bf16.mxu1 %v840_v56  ;;  %v82_v17 = vld [vmem:[%s1815_s1 + $0x1b0] sm:$0xff]  ;;  %v89_v19 = vld [vmem:[%s1815_s1 + $0x1e8] sm:$0xff]  ;;  %v91_v21 = vld [vmem:[%s1815_s1 + $0x1f8] sm:$0xff] }
  0x15   :  { %v850_v23 = vpack.c.bf16 %v82_v17, %v78_v15  ;;  %v724_v24 = vpack.c.bf16 %v89_v19, %v85_v18  ;;  %v84_v25 = vld [vmem:[%s1815_s1 + $0x1c0] sm:$0xff]  ;;  %v86_v27 = vld [vmem:[%s1815_s1 + $0x1d0] sm:$0xff]  ;;  %v852_v28 = vpack.c.bf16 %v91_v21, %v87_v20  ;;  %v93_v30 = vld [vmem:[%s1815_s1 + $0x208] sm:$0xff]  ;;  %v1253_v1 = vshrl.u32 %v286_v52, 7 }
  0x16   :  { %715 = vmatpush1.bf16.msra.mxu0 %v714_v62  ;;  %v88_v26 = vld [vmem:[%s1815_s1 + $0x1e0] sm:$0xff]  ;;  %v90_v29 = vld [vmem:[%s1815_s1 + $0x1f0] sm:$0xff]  ;;  %v97_v31 = vld [vmem:[%s1815_s1 + $0x228] sm:$0xff] }
  0x17   :  { %843 = vmatpush1.bf16.msra.mxu1 %v842_v63  ;;  %717 = vmatprep.subr.bf16.mxu0 %v716_v0  ;;  %v95_v32 = vld [vmem:[%s1815_s1 + $0x218] sm:$0xff]  ;;  %v726_v34 = vpack.c.bf16 %v88_v26, %v84_v25  ;;  %v854_v35 = vpack.c.bf16 %v90_v29, %v86_v27  ;;  %v728_v36 = vpack.c.bf16 %v97_v31, %v93_v30  ;;  %v92_v37 = vld [vmem:[%s1815_s1 + $0x200] sm:$0xff]  ;;  %v94_v39 = vld [vmem:[%s1815_s1 + $0x210] sm:$0xff]  ;;  %v1283_v15 = vsub.s32 2, %v1253_v1 }
  0x18   :  { %845 = vmatprep.subr.bf16.mxu1 %v844_v4  ;;  %v99_v33 = vld [vmem:[%s1815_s1 + $0x238] sm:$0xff]  ;;  %v96_v38 = vld [vmem:[%s1815_s1 + $0x220] sm:$0xff]  ;;  %v98_v41 = vld [vmem:[%s1815_s1 + $0x230] sm:$0xff] }
  0x19   :  { %v856_v40 = vpack.c.bf16 %v99_v33, %v95_v32  ;;  %v101_v42 = vld [vmem:[%s1815_s1 + $0x248] sm:$0xff]  ;;  %v103_v44 = vld [vmem:[%s1815_s1 + $0x258] sm:$0xff]  ;;  %v730_v46 = vpack.c.bf16 %v96_v38, %v92_v37  ;;  %v858_v47 = vpack.c.bf16 %v98_v41, %v94_v39  ;;  %v100_v49 = vld [vmem:[%s1815_s1 + $0x240] sm:$0xff]  ;;  %v318_v32 = vsub.s32 4, %v1253_v1 }
  0x1a   :  { %719 = vmatpush1.bf16.msra.mxu0 %v718_v10  ;;  %v105_v43 = vld [vmem:[%s1815_s1 + $0x268] sm:$0xff]  ;;  %v107_v45 = vld [vmem:[%s1815_s1 + $0x278] sm:$0xff]  ;;  %v104_v50 = vld [vmem:[%s1815_s1 + $0x260] sm:$0xff] }
  0x1b   :  { %847 = vmatpush1.bf16.msra.mxu1 %v846_v11  ;;  %721 = vmatprep.subr.bf16.mxu0 %v720_v12  ;;  %v732_v48 = vpack.c.bf16 %v105_v43, %v101_v42  ;;  %v102_v51 = vld [vmem:[%s1815_s1 + $0x250] sm:$0xff]  ;;  %v860_v53 = vpack.c.bf16 %v107_v45, %v103_v44  ;;  %v109_v55 = vld [vmem:[%s1815_s1 + $0x288] sm:$0xff]  ;;  %v111_v57 = vld [vmem:[%s1815_s1 + $0x298] sm:$0xff]  ;;  %v734_v59 = vpack.c.bf16 %v104_v50, %v100_v49 }
  0x1c   :  { %849 = vmatprep.subr.bf16.mxu1 %v848_v16  ;;  %v106_v54 = vld [vmem:[%s1815_s1 + $0x270] sm:$0xff]  ;;  %v113_v56 = vld [vmem:[%s1815_s1 + $0x2a8] sm:$0xff]  ;;  %v115_v58 = vld [vmem:[%s1815_s1 + $0x2b8] sm:$0xff] }
  0x1d   :  { %v862_v60 = vpack.c.bf16 %v106_v54, %v102_v51  ;;  %v736_v61 = vpack.c.bf16 %v113_v56, %v109_v55  ;;  %v108_v62 = vld [vmem:[%s1815_s1 + $0x280] sm:$0xff]  ;;  %v110_v0 = vld [vmem:[%s1815_s1 + $0x290] sm:$0xff]  ;;  %v864_v2 = vpack.c.bf16 %v115_v58, %v111_v57  ;;  %v117_v4 = vld [vmem:[%s1815_s1 + $0x2c8] sm:$0xff] }
  0x1e   :  { %723 = vmatpush1.bf16.msra.mxu0 %v722_v22  ;;  %v112_v63 = vld [vmem:[%s1815_s1 + $0x2a0] sm:$0xff]  ;;  %v114_v3 = vld [vmem:[%s1815_s1 + $0x2b0] sm:$0xff]  ;;  %v121_v5 = vld [vmem:[%s1815_s1 + $0x2e8] sm:$0xff] }
  0x1f   :  { %851 = vmatpush1.bf16.msra.mxu1 %v850_v23  ;;  %725 = vmatprep.subr.bf16.mxu0 %v724_v24  ;;  %v119_v6 = vld [vmem:[%s1815_s1 + $0x2d8] sm:$0xff]  ;;  %v738_v8 = vpack.c.bf16 %v112_v63, %v108_v62  ;;  %v116_v9 = vld [vmem:[%s1815_s1 + $0x2c0] sm:$0xff]  ;;  %v866_v10 = vpack.c.bf16 %v114_v3, %v110_v0  ;;  %v740_v11 = vpack.c.bf16 %v121_v5, %v117_v4  ;;  %v118_v13 = vld [vmem:[%s1815_s1 + $0x2d0] sm:$0xff]  ;;  %v1388_v5 = vsub.s32 0, %v1253_v1 }
  0x20   :  { %853 = vmatprep.subr.bf16.mxu1 %v852_v28  ;;  %v123_v7 = vld [vmem:[%s1815_s1 + $0x2f8] sm:$0xff]  ;;  %v120_v12 = vld [vmem:[%s1815_s1 + $0x2e0] sm:$0xff]  ;;  %v122_v14 = vld [vmem:[%s1815_s1 + $0x2f0] sm:$0xff] }
  0x21   :  { %v868_v16 = vpack.c.bf16 %v123_v7, %v119_v6  ;;  %v125_v17 = vld [vmem:[%s1815_s1 + $0x308] sm:$0xff]  ;;  %v693_v19 = vld [vmem:[%s1816_s0] sm:$0xff]   ;;  %v127_v20 = vld [vmem:[%s1815_s1 + $0x318] sm:$0xff]  ;;  %v742_v24 = vpack.c.bf16 %v120_v12, %v116_v9  ;;  %v870_v25 = vpack.c.bf16 %v122_v14, %v118_v13 }
  0x22   :  { %727 = vmatpush1.bf16.msra.mxu0 %v726_v34  ;;  %v129_v18 = vld [vmem:[%s1815_s1 + $0x328] sm:$0xff]  ;;  %v131_v21 = vld [vmem:[%s1815_s1 + $0x338] sm:$0xff]  ;;  %v1300_v22 = vunpack.c.l.bf16 %v693_v19  ;;  %v1302_v23 = vunpack.c.h.bf16 %v693_v19  ;;  %v124_v27 = vld [vmem:[%s1815_s1 + $0x300] sm:$0xff] }
  0x23   :  { %855 = vmatpush1.bf16.msra.mxu1 %v854_v35  ;;  %729 = vmatprep.subr.bf16.mxu0 %v728_v36  ;;  %v744_v26 = vpack.c.bf16 %v129_v18, %v125_v17  ;;  %v128_v28 = vld [vmem:[%s1815_s1 + $0x320] sm:$0xff]  ;;  %v126_v29 = vld [vmem:[%s1815_s1 + $0x310] sm:$0xff]  ;;  %v872_v33 = vpack.c.bf16 %v131_v21, %v127_v20  ;;  %v133_v35 = vld [vmem:[%s1815_s1 + $0x348] sm:$0xff]  ;;  %v322_v18 = vsub.s32 6, %v1253_v1 }
  0x24   :  { %857 = vmatprep.subr.bf16.mxu1 %v856_v40  ;;  %v315_v30 = vrot.slane %v1300_v22, %v1283_v15  ;;  %v331_v31 = vrot.slane %v1302_v23, %v1283_v15  ;;  %v130_v34 = vld [vmem:[%s1815_s1 + $0x330] sm:$0xff]  ;;  %v137_v36 = vld [vmem:[%s1815_s1 + $0x368] sm:$0xff]  ;;  %v135_v37 = vld [vmem:[%s1815_s1 + $0x358] sm:$0xff]  ;;  %v746_v40 = vpack.c.bf16 %v128_v28, %v124_v27  ;;  %v335_v51 = vrot.slane %v1302_v23, %v318_v32 }
  0x25   :  { %v139_v38 = vld [vmem:[%s1815_s1 + $0x378] sm:$0xff]  ;;  %v874_v41 = vpack.c.bf16 %v130_v34, %v126_v29  ;;  %v748_v42 = vpack.c.bf16 %v137_v36, %v133_v35  ;;  %v132_v43 = vld [vmem:[%s1815_s1 + $0x340] sm:$0xff]  ;;  %v134_v45 = vld [vmem:[%s1815_s1 + $0x350] sm:$0xff]  ;;  %v311_v20 = vrot.slane %v1300_v22, %v1388_v5  ;;  %v327_v21 = vrot.slane %v1302_v23, %v1388_v5 }
  0x26   :  { %731 = vmatpush1.bf16.msra.mxu0 %v730_v46  ;;  %v342_v39 = vsel %vm340_vm0, %v331_v31, %v315_v30  ;;  %v136_v44 = vld [vmem:[%s1815_s1 + $0x360] sm:$0xff]  ;;  %v319_v46 = vrot.slane %v1300_v22, %v318_v32  ;;  %v141_v49 = vld [vmem:[%s1815_s1 + $0x388] sm:$0xff]  ;;  %v143_v52 = vld [vmem:[%s1815_s1 + $0x398] sm:$0xff]  ;;  %v323_v35 = vrot.slane %v1300_v22, %v322_v18  ;;  %v339_v36 = vrot.slane %v1302_v23, %v322_v18 }
  0x27   :  { %859 = vmatpush1.bf16.msra.mxu1 %v858_v47  ;;  %733 = vmatprep.subr.bf16.mxu0 %v732_v48  ;;  %v876_v47 = vpack.c.bf16 %v139_v38, %v135_v37  ;;  %v138_v48 = vld [vmem:[%s1815_s1 + $0x370] sm:$0xff]  ;;  %v145_v50 = vld [vmem:[%s1815_s1 + $0x3a8] sm:$0xff]  ;;  %v750_v54 = vpack.c.bf16 %v136_v44, %v132_v43  ;;  %v140_v58 = vld [vmem:[%s1815_s1 + $0x380] sm:$0xff]  ;;  %v341_v37 = vsel %vm340_vm0, %v327_v21, %v311_v20 }
  0x28   :  { %861 = vmatprep.subr.bf16.mxu1 %v860_v53  ;;  %413 = vmatprep.mubr.f32.mxu0 %v342_v39  ;;  %v147_v53 = vld [vmem:[%s1815_s1 + $0x3b8] sm:$0xff]  ;;  %v1361_v55 = vsel %vm340_vm0, %v335_v51, %v319_v46  ;;  %v878_v56 = vpack.c.bf16 %v138_v48, %v134_v45  ;;  %v752_v57 = vpack.c.bf16 %v145_v50, %v141_v49  ;;  %v146_v62 = vld [vmem:[%s1815_s1 + $0x3b0] sm:$0xff]  ;;  %v149_v63 = vld [vmem:[%s1815_s1 + $0x3c8] sm:$0xff] }
  0x29   :  { %555 = vmatprep.mubr.f32.mxu1 %v342_v39  ;;  %v153_v0 = vld [vmem:[%s1815_s1 + $0x3e8] sm:$0xff]  ;;  %v155_v3 = vld [vmem:[%s1815_s1 + $0x3f8] sm:$0xff]  ;;  %v152_v9 = vld [vmem:[%s1815_s1 + $0x3e0] sm:$0xff]  ;;  %v344_v48 = vsel %vm340_vm0, %v339_v36, %v323_v35 }
  0x2a   :  { %735 = vmatpush1.bf16.msra.mxu0 %v734_v59  ;;  %v144_v59 = vld [vmem:[%s1815_s1 + $0x3a0] sm:$0xff]  ;;  %v756_v7 = vpack.c.bf16 %v153_v0, %v149_v63  ;;  %v154_v12 = vld [vmem:[%s1815_s1 + $0x3f0] sm:$0xff]  ;;  %v157_v13 = vld [vmem:[%s1815_s1 + $0x408] sm:$0xff] }
  0x2b   :  { %863 = vmatpush1.bf16.msra.mxu1 %v862_v60  ;;  %737 = vmatprep.subr.bf16.mxu0 %v736_v61  ;;  %v142_v60 = vld [vmem:[%s1815_s1 + $0x390] sm:$0xff]  ;;  %v880_v61 = vpack.c.bf16 %v147_v53, %v143_v52  ;;  %v754_v4 = vpack.c.bf16 %v144_v59, %v140_v58  ;;  %v161_v14 = vld [vmem:[%s1815_s1 + $0x428] sm:$0xff]  ;;  %v163_v17 = vld [vmem:[%s1815_s1 + $0x438] sm:$0xff] }
  0x2c   :  { %865 = vmatprep.subr.bf16.mxu1 %v864_v2  ;;  %v151_v2 = vld [vmem:[%s1815_s1 + $0x3d8] sm:$0xff]  ;;  %v882_v6 = vpack.c.bf16 %v146_v62, %v142_v60  ;;  %v160_v27 = vld [vmem:[%s1815_s1 + $0x420] sm:$0xff]  ;;  %v158_v28 = vld [vmem:[%s1815_s1 + $0x410] sm:$0xff] }
  0x2d   :  { %v162_v30 = vld [vmem:[%s1815_s1 + $0x430] sm:$0xff]  ;;  %v165_v31 = vld [vmem:[%s1815_s1 + $0x448] sm:$0xff]  ;;  %v171_v34 = vld [vmem:[%s1815_s1 + $0x478] sm:$0xff] }
  0x2e   :  { %739 = vmatpush1.bf16.msra.mxu0 %v738_v8  ;;  %v148_v8 = vld [vmem:[%s1815_s1 + $0x3c0] sm:$0xff]  ;;  %v169_v32 = vld [vmem:[%s1815_s1 + $0x468] sm:$0xff]  ;;  %v890_v39 = vpack.c.bf16 %v162_v30, %v158_v28  ;;  %v166_v22 = vld [vmem:[%s1815_s1 + $0x450] sm:$0xff] }
  0x2f   :  { %867 = vmatpush1.bf16.msra.mxu1 %v866_v10  ;;  %741 = vmatprep.subr.bf16.mxu0 %v740_v11  ;;  %v150_v10 = vld [vmem:[%s1815_s1 + $0x3d0] sm:$0xff]  ;;  %v884_v11 = vpack.c.bf16 %v155_v3, %v151_v2  ;;  %v758_v19 = vpack.c.bf16 %v152_v9, %v148_v8  ;;  %v173_v44 = vld [vmem:[%s1815_s1 + $0x488] sm:$0xff]  ;;  %v175_v46 = vld [vmem:[%s1815_s1 + $0x498] sm:$0xff] }
  0x30   :  { %869 = vmatprep.subr.bf16.mxu1 %v868_v16  ;;  %v159_v16 = vld [vmem:[%s1815_s1 + $0x418] sm:$0xff]  ;;  %v170_v43 = vld [vmem:[%s1815_s1 + $0x470] sm:$0xff]  ;;  %v177_v45 = vld [vmem:[%s1815_s1 + $0x4a8] sm:$0xff] }
  0x31   :  { %v888_v29 = vpack.c.bf16 %v163_v17, %v159_v16  ;;  %v894_v50 = vpack.c.bf16 %v170_v43, %v166_v22  ;;  %v768_v51 = vpack.c.bf16 %v177_v45, %v173_v44  ;;  %v172_v52 = vld [vmem:[%s1815_s1 + $0x480] sm:$0xff]  ;;  %v181_v58 = vld [vmem:[%s1815_s1 + $0x4c8] sm:$0xff]  ;;  %v183_v60 = vld [vmem:[%s1815_s1 + $0x4d8] sm:$0xff] }
  0x32   :  { %743 = vmatpush1.bf16.msra.mxu0 %v742_v24  ;;  %v886_v24 = vpack.c.bf16 %v154_v12, %v150_v10  ;;  %v176_v53 = vld [vmem:[%s1815_s1 + $0x4a0] sm:$0xff]  ;;  %v185_v59 = vld [vmem:[%s1815_s1 + $0x4e8] sm:$0xff]  ;;  %v191_v10 = vld [vmem:[%s1815_s1 + $0x518] sm:$0xff] }
  0x33   :  { %871 = vmatpush1.bf16.msra.mxu1 %v870_v25  ;;  %745 = vmatprep.subr.bf16.mxu0 %v744_v26  ;;  %v760_v25 = vpack.c.bf16 %v161_v14, %v157_v13  ;;  %v156_v26 = vld [vmem:[%s1815_s1 + $0x400] sm:$0xff]  ;;  %v770_v62 = vpack.c.bf16 %v176_v53, %v172_v52  ;;  %v772_v0 = vpack.c.bf16 %v185_v59, %v181_v58  ;;  %v189_v8 = vld [vmem:[%s1815_s1 + $0x508] sm:$0xff]  ;;  %v190_v18 = vld [vmem:[%s1815_s1 + $0x510] sm:$0xff] }
  0x34   :  { %873 = vmatprep.subr.bf16.mxu1 %v872_v33  ;;  %v167_v33 = vld [vmem:[%s1815_s1 + $0x458] sm:$0xff]  ;;  %v762_v38 = vpack.c.bf16 %v160_v27, %v156_v26  ;;  %v180_v2 = vld [vmem:[%s1815_s1 + $0x4c0] sm:$0xff]  ;;  %v193_v9 = vld [vmem:[%s1815_s1 + $0x528] sm:$0xff] }
  0x35   :  { %v892_v23 = vpack.c.bf16 %v171_v34, %v167_v33  ;;  %v184_v3 = vld [vmem:[%s1815_s1 + $0x4e0] sm:$0xff]  ;;  %v776_v14 = vpack.c.bf16 %v193_v9, %v189_v8  ;;  %v194_v20 = vld [vmem:[%s1815_s1 + $0x530] sm:$0xff]  ;;  %v197_v21 = vld [vmem:[%s1815_s1 + $0x548] sm:$0xff] }
  0x36   :  { %747 = vmatpush1.bf16.msra.mxu0 %v746_v40  ;;  %v764_v40 = vpack.c.bf16 %v169_v32, %v165_v31  ;;  %v774_v12 = vpack.c.bf16 %v184_v3, %v180_v2  ;;  %v188_v16 = vld [vmem:[%s1815_s1 + $0x500] sm:$0xff]  ;;  %v203_v26 = vld [vmem:[%s1815_s1 + $0x578] sm:$0xff]  ;;  %v906_v28 = vpack.c.bf16 %v194_v20, %v190_v18  ;;  %v198_v32 = vld [vmem:[%s1815_s1 + $0x550] sm:$0xff] }
  0x37   :  { %875 = vmatpush1.bf16.msra.mxu1 %v874_v41  ;;  %749 = vmatprep.subr.bf16.mxu0 %v748_v42  ;;  %v164_v41 = vld [vmem:[%s1815_s1 + $0x440] sm:$0xff]  ;;  %v202_v34 = vld [vmem:[%s1815_s1 + $0x570] sm:$0xff]  ;;  %v205_v35 = vld [vmem:[%s1815_s1 + $0x588] sm:$0xff] }
  0x38   :  { %877 = vmatprep.subr.bf16.mxu1 %v876_v47  ;;  %v168_v42 = vld [vmem:[%s1815_s1 + $0x460] sm:$0xff]  ;;  %v179_v47 = vld [vmem:[%s1815_s1 + $0x4b8] sm:$0xff]  ;;  %v209_v36 = vld [vmem:[%s1815_s1 + $0x5a8] sm:$0xff] }
  0x39   :  { %v766_v49 = vpack.c.bf16 %v168_v42, %v164_v41  ;;  %v192_v17 = vld [vmem:[%s1815_s1 + $0x520] sm:$0xff]  ;;  %v784_v41 = vpack.c.bf16 %v209_v36, %v205_v35  ;;  %v210_v44 = vld [vmem:[%s1815_s1 + $0x5b0] sm:$0xff]  ;;  %v213_v45 = vld [vmem:[%s1815_s1 + $0x5c8] sm:$0xff] }
  0x3a   :  { %751 = vmatpush1.bf16.msra.mxu0 %v750_v54  ;;  %v174_v54 = vld [vmem:[%s1815_s1 + $0x490] sm:$0xff]  ;;  %v778_v27 = vpack.c.bf16 %v192_v17, %v188_v16  ;;  %v196_v30 = vld [vmem:[%s1815_s1 + $0x540] sm:$0xff]  ;;  %v221_v58 = vld [vmem:[%s1815_s1 + $0x608] sm:$0xff] }
  0x3b   :  { %879 = vmatpush1.bf16.msra.mxu1 %v878_v56  ;;  %753 = vmatprep.subr.bf16.mxu0 %v752_v57  ;;  %v896_v56 = vpack.c.bf16 %v179_v47, %v175_v46  ;;  %v178_v57 = vld [vmem:[%s1815_s1 + $0x4b0] sm:$0xff]  ;;  %v200_v31 = vld [vmem:[%s1815_s1 + $0x560] sm:$0xff]  ;;  %v217_v46 = vld [vmem:[%s1815_s1 + $0x5e8] sm:$0xff] }
  0x3c   :  { %881 = vmatprep.subr.bf16.mxu1 %v880_v61  ;;  %v187_v61 = vld [vmem:[%s1815_s1 + $0x4f8] sm:$0xff]  ;;  %v898_v63 = vpack.c.bf16 %v178_v57, %v174_v54  ;;  %v204_v42 = vld [vmem:[%s1815_s1 + $0x580] sm:$0xff]  ;;  %v214_v54 = vld [vmem:[%s1815_s1 + $0x5d0] sm:$0xff] }
  0x3d   :  { %v208_v22 = vld [vmem:[%s1815_s1 + $0x5a0] sm:$0xff]  ;;  %v215_v47 = vld [vmem:[%s1815_s1 + $0x5d8] sm:$0xff]  ;;  %v218_v57 = vld [vmem:[%s1815_s1 + $0x5f0] sm:$0xff] }
  0x3e   :  { %755 = vmatpush1.bf16.msra.mxu0 %v754_v4  ;;  %v182_v4 = vld [vmem:[%s1815_s1 + $0x4d0] sm:$0xff]  ;;  %v212_v52 = vld [vmem:[%s1815_s1 + $0x5c0] sm:$0xff]  ;;  %v225_v59 = vld [vmem:[%s1815_s1 + $0x628] sm:$0xff] }
  0x3f   :  { %883 = vmatpush1.bf16.msra.mxu1 %v882_v6  ;;  %757 = vmatprep.subr.bf16.mxu0 %v756_v7  ;;  %v900_v6 = vpack.c.bf16 %v187_v61, %v183_v60  ;;  %v186_v7 = vld [vmem:[%s1815_s1 + $0x4f0] sm:$0xff]  ;;  %v216_v53 = vld [vmem:[%s1815_s1 + $0x5e0] sm:$0xff]  ;;  %v223_v60 = vld [vmem:[%s1815_s1 + $0x618] sm:$0xff] }
  0x40   :  { %885 = vmatprep.subr.bf16.mxu1 %v884_v11  ;;  %v195_v11 = vld [vmem:[%s1815_s1 + $0x538] sm:$0xff]  ;;  %v902_v13 = vpack.c.bf16 %v186_v7, %v182_v4  ;;  %v220_v2 = vld [vmem:[%s1815_s1 + $0x600] sm:$0xff]  ;;  %v222_v4 = vld [vmem:[%s1815_s1 + $0x610] sm:$0xff] }
  0x41   :  { %v227_v61 = vld [vmem:[%s1815_s1 + $0x638] sm:$0xff]  ;;  %v224_v3 = vld [vmem:[%s1815_s1 + $0x620] sm:$0xff]  ;;  %v226_v7 = vld [vmem:[%s1815_s1 + $0x630] sm:$0xff] }
  0x42   :  { %759 = vmatpush1.bf16.msra.mxu0 %v758_v19  ;;  %v904_v19 = vpack.c.bf16 %v195_v11, %v191_v10  ;;  %v229_v8 = vld [vmem:[%s1815_s1 + $0x648] sm:$0xff]  ;;  %v231_v10 = vld [vmem:[%s1815_s1 + $0x658] sm:$0xff]  ;;  %v228_v16 = vld [vmem:[%s1815_s1 + $0x640] sm:$0xff] }
  0x43   :  { %887 = vmatpush1.bf16.msra.mxu1 %v886_v24  ;;  %761 = vmatprep.subr.bf16.mxu0 %v760_v25  ;;  %v201_v24 = vld [vmem:[%s1815_s1 + $0x568] sm:$0xff]  ;;  %v199_v25 = vld [vmem:[%s1815_s1 + $0x558] sm:$0xff]  ;;  %v232_v17 = vld [vmem:[%s1815_s1 + $0x660] sm:$0xff] }
  0x44   :  { %889 = vmatprep.subr.bf16.mxu1 %v888_v29  ;;  %v780_v29 = vpack.c.bf16 %v201_v24, %v197_v21  ;;  %v908_v33 = vpack.c.bf16 %v203_v26, %v199_v25  ;;  %v233_v9 = vld [vmem:[%s1815_s1 + $0x668] sm:$0xff]  ;;  %v235_v11 = vld [vmem:[%s1815_s1 + $0x678] sm:$0xff]  ;;  %v230_v18 = vld [vmem:[%s1815_s1 + $0x650] sm:$0xff] }
  0x45   :  { %414 = vmatmul.mubr.f32.vlgmr.msra.gmra.mrb[0].mxu0 %v341_v37  ;;  %v234_v20 = vld [vmem:[%s1815_s1 + $0x670] sm:$0xff]  ;;  %v237_v21 = vld [vmem:[%s1815_s1 + $0x688] sm:$0xff]  ;;  %v239_v25 = vld [vmem:[%s1815_s1 + $0x698] sm:$0xff] }
  0x46   :  { %763 = vmatpush1.bf16.msra.mxu0 %v762_v38  ;;  %556 = vmatmul.mubr.f32.vlgmr.msra.gmra.mrb[0].mxu1 %v341_v37  ;;  %v207_v37 = vld [vmem:[%s1815_s1 + $0x598] sm:$0xff]  ;;  %v241_v24 = vld [vmem:[%s1815_s1 + $0x6a8] sm:$0xff] }
  0x47   :  { %891 = vmatpush1.bf16.msra.mxu1 %v890_v39  ;;  %765 = vmatprep.subr.bf16.mxu0 %v764_v40  ;;  %v211_v38 = vld [vmem:[%s1815_s1 + $0x5b8] sm:$0xff]  ;;  %v782_v39 = vpack.c.bf16 %v200_v31, %v196_v30  ;;  %v910_v40 = vpack.c.bf16 %v202_v34, %v198_v32  ;;  %v236_v30 = vld [vmem:[%s1815_s1 + $0x680] sm:$0xff]  ;;  %v238_v32 = vld [vmem:[%s1815_s1 + $0x690] sm:$0xff] }
  0x48   :  { %893 = vmatprep.subr.bf16.mxu1 %v892_v23  ;;  %484 = vmatprep.mubr.f32.mxu0 %v344_v48  ;;  %v206_v23 = vld [vmem:[%s1815_s1 + $0x590] sm:$0xff]  ;;  %v912_v43 = vpack.c.bf16 %v211_v38, %v207_v37  ;;  %v243_v26 = vld [vmem:[%s1815_s1 + $0x6b8] sm:$0xff]  ;;  %v240_v31 = vld [vmem:[%s1815_s1 + $0x6a0] sm:$0xff] }
  0x49   :  { %626 = vmatprep.mubr.f32.mxu1 %v344_v48  ;;  %v219_v48 = vld [vmem:[%s1815_s1 + $0x5f8] sm:$0xff]  ;;  %v242_v34 = vld [vmem:[%s1815_s1 + $0x6b0] sm:$0xff]  ;;  %v245_v35 = vld [vmem:[%s1815_s1 + $0x6c8] sm:$0xff] }
  0x4a   :  { %767 = vmatpush1.bf16.msra.mxu0 %v766_v49  ;;  %v786_v49 = vpack.c.bf16 %v208_v22, %v204_v42  ;;  %v249_v36 = vld [vmem:[%s1815_s1 + $0x6e8] sm:$0xff]  ;;  %v247_v37 = vld [vmem:[%s1815_s1 + $0x6d8] sm:$0xff]  ;;  %v244_v42 = vld [vmem:[%s1815_s1 + $0x6c0] sm:$0xff] }
  0x4b   :  { %895 = vmatpush1.bf16.msra.mxu1 %v894_v50  ;;  %769 = vmatprep.subr.bf16.mxu0 %v768_v51  ;;  %v914_v50 = vpack.c.bf16 %v210_v44, %v206_v23  ;;  %v788_v51 = vpack.c.bf16 %v217_v46, %v213_v45  ;;  %v251_v38 = vld [vmem:[%s1815_s1 + $0x6f8] sm:$0xff]  ;;  %v248_v22 = vld [vmem:[%s1815_s1 + $0x6e0] sm:$0xff]  ;;  %v246_v23 = vld [vmem:[%s1815_s1 + $0x6d0] sm:$0xff] }
  0x4c   :  { %897 = vmatprep.subr.bf16.mxu1 %v896_v56  ;;  %v916_v56 = vpack.c.bf16 %v219_v48, %v215_v47  ;;  %v250_v44 = vld [vmem:[%s1815_s1 + $0x6f0] sm:$0xff]  ;;  %v253_v45 = vld [vmem:[%s1815_s1 + $0x708] sm:$0xff]  ;;  %v255_v47 = vld [vmem:[%s1815_s1 + $0x718] sm:$0xff] }
  0x4d   :  { %v257_v46 = vld [vmem:[%s1815_s1 + $0x728] sm:$0xff]  ;;  %v259_v48 = vld [vmem:[%s1815_s1 + $0x738] sm:$0xff] }
  0x4e   :  { %771 = vmatpush1.bf16.msra.mxu0 %v770_v62  ;;  %v790_v62 = vpack.c.bf16 %v216_v53, %v212_v52  ;;  %v252_v52 = vld [vmem:[%s1815_s1 + $0x700] sm:$0xff] }
  0x4f   :  { %899 = vmatpush1.bf16.msra.mxu1 %v898_v63  ;;  %773 = vmatprep.subr.bf16.mxu0 %v772_v0  ;;  %v918_v63 = vpack.c.bf16 %v218_v57, %v214_v54  ;;  %v792_v0 = vpack.c.bf16 %v225_v59, %v221_v58  ;;  %v256_v53 = vld [vmem:[%s1815_s1 + $0x720] sm:$0xff]  ;;  %v254_v54 = vld [vmem:[%s1815_s1 + $0x710] sm:$0xff]  ;;  %v261_v58 = vld [vmem:[%s1815_s1 + $0x748] sm:$0xff] }
  0x50   :  { %901 = vmatprep.subr.bf16.mxu1 %v900_v6  ;;  %v920_v6 = vpack.c.bf16 %v227_v61, %v223_v60  ;;  %v258_v57 = vld [vmem:[%s1815_s1 + $0x730] sm:$0xff]  ;;  %v265_v59 = vld [vmem:[%s1815_s1 + $0x768] sm:$0xff]  ;;  %v263_v60 = vld [vmem:[%s1815_s1 + $0x758] sm:$0xff] }
  0x51   :  { %v267_v61 = vld [vmem:[%s1815_s1 + $0x778] sm:$0xff] }
  0x52   :  { %775 = vmatpush1.bf16.msra.mxu0 %v774_v12  ;;  %v794_v12 = vpack.c.bf16 %v224_v3, %v220_v2  ;;  %v260_v2 = vld [vmem:[%s1815_s1 + $0x740] sm:$0xff] }
  0x53   :  { %903 = vmatpush1.bf16.msra.mxu1 %v902_v13  ;;  %777 = vmatprep.subr.bf16.mxu0 %v776_v14  ;;  %v922_v13 = vpack.c.bf16 %v226_v7, %v222_v4  ;;  %v796_v14 = vpack.c.bf16 %v233_v9, %v229_v8  ;;  %v264_v3 = vld [vmem:[%s1815_s1 + $0x760] sm:$0xff]  ;;  %v262_v4 = vld [vmem:[%s1815_s1 + $0x750] sm:$0xff]  ;;  %v269_v8 = vld [vmem:[%s1815_s1 + $0x788] sm:$0xff] }
  0x54   :  { %905 = vmatprep.subr.bf16.mxu1 %v904_v19  ;;  %v924_v19 = vpack.c.bf16 %v235_v11, %v231_v10  ;;  %v266_v7 = vld [vmem:[%s1815_s1 + $0x770] sm:$0xff]  ;;  %v273_v9 = vld [vmem:[%s1815_s1 + $0x7a8] sm:$0xff]  ;;  %v271_v10 = vld [vmem:[%s1815_s1 + $0x798] sm:$0xff] }
  0x55   :  { %v275_v11 = vld [vmem:[%s1815_s1 + $0x7b8] sm:$0xff] }
  0x56   :  { %779 = vmatpush1.bf16.msra.mxu0 %v778_v27  ;;  %v798_v27 = vpack.c.bf16 %v232_v17, %v228_v16  ;;  %v268_v16 = vld [vmem:[%s1815_s1 + $0x780] sm:$0xff] }
  0x57   :  { %907 = vmatpush1.bf16.msra.mxu1 %v906_v28  ;;  %781 = vmatprep.subr.bf16.mxu0 %v780_v29  ;;  %v926_v28 = vpack.c.bf16 %v234_v20, %v230_v18  ;;  %v800_v29 = vpack.c.bf16 %v241_v24, %v237_v21  ;;  %v272_v17 = vld [vmem:[%s1815_s1 + $0x7a0] sm:$0xff]  ;;  %v270_v18 = vld [vmem:[%s1815_s1 + $0x790] sm:$0xff]  ;;  %v277_v21 = vld [vmem:[%s1815_s1 + $0x7c8] sm:$0xff] }
  0x58   :  { %909 = vmatprep.subr.bf16.mxu1 %v908_v33  ;;  %v928_v33 = vpack.c.bf16 %v243_v26, %v239_v25  ;;  %v274_v20 = vld [vmem:[%s1815_s1 + $0x7b0] sm:$0xff]  ;;  %v281_v24 = vld [vmem:[%s1815_s1 + $0x7e8] sm:$0xff]  ;;  %v279_v25 = vld [vmem:[%s1815_s1 + $0x7d8] sm:$0xff] }
  0x59   :  { %v283_v26 = vld [vmem:[%s1815_s1 + $0x7f8] sm:$0xff] }
  0x5a   :  { %783 = vmatpush1.bf16.msra.mxu0 %v782_v39  ;;  %v802_v39 = vpack.c.bf16 %v240_v31, %v236_v30  ;;  %v276_v30 = vld [vmem:[%s1815_s1 + $0x7c0] sm:$0xff] }
  0x5b   :  { %911 = vmatpush1.bf16.msra.mxu1 %v910_v40  ;;  %785 = vmatprep.subr.bf16.mxu0 %v784_v41  ;;  %v930_v40 = vpack.c.bf16 %v242_v34, %v238_v32  ;;  %v804_v41 = vpack.c.bf16 %v249_v36, %v245_v35  ;;  %v280_v31 = vld [vmem:[%s1815_s1 + $0x7e0] sm:$0xff]  ;;  %v948_v32 = vpack.c.bf16 %v283_v26, %v279_v25  ;;  %v282_v34 = vld [vmem:[%s1815_s1 + $0x7f0] sm:$0xff] }
  0x5c   :  { %913 = vmatprep.subr.bf16.mxu1 %v912_v43  ;;  %v932_v43 = vpack.c.bf16 %v251_v38, %v247_v37  ;;  %v822_v35 = vpack.c.bf16 %v280_v31, %v276_v30  ;;  %v10_v37 = vstv %s1817_s4  ;;  %v284_v38 = vld [vmem:[%s1818_s2] sm:$0xf] }
  0x5d   :  { %11 = vst [vmem:[#allocation2] sm:$0x1] %v10_v37 }
  0x5e   :  { %787 = vmatpush1.bf16.msra.mxu0 %v786_v49  ;;  %v806_v49 = vpack.c.bf16 %v248_v22, %v244_v42  ;;  %v637_v42 = vld [vmem:[%s1819_s3] sm:$0xf] }
  0x5f   :  { %915 = vmatpush1.bf16.msra.mxu1 %v914_v50  ;;  %789 = vmatprep.subr.bf16.mxu0 %v788_v51  ;;  %v934_v50 = vpack.c.bf16 %v250_v44, %v246_v23  ;;  %v808_v51 = vpack.c.bf16 %v257_v46, %v253_v45  ;;  %v642_v45 = vrot.slane %v637_v42, %v1388_v5 }
  0x60   :  { %917 = vmatprep.subr.bf16.mxu1 %v916_v56  ;;  %v936_v56 = vpack.c.bf16 %v259_v48, %v255_v47 }
  0x62   :  { %791 = vmatpush1.bf16.msra.mxu0 %v790_v62  ;;  %v810_v62 = vpack.c.bf16 %v256_v53, %v252_v52 }
  0x63   :  { %919 = vmatpush1.bf16.msra.mxu1 %v918_v63  ;;  %793 = vmatprep.subr.bf16.mxu0 %v792_v0  ;;  %v938_v63 = vpack.c.bf16 %v258_v57, %v254_v54  ;;  %v812_v0 = vpack.c.bf16 %v265_v59, %v261_v58 }
  0x64   :  { %921 = vmatprep.subr.bf16.mxu1 %v920_v6  ;;  %v940_v6 = vpack.c.bf16 %v267_v61, %v263_v60 }
  0x66   :  { %795 = vmatpush1.bf16.msra.mxu0 %v794_v12  ;;  %v814_v12 = vpack.c.bf16 %v264_v3, %v260_v2 }
  0x67   :  { %923 = vmatpush1.bf16.msra.mxu1 %v922_v13  ;;  %797 = vmatprep.subr.bf16.mxu0 %v796_v14  ;;  %v942_v13 = vpack.c.bf16 %v266_v7, %v262_v4  ;;  %v816_v14 = vpack.c.bf16 %v273_v9, %v269_v8 }
  0x68   :  { %925 = vmatprep.subr.bf16.mxu1 %v924_v19  ;;  %v944_v19 = vpack.c.bf16 %v275_v11, %v271_v10 }
  0x6a   :  { %799 = vmatpush1.bf16.msra.mxu0 %v798_v27  ;;  %v818_v27 = vpack.c.bf16 %v272_v17, %v268_v16 }
  0x6b   :  { %927 = vmatpush1.bf16.msra.mxu1 %v926_v28  ;;  %801 = vmatprep.subr.bf16.mxu0 %v800_v29  ;;  %v946_v28 = vpack.c.bf16 %v274_v20, %v270_v18  ;;  %v820_v29 = vpack.c.bf16 %v281_v24, %v277_v21 }
  0x6c   :  { %929 = vmatprep.subr.bf16.mxu1 %v928_v33  ;;  %v278_v33 = vld [vmem:[%s1815_s1 + $0x7d0] sm:$0xff] }
  0x6d   :  { %v950_v36 = vpack.c.bf16 %v282_v34, %v278_v33 }
  0x6e   :  { %803 = vmatpush1.bf16.msra.mxu0 %v802_v39  ;;  %v292_v39 = vsub.s32 1, %v1253_v1 }
  0x6f   :  { %931 = vmatpush1.bf16.msra.mxu1 %v930_v40  ;;  %805 = vmatprep.subr.bf16.mxu0 %v804_v41  ;;  %v300_v40 = vsub.s32 3, %v1253_v1  ;;  %v289_v41 = vrot.slane %v284_v38, %v1388_v5 }
  0x70   :  { %933 = vmatprep.subr.bf16.mxu1 %v932_v43  ;;  %v293_v22 = vrot.slane %v284_v38, %v292_v39 }
  0x71   :  { %v301_v23 = vrot.slane %v284_v38, %v300_v40  ;;  %v654_v57 = vrot.slane %v637_v42, %v300_v40 }
  0x72   :  { %807 = vmatpush1.bf16.msra.mxu0 %v806_v49  ;;  %v650_v49 = vrot.slane %v637_v42, %v1283_v15 }
  0x73   :  { %935 = vmatpush1.bf16.msra.mxu1 %v934_v50  ;;  %809 = vmatprep.subr.bf16.mxu0 %v808_v51  ;;  %v646_v50 = vrot.slane %v637_v42, %v292_v39 }
  0x74   :  { %937 = vmatprep.subr.bf16.mxu1 %v936_v56 }
  0x76   :  { %811 = vmatpush1.bf16.msra.mxu0 %v810_v62 }
  0x77   :  { %939 = vmatpush1.bf16.msra.mxu1 %v938_v63  ;;  %813 = vmatprep.subr.bf16.mxu0 %v812_v0 }
  0x78   :  { %941 = vmatprep.subr.bf16.mxu1 %v940_v6  ;;  %v691_v6 = vld [vmem:[#allocation2] ss:$0 sm:$0xff] }
  0x7a   :  { %815 = vmatpush1.bf16.msra.mxu0 %v814_v12 }
  0x7b   :  { %943 = vmatpush1.bf16.msra.mxu1 %v942_v13  ;;  %817 = vmatprep.subr.bf16.mxu0 %v816_v14 }
  0x7c   :  { %945 = vmatprep.subr.bf16.mxu1 %v944_v19 }
  0x7e   :  { %819 = vmatpush1.bf16.msra.mxu0 %v818_v27 }
  0x7f   :  { %947 = vmatpush1.bf16.msra.mxu1 %v946_v28  ;;  %821 = vmatprep.subr.bf16.mxu0 %v820_v29 }
  0x80   :  { %949 = vmatprep.subr.bf16.mxu1 %v948_v32 }
  0x82   :  { %823 = vmatpush1.bf16.msra.mxu0 %v822_v35 }
  0x83   :  { %951 = vmatpush1.bf16.msra.mxu1 %v950_v36 }
  0x85   :  { %485 = vmatmul.mubr.f32.vlgmr.msra.gmra.mrb[0].mxu0 %v1361_v55 }
  0x86   :  { %627 = vmatmul.mubr.f32.vlgmr.msra.gmra.mrb[0].mxu1 %v1361_v55  ;;  %v297_v55 = vrot.slane %v284_v38, %v1283_v15 }
 0x158   :  { %v486_v43 = vpop.f32.mrb[0].mxu0 }
 0x159   :  { %v952_v44 = vadd.f32 %v486_v43, %v289_v41  ;;  %v628_v46 = vpop.f32.mrb[0].mxu1  ;;  %v488_v47 = vpop.f32.mrb[1].mxu0 }
 0x15a   :  { %v954_v48 = vadd.f32 %v628_v46, %v297_v55  ;;  %v953_v1 = vadd.f32 %v488_v47, %v293_v22  ;;  %v630_v51 = vpop.f32.mrb[1].mxu1 }
 0x15b   :  { %v633_v52 = vmax.f32 %v952_v44, 0.0  ;;  %v955_v53 = vadd.f32 %v630_v51, %v301_v23 }
 0x15c   :  { %v635_v54 = vmax.f32 %v954_v48, 0.0  ;;  %v634_v56 = vmax.f32 %v953_v1, 0.0 }
 0x15d   :  { %v659_v58 = vmul.f32 %v642_v45, %v633_v52  ;;  %v636_v59 = vmax.f32 %v955_v53, 0.0 }
 0x15e   :  { %v661_v60 = vmul.f32 %v650_v49, %v635_v54  ;;  %v660_v61 = vmul.f32 %v646_v50, %v634_v56 }
 0x15f   :  { %v664_v62 = vsel %vm663_vm1, %v659_v58, 0.0  ;;  %v662_v5 = vmul.f32 %v654_v57, %v636_v59 }
 0x160   :  { %v665_v63 = vsel %vm663_vm1, %v660_v61, 0.0  ;;  %v667_v2 = vsel %vm663_vm1, %v661_v60, 0.0 }
 0x161   :  { %v666_v0 = vadd.f32 %v665_v63, %v664_v62  ;;  %v669_v15 = vsel %vm663_vm1, %v662_v5, 0.0 }
 0x163   :  { %v668_v3 = vadd.f32 %v667_v2, %v666_v0 }
 0x165   :  { %v670_v4 = vadd.f32 %v669_v15, %v668_v3 }
 0x167   :  { %671 = vadd.xlane.f32.xlu0 %v670_v4 }
 0x1f4   :  { %v672_v7 = vpop.xlane.xlu0 %671 }
 0x1f5   :  { %v680_v8 = vadd.f32 %v691_v6, %v672_v7 }
 0x1f7   :  { %v681_v9 = vmul.f32 0.5, %v680_v8 }
 0x1f9   :  { %960 = vtanh.f32 %v681_v9 }
 0x203   :  { %v961_v10 = vpop.eup %960 }
 0x204   :  { %v683_v11 = vadd.f32 1.0, %v961_v10 }
 0x206   :  { %v684_v12 = vmul.f32 0.5, %v683_v11 }
 0x208   :  { %686 = vst.msk [vmem:[%s1820_s5] sm:$0x3] %vm685_vm2, %v684_v12 }

</bundles_post_ra>
